<compile_context>
chip_gen: v6e
topology: v6e:2x2x1
jax: 0.10.0
libtpu: 0.0.40
codegen_flags: <defaults>
</compile_context>

<pallas_src>
import numpy as np
import jax
import jax.numpy as jnp
from jax import lax
from jax.experimental import pallas as pl
from jax.experimental.pallas import tpu as pltpu


def _sigmoid(x):
    # EUP-friendly sigmoid: one tanh (EUP slot) instead of exp + VALU divide.
    return 0.5 * (jnp.tanh(0.5 * x) + 1.0)


def _tnet_lstm_kernel(x_ref, w_ih0_ref, w_ihr_ref, w_hh_ref, b_ref,
                      w_fc_ref, b_fc_ref, out_ref,
                      seq_buf, gx_buf, h_buf, c_buf):
    SEQ, B, FEAT = x_ref.shape
    H = h_buf.shape[1]
    L = w_hh_ref.shape[0]
    AU = out_ref.shape[1] // 2

    def run_layer(l):
        # Per-layer weights pulled into locals once; with the unrolled time
        # loop they stay live instead of being re-read every step.
        w_hh = w_hh_ref[l]                       # (H, 4H)
        bias = b_ref[l]                          # (1, 4H)
        if l == 0:
            x_all = x_ref[...].reshape(SEQ * B, FEAT)
            w_ih = w_ih0_ref[...]                # (FEAT, 4H)
        else:
            x_all = seq_buf[...].reshape(SEQ * B, H)
            w_ih = w_ihr_ref[l - 1]              # (H, 4H)

        # Hoisted input projection (no sequential dependence): one batched
        # GEMM per layer with the bias folded in, written to VMEM scratch.
        gx = jnp.dot(x_all, w_ih, preferred_element_type=jnp.float32) + bias
        gx_buf[...] = gx.reshape(SEQ, B, 4 * H)

        # PyTorch nn.LSTM default: zero (h0, c0) for every layer.
        h_buf[...] = jnp.zeros_like(h_buf)
        c_buf[...] = jnp.zeros_like(c_buf)

        def step(t, carry):
            h_prev = h_buf[...]
            c_prev = c_buf[...]
            # Critical path per step: one small matmul + gate nonlinearities.
            gates = gx_buf[t] + jnp.dot(h_prev, w_hh,
                                        preferred_element_type=jnp.float32)
            i_g = _sigmoid(gates[:, 0 * H:1 * H])
            f_g = _sigmoid(gates[:, 1 * H:2 * H])
            g_g = jnp.tanh(gates[:, 2 * H:3 * H])
            o_g = _sigmoid(gates[:, 3 * H:4 * H])
            c_new = f_g * c_prev + i_g * g_g
            h_new = o_g * jnp.tanh(c_new)
            h_buf[...] = h_new
            c_buf[...] = c_new
            if l < L - 1:          # the last layer's output sequence is unused
                seq_buf[t] = h_new
            return carry

        # SEQ is static and small: fully unroll the recurrence.
        lax.fori_loop(0, SEQ, step, 0, unroll=True)

    for l in range(L):
        run_layer(l)

    # fc2 applied to hn[-1] (final hidden state of the last layer)
    h_last = h_buf[...]                                        # (B, H)
    logits = (jnp.dot(h_last, w_fc_ref[...],
                      preferred_element_type=jnp.float32)
              + b_fc_ref[...])                                 # (B, 2*AU)

    # log_softmax over the "2" axis of the (B, 2, AU) view: pairs (j, AU+j).
    a = logits[:, :AU]
    b = logits[:, AU:]
    m = jnp.maximum(a, b)
    lse = m + jnp.log(jnp.exp(a - m) + jnp.exp(b - m))
    out_ref[:, :AU] = a - lse
    out_ref[:, AU:] = b - lse


def _round_up(n, m):
    return (n + m - 1) // m * m


def _pad_gate_cols(w, H, Hp):
    """Pad the last axis (gate layout [i|f|g|o], each block H wide) to 4*Hp."""
    if Hp == H:
        return w
    lead = w.shape[:-1]
    w4 = w.reshape(lead + (4, H))
    pad = [(0, 0)] * (w4.ndim - 1) + [(0, Hp - H)]
    return jnp.pad(w4, pad).reshape(lead + (4 * Hp,))


def _pad_axis(w, H, Hp, axis):
    if Hp == H:
        return w
    pad = [(0, 0)] * w.ndim
    pad[axis] = (0, Hp - H)
    return jnp.pad(w, pad)


def t_net_lstm_forward(concat_au_feat_list, params):
    # cat along dim=0 (time), exactly like the PyTorch module
    x = jnp.concatenate(concat_au_feat_list, axis=0).astype(jnp.float32)
    w_ih0_t, w_ihr_t, w_hh_t, bias, w_fc_t, b_fc = params
    SEQ, B, FEAT = x.shape
    L, H, _ = w_hh_t.shape
    AU2 = w_fc_t.shape[1]

    # Lane/sublane-dense padding (perf only): padded hidden lanes stay exactly
    # zero through the whole recurrence; padded batch rows are sliced off.
    Hp = _round_up(H, 128)
    Bp = _round_up(B, 8)

    w_ih0_p = _pad_gate_cols(w_ih0_t, H, Hp)
    w_ihr_p = _pad_gate_cols(_pad_axis(w_ihr_t, H, Hp, axis=1), H, Hp)
    w_hh_p = _pad_gate_cols(_pad_axis(w_hh_t, H, Hp, axis=1), H, Hp)
    bias_p = _pad_gate_cols(bias, H, Hp)
    w_fc_p = _pad_axis(w_fc_t, H, Hp, axis=0)
    x_p = jnp.pad(x, ((0, 0), (0, Bp - B), (0, 0))) if Bp != B else x

    # NOTE: for production, weights could be cast to bf16 here (MXU-native,
    # halves VMEM/DMA) with f32 accumulation; kept f32 so the f32 reference
    # check stays tight.

    vmem = pl.BlockSpec(memory_space=pltpu.MemorySpace.VMEM)
    out_flat = pl.pallas_call(
        _tnet_lstm_kernel,
        out_shape=jax.ShapeDtypeStruct((Bp, AU2), jnp.float32),
        in_specs=[vmem] * 7,
        out_specs=vmem,
        scratch_shapes=[
            pltpu.VMEM((SEQ, Bp, Hp), jnp.float32),      # per-layer output seq
            pltpu.VMEM((SEQ, Bp, 4 * Hp), jnp.float32),  # hoisted x@W_ih + bias
            pltpu.VMEM((Bp, Hp), jnp.float32),           # h state
            pltpu.VMEM((Bp, Hp), jnp.float32),           # c state
        ],
    )(x_p, w_ih0_p, w_ihr_p, w_hh_p, bias_p, w_fc_p, b_fc)
    return out_flat[:B].reshape(B, 2, AU2 // 2)


def init_params(key, feat_dim, hidden, num_layers, au_num):
    H = hidden
    ks = jax.random.split(key, 4 * num_layers + 2)
    scale = 1.0 / (H ** 0.5)

    def u(k, shape):
        return jax.random.uniform(k, shape, jnp.float32, -scale, scale)

    w_ih0_t = u(ks[0], (feat_dim, 4 * H))
    w_ihr_t = jnp.stack([u(ks[1 + l], (H, 4 * H))
                         for l in range(num_layers - 1)])
    w_hh_t = jnp.stack([u(ks[num_layers + l], (H, 4 * H))
                        for l in range(num_layers)])
    b_ih = jnp.stack([u(ks[2 * num_layers + l], (1, 4 * H))
                      for l in range(num_layers)])
    b_hh = jnp.stack([u(ks[3 * num_layers + l], (1, 4 * H))
                      for l in range(num_layers)])
    bias = b_ih + b_hh                                   # (L, 1, 4H)
    w_fc_t = u(ks[4 * num_layers], (H, 2 * au_num))
    b_fc = u(ks[4 * num_layers + 1], (1, 2 * au_num))
    return (w_ih0_t, w_ihr_t, w_hh_t, bias, w_fc_t, b_fc)


def _ref_sigmoid(x):
    return 1.0 / (1.0 + jnp.exp(-x))


def ref_forward(concat_au_feat_list, params):
    """Pure-JAX reference matching the PyTorch forward semantics."""
    x = jnp.concatenate(concat_au_feat_list, axis=0).astype(jnp.float32)
    w_ih0_t, w_ihr_t, w_hh_t, bias, w_fc_t, b_fc = params
    L, H, _ = w_hh_t.shape
    SEQ, B, _ = x.shape
    seq = x
    h = None
    for l in range(L):
        wi = w_ih0_t if l == 0 else w_ihr_t[l - 1]
        wh = w_hh_t[l]
        bl = bias[l]
        h = jnp.zeros((B, H), jnp.float32)
        c = jnp.zeros((B, H), jnp.float32)
        outs = []
        for t in range(SEQ):
            gates = seq[t] @ wi + h @ wh + bl
            i_g = _ref_sigmoid(gates[:, :H])
            f_g = _ref_sigmoid(gates[:, H:2 * H])
            g_g = jnp.tanh(gates[:, 2 * H:3 * H])
            o_g = _ref_sigmoid(gates[:, 3 * H:])
            c = f_g * c + i_g * g_g
            h = o_g * jnp.tanh(c)
            outs.append(h)
        seq = jnp.stack(outs, axis=0)
    logits = h @ w_fc_t + b_fc
    out = logits.reshape(B, 2, -1)
    return jax.nn.log_softmax(out, axis=1)


if __name__ == "__main__":
    # Small demo config consistent with the module:
    # hidden = unit_dim * 64, output = (batch, 2, au_num)
    FEAT = 128
    UNIT_DIM = 1               # hidden = 64 (padded to 128 inside the wrapper)
    HIDDEN = UNIT_DIM * 64
    NUM_LAYERS = 3
    AU_NUM = 8
    B = 2
    CHUNK = 4                  # two chunks of length 4 -> concatenated seq = 8

    key = jax.random.PRNGKey(0)
    kp, kx1, kx2 = jax.random.split(key, 3)
    params = init_params(kp, FEAT, HIDDEN, NUM_LAYERS, AU_NUM)
    feats = [jax.random.normal(kx1, (CHUNK, B, FEAT), jnp.float32),
             jax.random.normal(kx2, (CHUNK, B, FEAT), jnp.float32)]

    out = t_net_lstm_forward(feats, params)
    out = jax.block_until_ready(out)
    assert out.shape == (B, 2, AU_NUM)

    ref = ref_forward(feats, params)
    np.testing.assert_allclose(np.asarray(out), np.asarray(ref),
                               atol=2e-4, rtol=2e-4)
    print("KERNEL_OK")
</pallas_src>

<mosaic_0001>
module attributes {stable_mosaic.version = 11 : i64} {
  func.func @_tnet_lstm_kernel(%arg0: memref<8x8x128xf32, #tpu.memory_space<vmem>>, %arg1: memref<128x512xf32, #tpu.memory_space<vmem>>, %arg2: memref<2x128x512xf32, #tpu.memory_space<vmem>>, %arg3: memref<3x128x512xf32, #tpu.memory_space<vmem>>, %arg4: memref<3x1x512xf32, #tpu.memory_space<vmem>>, %arg5: memref<128x16xf32, #tpu.memory_space<vmem>>, %arg6: memref<1x16xf32, #tpu.memory_space<vmem>>, %arg7: memref<8x16xf32, #tpu.memory_space<vmem>>, %arg8: memref<8x8x128xf32, #tpu.memory_space<vmem>>, %arg9: memref<8x8x512xf32, #tpu.memory_space<vmem>>, %arg10: memref<8x128xf32, #tpu.memory_space<vmem>>, %arg11: memref<8x128xf32, #tpu.memory_space<vmem>>) attributes {dimension_semantics = [], scalar_prefetch = 0 : i64, scratch_operands = 4 : i64, tpu.core_type = #tpu.core_type<tc>} {
    %c0 = arith.constant 0 : index
    %c0_0 = arith.constant 0 : index
    %c0_1 = arith.constant 0 : index
    %0 = vector.load %arg3[%c0, %c0_0, %c0_1] : memref<3x128x512xf32, #tpu.memory_space<vmem>>, vector<1x128x512xf32>
    %1 = vector.shape_cast %0 : vector<1x128x512xf32> to vector<128x512xf32>
    %c0_2 = arith.constant 0 : index
    %c0_3 = arith.constant 0 : index
    %c0_4 = arith.constant 0 : index
    %2 = vector.load %arg4[%c0_2, %c0_3, %c0_4] : memref<3x1x512xf32, #tpu.memory_space<vmem>>, vector<1x1x512xf32>
    %3 = vector.shape_cast %2 : vector<1x1x512xf32> to vector<1x512xf32>
    %c0_5 = arith.constant 0 : index
    %c0_6 = arith.constant 0 : index
    %c0_7 = arith.constant 0 : index
    %4 = vector.load %arg0[%c0_5, %c0_6, %c0_7] : memref<8x8x128xf32, #tpu.memory_space<vmem>>, vector<8x8x128xf32>
    %5 = vector.shape_cast %4 : vector<8x8x128xf32> to vector<64x128xf32>
    %c0_8 = arith.constant 0 : index
    %c0_9 = arith.constant 0 : index
    %6 = vector.load %arg1[%c0_8, %c0_9] : memref<128x512xf32, #tpu.memory_space<vmem>>, vector<128x512xf32>
    %cst = arith.constant dense<0.000000e+00> : vector<64x512xf32>
    %7 = tpu.matmul %5, %6, %cst {dimension_numbers = #tpu.dot_dimension_numbers<[1], [0], [0], [1], [0, 0, 1, 1], [], []>} : vector<64x128xf32>, vector<128x512xf32>, vector<64x512xf32> -> vector<64x512xf32>
    %8 = vector.broadcast %3 : vector<1x512xf32> to vector<64x512xf32>
    %9 = arith.addf %7, %8 : vector<64x512xf32>
    %10 = vector.shape_cast %9 : vector<64x512xf32> to vector<8x8x512xf32>
    %c0_10 = arith.constant 0 : index
    %c0_11 = arith.constant 0 : index
    %c0_12 = arith.constant 0 : index
    %11 = vector.load %arg9[%c0_10, %c0_11, %c0_12] : memref<8x8x512xf32, #tpu.memory_space<vmem>>, vector<8x8x512xf32>
    tpu.vector_store %arg9[%c0_10, %c0_11, %c0_12], %10 {strides = array<i32>} : memref<8x8x512xf32, #tpu.memory_space<vmem>>, vector<8x8x512xf32>,
    %cst_13 = arith.constant 0.000000e+00 : f32
    %12 = vector.broadcast %cst_13 : f32 to vector<8x128xf32>
    %c0_14 = arith.constant 0 : index
    %c0_15 = arith.constant 0 : index
    %13 = vector.load %arg10[%c0_14, %c0_15] : memref<8x128xf32, #tpu.memory_space<vmem>>, vector<8x128xf32>
    tpu.vector_store %arg10[%c0_14, %c0_15], %12 {strides = array<i32>} : memref<8x128xf32, #tpu.memory_space<vmem>>, vector<8x128xf32>,
    %cst_16 = arith.constant 0.000000e+00 : f32
    %14 = vector.broadcast %cst_16 : f32 to vector<8x128xf32>
    %c0_17 = arith.constant 0 : index
    %c0_18 = arith.constant 0 : index
    %15 = vector.load %arg11[%c0_17, %c0_18] : memref<8x128xf32, #tpu.memory_space<vmem>>, vector<8x128xf32>
    tpu.vector_store %arg11[%c0_17, %c0_18], %14 {strides = array<i32>} : memref<8x128xf32, #tpu.memory_space<vmem>>, vector<8x128xf32>,
    %c0_i32 = arith.constant 0 : i32
    %c0_19 = arith.constant 0 : index
    %c0_20 = arith.constant 0 : index
    %16 = vector.load %arg10[%c0_19, %c0_20] : memref<8x128xf32, #tpu.memory_space<vmem>>, vector<8x128xf32>
    %c0_21 = arith.constant 0 : index
    %c0_22 = arith.constant 0 : index
    %17 = vector.load %arg11[%c0_21, %c0_22] : memref<8x128xf32, #tpu.memory_space<vmem>>, vector<8x128xf32>
    %18 = arith.index_cast %c0_i32 : i32 to index
    %c0_23 = arith.constant 0 : index
    %c0_24 = arith.constant 0 : index
    %19 = vector.load %arg9[%18, %c0_23, %c0_24] : memref<8x8x512xf32, #tpu.memory_space<vmem>>, vector<1x8x512xf32>
    %20 = vector.shape_cast %19 : vector<1x8x512xf32> to vector<8x512xf32>
    %cst_25 = arith.constant dense<0.000000e+00> : vector<8x512xf32>
    %21 = tpu.matmul %16, %1, %cst_25 {dimension_numbers = #tpu.dot_dimension_numbers<[1], [0], [0], [1], [0, 0, 1, 1], [], []>} : vector<8x128xf32>, vector<128x512xf32>, vector<8x512xf32> -> vector<8x512xf32>
    %22 = arith.addf %20, %21 : vector<8x512xf32>
    %23 = vector.extract_strided_slice %22 {offsets = [0, 0], sizes = [8, 128], strides = [1, 1]} : vector<8x512xf32> to vector<8x128xf32>
    %cst_26 = arith.constant 5.000000e-01 : f32
    %24 = vector.broadcast %cst_26 : f32 to vector<8x128xf32>
    %25 = arith.mulf %24, %23 : vector<8x128xf32>
    %26 = math.tanh %25 : vector<8x128xf32>
    %cst_27 = arith.constant 1.000000e+00 : f32
    %27 = vector.broadcast %cst_27 : f32 to vector<8x128xf32>
    %28 = arith.addf %26, %27 : vector<8x128xf32>
    %cst_28 = arith.constant 5.000000e-01 : f32
    %29 = vector.broadcast %cst_28 : f32 to vector<8x128xf32>
    %30 = arith.mulf %29, %28 : vector<8x128xf32>
    %31 = vector.extract_strided_slice %22 {offsets = [0, 128], sizes = [8, 128], strides = [1, 1]} : vector<8x512xf32> to vector<8x128xf32>
    %cst_29 = arith.constant 5.000000e-01 : f32
    %32 = vector.broadcast %cst_29 : f32 to vector<8x128xf32>
    %33 = arith.mulf %32, %31 : vector<8x128xf32>
    %34 = math.tanh %33 : vector<8x128xf32>
    %cst_30 = arith.constant 1.000000e+00 : f32
    %35 = vector.broadcast %cst_30 : f32 to vector<8x128xf32>
    %36 = arith.addf %34, %35 : vector<8x128xf32>
    %cst_31 = arith.constant 5.000000e-01 : f32
    %37 = vector.broadcast %cst_31 : f32 to vector<8x128xf32>
    %38 = arith.mulf %37, %36 : vector<8x128xf32>
    %39 = vector.extract_strided_slice %22 {offsets = [0, 256], sizes = [8, 128], strides = [1, 1]} : vector<8x512xf32> to vector<8x128xf32>
    %40 = math.tanh %39 : vector<8x128xf32>
    %41 = vector.extract_strided_slice %22 {offsets = [0, 384], sizes = [8, 128], strides = [1, 1]} : vector<8x512xf32> to vector<8x128xf32>
    %cst_32 = arith.constant 5.000000e-01 : f32
    %42 = vector.broadcast %cst_32 : f32 to vector<8x128xf32>
    %43 = arith.mulf %42, %41 : vector<8x128xf32>
    %44 = math.tanh %43 : vector<8x128xf32>
    %cst_33 = arith.constant 1.000000e+00 : f32
    %45 = vector.broadcast %cst_33 : f32 to vector<8x128xf32>
    %46 = arith.addf %44, %45 : vector<8x128xf32>
    %cst_34 = arith.constant 5.000000e-01 : f32
    %47 = vector.broadcast %cst_34 : f32 to vector<8x128xf32>
    %48 = arith.mulf %47, %46 : vector<8x128xf32>
    %49 = arith.mulf %38, %17 : vector<8x128xf32>
    %50 = arith.mulf %30, %40 : vector<8x128xf32>
    %51 = arith.addf %49, %50 : vector<8x128xf32>
    %52 = math.tanh %51 : vector<8x128xf32>
    %53 = arith.mulf %48, %52 : vector<8x128xf32>
    %c0_35 = arith.constant 0 : index
    %c0_36 = arith.constant 0 : index
    %54 = vector.load %arg10[%c0_35, %c0_36] : memref<8x128xf32, #tpu.memory_space<vmem>>, vector<8x128xf32>
    tpu.vector_store %arg10[%c0_35, %c0_36], %53 {strides = array<i32>} : memref<8x128xf32, #tpu.memory_space<vmem>>, vector<8x128xf32>,
    %c0_37 = arith.constant 0 : index
    %c0_38 = arith.constant 0 : index
    %55 = vector.load %arg11[%c0_37, %c0_38] : memref<8x128xf32, #tpu.memory_space<vmem>>, vector<8x128xf32>
    tpu.vector_store %arg11[%c0_37, %c0_38], %51 {strides = array<i32>} : memref<8x128xf32, #tpu.memory_space<vmem>>, vector<8x128xf32>,
    %56 = arith.index_cast %c0_i32 : i32 to index
    %c0_39 = arith.constant 0 : index
    %c0_40 = arith.constant 0 : index
    %57 = vector.load %arg8[%56, %c0_39, %c0_40] : memref<8x8x128xf32, #tpu.memory_space<vmem>>, vector<1x8x128xf32>
    %58 = vector.shape_cast %57 : vector<1x8x128xf32> to vector<8x128xf32>
    %59 = vector.shape_cast %53 : vector<8x128xf32> to vector<1x8x128xf32>
    tpu.vector_store %arg8[%56, %c0_39, %c0_40], %59 {strides = array<i32>} : memref<8x8x128xf32, #tpu.memory_space<vmem>>, vector<1x8x128xf32>,
    %c1_i32 = arith.constant 1 : i32
    %c0_41 = arith.constant 0 : index
    %c0_42 = arith.constant 0 : index
    %60 = vector.load %arg10[%c0_41, %c0_42] : memref<8x128xf32, #tpu.memory_space<vmem>>, vector<8x128xf32>
    %c0_43 = arith.constant 0 : index
    %c0_44 = arith.constant 0 : index
    %61 = vector.load %arg11[%c0_43, %c0_44] : memref<8x128xf32, #tpu.memory_space<vmem>>, vector<8x128xf32>
    %62 = arith.index_cast %c1_i32 : i32 to index
    %c0_45 = arith.constant 0 : index
    %c0_46 = arith.constant 0 : index
    %63 = vector.load %arg9[%62, %c0_45, %c0_46] : memref<8x8x512xf32, #tpu.memory_space<vmem>>, vector<1x8x512xf32>
    %64 = vector.shape_cast %63 : vector<1x8x512xf32> to vector<8x512xf32>
    %cst_47 = arith.constant dense<0.000000e+00> : vector<8x512xf32>
    %65 = tpu.matmul %60, %1, %cst_47 {dimension_numbers = #tpu.dot_dimension_numbers<[1], [0], [0], [1], [0, 0, 1, 1], [], []>} : vector<8x128xf32>, vector<128x512xf32>, vector<8x512xf32> -> vector<8x512xf32>
    %66 = arith.addf %64, %65 : vector<8x512xf32>
    %67 = vector.extract_strided_slice %66 {offsets = [0, 0], sizes = [8, 128], strides = [1, 1]} : vector<8x512xf32> to vector<8x128xf32>
    %cst_48 = arith.constant 5.000000e-01 : f32
    %68 = vector.broadcast %cst_48 : f32 to vector<8x128xf32>
    %69 = arith.mulf %68, %67 : vector<8x128xf32>
    %70 = math.tanh %69 : vector<8x128xf32>
    %cst_49 = arith.constant 1.000000e+00 : f32
    %71 = vector.broadcast %cst_49 : f32 to vector<8x128xf32>
    %72 = arith.addf %70, %71 : vector<8x128xf32>
    %cst_50 = arith.constant 5.000000e-01 : f32
    %73 = vector.broadcast %cst_50 : f32 to vector<8x128xf32>
    %74 = arith.mulf %73, %72 : vector<8x128xf32>
    %75 = vector.extract_strided_slice %66 {offsets = [0, 128], sizes = [8, 128], strides = [1, 1]} : vector<8x512xf32> to vector<8x128xf32>
    %cst_51 = arith.constant 5.000000e-01 : f32
    %76 = vector.broadcast %cst_51 : f32 to vector<8x128xf32>
    %77 = arith.mulf %76, %75 : vector<8x128xf32>
    %78 = math.tanh %77 : vector<8x128xf32>
    %cst_52 = arith.constant 1.000000e+00 : f32
    %79 = vector.broadcast %cst_52 : f32 to vector<8x128xf32>
    %80 = arith.addf %78, %79 : vector<8x128xf32>
    %cst_53 = arith.constant 5.000000e-01 : f32
    %81 = vector.broadcast %cst_53 : f32 to vector<8x128xf32>
    %82 = arith.mulf %81, %80 : vector<8x128xf32>
    %83 = vector.extract_strided_slice %66 {offsets = [0, 256], sizes = [8, 128], strides = [1, 1]} : vector<8x512xf32> to vector<8x128xf32>
    %84 = math.tanh %83 : vector<8x128xf32>
    %85 = vector.extract_strided_slice %66 {offsets = [0, 384], sizes = [8, 128], strides = [1, 1]} : vector<8x512xf32> to vector<8x128xf32>
    %cst_54 = arith.constant 5.000000e-01 : f32
    %86 = vector.broadcast %cst_54 : f32 to vector<8x128xf32>
    %87 = arith.mulf %86, %85 : vector<8x128xf32>
    %88 = math.tanh %87 : vector<8x128xf32>
    %cst_55 = arith.constant 1.000000e+00 : f32
    %89 = vector.broadcast %cst_55 : f32 to vector<8x128xf32>
    %90 = arith.addf %88, %89 : vector<8x128xf32>
    %cst_56 = arith.constant 5.000000e-01 : f32
    %91 = vector.broadcast %cst_56 : f32 to vector<8x128xf32>
    %92 = arith.mulf %91, %90 : vector<8x128xf32>
    %93 = arith.mulf %82, %61 : vector<8x128xf32>
    %94 = arith.mulf %74, %84 : vector<8x128xf32>
    %95 = arith.addf %93, %94 : vector<8x128xf32>
    %96 = math.tanh %95 : vector<8x128xf32>
    %97 = arith.mulf %92, %96 : vector<8x128xf32>
    %c0_57 = arith.constant 0 : index
    %c0_58 = arith.constant 0 : index
    %98 = vector.load %arg10[%c0_57, %c0_58] : memref<8x128xf32, #tpu.memory_space<vmem>>, vector<8x128xf32>
    tpu.vector_store %arg10[%c0_57, %c0_58], %97 {strides = array<i32>} : memref<8x128xf32, #tpu.memory_space<vmem>>, vector<8x128xf32>,
    %c0_59 = arith.constant 0 : index
    %c0_60 = arith.constant 0 : index
    %99 = vector.load %arg11[%c0_59, %c0_60] : memref<8x128xf32, #tpu.memory_space<vmem>>, vector<8x128xf32>
    tpu.vector_store %arg11[%c0_59, %c0_60], %95 {strides = array<i32>} : memref<8x128xf32, #tpu.memory_space<vmem>>, vector<8x128xf32>,
    %100 = arith.index_cast %c1_i32 : i32 to index
    %c0_61 = arith.constant 0 : index
    %c0_62 = arith.constant 0 : index
    %101 = vector.load %arg8[%100, %c0_61, %c0_62] : memref<8x8x128xf32, #tpu.memory_space<vmem>>, vector<1x8x128xf32>
    %102 = vector.shape_cast %101 : vector<1x8x128xf32> to vector<8x128xf32>
    %103 = vector.shape_cast %97 : vector<8x128xf32> to vector<1x8x128xf32>
    tpu.vector_store %arg8[%100, %c0_61, %c0_62], %103 {strides = array<i32>} : memref<8x8x128xf32, #tpu.memory_space<vmem>>, vector<1x8x128xf32>,
    %c2_i32 = arith.constant 2 : i32
    %c0_63 = arith.constant 0 : index
    %c0_64 = arith.constant 0 : index
    %104 = vector.load %arg10[%c0_63, %c0_64] : memref<8x128xf32, #tpu.memory_space<vmem>>, vector<8x128xf32>
    %c0_65 = arith.constant 0 : index
    %c0_66 = arith.constant 0 : index
    %105 = vector.load %arg11[%c0_65, %c0_66] : memref<8x128xf32, #tpu.memory_space<vmem>>, vector<8x128xf32>
    %106 = arith.index_cast %c2_i32 : i32 to index
    %c0_67 = arith.constant 0 : index
    %c0_68 = arith.constant 0 : index
    %107 = vector.load %arg9[%106, %c0_67, %c0_68] : memref<8x8x512xf32, #tpu.memory_space<vmem>>, vector<1x8x512xf32>
    %108 = vector.shape_cast %107 : vector<1x8x512xf32> to vector<8x512xf32>
    %cst_69 = arith.constant dense<0.000000e+00> : vector<8x512xf32>
    %109 = tpu.matmul %104, %1, %cst_69 {dimension_numbers = #tpu.dot_dimension_numbers<[1], [0], [0], [1], [0, 0, 1, 1], [], []>} : vector<8x128xf32>, vector<128x512xf32>, vector<8x512xf32> -> vector<8x512xf32>
    %110 = arith.addf %108, %109 : vector<8x512xf32>
    %111 = vector.extract_strided_slice %110 {offsets = [0, 0], sizes = [8, 128], strides = [1, 1]} : vector<8x512xf32> to vector<8x128xf32>
    %cst_70 = arith.constant 5.000000e-01 : f32
    %112 = vector.broadcast %cst_70 : f32 to vector<8x128xf32>
    %113 = arith.mulf %112, %111 : vector<8x128xf32>
    %114 = math.tanh %113 : vector<8x128xf32>
    %cst_71 = arith.constant 1.000000e+00 : f32
    %115 = vector.broadcast %cst_71 : f32 to vector<8x128xf32>
    %116 = arith.addf %114, %115 : vector<8x128xf32>
    %cst_72 = arith.constant 5.000000e-01 : f32
    %117 = vector.broadcast %cst_72 : f32 to vector<8x128xf32>
    %118 = arith.mulf %117, %116 : vector<8x128xf32>
    %119 = vector.extract_strided_slice %110 {offsets = [0, 128], sizes = [8, 128], strides = [1, 1]} : vector<8x512xf32> to vector<8x128xf32>
    %cst_73 = arith.constant 5.000000e-01 : f32
    %120 = vector.broadcast %cst_73 : f32 to vector<8x128xf32>
    %121 = arith.mulf %120, %119 : vector<8x128xf32>
    %122 = math.tanh %121 : vector<8x128xf32>
    %cst_74 = arith.constant 1.000000e+00 : f32
    %123 = vector.broadcast %cst_74 : f32 to vector<8x128xf32>
    %124 = arith.addf %122, %123 : vector<8x128xf32>
    %cst_75 = arith.constant 5.000000e-01 : f32
    %125 = vector.broadcast %cst_75 : f32 to vector<8x128xf32>
    %126 = arith.mulf %125, %124 : vector<8x128xf32>
    %127 = vector.extract_strided_slice %110 {offsets = [0, 256], sizes = [8, 128], strides = [1, 1]} : vector<8x512xf32> to vector<8x128xf32>
    %128 = math.tanh %127 : vector<8x128xf32>
    %129 = vector.extract_strided_slice %110 {offsets = [0, 384], sizes = [8, 128], strides = [1, 1]} : vector<8x512xf32> to vector<8x128xf32>
    %cst_76 = arith.constant 5.000000e-01 : f32
    %130 = vector.broadcast %cst_76 : f32 to vector<8x128xf32>
    %131 = arith.mulf %130, %129 : vector<8x128xf32>
    %132 = math.tanh %131 : vector<8x128xf32>
    %cst_77 = arith.constant 1.000000e+00 : f32
    %133 = vector.broadcast %cst_77 : f32 to vector<8x128xf32>
    %134 = arith.addf %132, %133 : vector<8x128xf32>
    %cst_78 = arith.constant 5.000000e-01 : f32
    %135 = vector.broadcast %cst_78 : f32 to vector<8x128xf32>
    %136 = arith.mulf %135, %134 : vector<8x128xf32>
    %137 = arith.mulf %126, %105 : vector<8x128xf32>
    %138 = arith.mulf %118, %128 : vector<8x128xf32>
    %139 = arith.addf %137, %138 : vector<8x128xf32>
    %140 = math.tanh %139 : vector<8x128xf32>
    %141 = arith.mulf %136, %140 : vector<8x128xf32>
    %c0_79 = arith.constant 0 : index
    %c0_80 = arith.constant 0 : index
    %142 = vector.load %arg10[%c0_79, %c0_80] : memref<8x128xf32, #tpu.memory_space<vmem>>, vector<8x128xf32>
    tpu.vector_store %arg10[%c0_79, %c0_80], %141 {strides = array<i32>} : memref<8x128xf32, #tpu.memory_space<vmem>>, vector<8x128xf32>,
    %c0_81 = arith.constant 0 : index
    %c0_82 = arith.constant 0 : index
    %143 = vector.load %arg11[%c0_81, %c0_82] : memref<8x128xf32, #tpu.memory_space<vmem>>, vector<8x128xf32>
    tpu.vector_store %arg11[%c0_81, %c0_82], %139 {strides = array<i32>} : memref<8x128xf32, #tpu.memory_space<vmem>>, vector<8x128xf32>,
    %144 = arith.index_cast %c2_i32 : i32 to index
    %c0_83 = arith.constant 0 : index
    %c0_84 = arith.constant 0 : index
    %145 = vector.load %arg8[%144, %c0_83, %c0_84] : memref<8x8x128xf32, #tpu.memory_space<vmem>>, vector<1x8x128xf32>
    %146 = vector.shape_cast %145 : vector<1x8x128xf32> to vector<8x128xf32>
    %147 = vector.shape_cast %141 : vector<8x128xf32> to vector<1x8x128xf32>
    tpu.vector_store %arg8[%144, %c0_83, %c0_84], %147 {strides = array<i32>} : memref<8x8x128xf32, #tpu.memory_space<vmem>>, vector<1x8x128xf32>,
    %c3_i32 = arith.constant 3 : i32
    %c0_85 = arith.constant 0 : index
    %c0_86 = arith.constant 0 : index
    %148 = vector.load %arg10[%c0_85, %c0_86] : memref<8x128xf32, #tpu.memory_space<vmem>>, vector<8x128xf32>
    %c0_87 = arith.constant 0 : index
    %c0_88 = arith.constant 0 : index
    %149 = vector.load %arg11[%c0_87, %c0_88] : memref<8x128xf32, #tpu.memory_space<vmem>>, vector<8x128xf32>
    %150 = arith.index_cast %c3_i32 : i32 to index
    %c0_89 = arith.constant 0 : index
    %c0_90 = arith.constant 0 : index
    %151 = vector.load %arg9[%150, %c0_89, %c0_90] : memref<8x8x512xf32, #tpu.memory_space<vmem>>, vector<1x8x512xf32>
    %152 = vector.shape_cast %151 : vector<1x8x512xf32> to vector<8x512xf32>
    %cst_91 = arith.constant dense<0.000000e+00> : vector<8x512xf32>
    %153 = tpu.matmul %148, %1, %cst_91 {dimension_numbers = #tpu.dot_dimension_numbers<[1], [0], [0], [1], [0, 0, 1, 1], [], []>} : vector<8x128xf32>, vector<128x512xf32>, vector<8x512xf32> -> vector<8x512xf32>
    %154 = arith.addf %152, %153 : vector<8x512xf32>
    %155 = vector.extract_strided_slice %154 {offsets = [0, 0], sizes = [8, 128], strides = [1, 1]} : vector<8x512xf32> to vector<8x128xf32>
    %cst_92 = arith.constant 5.000000e-01 : f32
    %156 = vector.broadcast %cst_92 : f32 to vector<8x128xf32>
    %157 = arith.mulf %156, %155 : vector<8x128xf32>
    %158 = math.tanh %157 : vector<8x128xf32>
    %cst_93 = arith.constant 1.000000e+00 : f32
    %159 = vector.broadcast %cst_93 : f32 to vector<8x128xf32>
    %160 = arith.addf %158, %159 : vector<8x128xf32>
    %cst_94 = arith.constant 5.000000e-01 : f32
    %161 = vector.broadcast %cst_94 : f32 to vector<8x128xf32>
    %162 = arith.mulf %161, %160 : vector<8x128xf32>
    %163 = vector.extract_strided_slice %154 {offsets = [0, 128], sizes = [8, 128], strides = [1, 1]} : vector<8x512xf32> to vector<8x128xf32>
    %cst_95 = arith.constant 5.000000e-01 : f32
    %164 = vector.broadcast %cst_95 : f32 to vector<8x128xf32>
    %165 = arith.mulf %164, %163 : vector<8x128xf32>
    %166 = math.tanh %165 : vector<8x128xf32>
    %cst_96 = arith.constant 1.000000e+00 : f32
    %167 = vector.broadcast %cst_96 : f32 to vector<8x128xf32>
    %168 = arith.addf %166, %167 : vector<8x128xf32>
    %cst_97 = arith.constant 5.000000e-01 : f32
    %169 = vector.broadcast %cst_97 : f32 to vector<8x128xf32>
    %170 = arith.mulf %169, %168 : vector<8x128xf32>
    %171 = vector.extract_strided_slice %154 {offsets = [0, 256], sizes = [8, 128], strides = [1, 1]} : vector<8x512xf32> to vector<8x128xf32>
    %172 = math.tanh %171 : vector<8x128xf32>
    %173 = vector.extract_strided_slice %154 {offsets = [0, 384], sizes = [8, 128], strides = [1, 1]} : vector<8x512xf32> to vector<8x128xf32>
    %cst_98 = arith.constant 5.000000e-01 : f32
    %174 = vector.broadcast %cst_98 : f32 to vector<8x128xf32>
    %175 = arith.mulf %174, %173 : vector<8x128xf32>
    %176 = math.tanh %175 : vector<8x128xf32>
    %cst_99 = arith.constant 1.000000e+00 : f32
    %177 = vector.broadcast %cst_99 : f32 to vector<8x128xf32>
    %178 = arith.addf %176, %177 : vector<8x128xf32>
    %cst_100 = arith.constant 5.000000e-01 : f32
    %179 = vector.broadcast %cst_100 : f32 to vector<8x128xf32>
    %180 = arith.mulf %179, %178 : vector<8x128xf32>
    %181 = arith.mulf %170, %149 : vector<8x128xf32>
    %182 = arith.mulf %162, %172 : vector<8x128xf32>
    %183 = arith.addf %181, %182 : vector<8x128xf32>
    %184 = math.tanh %183 : vector<8x128xf32>
    %185 = arith.mulf %180, %184 : vector<8x128xf32>
    %c0_101 = arith.constant 0 : index
    %c0_102 = arith.constant 0 : index
    %186 = vector.load %arg10[%c0_101, %c0_102] : memref<8x128xf32, #tpu.memory_space<vmem>>, vector<8x128xf32>
    tpu.vector_store %arg10[%c0_101, %c0_102], %185 {strides = array<i32>} : memref<8x128xf32, #tpu.memory_space<vmem>>, vector<8x128xf32>,
    %c0_103 = arith.constant 0 : index
    %c0_104 = arith.constant 0 : index
    %187 = vector.load %arg11[%c0_103, %c0_104] : memref<8x128xf32, #tpu.memory_space<vmem>>, vector<8x128xf32>
    tpu.vector_store %arg11[%c0_103, %c0_104], %183 {strides = array<i32>} : memref<8x128xf32, #tpu.memory_space<vmem>>, vector<8x128xf32>,
    %188 = arith.index_cast %c3_i32 : i32 to index
    %c0_105 = arith.constant 0 : index
    %c0_106 = arith.constant 0 : index
    %189 = vector.load %arg8[%188, %c0_105, %c0_106] : memref<8x8x128xf32, #tpu.memory_space<vmem>>, vector<1x8x128xf32>
    %190 = vector.shape_cast %189 : vector<1x8x128xf32> to vector<8x128xf32>
    %191 = vector.shape_cast %185 : vector<8x128xf32> to vector<1x8x128xf32>
    tpu.vector_store %arg8[%188, %c0_105, %c0_106], %191 {strides = array<i32>} : memref<8x8x128xf32, #tpu.memory_space<vmem>>, vector<1x8x128xf32>,
    %c4_i32 = arith.constant 4 : i32
    %c0_107 = arith.constant 0 : index
    %c0_108 = arith.constant 0 : index
    %192 = vector.load %arg10[%c0_107, %c0_108] : memref<8x128xf32, #tpu.memory_space<vmem>>, vector<8x128xf32>
    %c0_109 = arith.constant 0 : index
    %c0_110 = arith.constant 0 : index
    %193 = vector.load %arg11[%c0_109, %c0_110] : memref<8x128xf32, #tpu.memory_space<vmem>>, vector<8x128xf32>
    %194 = arith.index_cast %c4_i32 : i32 to index
    %c0_111 = arith.constant 0 : index
    %c0_112 = arith.constant 0 : index
    %195 = vector.load %arg9[%194, %c0_111, %c0_112] : memref<8x8x512xf32, #tpu.memory_space<vmem>>, vector<1x8x512xf32>
    %196 = vector.shape_cast %195 : vector<1x8x512xf32> to vector<8x512xf32>
    %cst_113 = arith.constant dense<0.000000e+00> : vector<8x512xf32>
    %197 = tpu.matmul %192, %1, %cst_113 {dimension_numbers = #tpu.dot_dimension_numbers<[1], [0], [0], [1], [0, 0, 1, 1], [], []>} : vector<8x128xf32>, vector<128x512xf32>, vector<8x512xf32> -> vector<8x512xf32>
    %198 = arith.addf %196, %197 : vector<8x512xf32>
    %199 = vector.extract_strided_slice %198 {offsets = [0, 0], sizes = [8, 128], strides = [1, 1]} : vector<8x512xf32> to vector<8x128xf32>
    %cst_114 = arith.constant 5.000000e-01 : f32
    %200 = vector.broadcast %cst_114 : f32 to vector<8x128xf32>
    %201 = arith.mulf %200, %199 : vector<8x128xf32>
    %202 = math.tanh %201 : vector<8x128xf32>
    %cst_115 = arith.constant 1.000000e+00 : f32
    %203 = vector.broadcast %cst_115 : f32 to vector<8x128xf32>
    %204 = arith.addf %202, %203 : vector<8x128xf32>
    %cst_116 = arith.constant 5.000000e-01 : f32
    %205 = vector.broadcast %cst_116 : f32 to vector<8x128xf32>
    %206 = arith.mulf %205, %204 : vector<8x128xf32>
    %207 = vector.extract_strided_slice %198 {offsets = [0, 128], sizes = [8, 128], strides = [1, 1]} : vector<8x512xf32> to vector<8x128xf32>
    %cst_117 = arith.constant 5.000000e-01 : f32
    %208 = vector.broadcast %cst_117 : f32 to vector<8x128xf32>
    %209 = arith.mulf %208, %207 : vector<8x128xf32>
    %210 = math.tanh %209 : vector<8x128xf32>
    %cst_118 = arith.constant 1.000000e+00 : f32
    %211 = vector.broadcast %cst_118 : f32 to vector<8x128xf32>
    %212 = arith.addf %210, %211 : vector<8x128xf32>
    %cst_119 = arith.constant 5.000000e-01 : f32
    %213 = vector.broadcast %cst_119 : f32 to vector<8x128xf32>
    %214 = arith.mulf %213, %212 : vector<8x128xf32>
    %215 = vector.extract_strided_slice %198 {offsets = [0, 256], sizes = [8, 128], strides = [1, 1]} : vector<8x512xf32> to vector<8x128xf32>
    %216 = math.tanh %215 : vector<8x128xf32>
    %217 = vector.extract_strided_slice %198 {offsets = [0, 384], sizes = [8, 128], strides = [1, 1]} : vector<8x512xf32> to vector<8x128xf32>
    %cst_120 = arith.constant 5.000000e-01 : f32
    %218 = vector.broadcast %cst_120 : f32 to vector<8x128xf32>
    %219 = arith.mulf %218, %217 : vector<8x128xf32>
    %220 = math.tanh %219 : vector<8x128xf32>
    %cst_121 = arith.constant 1.000000e+00 : f32
    %221 = vector.broadcast %cst_121 : f32 to vector<8x128xf32>
    %222 = arith.addf %220, %221 : vector<8x128xf32>
    %cst_122 = arith.constant 5.000000e-01 : f32
    %223 = vector.broadcast %cst_122 : f32 to vector<8x128xf32>
    %224 = arith.mulf %223, %222 : vector<8x128xf32>
    %225 = arith.mulf %214, %193 : vector<8x128xf32>
    %226 = arith.mulf %206, %216 : vector<8x128xf32>
    %227 = arith.addf %225, %226 : vector<8x128xf32>
    %228 = math.tanh %227 : vector<8x128xf32>
    %229 = arith.mulf %224, %228 : vector<8x128xf32>
    %c0_123 = arith.constant 0 : index
    %c0_124 = arith.constant 0 : index
    %230 = vector.load %arg10[%c0_123, %c0_124] : memref<8x128xf32, #tpu.memory_space<vmem>>, vector<8x128xf32>
    tpu.vector_store %arg10[%c0_123, %c0_124], %229 {strides = array<i32>} : memref<8x128xf32, #tpu.memory_space<vmem>>, vector<8x128xf32>,
    %c0_125 = arith.constant 0 : index
    %c0_126 = arith.constant 0 : index
    %231 = vector.load %arg11[%c0_125, %c0_126] : memref<8x128xf32, #tpu.memory_space<vmem>>, vector<8x128xf32>
    tpu.vector_store %arg11[%c0_125, %c0_126], %227 {strides = array<i32>} : memref<8x128xf32, #tpu.memory_space<vmem>>, vector<8x128xf32>,
    %232 = arith.index_cast %c4_i32 : i32 to index
    %c0_127 = arith.constant 0 : index
    %c0_128 = arith.constant 0 : index
    %233 = vector.load %arg8[%232, %c0_127, %c0_128] : memref<8x8x128xf32, #tpu.memory_space<vmem>>, vector<1x8x128xf32>
    %234 = vector.shape_cast %233 : vector<1x8x128xf32> to vector<8x128xf32>
    %235 = vector.shape_cast %229 : vector<8x128xf32> to vector<1x8x128xf32>
    tpu.vector_store %arg8[%232, %c0_127, %c0_128], %235 {strides = array<i32>} : memref<8x8x128xf32, #tpu.memory_space<vmem>>, vector<1x8x128xf32>,
    %c5_i32 = arith.constant 5 : i32
    %c0_129 = arith.constant 0 : index
    %c0_130 = arith.constant 0 : index
    %236 = vector.load %arg10[%c0_129, %c0_130] : memref<8x128xf32, #tpu.memory_space<vmem>>, vector<8x128xf32>
    %c0_131 = arith.constant 0 : index
    %c0_132 = arith.constant 0 : index
    %237 = vector.load %arg11[%c0_131, %c0_132] : memref<8x128xf32, #tpu.memory_space<vmem>>, vector<8x128xf32>
    %238 = arith.index_cast %c5_i32 : i32 to index
    %c0_133 = arith.constant 0 : index
    %c0_134 = arith.constant 0 : index
    %239 = vector.load %arg9[%238, %c0_133, %c0_134] : memref<8x8x512xf32, #tpu.memory_space<vmem>>, vector<1x8x512xf32>
    %240 = vector.shape_cast %239 : vector<1x8x512xf32> to vector<8x512xf32>
    %cst_135 = arith.constant dense<0.000000e+00> : vector<8x512xf32>
    %241 = tpu.matmul %236, %1, %cst_135 {dimension_numbers = #tpu.dot_dimension_numbers<[1], [0], [0], [1], [0, 0, 1, 1], [], []>} : vector<8x128xf32>, vector<128x512xf32>, vector<8x512xf32> -> vector<8x512xf32>
    %242 = arith.addf %240, %241 : vector<8x512xf32>
    %243 = vector.extract_strided_slice %242 {offsets = [0, 0], sizes = [8, 128], strides = [1, 1]} : vector<8x512xf32> to vector<8x128xf32>
    %cst_136 = arith.constant 5.000000e-01 : f32
    %244 = vector.broadcast %cst_136 : f32 to vector<8x128xf32>
    %245 = arith.mulf %244, %243 : vector<8x128xf32>
    %246 = math.tanh %245 : vector<8x128xf32>
    %cst_137 = arith.constant 1.000000e+00 : f32
    %247 = vector.broadcast %cst_137 : f32 to vector<8x128xf32>
    %248 = arith.addf %246, %247 : vector<8x128xf32>
    %cst_138 = arith.constant 5.000000e-01 : f32
    %249 = vector.broadcast %cst_138 : f32 to vector<8x128xf32>
    %250 = arith.mulf %249, %248 : vector<8x128xf32>
    %251 = vector.extract_strided_slice %242 {offsets = [0, 128], sizes = [8, 128], strides = [1, 1]} : vector<8x512xf32> to vector<8x128xf32>
    %cst_139 = arith.constant 5.000000e-01 : f32
    %252 = vector.broadcast %cst_139 : f32 to vector<8x128xf32>
    %253 = arith.mulf %252, %251 : vector<8x128xf32>
    %254 = math.tanh %253 : vector<8x128xf32>
    %cst_140 = arith.constant 1.000000e+00 : f32
    %255 = vector.broadcast %cst_140 : f32 to vector<8x128xf32>
    %256 = arith.addf %254, %255 : vector<8x128xf32>
    %cst_141 = arith.constant 5.000000e-01 : f32
    %257 = vector.broadcast %cst_141 : f32 to vector<8x128xf32>
    %258 = arith.mulf %257, %256 : vector<8x128xf32>
    %259 = vector.extract_strided_slice %242 {offsets = [0, 256], sizes = [8, 128], strides = [1, 1]} : vector<8x512xf32> to vector<8x128xf32>
    %260 = math.tanh %259 : vector<8x128xf32>
    %261 = vector.extract_strided_slice %242 {offsets = [0, 384], sizes = [8, 128], strides = [1, 1]} : vector<8x512xf32> to vector<8x128xf32>
    %cst_142 = arith.constant 5.000000e-01 : f32
    %262 = vector.broadcast %cst_142 : f32 to vector<8x128xf32>
    %263 = arith.mulf %262, %261 : vector<8x128xf32>
    %264 = math.tanh %263 : vector<8x128xf32>
    %cst_143 = arith.constant 1.000000e+00 : f32
    %265 = vector.broadcast %cst_143 : f32 to vector<8x128xf32>
    %266 = arith.addf %264, %265 : vector<8x128xf32>
    %cst_144 = arith.constant 5.000000e-01 : f32
    %267 = vector.broadcast %cst_144 : f32 to vector<8x128xf32>
    %268 = arith.mulf %267, %266 : vector<8x128xf32>
    %269 = arith.mulf %258, %237 : vector<8x128xf32>
    %270 = arith.mulf %250, %260 : vector<8x128xf32>
    %271 = arith.addf %269, %270 : vector<8x128xf32>
    %272 = math.tanh %271 : vector<8x128xf32>
    %273 = arith.mulf %268, %272 : vector<8x128xf32>
    %c0_145 = arith.constant 0 : index
    %c0_146 = arith.constant 0 : index
    %274 = vector.load %arg10[%c0_145, %c0_146] : memref<8x128xf32, #tpu.memory_space<vmem>>, vector<8x128xf32>
    tpu.vector_store %arg10[%c0_145, %c0_146], %273 {strides = array<i32>} : memref<8x128xf32, #tpu.memory_space<vmem>>, vector<8x128xf32>,
    %c0_147 = arith.constant 0 : index
    %c0_148 = arith.constant 0 : index
    %275 = vector.load %arg11[%c0_147, %c0_148] : memref<8x128xf32, #tpu.memory_space<vmem>>, vector<8x128xf32>
    tpu.vector_store %arg11[%c0_147, %c0_148], %271 {strides = array<i32>} : memref<8x128xf32, #tpu.memory_space<vmem>>, vector<8x128xf32>,
    %276 = arith.index_cast %c5_i32 : i32 to index
    %c0_149 = arith.constant 0 : index
    %c0_150 = arith.constant 0 : index
    %277 = vector.load %arg8[%276, %c0_149, %c0_150] : memref<8x8x128xf32, #tpu.memory_space<vmem>>, vector<1x8x128xf32>
    %278 = vector.shape_cast %277 : vector<1x8x128xf32> to vector<8x128xf32>
    %279 = vector.shape_cast %273 : vector<8x128xf32> to vector<1x8x128xf32>
    tpu.vector_store %arg8[%276, %c0_149, %c0_150], %279 {strides = array<i32>} : memref<8x8x128xf32, #tpu.memory_space<vmem>>, vector<1x8x128xf32>,
    %c6_i32 = arith.constant 6 : i32
    %c0_151 = arith.constant 0 : index
    %c0_152 = arith.constant 0 : index
    %280 = vector.load %arg10[%c0_151, %c0_152] : memref<8x128xf32, #tpu.memory_space<vmem>>, vector<8x128xf32>
    %c0_153 = arith.constant 0 : index
    %c0_154 = arith.constant 0 : index
    %281 = vector.load %arg11[%c0_153, %c0_154] : memref<8x128xf32, #tpu.memory_space<vmem>>, vector<8x128xf32>
    %282 = arith.index_cast %c6_i32 : i32 to index
    %c0_155 = arith.constant 0 : index
    %c0_156 = arith.constant 0 : index
    %283 = vector.load %arg9[%282, %c0_155, %c0_156] : memref<8x8x512xf32, #tpu.memory_space<vmem>>, vector<1x8x512xf32>
    %284 = vector.shape_cast %283 : vector<1x8x512xf32> to vector<8x512xf32>
    %cst_157 = arith.constant dense<0.000000e+00> : vector<8x512xf32>
    %285 = tpu.matmul %280, %1, %cst_157 {dimension_numbers = #tpu.dot_dimension_numbers<[1], [0], [0], [1], [0, 0, 1, 1], [], []>} : vector<8x128xf32>, vector<128x512xf32>, vector<8x512xf32> -> vector<8x512xf32>
    %286 = arith.addf %284, %285 : vector<8x512xf32>
    %287 = vector.extract_strided_slice %286 {offsets = [0, 0], sizes = [8, 128], strides = [1, 1]} : vector<8x512xf32> to vector<8x128xf32>
    %cst_158 = arith.constant 5.000000e-01 : f32
    %288 = vector.broadcast %cst_158 : f32 to vector<8x128xf32>
    %289 = arith.mulf %288, %287 : vector<8x128xf32>
    %290 = math.tanh %289 : vector<8x128xf32>
    %cst_159 = arith.constant 1.000000e+00 : f32
    %291 = vector.broadcast %cst_159 : f32 to vector<8x128xf32>
    %292 = arith.addf %290, %291 : vector<8x128xf32>
    %cst_160 = arith.constant 5.000000e-01 : f32
    %293 = vector.broadcast %cst_160 : f32 to vector<8x128xf32>
    %294 = arith.mulf %293, %292 : vector<8x128xf32>
    %295 = vector.extract_strided_slice %286 {offsets = [0, 128], sizes = [8, 128], strides = [1, 1]} : vector<8x512xf32> to vector<8x128xf32>
    %cst_161 = arith.constant 5.000000e-01 : f32
    %296 = vector.broadcast %cst_161 : f32 to vector<8x128xf32>
    %297 = arith.mulf %296, %295 : vector<8x128xf32>
    %298 = math.tanh %297 : vector<8x128xf32>
    %cst_162 = arith.constant 1.000000e+00 : f32
    %299 = vector.broadcast %cst_162 : f32 to vector<8x128xf32>
    %300 = arith.addf %298, %299 : vector<8x128xf32>
    %cst_163 = arith.constant 5.000000e-01 : f32
    %301 = vector.broadcast %cst_163 : f32 to vector<8x128xf32>
    %302 = arith.mulf %301, %300 : vector<8x128xf32>
    %303 = vector.extract_strided_slice %286 {offsets = [0, 256], sizes = [8, 128], strides = [1, 1]} : vector<8x512xf32> to vector<8x128xf32>
    %304 = math.tanh %303 : vector<8x128xf32>
    %305 = vector.extract_strided_slice %286 {offsets = [0, 384], sizes = [8, 128], strides = [1, 1]} : vector<8x512xf32> to vector<8x128xf32>
    %cst_164 = arith.constant 5.000000e-01 : f32
    %306 = vector.broadcast %cst_164 : f32 to vector<8x128xf32>
    %307 = arith.mulf %306, %305 : vector<8x128xf32>
    %308 = math.tanh %307 : vector<8x128xf32>
    %cst_165 = arith.constant 1.000000e+00 : f32
    %309 = vector.broadcast %cst_165 : f32 to vector<8x128xf32>
    %310 = arith.addf %308, %309 : vector<8x128xf32>
    %cst_166 = arith.constant 5.000000e-01 : f32
    %311 = vector.broadcast %cst_166 : f32 to vector<8x128xf32>
    %312 = arith.mulf %311, %310 : vector<8x128xf32>
    %313 = arith.mulf %302, %281 : vector<8x128xf32>
    %314 = arith.mulf %294, %304 : vector<8x128xf32>
    %315 = arith.addf %313, %314 : vector<8x128xf32>
    %316 = math.tanh %315 : vector<8x128xf32>
    %317 = arith.mulf %312, %316 : vector<8x128xf32>
    %c0_167 = arith.constant 0 : index
    %c0_168 = arith.constant 0 : index
    %318 = vector.load %arg10[%c0_167, %c0_168] : memref<8x128xf32, #tpu.memory_space<vmem>>, vector<8x128xf32>
    tpu.vector_store %arg10[%c0_167, %c0_168], %317 {strides = array<i32>} : memref<8x128xf32, #tpu.memory_space<vmem>>, vector<8x128xf32>,
    %c0_169 = arith.constant 0 : index
    %c0_170 = arith.constant 0 : index
    %319 = vector.load %arg11[%c0_169, %c0_170] : memref<8x128xf32, #tpu.memory_space<vmem>>, vector<8x128xf32>
    tpu.vector_store %arg11[%c0_169, %c0_170], %315 {strides = array<i32>} : memref<8x128xf32, #tpu.memory_space<vmem>>, vector<8x128xf32>,
    %320 = arith.index_cast %c6_i32 : i32 to index
    %c0_171 = arith.constant 0 : index
    %c0_172 = arith.constant 0 : index
    %321 = vector.load %arg8[%320, %c0_171, %c0_172] : memref<8x8x128xf32, #tpu.memory_space<vmem>>, vector<1x8x128xf32>
    %322 = vector.shape_cast %321 : vector<1x8x128xf32> to vector<8x128xf32>
    %323 = vector.shape_cast %317 : vector<8x128xf32> to vector<1x8x128xf32>
    tpu.vector_store %arg8[%320, %c0_171, %c0_172], %323 {strides = array<i32>} : memref<8x8x128xf32, #tpu.memory_space<vmem>>, vector<1x8x128xf32>,
    %c7_i32 = arith.constant 7 : i32
    %c0_173 = arith.constant 0 : index
    %c0_174 = arith.constant 0 : index
    %324 = vector.load %arg10[%c0_173, %c0_174] : memref<8x128xf32, #tpu.memory_space<vmem>>, vector<8x128xf32>
    %c0_175 = arith.constant 0 : index
    %c0_176 = arith.constant 0 : index
    %325 = vector.load %arg11[%c0_175, %c0_176] : memref<8x128xf32, #tpu.memory_space<vmem>>, vector<8x128xf32>
    %326 = arith.index_cast %c7_i32 : i32 to index
    %c0_177 = arith.constant 0 : index
    %c0_178 = arith.constant 0 : index
    %327 = vector.load %arg9[%326, %c0_177, %c0_178] : memref<8x8x512xf32, #tpu.memory_space<vmem>>, vector<1x8x512xf32>
    %328 = vector.shape_cast %327 : vector<1x8x512xf32> to vector<8x512xf32>
    %cst_179 = arith.constant dense<0.000000e+00> : vector<8x512xf32>
    %329 = tpu.matmul %324, %1, %cst_179 {dimension_numbers = #tpu.dot_dimension_numbers<[1], [0], [0], [1], [0, 0, 1, 1], [], []>} : vector<8x128xf32>, vector<128x512xf32>, vector<8x512xf32> -> vector<8x512xf32>
    %330 = arith.addf %328, %329 : vector<8x512xf32>
    %331 = vector.extract_strided_slice %330 {offsets = [0, 0], sizes = [8, 128], strides = [1, 1]} : vector<8x512xf32> to vector<8x128xf32>
    %cst_180 = arith.constant 5.000000e-01 : f32
    %332 = vector.broadcast %cst_180 : f32 to vector<8x128xf32>
    %333 = arith.mulf %332, %331 : vector<8x128xf32>
    %334 = math.tanh %333 : vector<8x128xf32>
    %cst_181 = arith.constant 1.000000e+00 : f32
    %335 = vector.broadcast %cst_181 : f32 to vector<8x128xf32>
    %336 = arith.addf %334, %335 : vector<8x128xf32>
    %cst_182 = arith.constant 5.000000e-01 : f32
    %337 = vector.broadcast %cst_182 : f32 to vector<8x128xf32>
    %338 = arith.mulf %337, %336 : vector<8x128xf32>
    %339 = vector.extract_strided_slice %330 {offsets = [0, 128], sizes = [8, 128], strides = [1, 1]} : vector<8x512xf32> to vector<8x128xf32>
    %cst_183 = arith.constant 5.000000e-01 : f32
    %340 = vector.broadcast %cst_183 : f32 to vector<8x128xf32>
    %341 = arith.mulf %340, %339 : vector<8x128xf32>
    %342 = math.tanh %341 : vector<8x128xf32>
    %cst_184 = arith.constant 1.000000e+00 : f32
    %343 = vector.broadcast %cst_184 : f32 to vector<8x128xf32>
    %344 = arith.addf %342, %343 : vector<8x128xf32>
    %cst_185 = arith.constant 5.000000e-01 : f32
    %345 = vector.broadcast %cst_185 : f32 to vector<8x128xf32>
    %346 = arith.mulf %345, %344 : vector<8x128xf32>
    %347 = vector.extract_strided_slice %330 {offsets = [0, 256], sizes = [8, 128], strides = [1, 1]} : vector<8x512xf32> to vector<8x128xf32>
    %348 = math.tanh %347 : vector<8x128xf32>
    %349 = vector.extract_strided_slice %330 {offsets = [0, 384], sizes = [8, 128], strides = [1, 1]} : vector<8x512xf32> to vector<8x128xf32>
    %cst_186 = arith.constant 5.000000e-01 : f32
    %350 = vector.broadcast %cst_186 : f32 to vector<8x128xf32>
    %351 = arith.mulf %350, %349 : vector<8x128xf32>
    %352 = math.tanh %351 : vector<8x128xf32>
    %cst_187 = arith.constant 1.000000e+00 : f32
    %353 = vector.broadcast %cst_187 : f32 to vector<8x128xf32>
    %354 = arith.addf %352, %353 : vector<8x128xf32>
    %cst_188 = arith.constant 5.000000e-01 : f32
    %355 = vector.broadcast %cst_188 : f32 to vector<8x128xf32>
    %356 = arith.mulf %355, %354 : vector<8x128xf32>
    %357 = arith.mulf %346, %325 : vector<8x128xf32>
    %358 = arith.mulf %338, %348 : vector<8x128xf32>
    %359 = arith.addf %357, %358 : vector<8x128xf32>
    %360 = math.tanh %359 : vector<8x128xf32>
    %361 = arith.mulf %356, %360 : vector<8x128xf32>
    %c0_189 = arith.constant 0 : index
    %c0_190 = arith.constant 0 : index
    %362 = vector.load %arg10[%c0_189, %c0_190] : memref<8x128xf32, #tpu.memory_space<vmem>>, vector<8x128xf32>
    tpu.vector_store %arg10[%c0_189, %c0_190], %361 {strides = array<i32>} : memref<8x128xf32, #tpu.memory_space<vmem>>, vector<8x128xf32>,
    %c0_191 = arith.constant 0 : index
    %c0_192 = arith.constant 0 : index
    %363 = vector.load %arg11[%c0_191, %c0_192] : memref<8x128xf32, #tpu.memory_space<vmem>>, vector<8x128xf32>
    tpu.vector_store %arg11[%c0_191, %c0_192], %359 {strides = array<i32>} : memref<8x128xf32, #tpu.memory_space<vmem>>, vector<8x128xf32>,
    %364 = arith.index_cast %c7_i32 : i32 to index
    %c0_193 = arith.constant 0 : index
    %c0_194 = arith.constant 0 : index
    %365 = vector.load %arg8[%364, %c0_193, %c0_194] : memref<8x8x128xf32, #tpu.memory_space<vmem>>, vector<1x8x128xf32>
    %366 = vector.shape_cast %365 : vector<1x8x128xf32> to vector<8x128xf32>
    %367 = vector.shape_cast %361 : vector<8x128xf32> to vector<1x8x128xf32>
    tpu.vector_store %arg8[%364, %c0_193, %c0_194], %367 {strides = array<i32>} : memref<8x8x128xf32, #tpu.memory_space<vmem>>, vector<1x8x128xf32>,
    %c8_i32 = arith.constant 8 : i32
    %c1 = arith.constant 1 : index
    %c0_195 = arith.constant 0 : index
    %c0_196 = arith.constant 0 : index
    %368 = vector.load %arg3[%c1, %c0_195, %c0_196] : memref<3x128x512xf32, #tpu.memory_space<vmem>>, vector<1x128x512xf32>
    %369 = vector.shape_cast %368 : vector<1x128x512xf32> to vector<128x512xf32>
    %c1_197 = arith.constant 1 : index
    %c0_198 = arith.constant 0 : index
    %c0_199 = arith.constant 0 : index
    %370 = vector.load %arg4[%c1_197, %c0_198, %c0_199] : memref<3x1x512xf32, #tpu.memory_space<vmem>>, vector<1x1x512xf32>
    %371 = vector.shape_cast %370 : vector<1x1x512xf32> to vector<1x512xf32>
    %c0_200 = arith.constant 0 : index
    %c0_201 = arith.constant 0 : index
    %c0_202 = arith.constant 0 : index
    %372 = vector.load %arg8[%c0_200, %c0_201, %c0_202] : memref<8x8x128xf32, #tpu.memory_space<vmem>>, vector<8x8x128xf32>
    %373 = vector.shape_cast %372 : vector<8x8x128xf32> to vector<64x128xf32>
    %c0_203 = arith.constant 0 : index
    %c0_204 = arith.constant 0 : index
    %c0_205 = arith.constant 0 : index
    %374 = vector.load %arg2[%c0_203, %c0_204, %c0_205] : memref<2x128x512xf32, #tpu.memory_space<vmem>>, vector<1x128x512xf32>
    %375 = vector.shape_cast %374 : vector<1x128x512xf32> to vector<128x512xf32>
    %cst_206 = arith.constant dense<0.000000e+00> : vector<64x512xf32>
    %376 = tpu.matmul %373, %375, %cst_206 {dimension_numbers = #tpu.dot_dimension_numbers<[1], [0], [0], [1], [0, 0, 1, 1], [], []>} : vector<64x128xf32>, vector<128x512xf32>, vector<64x512xf32> -> vector<64x512xf32>
    %377 = vector.broadcast %371 : vector<1x512xf32> to vector<64x512xf32>
    %378 = arith.addf %376, %377 : vector<64x512xf32>
    %379 = vector.shape_cast %378 : vector<64x512xf32> to vector<8x8x512xf32>
    %c0_207 = arith.constant 0 : index
    %c0_208 = arith.constant 0 : index
    %c0_209 = arith.constant 0 : index
    %380 = vector.load %arg9[%c0_207, %c0_208, %c0_209] : memref<8x8x512xf32, #tpu.memory_space<vmem>>, vector<8x8x512xf32>
    tpu.vector_store %arg9[%c0_207, %c0_208, %c0_209], %379 {strides = array<i32>} : memref<8x8x512xf32, #tpu.memory_space<vmem>>, vector<8x8x512xf32>,
    %cst_210 = arith.constant 0.000000e+00 : f32
    %381 = vector.broadcast %cst_210 : f32 to vector<8x128xf32>
    %c0_211 = arith.constant 0 : index
    %c0_212 = arith.constant 0 : index
    %382 = vector.load %arg10[%c0_211, %c0_212] : memref<8x128xf32, #tpu.memory_space<vmem>>, vector<8x128xf32>
    tpu.vector_store %arg10[%c0_211, %c0_212], %381 {strides = array<i32>} : memref<8x128xf32, #tpu.memory_space<vmem>>, vector<8x128xf32>,
    %cst_213 = arith.constant 0.000000e+00 : f32
    %383 = vector.broadcast %cst_213 : f32 to vector<8x128xf32>
    %c0_214 = arith.constant 0 : index
    %c0_215 = arith.constant 0 : index
    %384 = vector.load %arg11[%c0_214, %c0_215] : memref<8x128xf32, #tpu.memory_space<vmem>>, vector<8x128xf32>
    tpu.vector_store %arg11[%c0_214, %c0_215], %383 {strides = array<i32>} : memref<8x128xf32, #tpu.memory_space<vmem>>, vector<8x128xf32>,
    %c0_i32_216 = arith.constant 0 : i32
    %c0_217 = arith.constant 0 : index
    %c0_218 = arith.constant 0 : index
    %385 = vector.load %arg10[%c0_217, %c0_218] : memref<8x128xf32, #tpu.memory_space<vmem>>, vector<8x128xf32>
    %c0_219 = arith.constant 0 : index
    %c0_220 = arith.constant 0 : index
    %386 = vector.load %arg11[%c0_219, %c0_220] : memref<8x128xf32, #tpu.memory_space<vmem>>, vector<8x128xf32>
    %387 = arith.index_cast %c0_i32_216 : i32 to index
    %c0_221 = arith.constant 0 : index
    %c0_222 = arith.constant 0 : index
    %388 = vector.load %arg9[%387, %c0_221, %c0_222] : memref<8x8x512xf32, #tpu.memory_space<vmem>>, vector<1x8x512xf32>
    %389 = vector.shape_cast %388 : vector<1x8x512xf32> to vector<8x512xf32>
    %cst_223 = arith.constant dense<0.000000e+00> : vector<8x512xf32>
    %390 = tpu.matmul %385, %369, %cst_223 {dimension_numbers = #tpu.dot_dimension_numbers<[1], [0], [0], [1], [0, 0, 1, 1], [], []>} : vector<8x128xf32>, vector<128x512xf32>, vector<8x512xf32> -> vector<8x512xf32>
    %391 = arith.addf %389, %390 : vector<8x512xf32>
    %392 = vector.extract_strided_slice %391 {offsets = [0, 0], sizes = [8, 128], strides = [1, 1]} : vector<8x512xf32> to vector<8x128xf32>
    %cst_224 = arith.constant 5.000000e-01 : f32
    %393 = vector.broadcast %cst_224 : f32 to vector<8x128xf32>
    %394 = arith.mulf %393, %392 : vector<8x128xf32>
    %395 = math.tanh %394 : vector<8x128xf32>
    %cst_225 = arith.constant 1.000000e+00 : f32
    %396 = vector.broadcast %cst_225 : f32 to vector<8x128xf32>
    %397 = arith.addf %395, %396 : vector<8x128xf32>
    %cst_226 = arith.constant 5.000000e-01 : f32
    %398 = vector.broadcast %cst_226 : f32 to vector<8x128xf32>
    %399 = arith.mulf %398, %397 : vector<8x128xf32>
    %400 = vector.extract_strided_slice %391 {offsets = [0, 128], sizes = [8, 128], strides = [1, 1]} : vector<8x512xf32> to vector<8x128xf32>
    %cst_227 = arith.constant 5.000000e-01 : f32
    %401 = vector.broadcast %cst_227 : f32 to vector<8x128xf32>
    %402 = arith.mulf %401, %400 : vector<8x128xf32>
    %403 = math.tanh %402 : vector<8x128xf32>
    %cst_228 = arith.constant 1.000000e+00 : f32
    %404 = vector.broadcast %cst_228 : f32 to vector<8x128xf32>
    %405 = arith.addf %403, %404 : vector<8x128xf32>
    %cst_229 = arith.constant 5.000000e-01 : f32
    %406 = vector.broadcast %cst_229 : f32 to vector<8x128xf32>
    %407 = arith.mulf %406, %405 : vector<8x128xf32>
    %408 = vector.extract_strided_slice %391 {offsets = [0, 256], sizes = [8, 128], strides = [1, 1]} : vector<8x512xf32> to vector<8x128xf32>
    %409 = math.tanh %408 : vector<8x128xf32>
    %410 = vector.extract_strided_slice %391 {offsets = [0, 384], sizes = [8, 128], strides = [1, 1]} : vector<8x512xf32> to vector<8x128xf32>
    %cst_230 = arith.constant 5.000000e-01 : f32
    %411 = vector.broadcast %cst_230 : f32 to vector<8x128xf32>
    %412 = arith.mulf %411, %410 : vector<8x128xf32>
    %413 = math.tanh %412 : vector<8x128xf32>
    %cst_231 = arith.constant 1.000000e+00 : f32
    %414 = vector.broadcast %cst_231 : f32 to vector<8x128xf32>
    %415 = arith.addf %413, %414 : vector<8x128xf32>
    %cst_232 = arith.constant 5.000000e-01 : f32
    %416 = vector.broadcast %cst_232 : f32 to vector<8x128xf32>
    %417 = arith.mulf %416, %415 : vector<8x128xf32>
    %418 = arith.mulf %407, %386 : vector<8x128xf32>
    %419 = arith.mulf %399, %409 : vector<8x128xf32>
    %420 = arith.addf %418, %419 : vector<8x128xf32>
    %421 = math.tanh %420 : vector<8x128xf32>
    %422 = arith.mulf %417, %421 : vector<8x128xf32>
    %c0_233 = arith.constant 0 : index
    %c0_234 = arith.constant 0 : index
    %423 = vector.load %arg10[%c0_233, %c0_234] : memref<8x128xf32, #tpu.memory_space<vmem>>, vector<8x128xf32>
    tpu.vector_store %arg10[%c0_233, %c0_234], %422 {strides = array<i32>} : memref<8x128xf32, #tpu.memory_space<vmem>>, vector<8x128xf32>,
    %c0_235 = arith.constant 0 : index
    %c0_236 = arith.constant 0 : index
    %424 = vector.load %arg11[%c0_235, %c0_236] : memref<8x128xf32, #tpu.memory_space<vmem>>, vector<8x128xf32>
    tpu.vector_store %arg11[%c0_235, %c0_236], %420 {strides = array<i32>} : memref<8x128xf32, #tpu.memory_space<vmem>>, vector<8x128xf32>,
    %425 = arith.index_cast %c0_i32_216 : i32 to index
    %c0_237 = arith.constant 0 : index
    %c0_238 = arith.constant 0 : index
    %426 = vector.load %arg8[%425, %c0_237, %c0_238] : memref<8x8x128xf32, #tpu.memory_space<vmem>>, vector<1x8x128xf32>
    %427 = vector.shape_cast %426 : vector<1x8x128xf32> to vector<8x128xf32>
    %428 = vector.shape_cast %422 : vector<8x128xf32> to vector<1x8x128xf32>
    tpu.vector_store %arg8[%425, %c0_237, %c0_238], %428 {strides = array<i32>} : memref<8x8x128xf32, #tpu.memory_space<vmem>>, vector<1x8x128xf32>,
    %c1_i32_239 = arith.constant 1 : i32
    %c0_240 = arith.constant 0 : index
    %c0_241 = arith.constant 0 : index
    %429 = vector.load %arg10[%c0_240, %c0_241] : memref<8x128xf32, #tpu.memory_space<vmem>>, vector<8x128xf32>
    %c0_242 = arith.constant 0 : index
    %c0_243 = arith.constant 0 : index
    %430 = vector.load %arg11[%c0_242, %c0_243] : memref<8x128xf32, #tpu.memory_space<vmem>>, vector<8x128xf32>
    %431 = arith.index_cast %c1_i32_239 : i32 to index
    %c0_244 = arith.constant 0 : index
    %c0_245 = arith.constant 0 : index
    %432 = vector.load %arg9[%431, %c0_244, %c0_245] : memref<8x8x512xf32, #tpu.memory_space<vmem>>, vector<1x8x512xf32>
    %433 = vector.shape_cast %432 : vector<1x8x512xf32> to vector<8x512xf32>
    %cst_246 = arith.constant dense<0.000000e+00> : vector<8x512xf32>
    %434 = tpu.matmul %429, %369, %cst_246 {dimension_numbers = #tpu.dot_dimension_numbers<[1], [0], [0], [1], [0, 0, 1, 1], [], []>} : vector<8x128xf32>, vector<128x512xf32>, vector<8x512xf32> -> vector<8x512xf32>
    %435 = arith.addf %433, %434 : vector<8x512xf32>
    %436 = vector.extract_strided_slice %435 {offsets = [0, 0], sizes = [8, 128], strides = [1, 1]} : vector<8x512xf32> to vector<8x128xf32>
    %cst_247 = arith.constant 5.000000e-01 : f32
    %437 = vector.broadcast %cst_247 : f32 to vector<8x128xf32>
    %438 = arith.mulf %437, %436 : vector<8x128xf32>
    %439 = math.tanh %438 : vector<8x128xf32>
    %cst_248 = arith.constant 1.000000e+00 : f32
    %440 = vector.broadcast %cst_248 : f32 to vector<8x128xf32>
    %441 = arith.addf %439, %440 : vector<8x128xf32>
    %cst_249 = arith.constant 5.000000e-01 : f32
    %442 = vector.broadcast %cst_249 : f32 to vector<8x128xf32>
    %443 = arith.mulf %442, %441 : vector<8x128xf32>
    %444 = vector.extract_strided_slice %435 {offsets = [0, 128], sizes = [8, 128], strides = [1, 1]} : vector<8x512xf32> to vector<8x128xf32>
    %cst_250 = arith.constant 5.000000e-01 : f32
    %445 = vector.broadcast %cst_250 : f32 to vector<8x128xf32>
    %446 = arith.mulf %445, %444 : vector<8x128xf32>
    %447 = math.tanh %446 : vector<8x128xf32>
    %cst_251 = arith.constant 1.000000e+00 : f32
    %448 = vector.broadcast %cst_251 : f32 to vector<8x128xf32>
    %449 = arith.addf %447, %448 : vector<8x128xf32>
    %cst_252 = arith.constant 5.000000e-01 : f32
    %450 = vector.broadcast %cst_252 : f32 to vector<8x128xf32>
    %451 = arith.mulf %450, %449 : vector<8x128xf32>
    %452 = vector.extract_strided_slice %435 {offsets = [0, 256], sizes = [8, 128], strides = [1, 1]} : vector<8x512xf32> to vector<8x128xf32>
    %453 = math.tanh %452 : vector<8x128xf32>
    %454 = vector.extract_strided_slice %435 {offsets = [0, 384], sizes = [8, 128], strides = [1, 1]} : vector<8x512xf32> to vector<8x128xf32>
    %cst_253 = arith.constant 5.000000e-01 : f32
    %455 = vector.broadcast %cst_253 : f32 to vector<8x128xf32>
    %456 = arith.mulf %455, %454 : vector<8x128xf32>
    %457 = math.tanh %456 : vector<8x128xf32>
    %cst_254 = arith.constant 1.000000e+00 : f32
    %458 = vector.broadcast %cst_254 : f32 to vector<8x128xf32>
    %459 = arith.addf %457, %458 : vector<8x128xf32>
    %cst_255 = arith.constant 5.000000e-01 : f32
    %460 = vector.broadcast %cst_255 : f32 to vector<8x128xf32>
    %461 = arith.mulf %460, %459 : vector<8x128xf32>
    %462 = arith.mulf %451, %430 : vector<8x128xf32>
    %463 = arith.mulf %443, %453 : vector<8x128xf32>
    %464 = arith.addf %462, %463 : vector<8x128xf32>
    %465 = math.tanh %464 : vector<8x128xf32>
    %466 = arith.mulf %461, %465 : vector<8x128xf32>
    %c0_256 = arith.constant 0 : index
    %c0_257 = arith.constant 0 : index
    %467 = vector.load %arg10[%c0_256, %c0_257] : memref<8x128xf32, #tpu.memory_space<vmem>>, vector<8x128xf32>
    tpu.vector_store %arg10[%c0_256, %c0_257], %466 {strides = array<i32>} : memref<8x128xf32, #tpu.memory_space<vmem>>, vector<8x128xf32>,
    %c0_258 = arith.constant 0 : index
    %c0_259 = arith.constant 0 : index
    %468 = vector.load %arg11[%c0_258, %c0_259] : memref<8x128xf32, #tpu.memory_space<vmem>>, vector<8x128xf32>
    tpu.vector_store %arg11[%c0_258, %c0_259], %464 {strides = array<i32>} : memref<8x128xf32, #tpu.memory_space<vmem>>, vector<8x128xf32>,
    %469 = arith.index_cast %c1_i32_239 : i32 to index
    %c0_260 = arith.constant 0 : index
    %c0_261 = arith.constant 0 : index
    %470 = vector.load %arg8[%469, %c0_260, %c0_261] : memref<8x8x128xf32, #tpu.memory_space<vmem>>, vector<1x8x128xf32>
    %471 = vector.shape_cast %470 : vector<1x8x128xf32> to vector<8x128xf32>
    %472 = vector.shape_cast %466 : vector<8x128xf32> to vector<1x8x128xf32>
    tpu.vector_store %arg8[%469, %c0_260, %c0_261], %472 {strides = array<i32>} : memref<8x8x128xf32, #tpu.memory_space<vmem>>, vector<1x8x128xf32>,
    %c2_i32_262 = arith.constant 2 : i32
    %c0_263 = arith.constant 0 : index
    %c0_264 = arith.constant 0 : index
    %473 = vector.load %arg10[%c0_263, %c0_264] : memref<8x128xf32, #tpu.memory_space<vmem>>, vector<8x128xf32>
    %c0_265 = arith.constant 0 : index
    %c0_266 = arith.constant 0 : index
    %474 = vector.load %arg11[%c0_265, %c0_266] : memref<8x128xf32, #tpu.memory_space<vmem>>, vector<8x128xf32>
    %475 = arith.index_cast %c2_i32_262 : i32 to index
    %c0_267 = arith.constant 0 : index
    %c0_268 = arith.constant 0 : index
    %476 = vector.load %arg9[%475, %c0_267, %c0_268] : memref<8x8x512xf32, #tpu.memory_space<vmem>>, vector<1x8x512xf32>
    %477 = vector.shape_cast %476 : vector<1x8x512xf32> to vector<8x512xf32>
    %cst_269 = arith.constant dense<0.000000e+00> : vector<8x512xf32>
    %478 = tpu.matmul %473, %369, %cst_269 {dimension_numbers = #tpu.dot_dimension_numbers<[1], [0], [0], [1], [0, 0, 1, 1], [], []>} : vector<8x128xf32>, vector<128x512xf32>, vector<8x512xf32> -> vector<8x512xf32>
    %479 = arith.addf %477, %478 : vector<8x512xf32>
    %480 = vector.extract_strided_slice %479 {offsets = [0, 0], sizes = [8, 128], strides = [1, 1]} : vector<8x512xf32> to vector<8x128xf32>
    %cst_270 = arith.constant 5.000000e-01 : f32
    %481 = vector.broadcast %cst_270 : f32 to vector<8x128xf32>
    %482 = arith.mulf %481, %480 : vector<8x128xf32>
    %483 = math.tanh %482 : vector<8x128xf32>
    %cst_271 = arith.constant 1.000000e+00 : f32
    %484 = vector.broadcast %cst_271 : f32 to vector<8x128xf32>
    %485 = arith.addf %483, %484 : vector<8x128xf32>
    %cst_272 = arith.constant 5.000000e-01 : f32
    %486 = vector.broadcast %cst_272 : f32 to vector<8x128xf32>
    %487 = arith.mulf %486, %485 : vector<8x128xf32>
    %488 = vector.extract_strided_slice %479 {offsets = [0, 128], sizes = [8, 128], strides = [1, 1]} : vector<8x512xf32> to vector<8x128xf32>
    %cst_273 = arith.constant 5.000000e-01 : f32
    %489 = vector.broadcast %cst_273 : f32 to vector<8x128xf32>
    %490 = arith.mulf %489, %488 : vector<8x128xf32>
    %491 = math.tanh %490 : vector<8x128xf32>
    %cst_274 = arith.constant 1.000000e+00 : f32
    %492 = vector.broadcast %cst_274 : f32 to vector<8x128xf32>
    %493 = arith.addf %491, %492 : vector<8x128xf32>
    %cst_275 = arith.constant 5.000000e-01 : f32
    %494 = vector.broadcast %cst_275 : f32 to vector<8x128xf32>
    %495 = arith.mulf %494, %493 : vector<8x128xf32>
    %496 = vector.extract_strided_slice %479 {offsets = [0, 256], sizes = [8, 128], strides = [1, 1]} : vector<8x512xf32> to vector<8x128xf32>
    %497 = math.tanh %496 : vector<8x128xf32>
    %498 = vector.extract_strided_slice %479 {offsets = [0, 384], sizes = [8, 128], strides = [1, 1]} : vector<8x512xf32> to vector<8x128xf32>
    %cst_276 = arith.constant 5.000000e-01 : f32
    %499 = vector.broadcast %cst_276 : f32 to vector<8x128xf32>
    %500 = arith.mulf %499, %498 : vector<8x128xf32>
    %501 = math.tanh %500 : vector<8x128xf32>
    %cst_277 = arith.constant 1.000000e+00 : f32
    %502 = vector.broadcast %cst_277 : f32 to vector<8x128xf32>
    %503 = arith.addf %501, %502 : vector<8x128xf32>
    %cst_278 = arith.constant 5.000000e-01 : f32
    %504 = vector.broadcast %cst_278 : f32 to vector<8x128xf32>
    %505 = arith.mulf %504, %503 : vector<8x128xf32>
    %506 = arith.mulf %495, %474 : vector<8x128xf32>
    %507 = arith.mulf %487, %497 : vector<8x128xf32>
    %508 = arith.addf %506, %507 : vector<8x128xf32>
    %509 = math.tanh %508 : vector<8x128xf32>
    %510 = arith.mulf %505, %509 : vector<8x128xf32>
    %c0_279 = arith.constant 0 : index
    %c0_280 = arith.constant 0 : index
    %511 = vector.load %arg10[%c0_279, %c0_280] : memref<8x128xf32, #tpu.memory_space<vmem>>, vector<8x128xf32>
    tpu.vector_store %arg10[%c0_279, %c0_280], %510 {strides = array<i32>} : memref<8x128xf32, #tpu.memory_space<vmem>>, vector<8x128xf32>,
    %c0_281 = arith.constant 0 : index
    %c0_282 = arith.constant 0 : index
    %512 = vector.load %arg11[%c0_281, %c0_282] : memref<8x128xf32, #tpu.memory_space<vmem>>, vector<8x128xf32>
    tpu.vector_store %arg11[%c0_281, %c0_282], %508 {strides = array<i32>} : memref<8x128xf32, #tpu.memory_space<vmem>>, vector<8x128xf32>,
    %513 = arith.index_cast %c2_i32_262 : i32 to index
    %c0_283 = arith.constant 0 : index
    %c0_284 = arith.constant 0 : index
    %514 = vector.load %arg8[%513, %c0_283, %c0_284] : memref<8x8x128xf32, #tpu.memory_space<vmem>>, vector<1x8x128xf32>
    %515 = vector.shape_cast %514 : vector<1x8x128xf32> to vector<8x128xf32>
    %516 = vector.shape_cast %510 : vector<8x128xf32> to vector<1x8x128xf32>
    tpu.vector_store %arg8[%513, %c0_283, %c0_284], %516 {strides = array<i32>} : memref<8x8x128xf32, #tpu.memory_space<vmem>>, vector<1x8x128xf32>,
    %c3_i32_285 = arith.constant 3 : i32
    %c0_286 = arith.constant 0 : index
    %c0_287 = arith.constant 0 : index
    %517 = vector.load %arg10[%c0_286, %c0_287] : memref<8x128xf32, #tpu.memory_space<vmem>>, vector<8x128xf32>
    %c0_288 = arith.constant 0 : index
    %c0_289 = arith.constant 0 : index
    %518 = vector.load %arg11[%c0_288, %c0_289] : memref<8x128xf32, #tpu.memory_space<vmem>>, vector<8x128xf32>
    %519 = arith.index_cast %c3_i32_285 : i32 to index
    %c0_290 = arith.constant 0 : index
    %c0_291 = arith.constant 0 : index
    %520 = vector.load %arg9[%519, %c0_290, %c0_291] : memref<8x8x512xf32, #tpu.memory_space<vmem>>, vector<1x8x512xf32>
    %521 = vector.shape_cast %520 : vector<1x8x512xf32> to vector<8x512xf32>
    %cst_292 = arith.constant dense<0.000000e+00> : vector<8x512xf32>
    %522 = tpu.matmul %517, %369, %cst_292 {dimension_numbers = #tpu.dot_dimension_numbers<[1], [0], [0], [1], [0, 0, 1, 1], [], []>} : vector<8x128xf32>, vector<128x512xf32>, vector<8x512xf32> -> vector<8x512xf32>
    %523 = arith.addf %521, %522 : vector<8x512xf32>
    %524 = vector.extract_strided_slice %523 {offsets = [0, 0], sizes = [8, 128], strides = [1, 1]} : vector<8x512xf32> to vector<8x128xf32>
    %cst_293 = arith.constant 5.000000e-01 : f32
    %525 = vector.broadcast %cst_293 : f32 to vector<8x128xf32>
    %526 = arith.mulf %525, %524 : vector<8x128xf32>
    %527 = math.tanh %526 : vector<8x128xf32>
    %cst_294 = arith.constant 1.000000e+00 : f32
    %528 = vector.broadcast %cst_294 : f32 to vector<8x128xf32>
    %529 = arith.addf %527, %528 : vector<8x128xf32>
    %cst_295 = arith.constant 5.000000e-01 : f32
    %530 = vector.broadcast %cst_295 : f32 to vector<8x128xf32>
    %531 = arith.mulf %530, %529 : vector<8x128xf32>
    %532 = vector.extract_strided_slice %523 {offsets = [0, 128], sizes = [8, 128], strides = [1, 1]} : vector<8x512xf32> to vector<8x128xf32>
    %cst_296 = arith.constant 5.000000e-01 : f32
    %533 = vector.broadcast %cst_296 : f32 to vector<8x128xf32>
    %534 = arith.mulf %533, %532 : vector<8x128xf32>
    %535 = math.tanh %534 : vector<8x128xf32>
    %cst_297 = arith.constant 1.000000e+00 : f32
    %536 = vector.broadcast %cst_297 : f32 to vector<8x128xf32>
    %537 = arith.addf %535, %536 : vector<8x128xf32>
    %cst_298 = arith.constant 5.000000e-01 : f32
    %538 = vector.broadcast %cst_298 : f32 to vector<8x128xf32>
    %539 = arith.mulf %538, %537 : vector<8x128xf32>
    %540 = vector.extract_strided_slice %523 {offsets = [0, 256], sizes = [8, 128], strides = [1, 1]} : vector<8x512xf32> to vector<8x128xf32>
    %541 = math.tanh %540 : vector<8x128xf32>
    %542 = vector.extract_strided_slice %523 {offsets = [0, 384], sizes = [8, 128], strides = [1, 1]} : vector<8x512xf32> to vector<8x128xf32>
    %cst_299 = arith.constant 5.000000e-01 : f32
    %543 = vector.broadcast %cst_299 : f32 to vector<8x128xf32>
    %544 = arith.mulf %543, %542 : vector<8x128xf32>
    %545 = math.tanh %544 : vector<8x128xf32>
    %cst_300 = arith.constant 1.000000e+00 : f32
    %546 = vector.broadcast %cst_300 : f32 to vector<8x128xf32>
    %547 = arith.addf %545, %546 : vector<8x128xf32>
    %cst_301 = arith.constant 5.000000e-01 : f32
    %548 = vector.broadcast %cst_301 : f32 to vector<8x128xf32>
    %549 = arith.mulf %548, %547 : vector<8x128xf32>
    %550 = arith.mulf %539, %518 : vector<8x128xf32>
    %551 = arith.mulf %531, %541 : vector<8x128xf32>
    %552 = arith.addf %550, %551 : vector<8x128xf32>
    %553 = math.tanh %552 : vector<8x128xf32>
    %554 = arith.mulf %549, %553 : vector<8x128xf32>
    %c0_302 = arith.constant 0 : index
    %c0_303 = arith.constant 0 : index
    %555 = vector.load %arg10[%c0_302, %c0_303] : memref<8x128xf32, #tpu.memory_space<vmem>>, vector<8x128xf32>
    tpu.vector_store %arg10[%c0_302, %c0_303], %554 {strides = array<i32>} : memref<8x128xf32, #tpu.memory_space<vmem>>, vector<8x128xf32>,
    %c0_304 = arith.constant 0 : index
    %c0_305 = arith.constant 0 : index
    %556 = vector.load %arg11[%c0_304, %c0_305] : memref<8x128xf32, #tpu.memory_space<vmem>>, vector<8x128xf32>
    tpu.vector_store %arg11[%c0_304, %c0_305], %552 {strides = array<i32>} : memref<8x128xf32, #tpu.memory_space<vmem>>, vector<8x128xf32>,
    %557 = arith.index_cast %c3_i32_285 : i32 to index
    %c0_306 = arith.constant 0 : index
    %c0_307 = arith.constant 0 : index
    %558 = vector.load %arg8[%557, %c0_306, %c0_307] : memref<8x8x128xf32, #tpu.memory_space<vmem>>, vector<1x8x128xf32>
    %559 = vector.shape_cast %558 : vector<1x8x128xf32> to vector<8x128xf32>
    %560 = vector.shape_cast %554 : vector<8x128xf32> to vector<1x8x128xf32>
    tpu.vector_store %arg8[%557, %c0_306, %c0_307], %560 {strides = array<i32>} : memref<8x8x128xf32, #tpu.memory_space<vmem>>, vector<1x8x128xf32>,
    %c4_i32_308 = arith.constant 4 : i32
    %c0_309 = arith.constant 0 : index
    %c0_310 = arith.constant 0 : index
    %561 = vector.load %arg10[%c0_309, %c0_310] : memref<8x128xf32, #tpu.memory_space<vmem>>, vector<8x128xf32>
    %c0_311 = arith.constant 0 : index
    %c0_312 = arith.constant 0 : index
    %562 = vector.load %arg11[%c0_311, %c0_312] : memref<8x128xf32, #tpu.memory_space<vmem>>, vector<8x128xf32>
    %563 = arith.index_cast %c4_i32_308 : i32 to index
    %c0_313 = arith.constant 0 : index
    %c0_314 = arith.constant 0 : index
    %564 = vector.load %arg9[%563, %c0_313, %c0_314] : memref<8x8x512xf32, #tpu.memory_space<vmem>>, vector<1x8x512xf32>
    %565 = vector.shape_cast %564 : vector<1x8x512xf32> to vector<8x512xf32>
    %cst_315 = arith.constant dense<0.000000e+00> : vector<8x512xf32>
    %566 = tpu.matmul %561, %369, %cst_315 {dimension_numbers = #tpu.dot_dimension_numbers<[1], [0], [0], [1], [0, 0, 1, 1], [], []>} : vector<8x128xf32>, vector<128x512xf32>, vector<8x512xf32> -> vector<8x512xf32>
    %567 = arith.addf %565, %566 : vector<8x512xf32>
    %568 = vector.extract_strided_slice %567 {offsets = [0, 0], sizes = [8, 128], strides = [1, 1]} : vector<8x512xf32> to vector<8x128xf32>
    %cst_316 = arith.constant 5.000000e-01 : f32
    %569 = vector.broadcast %cst_316 : f32 to vector<8x128xf32>
    %570 = arith.mulf %569, %568 : vector<8x128xf32>
    %571 = math.tanh %570 : vector<8x128xf32>
    %cst_317 = arith.constant 1.000000e+00 : f32
    %572 = vector.broadcast %cst_317 : f32 to vector<8x128xf32>
    %573 = arith.addf %571, %572 : vector<8x128xf32>
    %cst_318 = arith.constant 5.000000e-01 : f32
    %574 = vector.broadcast %cst_318 : f32 to vector<8x128xf32>
    %575 = arith.mulf %574, %573 : vector<8x128xf32>
    %576 = vector.extract_strided_slice %567 {offsets = [0, 128], sizes = [8, 128], strides = [1, 1]} : vector<8x512xf32> to vector<8x128xf32>
    %cst_319 = arith.constant 5.000000e-01 : f32
    %577 = vector.broadcast %cst_319 : f32 to vector<8x128xf32>
    %578 = arith.mulf %577, %576 : vector<8x128xf32>
    %579 = math.tanh %578 : vector<8x128xf32>
    %cst_320 = arith.constant 1.000000e+00 : f32
    %580 = vector.broadcast %cst_320 : f32 to vector<8x128xf32>
    %581 = arith.addf %579, %580 : vector<8x128xf32>
    %cst_321 = arith.constant 5.000000e-01 : f32
    %582 = vector.broadcast %cst_321 : f32 to vector<8x128xf32>
    %583 = arith.mulf %582, %581 : vector<8x128xf32>
    %584 = vector.extract_strided_slice %567 {offsets = [0, 256], sizes = [8, 128], strides = [1, 1]} : vector<8x512xf32> to vector<8x128xf32>
    %585 = math.tanh %584 : vector<8x128xf32>
    %586 = vector.extract_strided_slice %567 {offsets = [0, 384], sizes = [8, 128], strides = [1, 1]} : vector<8x512xf32> to vector<8x128xf32>
    %cst_322 = arith.constant 5.000000e-01 : f32
    %587 = vector.broadcast %cst_322 : f32 to vector<8x128xf32>
    %588 = arith.mulf %587, %586 : vector<8x128xf32>
    %589 = math.tanh %588 : vector<8x128xf32>
    %cst_323 = arith.constant 1.000000e+00 : f32
    %590 = vector.broadcast %cst_323 : f32 to vector<8x128xf32>
    %591 = arith.addf %589, %590 : vector<8x128xf32>
    %cst_324 = arith.constant 5.000000e-01 : f32
    %592 = vector.broadcast %cst_324 : f32 to vector<8x128xf32>
    %593 = arith.mulf %592, %591 : vector<8x128xf32>
    %594 = arith.mulf %583, %562 : vector<8x128xf32>
    %595 = arith.mulf %575, %585 : vector<8x128xf32>
    %596 = arith.addf %594, %595 : vector<8x128xf32>
    %597 = math.tanh %596 : vector<8x128xf32>
    %598 = arith.mulf %593, %597 : vector<8x128xf32>
    %c0_325 = arith.constant 0 : index
    %c0_326 = arith.constant 0 : index
    %599 = vector.load %arg10[%c0_325, %c0_326] : memref<8x128xf32, #tpu.memory_space<vmem>>, vector<8x128xf32>
    tpu.vector_store %arg10[%c0_325, %c0_326], %598 {strides = array<i32>} : memref<8x128xf32, #tpu.memory_space<vmem>>, vector<8x128xf32>,
    %c0_327 = arith.constant 0 : index
    %c0_328 = arith.constant 0 : index
    %600 = vector.load %arg11[%c0_327, %c0_328] : memref<8x128xf32, #tpu.memory_space<vmem>>, vector<8x128xf32>
    tpu.vector_store %arg11[%c0_327, %c0_328], %596 {strides = array<i32>} : memref<8x128xf32, #tpu.memory_space<vmem>>, vector<8x128xf32>,
    %601 = arith.index_cast %c4_i32_308 : i32 to index
    %c0_329 = arith.constant 0 : index
    %c0_330 = arith.constant 0 : index
    %602 = vector.load %arg8[%601, %c0_329, %c0_330] : memref<8x8x128xf32, #tpu.memory_space<vmem>>, vector<1x8x128xf32>
    %603 = vector.shape_cast %602 : vector<1x8x128xf32> to vector<8x128xf32>
    %604 = vector.shape_cast %598 : vector<8x128xf32> to vector<1x8x128xf32>
    tpu.vector_store %arg8[%601, %c0_329, %c0_330], %604 {strides = array<i32>} : memref<8x8x128xf32, #tpu.memory_space<vmem>>, vector<1x8x128xf32>,
    %c5_i32_331 = arith.constant 5 : i32
    %c0_332 = arith.constant 0 : index
    %c0_333 = arith.constant 0 : index
    %605 = vector.load %arg10[%c0_332, %c0_333] : memref<8x128xf32, #tpu.memory_space<vmem>>, vector<8x128xf32>
    %c0_334 = arith.constant 0 : index
    %c0_335 = arith.constant 0 : index
    %606 = vector.load %arg11[%c0_334, %c0_335] : memref<8x128xf32, #tpu.memory_space<vmem>>, vector<8x128xf32>
    %607 = arith.index_cast %c5_i32_331 : i32 to index
    %c0_336 = arith.constant 0 : index
    %c0_337 = arith.constant 0 : index
    %608 = vector.load %arg9[%607, %c0_336, %c0_337] : memref<8x8x512xf32, #tpu.memory_space<vmem>>, vector<1x8x512xf32>
    %609 = vector.shape_cast %608 : vector<1x8x512xf32> to vector<8x512xf32>
    %cst_338 = arith.constant dense<0.000000e+00> : vector<8x512xf32>
    %610 = tpu.matmul %605, %369, %cst_338 {dimension_numbers = #tpu.dot_dimension_numbers<[1], [0], [0], [1], [0, 0, 1, 1], [], []>} : vector<8x128xf32>, vector<128x512xf32>, vector<8x512xf32> -> vector<8x512xf32>
    %611 = arith.addf %609, %610 : vector<8x512xf32>
    %612 = vector.extract_strided_slice %611 {offsets = [0, 0], sizes = [8, 128], strides = [1, 1]} : vector<8x512xf32> to vector<8x128xf32>
    %cst_339 = arith.constant 5.000000e-01 : f32
    %613 = vector.broadcast %cst_339 : f32 to vector<8x128xf32>
    %614 = arith.mulf %613, %612 : vector<8x128xf32>
    %615 = math.tanh %614 : vector<8x128xf32>
    %cst_340 = arith.constant 1.000000e+00 : f32
    %616 = vector.broadcast %cst_340 : f32 to vector<8x128xf32>
    %617 = arith.addf %615, %616 : vector<8x128xf32>
    %cst_341 = arith.constant 5.000000e-01 : f32
    %618 = vector.broadcast %cst_341 : f32 to vector<8x128xf32>
    %619 = arith.mulf %618, %617 : vector<8x128xf32>
    %620 = vector.extract_strided_slice %611 {offsets = [0, 128], sizes = [8, 128], strides = [1, 1]} : vector<8x512xf32> to vector<8x128xf32>
    %cst_342 = arith.constant 5.000000e-01 : f32
    %621 = vector.broadcast %cst_342 : f32 to vector<8x128xf32>
    %622 = arith.mulf %621, %620 : vector<8x128xf32>
    %623 = math.tanh %622 : vector<8x128xf32>
    %cst_343 = arith.constant 1.000000e+00 : f32
    %624 = vector.broadcast %cst_343 : f32 to vector<8x128xf32>
    %625 = arith.addf %623, %624 : vector<8x128xf32>
    %cst_344 = arith.constant 5.000000e-01 : f32
    %626 = vector.broadcast %cst_344 : f32 to vector<8x128xf32>
    %627 = arith.mulf %626, %625 : vector<8x128xf32>
    %628 = vector.extract_strided_slice %611 {offsets = [0, 256], sizes = [8, 128], strides = [1, 1]} : vector<8x512xf32> to vector<8x128xf32>
    %629 = math.tanh %628 : vector<8x128xf32>
    %630 = vector.extract_strided_slice %611 {offsets = [0, 384], sizes = [8, 128], strides = [1, 1]} : vector<8x512xf32> to vector<8x128xf32>
    %cst_345 = arith.constant 5.000000e-01 : f32
    %631 = vector.broadcast %cst_345 : f32 to vector<8x128xf32>
    %632 = arith.mulf %631, %630 : vector<8x128xf32>
    %633 = math.tanh %632 : vector<8x128xf32>
    %cst_346 = arith.constant 1.000000e+00 : f32
    %634 = vector.broadcast %cst_346 : f32 to vector<8x128xf32>
    %635 = arith.addf %633, %634 : vector<8x128xf32>
    %cst_347 = arith.constant 5.000000e-01 : f32
    %636 = vector.broadcast %cst_347 : f32 to vector<8x128xf32>
    %637 = arith.mulf %636, %635 : vector<8x128xf32>
    %638 = arith.mulf %627, %606 : vector<8x128xf32>
    %639 = arith.mulf %619, %629 : vector<8x128xf32>
    %640 = arith.addf %638, %639 : vector<8x128xf32>
    %641 = math.tanh %640 : vector<8x128xf32>
    %642 = arith.mulf %637, %641 : vector<8x128xf32>
    %c0_348 = arith.constant 0 : index
    %c0_349 = arith.constant 0 : index
    %643 = vector.load %arg10[%c0_348, %c0_349] : memref<8x128xf32, #tpu.memory_space<vmem>>, vector<8x128xf32>
    tpu.vector_store %arg10[%c0_348, %c0_349], %642 {strides = array<i32>} : memref<8x128xf32, #tpu.memory_space<vmem>>, vector<8x128xf32>,
    %c0_350 = arith.constant 0 : index
    %c0_351 = arith.constant 0 : index
    %644 = vector.load %arg11[%c0_350, %c0_351] : memref<8x128xf32, #tpu.memory_space<vmem>>, vector<8x128xf32>
    tpu.vector_store %arg11[%c0_350, %c0_351], %640 {strides = array<i32>} : memref<8x128xf32, #tpu.memory_space<vmem>>, vector<8x128xf32>,
    %645 = arith.index_cast %c5_i32_331 : i32 to index
    %c0_352 = arith.constant 0 : index
    %c0_353 = arith.constant 0 : index
    %646 = vector.load %arg8[%645, %c0_352, %c0_353] : memref<8x8x128xf32, #tpu.memory_space<vmem>>, vector<1x8x128xf32>
    %647 = vector.shape_cast %646 : vector<1x8x128xf32> to vector<8x128xf32>
    %648 = vector.shape_cast %642 : vector<8x128xf32> to vector<1x8x128xf32>
    tpu.vector_store %arg8[%645, %c0_352, %c0_353], %648 {strides = array<i32>} : memref<8x8x128xf32, #tpu.memory_space<vmem>>, vector<1x8x128xf32>,
    %c6_i32_354 = arith.constant 6 : i32
    %c0_355 = arith.constant 0 : index
    %c0_356 = arith.constant 0 : index
    %649 = vector.load %arg10[%c0_355, %c0_356] : memref<8x128xf32, #tpu.memory_space<vmem>>, vector<8x128xf32>
    %c0_357 = arith.constant 0 : index
    %c0_358 = arith.constant 0 : index
    %650 = vector.load %arg11[%c0_357, %c0_358] : memref<8x128xf32, #tpu.memory_space<vmem>>, vector<8x128xf32>
    %651 = arith.index_cast %c6_i32_354 : i32 to index
    %c0_359 = arith.constant 0 : index
    %c0_360 = arith.constant 0 : index
    %652 = vector.load %arg9[%651, %c0_359, %c0_360] : memref<8x8x512xf32, #tpu.memory_space<vmem>>, vector<1x8x512xf32>
    %653 = vector.shape_cast %652 : vector<1x8x512xf32> to vector<8x512xf32>
    %cst_361 = arith.constant dense<0.000000e+00> : vector<8x512xf32>
    %654 = tpu.matmul %649, %369, %cst_361 {dimension_numbers = #tpu.dot_dimension_numbers<[1], [0], [0], [1], [0, 0, 1, 1], [], []>} : vector<8x128xf32>, vector<128x512xf32>, vector<8x512xf32> -> vector<8x512xf32>
    %655 = arith.addf %653, %654 : vector<8x512xf32>
    %656 = vector.extract_strided_slice %655 {offsets = [0, 0], sizes = [8, 128], strides = [1, 1]} : vector<8x512xf32> to vector<8x128xf32>
    %cst_362 = arith.constant 5.000000e-01 : f32
    %657 = vector.broadcast %cst_362 : f32 to vector<8x128xf32>
    %658 = arith.mulf %657, %656 : vector<8x128xf32>
    %659 = math.tanh %658 : vector<8x128xf32>
    %cst_363 = arith.constant 1.000000e+00 : f32
    %660 = vector.broadcast %cst_363 : f32 to vector<8x128xf32>
    %661 = arith.addf %659, %660 : vector<8x128xf32>
    %cst_364 = arith.constant 5.000000e-01 : f32
    %662 = vector.broadcast %cst_364 : f32 to vector<8x128xf32>
    %663 = arith.mulf %662, %661 : vector<8x128xf32>
    %664 = vector.extract_strided_slice %655 {offsets = [0, 128], sizes = [8, 128], strides = [1, 1]} : vector<8x512xf32> to vector<8x128xf32>
    %cst_365 = arith.constant 5.000000e-01 : f32
    %665 = vector.broadcast %cst_365 : f32 to vector<8x128xf32>
    %666 = arith.mulf %665, %664 : vector<8x128xf32>
    %667 = math.tanh %666 : vector<8x128xf32>
    %cst_366 = arith.constant 1.000000e+00 : f32
    %668 = vector.broadcast %cst_366 : f32 to vector<8x128xf32>
    %669 = arith.addf %667, %668 : vector<8x128xf32>
    %cst_367 = arith.constant 5.000000e-01 : f32
    %670 = vector.broadcast %cst_367 : f32 to vector<8x128xf32>
    %671 = arith.mulf %670, %669 : vector<8x128xf32>
    %672 = vector.extract_strided_slice %655 {offsets = [0, 256], sizes = [8, 128], strides = [1, 1]} : vector<8x512xf32> to vector<8x128xf32>
    %673 = math.tanh %672 : vector<8x128xf32>
    %674 = vector.extract_strided_slice %655 {offsets = [0, 384], sizes = [8, 128], strides = [1, 1]} : vector<8x512xf32> to vector<8x128xf32>
    %cst_368 = arith.constant 5.000000e-01 : f32
    %675 = vector.broadcast %cst_368 : f32 to vector<8x128xf32>
    %676 = arith.mulf %675, %674 : vector<8x128xf32>
    %677 = math.tanh %676 : vector<8x128xf32>
    %cst_369 = arith.constant 1.000000e+00 : f32
    %678 = vector.broadcast %cst_369 : f32 to vector<8x128xf32>
    %679 = arith.addf %677, %678 : vector<8x128xf32>
    %cst_370 = arith.constant 5.000000e-01 : f32
    %680 = vector.broadcast %cst_370 : f32 to vector<8x128xf32>
    %681 = arith.mulf %680, %679 : vector<8x128xf32>
    %682 = arith.mulf %671, %650 : vector<8x128xf32>
    %683 = arith.mulf %663, %673 : vector<8x128xf32>
    %684 = arith.addf %682, %683 : vector<8x128xf32>
    %685 = math.tanh %684 : vector<8x128xf32>
    %686 = arith.mulf %681, %685 : vector<8x128xf32>
    %c0_371 = arith.constant 0 : index
    %c0_372 = arith.constant 0 : index
    %687 = vector.load %arg10[%c0_371, %c0_372] : memref<8x128xf32, #tpu.memory_space<vmem>>, vector<8x128xf32>
    tpu.vector_store %arg10[%c0_371, %c0_372], %686 {strides = array<i32>} : memref<8x128xf32, #tpu.memory_space<vmem>>, vector<8x128xf32>,
    %c0_373 = arith.constant 0 : index
    %c0_374 = arith.constant 0 : index
    %688 = vector.load %arg11[%c0_373, %c0_374] : memref<8x128xf32, #tpu.memory_space<vmem>>, vector<8x128xf32>
    tpu.vector_store %arg11[%c0_373, %c0_374], %684 {strides = array<i32>} : memref<8x128xf32, #tpu.memory_space<vmem>>, vector<8x128xf32>,
    %689 = arith.index_cast %c6_i32_354 : i32 to index
    %c0_375 = arith.constant 0 : index
    %c0_376 = arith.constant 0 : index
    %690 = vector.load %arg8[%689, %c0_375, %c0_376] : memref<8x8x128xf32, #tpu.memory_space<vmem>>, vector<1x8x128xf32>
    %691 = vector.shape_cast %690 : vector<1x8x128xf32> to vector<8x128xf32>
    %692 = vector.shape_cast %686 : vector<8x128xf32> to vector<1x8x128xf32>
    tpu.vector_store %arg8[%689, %c0_375, %c0_376], %692 {strides = array<i32>} : memref<8x8x128xf32, #tpu.memory_space<vmem>>, vector<1x8x128xf32>,
    %c7_i32_377 = arith.constant 7 : i32
    %c0_378 = arith.constant 0 : index
    %c0_379 = arith.constant 0 : index
    %693 = vector.load %arg10[%c0_378, %c0_379] : memref<8x128xf32, #tpu.memory_space<vmem>>, vector<8x128xf32>
    %c0_380 = arith.constant 0 : index
    %c0_381 = arith.constant 0 : index
    %694 = vector.load %arg11[%c0_380, %c0_381] : memref<8x128xf32, #tpu.memory_space<vmem>>, vector<8x128xf32>
    %695 = arith.index_cast %c7_i32_377 : i32 to index
    %c0_382 = arith.constant 0 : index
    %c0_383 = arith.constant 0 : index
    %696 = vector.load %arg9[%695, %c0_382, %c0_383] : memref<8x8x512xf32, #tpu.memory_space<vmem>>, vector<1x8x512xf32>
    %697 = vector.shape_cast %696 : vector<1x8x512xf32> to vector<8x512xf32>
    %cst_384 = arith.constant dense<0.000000e+00> : vector<8x512xf32>
    %698 = tpu.matmul %693, %369, %cst_384 {dimension_numbers = #tpu.dot_dimension_numbers<[1], [0], [0], [1], [0, 0, 1, 1], [], []>} : vector<8x128xf32>, vector<128x512xf32>, vector<8x512xf32> -> vector<8x512xf32>
    %699 = arith.addf %697, %698 : vector<8x512xf32>
    %700 = vector.extract_strided_slice %699 {offsets = [0, 0], sizes = [8, 128], strides = [1, 1]} : vector<8x512xf32> to vector<8x128xf32>
    %cst_385 = arith.constant 5.000000e-01 : f32
    %701 = vector.broadcast %cst_385 : f32 to vector<8x128xf32>
    %702 = arith.mulf %701, %700 : vector<8x128xf32>
    %703 = math.tanh %702 : vector<8x128xf32>
    %cst_386 = arith.constant 1.000000e+00 : f32
    %704 = vector.broadcast %cst_386 : f32 to vector<8x128xf32>
    %705 = arith.addf %703, %704 : vector<8x128xf32>
    %cst_387 = arith.constant 5.000000e-01 : f32
    %706 = vector.broadcast %cst_387 : f32 to vector<8x128xf32>
    %707 = arith.mulf %706, %705 : vector<8x128xf32>
    %708 = vector.extract_strided_slice %699 {offsets = [0, 128], sizes = [8, 128], strides = [1, 1]} : vector<8x512xf32> to vector<8x128xf32>
    %cst_388 = arith.constant 5.000000e-01 : f32
    %709 = vector.broadcast %cst_388 : f32 to vector<8x128xf32>
    %710 = arith.mulf %709, %708 : vector<8x128xf32>
    %711 = math.tanh %710 : vector<8x128xf32>
    %cst_389 = arith.constant 1.000000e+00 : f32
    %712 = vector.broadcast %cst_389 : f32 to vector<8x128xf32>
    %713 = arith.addf %711, %712 : vector<8x128xf32>
    %cst_390 = arith.constant 5.000000e-01 : f32
    %714 = vector.broadcast %cst_390 : f32 to vector<8x128xf32>
    %715 = arith.mulf %714, %713 : vector<8x128xf32>
    %716 = vector.extract_strided_slice %699 {offsets = [0, 256], sizes = [8, 128], strides = [1, 1]} : vector<8x512xf32> to vector<8x128xf32>
    %717 = math.tanh %716 : vector<8x128xf32>
    %718 = vector.extract_strided_slice %699 {offsets = [0, 384], sizes = [8, 128], strides = [1, 1]} : vector<8x512xf32> to vector<8x128xf32>
    %cst_391 = arith.constant 5.000000e-01 : f32
    %719 = vector.broadcast %cst_391 : f32 to vector<8x128xf32>
    %720 = arith.mulf %719, %718 : vector<8x128xf32>
    %721 = math.tanh %720 : vector<8x128xf32>
    %cst_392 = arith.constant 1.000000e+00 : f32
    %722 = vector.broadcast %cst_392 : f32 to vector<8x128xf32>
    %723 = arith.addf %721, %722 : vector<8x128xf32>
    %cst_393 = arith.constant 5.000000e-01 : f32
    %724 = vector.broadcast %cst_393 : f32 to vector<8x128xf32>
    %725 = arith.mulf %724, %723 : vector<8x128xf32>
    %726 = arith.mulf %715, %694 : vector<8x128xf32>
    %727 = arith.mulf %707, %717 : vector<8x128xf32>
    %728 = arith.addf %726, %727 : vector<8x128xf32>
    %729 = math.tanh %728 : vector<8x128xf32>
    %730 = arith.mulf %725, %729 : vector<8x128xf32>
    %c0_394 = arith.constant 0 : index
    %c0_395 = arith.constant 0 : index
    %731 = vector.load %arg10[%c0_394, %c0_395] : memref<8x128xf32, #tpu.memory_space<vmem>>, vector<8x128xf32>
    tpu.vector_store %arg10[%c0_394, %c0_395], %730 {strides = array<i32>} : memref<8x128xf32, #tpu.memory_space<vmem>>, vector<8x128xf32>,
    %c0_396 = arith.constant 0 : index
    %c0_397 = arith.constant 0 : index
    %732 = vector.load %arg11[%c0_396, %c0_397] : memref<8x128xf32, #tpu.memory_space<vmem>>, vector<8x128xf32>
    tpu.vector_store %arg11[%c0_396, %c0_397], %728 {strides = array<i32>} : memref<8x128xf32, #tpu.memory_space<vmem>>, vector<8x128xf32>,
    %733 = arith.index_cast %c7_i32_377 : i32 to index
    %c0_398 = arith.constant 0 : index
    %c0_399 = arith.constant 0 : index
    %734 = vector.load %arg8[%733, %c0_398, %c0_399] : memref<8x8x128xf32, #tpu.memory_space<vmem>>, vector<1x8x128xf32>
    %735 = vector.shape_cast %734 : vector<1x8x128xf32> to vector<8x128xf32>
    %736 = vector.shape_cast %730 : vector<8x128xf32> to vector<1x8x128xf32>
    tpu.vector_store %arg8[%733, %c0_398, %c0_399], %736 {strides = array<i32>} : memref<8x8x128xf32, #tpu.memory_space<vmem>>, vector<1x8x128xf32>,
    %c8_i32_400 = arith.constant 8 : i32
    %c2 = arith.constant 2 : index
    %c0_401 = arith.constant 0 : index
    %c0_402 = arith.constant 0 : index
    %737 = vector.load %arg3[%c2, %c0_401, %c0_402] : memref<3x128x512xf32, #tpu.memory_space<vmem>>, vector<1x128x512xf32>
    %738 = vector.shape_cast %737 : vector<1x128x512xf32> to vector<128x512xf32>
    %c2_403 = arith.constant 2 : index
    %c0_404 = arith.constant 0 : index
    %c0_405 = arith.constant 0 : index
    %739 = vector.load %arg4[%c2_403, %c0_404, %c0_405] : memref<3x1x512xf32, #tpu.memory_space<vmem>>, vector<1x1x512xf32>
    %740 = vector.shape_cast %739 : vector<1x1x512xf32> to vector<1x512xf32>
    %c0_406 = arith.constant 0 : index
    %c0_407 = arith.constant 0 : index
    %c0_408 = arith.constant 0 : index
    %741 = vector.load %arg8[%c0_406, %c0_407, %c0_408] : memref<8x8x128xf32, #tpu.memory_space<vmem>>, vector<8x8x128xf32>
    %742 = vector.shape_cast %741 : vector<8x8x128xf32> to vector<64x128xf32>
    %c1_409 = arith.constant 1 : index
    %c0_410 = arith.constant 0 : index
    %c0_411 = arith.constant 0 : index
    %743 = vector.load %arg2[%c1_409, %c0_410, %c0_411] : memref<2x128x512xf32, #tpu.memory_space<vmem>>, vector<1x128x512xf32>
    %744 = vector.shape_cast %743 : vector<1x128x512xf32> to vector<128x512xf32>
    %cst_412 = arith.constant dense<0.000000e+00> : vector<64x512xf32>
    %745 = tpu.matmul %742, %744, %cst_412 {dimension_numbers = #tpu.dot_dimension_numbers<[1], [0], [0], [1], [0, 0, 1, 1], [], []>} : vector<64x128xf32>, vector<128x512xf32>, vector<64x512xf32> -> vector<64x512xf32>
    %746 = vector.broadcast %740 : vector<1x512xf32> to vector<64x512xf32>
    %747 = arith.addf %745, %746 : vector<64x512xf32>
    %748 = vector.shape_cast %747 : vector<64x512xf32> to vector<8x8x512xf32>
    %c0_413 = arith.constant 0 : index
    %c0_414 = arith.constant 0 : index
    %c0_415 = arith.constant 0 : index
    %749 = vector.load %arg9[%c0_413, %c0_414, %c0_415] : memref<8x8x512xf32, #tpu.memory_space<vmem>>, vector<8x8x512xf32>
    tpu.vector_store %arg9[%c0_413, %c0_414, %c0_415], %748 {strides = array<i32>} : memref<8x8x512xf32, #tpu.memory_space<vmem>>, vector<8x8x512xf32>,
    %cst_416 = arith.constant 0.000000e+00 : f32
    %750 = vector.broadcast %cst_416 : f32 to vector<8x128xf32>
    %c0_417 = arith.constant 0 : index
    %c0_418 = arith.constant 0 : index
    %751 = vector.load %arg10[%c0_417, %c0_418] : memref<8x128xf32, #tpu.memory_space<vmem>>, vector<8x128xf32>
    tpu.vector_store %arg10[%c0_417, %c0_418], %750 {strides = array<i32>} : memref<8x128xf32, #tpu.memory_space<vmem>>, vector<8x128xf32>,
    %cst_419 = arith.constant 0.000000e+00 : f32
    %752 = vector.broadcast %cst_419 : f32 to vector<8x128xf32>
    %c0_420 = arith.constant 0 : index
    %c0_421 = arith.constant 0 : index
    %753 = vector.load %arg11[%c0_420, %c0_421] : memref<8x128xf32, #tpu.memory_space<vmem>>, vector<8x128xf32>
    tpu.vector_store %arg11[%c0_420, %c0_421], %752 {strides = array<i32>} : memref<8x128xf32, #tpu.memory_space<vmem>>, vector<8x128xf32>,
    %c0_i32_422 = arith.constant 0 : i32
    %c0_423 = arith.constant 0 : index
    %c0_424 = arith.constant 0 : index
    %754 = vector.load %arg10[%c0_423, %c0_424] : memref<8x128xf32, #tpu.memory_space<vmem>>, vector<8x128xf32>
    %c0_425 = arith.constant 0 : index
    %c0_426 = arith.constant 0 : index
    %755 = vector.load %arg11[%c0_425, %c0_426] : memref<8x128xf32, #tpu.memory_space<vmem>>, vector<8x128xf32>
    %756 = arith.index_cast %c0_i32_422 : i32 to index
    %c0_427 = arith.constant 0 : index
    %c0_428 = arith.constant 0 : index
    %757 = vector.load %arg9[%756, %c0_427, %c0_428] : memref<8x8x512xf32, #tpu.memory_space<vmem>>, vector<1x8x512xf32>
    %758 = vector.shape_cast %757 : vector<1x8x512xf32> to vector<8x512xf32>
    %cst_429 = arith.constant dense<0.000000e+00> : vector<8x512xf32>
    %759 = tpu.matmul %754, %738, %cst_429 {dimension_numbers = #tpu.dot_dimension_numbers<[1], [0], [0], [1], [0, 0, 1, 1], [], []>} : vector<8x128xf32>, vector<128x512xf32>, vector<8x512xf32> -> vector<8x512xf32>
    %760 = arith.addf %758, %759 : vector<8x512xf32>
    %761 = vector.extract_strided_slice %760 {offsets = [0, 0], sizes = [8, 128], strides = [1, 1]} : vector<8x512xf32> to vector<8x128xf32>
    %cst_430 = arith.constant 5.000000e-01 : f32
    %762 = vector.broadcast %cst_430 : f32 to vector<8x128xf32>
    %763 = arith.mulf %762, %761 : vector<8x128xf32>
    %764 = math.tanh %763 : vector<8x128xf32>
    %cst_431 = arith.constant 1.000000e+00 : f32
    %765 = vector.broadcast %cst_431 : f32 to vector<8x128xf32>
    %766 = arith.addf %764, %765 : vector<8x128xf32>
    %cst_432 = arith.constant 5.000000e-01 : f32
    %767 = vector.broadcast %cst_432 : f32 to vector<8x128xf32>
    %768 = arith.mulf %767, %766 : vector<8x128xf32>
    %769 = vector.extract_strided_slice %760 {offsets = [0, 128], sizes = [8, 128], strides = [1, 1]} : vector<8x512xf32> to vector<8x128xf32>
    %cst_433 = arith.constant 5.000000e-01 : f32
    %770 = vector.broadcast %cst_433 : f32 to vector<8x128xf32>
    %771 = arith.mulf %770, %769 : vector<8x128xf32>
    %772 = math.tanh %771 : vector<8x128xf32>
    %cst_434 = arith.constant 1.000000e+00 : f32
    %773 = vector.broadcast %cst_434 : f32 to vector<8x128xf32>
    %774 = arith.addf %772, %773 : vector<8x128xf32>
    %cst_435 = arith.constant 5.000000e-01 : f32
    %775 = vector.broadcast %cst_435 : f32 to vector<8x128xf32>
    %776 = arith.mulf %775, %774 : vector<8x128xf32>
    %777 = vector.extract_strided_slice %760 {offsets = [0, 256], sizes = [8, 128], strides = [1, 1]} : vector<8x512xf32> to vector<8x128xf32>
    %778 = math.tanh %777 : vector<8x128xf32>
    %779 = vector.extract_strided_slice %760 {offsets = [0, 384], sizes = [8, 128], strides = [1, 1]} : vector<8x512xf32> to vector<8x128xf32>
    %cst_436 = arith.constant 5.000000e-01 : f32
    %780 = vector.broadcast %cst_436 : f32 to vector<8x128xf32>
    %781 = arith.mulf %780, %779 : vector<8x128xf32>
    %782 = math.tanh %781 : vector<8x128xf32>
    %cst_437 = arith.constant 1.000000e+00 : f32
    %783 = vector.broadcast %cst_437 : f32 to vector<8x128xf32>
    %784 = arith.addf %782, %783 : vector<8x128xf32>
    %cst_438 = arith.constant 5.000000e-01 : f32
    %785 = vector.broadcast %cst_438 : f32 to vector<8x128xf32>
    %786 = arith.mulf %785, %784 : vector<8x128xf32>
    %787 = arith.mulf %776, %755 : vector<8x128xf32>
    %788 = arith.mulf %768, %778 : vector<8x128xf32>
    %789 = arith.addf %787, %788 : vector<8x128xf32>
    %790 = math.tanh %789 : vector<8x128xf32>
    %791 = arith.mulf %786, %790 : vector<8x128xf32>
    %c0_439 = arith.constant 0 : index
    %c0_440 = arith.constant 0 : index
    %792 = vector.load %arg10[%c0_439, %c0_440] : memref<8x128xf32, #tpu.memory_space<vmem>>, vector<8x128xf32>
    tpu.vector_store %arg10[%c0_439, %c0_440], %791 {strides = array<i32>} : memref<8x128xf32, #tpu.memory_space<vmem>>, vector<8x128xf32>,
    %c0_441 = arith.constant 0 : index
    %c0_442 = arith.constant 0 : index
    %793 = vector.load %arg11[%c0_441, %c0_442] : memref<8x128xf32, #tpu.memory_space<vmem>>, vector<8x128xf32>
    tpu.vector_store %arg11[%c0_441, %c0_442], %789 {strides = array<i32>} : memref<8x128xf32, #tpu.memory_space<vmem>>, vector<8x128xf32>,
    %c1_i32_443 = arith.constant 1 : i32
    %c0_444 = arith.constant 0 : index
    %c0_445 = arith.constant 0 : index
    %794 = vector.load %arg10[%c0_444, %c0_445] : memref<8x128xf32, #tpu.memory_space<vmem>>, vector<8x128xf32>
    %c0_446 = arith.constant 0 : index
    %c0_447 = arith.constant 0 : index
    %795 = vector.load %arg11[%c0_446, %c0_447] : memref<8x128xf32, #tpu.memory_space<vmem>>, vector<8x128xf32>
    %796 = arith.index_cast %c1_i32_443 : i32 to index
    %c0_448 = arith.constant 0 : index
    %c0_449 = arith.constant 0 : index
    %797 = vector.load %arg9[%796, %c0_448, %c0_449] : memref<8x8x512xf32, #tpu.memory_space<vmem>>, vector<1x8x512xf32>
    %798 = vector.shape_cast %797 : vector<1x8x512xf32> to vector<8x512xf32>
    %cst_450 = arith.constant dense<0.000000e+00> : vector<8x512xf32>
    %799 = tpu.matmul %794, %738, %cst_450 {dimension_numbers = #tpu.dot_dimension_numbers<[1], [0], [0], [1], [0, 0, 1, 1], [], []>} : vector<8x128xf32>, vector<128x512xf32>, vector<8x512xf32> -> vector<8x512xf32>
    %800 = arith.addf %798, %799 : vector<8x512xf32>
    %801 = vector.extract_strided_slice %800 {offsets = [0, 0], sizes = [8, 128], strides = [1, 1]} : vector<8x512xf32> to vector<8x128xf32>
    %cst_451 = arith.constant 5.000000e-01 : f32
    %802 = vector.broadcast %cst_451 : f32 to vector<8x128xf32>
    %803 = arith.mulf %802, %801 : vector<8x128xf32>
    %804 = math.tanh %803 : vector<8x128xf32>
    %cst_452 = arith.constant 1.000000e+00 : f32
    %805 = vector.broadcast %cst_452 : f32 to vector<8x128xf32>
    %806 = arith.addf %804, %805 : vector<8x128xf32>
    %cst_453 = arith.constant 5.000000e-01 : f32
    %807 = vector.broadcast %cst_453 : f32 to vector<8x128xf32>
    %808 = arith.mulf %807, %806 : vector<8x128xf32>
    %809 = vector.extract_strided_slice %800 {offsets = [0, 128], sizes = [8, 128], strides = [1, 1]} : vector<8x512xf32> to vector<8x128xf32>
    %cst_454 = arith.constant 5.000000e-01 : f32
    %810 = vector.broadcast %cst_454 : f32 to vector<8x128xf32>
    %811 = arith.mulf %810, %809 : vector<8x128xf32>
    %812 = math.tanh %811 : vector<8x128xf32>
    %cst_455 = arith.constant 1.000000e+00 : f32
    %813 = vector.broadcast %cst_455 : f32 to vector<8x128xf32>
    %814 = arith.addf %812, %813 : vector<8x128xf32>
    %cst_456 = arith.constant 5.000000e-01 : f32
    %815 = vector.broadcast %cst_456 : f32 to vector<8x128xf32>
    %816 = arith.mulf %815, %814 : vector<8x128xf32>
    %817 = vector.extract_strided_slice %800 {offsets = [0, 256], sizes = [8, 128], strides = [1, 1]} : vector<8x512xf32> to vector<8x128xf32>
    %818 = math.tanh %817 : vector<8x128xf32>
    %819 = vector.extract_strided_slice %800 {offsets = [0, 384], sizes = [8, 128], strides = [1, 1]} : vector<8x512xf32> to vector<8x128xf32>
    %cst_457 = arith.constant 5.000000e-01 : f32
    %820 = vector.broadcast %cst_457 : f32 to vector<8x128xf32>
    %821 = arith.mulf %820, %819 : vector<8x128xf32>
    %822 = math.tanh %821 : vector<8x128xf32>
    %cst_458 = arith.constant 1.000000e+00 : f32
    %823 = vector.broadcast %cst_458 : f32 to vector<8x128xf32>
    %824 = arith.addf %822, %823 : vector<8x128xf32>
    %cst_459 = arith.constant 5.000000e-01 : f32
    %825 = vector.broadcast %cst_459 : f32 to vector<8x128xf32>
    %826 = arith.mulf %825, %824 : vector<8x128xf32>
    %827 = arith.mulf %816, %795 : vector<8x128xf32>
    %828 = arith.mulf %808, %818 : vector<8x128xf32>
    %829 = arith.addf %827, %828 : vector<8x128xf32>
    %830 = math.tanh %829 : vector<8x128xf32>
    %831 = arith.mulf %826, %830 : vector<8x128xf32>
    %c0_460 = arith.constant 0 : index
    %c0_461 = arith.constant 0 : index
    %832 = vector.load %arg10[%c0_460, %c0_461] : memref<8x128xf32, #tpu.memory_space<vmem>>, vector<8x128xf32>
    tpu.vector_store %arg10[%c0_460, %c0_461], %831 {strides = array<i32>} : memref<8x128xf32, #tpu.memory_space<vmem>>, vector<8x128xf32>,
    %c0_462 = arith.constant 0 : index
    %c0_463 = arith.constant 0 : index
    %833 = vector.load %arg11[%c0_462, %c0_463] : memref<8x128xf32, #tpu.memory_space<vmem>>, vector<8x128xf32>
    tpu.vector_store %arg11[%c0_462, %c0_463], %829 {strides = array<i32>} : memref<8x128xf32, #tpu.memory_space<vmem>>, vector<8x128xf32>,
    %c2_i32_464 = arith.constant 2 : i32
    %c0_465 = arith.constant 0 : index
    %c0_466 = arith.constant 0 : index
    %834 = vector.load %arg10[%c0_465, %c0_466] : memref<8x128xf32, #tpu.memory_space<vmem>>, vector<8x128xf32>
    %c0_467 = arith.constant 0 : index
    %c0_468 = arith.constant 0 : index
    %835 = vector.load %arg11[%c0_467, %c0_468] : memref<8x128xf32, #tpu.memory_space<vmem>>, vector<8x128xf32>
    %836 = arith.index_cast %c2_i32_464 : i32 to index
    %c0_469 = arith.constant 0 : index
    %c0_470 = arith.constant 0 : index
    %837 = vector.load %arg9[%836, %c0_469, %c0_470] : memref<8x8x512xf32, #tpu.memory_space<vmem>>, vector<1x8x512xf32>
    %838 = vector.shape_cast %837 : vector<1x8x512xf32> to vector<8x512xf32>
    %cst_471 = arith.constant dense<0.000000e+00> : vector<8x512xf32>
    %839 = tpu.matmul %834, %738, %cst_471 {dimension_numbers = #tpu.dot_dimension_numbers<[1], [0], [0], [1], [0, 0, 1, 1], [], []>} : vector<8x128xf32>, vector<128x512xf32>, vector<8x512xf32> -> vector<8x512xf32>
    %840 = arith.addf %838, %839 : vector<8x512xf32>
    %841 = vector.extract_strided_slice %840 {offsets = [0, 0], sizes = [8, 128], strides = [1, 1]} : vector<8x512xf32> to vector<8x128xf32>
    %cst_472 = arith.constant 5.000000e-01 : f32
    %842 = vector.broadcast %cst_472 : f32 to vector<8x128xf32>
    %843 = arith.mulf %842, %841 : vector<8x128xf32>
    %844 = math.tanh %843 : vector<8x128xf32>
    %cst_473 = arith.constant 1.000000e+00 : f32
    %845 = vector.broadcast %cst_473 : f32 to vector<8x128xf32>
    %846 = arith.addf %844, %845 : vector<8x128xf32>
    %cst_474 = arith.constant 5.000000e-01 : f32
    %847 = vector.broadcast %cst_474 : f32 to vector<8x128xf32>
    %848 = arith.mulf %847, %846 : vector<8x128xf32>
    %849 = vector.extract_strided_slice %840 {offsets = [0, 128], sizes = [8, 128], strides = [1, 1]} : vector<8x512xf32> to vector<8x128xf32>
    %cst_475 = arith.constant 5.000000e-01 : f32
    %850 = vector.broadcast %cst_475 : f32 to vector<8x128xf32>
    %851 = arith.mulf %850, %849 : vector<8x128xf32>
    %852 = math.tanh %851 : vector<8x128xf32>
    %cst_476 = arith.constant 1.000000e+00 : f32
    %853 = vector.broadcast %cst_476 : f32 to vector<8x128xf32>
    %854 = arith.addf %852, %853 : vector<8x128xf32>
    %cst_477 = arith.constant 5.000000e-01 : f32
    %855 = vector.broadcast %cst_477 : f32 to vector<8x128xf32>
    %856 = arith.mulf %855, %854 : vector<8x128xf32>
    %857 = vector.extract_strided_slice %840 {offsets = [0, 256], sizes = [8, 128], strides = [1, 1]} : vector<8x512xf32> to vector<8x128xf32>
    %858 = math.tanh %857 : vector<8x128xf32>
    %859 = vector.extract_strided_slice %840 {offsets = [0, 384], sizes = [8, 128], strides = [1, 1]} : vector<8x512xf32> to vector<8x128xf32>
    %cst_478 = arith.constant 5.000000e-01 : f32
    %860 = vector.broadcast %cst_478 : f32 to vector<8x128xf32>
    %861 = arith.mulf %860, %859 : vector<8x128xf32>
    %862 = math.tanh %861 : vector<8x128xf32>
    %cst_479 = arith.constant 1.000000e+00 : f32
    %863 = vector.broadcast %cst_479 : f32 to vector<8x128xf32>
    %864 = arith.addf %862, %863 : vector<8x128xf32>
    %cst_480 = arith.constant 5.000000e-01 : f32
    %865 = vector.broadcast %cst_480 : f32 to vector<8x128xf32>
    %866 = arith.mulf %865, %864 : vector<8x128xf32>
    %867 = arith.mulf %856, %835 : vector<8x128xf32>
    %868 = arith.mulf %848, %858 : vector<8x128xf32>
    %869 = arith.addf %867, %868 : vector<8x128xf32>
    %870 = math.tanh %869 : vector<8x128xf32>
    %871 = arith.mulf %866, %870 : vector<8x128xf32>
    %c0_481 = arith.constant 0 : index
    %c0_482 = arith.constant 0 : index
    %872 = vector.load %arg10[%c0_481, %c0_482] : memref<8x128xf32, #tpu.memory_space<vmem>>, vector<8x128xf32>
    tpu.vector_store %arg10[%c0_481, %c0_482], %871 {strides = array<i32>} : memref<8x128xf32, #tpu.memory_space<vmem>>, vector<8x128xf32>,
    %c0_483 = arith.constant 0 : index
    %c0_484 = arith.constant 0 : index
    %873 = vector.load %arg11[%c0_483, %c0_484] : memref<8x128xf32, #tpu.memory_space<vmem>>, vector<8x128xf32>
    tpu.vector_store %arg11[%c0_483, %c0_484], %869 {strides = array<i32>} : memref<8x128xf32, #tpu.memory_space<vmem>>, vector<8x128xf32>,
    %c3_i32_485 = arith.constant 3 : i32
    %c0_486 = arith.constant 0 : index
    %c0_487 = arith.constant 0 : index
    %874 = vector.load %arg10[%c0_486, %c0_487] : memref<8x128xf32, #tpu.memory_space<vmem>>, vector<8x128xf32>
    %c0_488 = arith.constant 0 : index
    %c0_489 = arith.constant 0 : index
    %875 = vector.load %arg11[%c0_488, %c0_489] : memref<8x128xf32, #tpu.memory_space<vmem>>, vector<8x128xf32>
    %876 = arith.index_cast %c3_i32_485 : i32 to index
    %c0_490 = arith.constant 0 : index
    %c0_491 = arith.constant 0 : index
    %877 = vector.load %arg9[%876, %c0_490, %c0_491] : memref<8x8x512xf32, #tpu.memory_space<vmem>>, vector<1x8x512xf32>
    %878 = vector.shape_cast %877 : vector<1x8x512xf32> to vector<8x512xf32>
    %cst_492 = arith.constant dense<0.000000e+00> : vector<8x512xf32>
    %879 = tpu.matmul %874, %738, %cst_492 {dimension_numbers = #tpu.dot_dimension_numbers<[1], [0], [0], [1], [0, 0, 1, 1], [], []>} : vector<8x128xf32>, vector<128x512xf32>, vector<8x512xf32> -> vector<8x512xf32>
    %880 = arith.addf %878, %879 : vector<8x512xf32>
    %881 = vector.extract_strided_slice %880 {offsets = [0, 0], sizes = [8, 128], strides = [1, 1]} : vector<8x512xf32> to vector<8x128xf32>
    %cst_493 = arith.constant 5.000000e-01 : f32
    %882 = vector.broadcast %cst_493 : f32 to vector<8x128xf32>
    %883 = arith.mulf %882, %881 : vector<8x128xf32>
    %884 = math.tanh %883 : vector<8x128xf32>
    %cst_494 = arith.constant 1.000000e+00 : f32
    %885 = vector.broadcast %cst_494 : f32 to vector<8x128xf32>
    %886 = arith.addf %884, %885 : vector<8x128xf32>
    %cst_495 = arith.constant 5.000000e-01 : f32
    %887 = vector.broadcast %cst_495 : f32 to vector<8x128xf32>
    %888 = arith.mulf %887, %886 : vector<8x128xf32>
    %889 = vector.extract_strided_slice %880 {offsets = [0, 128], sizes = [8, 128], strides = [1, 1]} : vector<8x512xf32> to vector<8x128xf32>
    %cst_496 = arith.constant 5.000000e-01 : f32
    %890 = vector.broadcast %cst_496 : f32 to vector<8x128xf32>
    %891 = arith.mulf %890, %889 : vector<8x128xf32>
    %892 = math.tanh %891 : vector<8x128xf32>
    %cst_497 = arith.constant 1.000000e+00 : f32
    %893 = vector.broadcast %cst_497 : f32 to vector<8x128xf32>
    %894 = arith.addf %892, %893 : vector<8x128xf32>
    %cst_498 = arith.constant 5.000000e-01 : f32
    %895 = vector.broadcast %cst_498 : f32 to vector<8x128xf32>
    %896 = arith.mulf %895, %894 : vector<8x128xf32>
    %897 = vector.extract_strided_slice %880 {offsets = [0, 256], sizes = [8, 128], strides = [1, 1]} : vector<8x512xf32> to vector<8x128xf32>
    %898 = math.tanh %897 : vector<8x128xf32>
    %899 = vector.extract_strided_slice %880 {offsets = [0, 384], sizes = [8, 128], strides = [1, 1]} : vector<8x512xf32> to vector<8x128xf32>
    %cst_499 = arith.constant 5.000000e-01 : f32
    %900 = vector.broadcast %cst_499 : f32 to vector<8x128xf32>
    %901 = arith.mulf %900, %899 : vector<8x128xf32>
    %902 = math.tanh %901 : vector<8x128xf32>
    %cst_500 = arith.constant 1.000000e+00 : f32
    %903 = vector.broadcast %cst_500 : f32 to vector<8x128xf32>
    %904 = arith.addf %902, %903 : vector<8x128xf32>
    %cst_501 = arith.constant 5.000000e-01 : f32
    %905 = vector.broadcast %cst_501 : f32 to vector<8x128xf32>
    %906 = arith.mulf %905, %904 : vector<8x128xf32>
    %907 = arith.mulf %896, %875 : vector<8x128xf32>
    %908 = arith.mulf %888, %898 : vector<8x128xf32>
    %909 = arith.addf %907, %908 : vector<8x128xf32>
    %910 = math.tanh %909 : vector<8x128xf32>
    %911 = arith.mulf %906, %910 : vector<8x128xf32>
    %c0_502 = arith.constant 0 : index
    %c0_503 = arith.constant 0 : index
    %912 = vector.load %arg10[%c0_502, %c0_503] : memref<8x128xf32, #tpu.memory_space<vmem>>, vector<8x128xf32>
    tpu.vector_store %arg10[%c0_502, %c0_503], %911 {strides = array<i32>} : memref<8x128xf32, #tpu.memory_space<vmem>>, vector<8x128xf32>,
    %c0_504 = arith.constant 0 : index
    %c0_505 = arith.constant 0 : index
    %913 = vector.load %arg11[%c0_504, %c0_505] : memref<8x128xf32, #tpu.memory_space<vmem>>, vector<8x128xf32>
    tpu.vector_store %arg11[%c0_504, %c0_505], %909 {strides = array<i32>} : memref<8x128xf32, #tpu.memory_space<vmem>>, vector<8x128xf32>,
    %c4_i32_506 = arith.constant 4 : i32
    %c0_507 = arith.constant 0 : index
    %c0_508 = arith.constant 0 : index
    %914 = vector.load %arg10[%c0_507, %c0_508] : memref<8x128xf32, #tpu.memory_space<vmem>>, vector<8x128xf32>
    %c0_509 = arith.constant 0 : index
    %c0_510 = arith.constant 0 : index
    %915 = vector.load %arg11[%c0_509, %c0_510] : memref<8x128xf32, #tpu.memory_space<vmem>>, vector<8x128xf32>
    %916 = arith.index_cast %c4_i32_506 : i32 to index
    %c0_511 = arith.constant 0 : index
    %c0_512 = arith.constant 0 : index
    %917 = vector.load %arg9[%916, %c0_511, %c0_512] : memref<8x8x512xf32, #tpu.memory_space<vmem>>, vector<1x8x512xf32>
    %918 = vector.shape_cast %917 : vector<1x8x512xf32> to vector<8x512xf32>
    %cst_513 = arith.constant dense<0.000000e+00> : vector<8x512xf32>
    %919 = tpu.matmul %914, %738, %cst_513 {dimension_numbers = #tpu.dot_dimension_numbers<[1], [0], [0], [1], [0, 0, 1, 1], [], []>} : vector<8x128xf32>, vector<128x512xf32>, vector<8x512xf32> -> vector<8x512xf32>
    %920 = arith.addf %918, %919 : vector<8x512xf32>
    %921 = vector.extract_strided_slice %920 {offsets = [0, 0], sizes = [8, 128], strides = [1, 1]} : vector<8x512xf32> to vector<8x128xf32>
    %cst_514 = arith.constant 5.000000e-01 : f32
    %922 = vector.broadcast %cst_514 : f32 to vector<8x128xf32>
    %923 = arith.mulf %922, %921 : vector<8x128xf32>
    %924 = math.tanh %923 : vector<8x128xf32>
    %cst_515 = arith.constant 1.000000e+00 : f32
    %925 = vector.broadcast %cst_515 : f32 to vector<8x128xf32>
    %926 = arith.addf %924, %925 : vector<8x128xf32>
    %cst_516 = arith.constant 5.000000e-01 : f32
    %927 = vector.broadcast %cst_516 : f32 to vector<8x128xf32>
    %928 = arith.mulf %927, %926 : vector<8x128xf32>
    %929 = vector.extract_strided_slice %920 {offsets = [0, 128], sizes = [8, 128], strides = [1, 1]} : vector<8x512xf32> to vector<8x128xf32>
    %cst_517 = arith.constant 5.000000e-01 : f32
    %930 = vector.broadcast %cst_517 : f32 to vector<8x128xf32>
    %931 = arith.mulf %930, %929 : vector<8x128xf32>
    %932 = math.tanh %931 : vector<8x128xf32>
    %cst_518 = arith.constant 1.000000e+00 : f32
    %933 = vector.broadcast %cst_518 : f32 to vector<8x128xf32>
    %934 = arith.addf %932, %933 : vector<8x128xf32>
    %cst_519 = arith.constant 5.000000e-01 : f32
    %935 = vector.broadcast %cst_519 : f32 to vector<8x128xf32>
    %936 = arith.mulf %935, %934 : vector<8x128xf32>
    %937 = vector.extract_strided_slice %920 {offsets = [0, 256], sizes = [8, 128], strides = [1, 1]} : vector<8x512xf32> to vector<8x128xf32>
    %938 = math.tanh %937 : vector<8x128xf32>
    %939 = vector.extract_strided_slice %920 {offsets = [0, 384], sizes = [8, 128], strides = [1, 1]} : vector<8x512xf32> to vector<8x128xf32>
    %cst_520 = arith.constant 5.000000e-01 : f32
    %940 = vector.broadcast %cst_520 : f32 to vector<8x128xf32>
    %941 = arith.mulf %940, %939 : vector<8x128xf32>
    %942 = math.tanh %941 : vector<8x128xf32>
    %cst_521 = arith.constant 1.000000e+00 : f32
    %943 = vector.broadcast %cst_521 : f32 to vector<8x128xf32>
    %944 = arith.addf %942, %943 : vector<8x128xf32>
    %cst_522 = arith.constant 5.000000e-01 : f32
    %945 = vector.broadcast %cst_522 : f32 to vector<8x128xf32>
    %946 = arith.mulf %945, %944 : vector<8x128xf32>
    %947 = arith.mulf %936, %915 : vector<8x128xf32>
    %948 = arith.mulf %928, %938 : vector<8x128xf32>
    %949 = arith.addf %947, %948 : vector<8x128xf32>
    %950 = math.tanh %949 : vector<8x128xf32>
    %951 = arith.mulf %946, %950 : vector<8x128xf32>
    %c0_523 = arith.constant 0 : index
    %c0_524 = arith.constant 0 : index
    %952 = vector.load %arg10[%c0_523, %c0_524] : memref<8x128xf32, #tpu.memory_space<vmem>>, vector<8x128xf32>
    tpu.vector_store %arg10[%c0_523, %c0_524], %951 {strides = array<i32>} : memref<8x128xf32, #tpu.memory_space<vmem>>, vector<8x128xf32>,
    %c0_525 = arith.constant 0 : index
    %c0_526 = arith.constant 0 : index
    %953 = vector.load %arg11[%c0_525, %c0_526] : memref<8x128xf32, #tpu.memory_space<vmem>>, vector<8x128xf32>
    tpu.vector_store %arg11[%c0_525, %c0_526], %949 {strides = array<i32>} : memref<8x128xf32, #tpu.memory_space<vmem>>, vector<8x128xf32>,
    %c5_i32_527 = arith.constant 5 : i32
    %c0_528 = arith.constant 0 : index
    %c0_529 = arith.constant 0 : index
    %954 = vector.load %arg10[%c0_528, %c0_529] : memref<8x128xf32, #tpu.memory_space<vmem>>, vector<8x128xf32>
    %c0_530 = arith.constant 0 : index
    %c0_531 = arith.constant 0 : index
    %955 = vector.load %arg11[%c0_530, %c0_531] : memref<8x128xf32, #tpu.memory_space<vmem>>, vector<8x128xf32>
    %956 = arith.index_cast %c5_i32_527 : i32 to index
    %c0_532 = arith.constant 0 : index
    %c0_533 = arith.constant 0 : index
    %957 = vector.load %arg9[%956, %c0_532, %c0_533] : memref<8x8x512xf32, #tpu.memory_space<vmem>>, vector<1x8x512xf32>
    %958 = vector.shape_cast %957 : vector<1x8x512xf32> to vector<8x512xf32>
    %cst_534 = arith.constant dense<0.000000e+00> : vector<8x512xf32>
    %959 = tpu.matmul %954, %738, %cst_534 {dimension_numbers = #tpu.dot_dimension_numbers<[1], [0], [0], [1], [0, 0, 1, 1], [], []>} : vector<8x128xf32>, vector<128x512xf32>, vector<8x512xf32> -> vector<8x512xf32>
    %960 = arith.addf %958, %959 : vector<8x512xf32>
    %961 = vector.extract_strided_slice %960 {offsets = [0, 0], sizes = [8, 128], strides = [1, 1]} : vector<8x512xf32> to vector<8x128xf32>
    %cst_535 = arith.constant 5.000000e-01 : f32
    %962 = vector.broadcast %cst_535 : f32 to vector<8x128xf32>
    %963 = arith.mulf %962, %961 : vector<8x128xf32>
    %964 = math.tanh %963 : vector<8x128xf32>
    %cst_536 = arith.constant 1.000000e+00 : f32
    %965 = vector.broadcast %cst_536 : f32 to vector<8x128xf32>
    %966 = arith.addf %964, %965 : vector<8x128xf32>
    %cst_537 = arith.constant 5.000000e-01 : f32
    %967 = vector.broadcast %cst_537 : f32 to vector<8x128xf32>
    %968 = arith.mulf %967, %966 : vector<8x128xf32>
    %969 = vector.extract_strided_slice %960 {offsets = [0, 128], sizes = [8, 128], strides = [1, 1]} : vector<8x512xf32> to vector<8x128xf32>
    %cst_538 = arith.constant 5.000000e-01 : f32
    %970 = vector.broadcast %cst_538 : f32 to vector<8x128xf32>
    %971 = arith.mulf %970, %969 : vector<8x128xf32>
    %972 = math.tanh %971 : vector<8x128xf32>
    %cst_539 = arith.constant 1.000000e+00 : f32
    %973 = vector.broadcast %cst_539 : f32 to vector<8x128xf32>
    %974 = arith.addf %972, %973 : vector<8x128xf32>
    %cst_540 = arith.constant 5.000000e-01 : f32
    %975 = vector.broadcast %cst_540 : f32 to vector<8x128xf32>
    %976 = arith.mulf %975, %974 : vector<8x128xf32>
    %977 = vector.extract_strided_slice %960 {offsets = [0, 256], sizes = [8, 128], strides = [1, 1]} : vector<8x512xf32> to vector<8x128xf32>
    %978 = math.tanh %977 : vector<8x128xf32>
    %979 = vector.extract_strided_slice %960 {offsets = [0, 384], sizes = [8, 128], strides = [1, 1]} : vector<8x512xf32> to vector<8x128xf32>
    %cst_541 = arith.constant 5.000000e-01 : f32
    %980 = vector.broadcast %cst_541 : f32 to vector<8x128xf32>
    %981 = arith.mulf %980, %979 : vector<8x128xf32>
    %982 = math.tanh %981 : vector<8x128xf32>
    %cst_542 = arith.constant 1.000000e+00 : f32
    %983 = vector.broadcast %cst_542 : f32 to vector<8x128xf32>
    %984 = arith.addf %982, %983 : vector<8x128xf32>
    %cst_543 = arith.constant 5.000000e-01 : f32
    %985 = vector.broadcast %cst_543 : f32 to vector<8x128xf32>
    %986 = arith.mulf %985, %984 : vector<8x128xf32>
    %987 = arith.mulf %976, %955 : vector<8x128xf32>
    %988 = arith.mulf %968, %978 : vector<8x128xf32>
    %989 = arith.addf %987, %988 : vector<8x128xf32>
    %990 = math.tanh %989 : vector<8x128xf32>
    %991 = arith.mulf %986, %990 : vector<8x128xf32>
    %c0_544 = arith.constant 0 : index
    %c0_545 = arith.constant 0 : index
    %992 = vector.load %arg10[%c0_544, %c0_545] : memref<8x128xf32, #tpu.memory_space<vmem>>, vector<8x128xf32>
    tpu.vector_store %arg10[%c0_544, %c0_545], %991 {strides = array<i32>} : memref<8x128xf32, #tpu.memory_space<vmem>>, vector<8x128xf32>,
    %c0_546 = arith.constant 0 : index
    %c0_547 = arith.constant 0 : index
    %993 = vector.load %arg11[%c0_546, %c0_547] : memref<8x128xf32, #tpu.memory_space<vmem>>, vector<8x128xf32>
    tpu.vector_store %arg11[%c0_546, %c0_547], %989 {strides = array<i32>} : memref<8x128xf32, #tpu.memory_space<vmem>>, vector<8x128xf32>,
    %c6_i32_548 = arith.constant 6 : i32
    %c0_549 = arith.constant 0 : index
    %c0_550 = arith.constant 0 : index
    %994 = vector.load %arg10[%c0_549, %c0_550] : memref<8x128xf32, #tpu.memory_space<vmem>>, vector<8x128xf32>
    %c0_551 = arith.constant 0 : index
    %c0_552 = arith.constant 0 : index
    %995 = vector.load %arg11[%c0_551, %c0_552] : memref<8x128xf32, #tpu.memory_space<vmem>>, vector<8x128xf32>
    %996 = arith.index_cast %c6_i32_548 : i32 to index
    %c0_553 = arith.constant 0 : index
    %c0_554 = arith.constant 0 : index
    %997 = vector.load %arg9[%996, %c0_553, %c0_554] : memref<8x8x512xf32, #tpu.memory_space<vmem>>, vector<1x8x512xf32>
    %998 = vector.shape_cast %997 : vector<1x8x512xf32> to vector<8x512xf32>
    %cst_555 = arith.constant dense<0.000000e+00> : vector<8x512xf32>
    %999 = tpu.matmul %994, %738, %cst_555 {dimension_numbers = #tpu.dot_dimension_numbers<[1], [0], [0], [1], [0, 0, 1, 1], [], []>} : vector<8x128xf32>, vector<128x512xf32>, vector<8x512xf32> -> vector<8x512xf32>
    %1000 = arith.addf %998, %999 : vector<8x512xf32>
    %1001 = vector.extract_strided_slice %1000 {offsets = [0, 0], sizes = [8, 128], strides = [1, 1]} : vector<8x512xf32> to vector<8x128xf32>
    %cst_556 = arith.constant 5.000000e-01 : f32
    %1002 = vector.broadcast %cst_556 : f32 to vector<8x128xf32>
    %1003 = arith.mulf %1002, %1001 : vector<8x128xf32>
    %1004 = math.tanh %1003 : vector<8x128xf32>
    %cst_557 = arith.constant 1.000000e+00 : f32
    %1005 = vector.broadcast %cst_557 : f32 to vector<8x128xf32>
    %1006 = arith.addf %1004, %1005 : vector<8x128xf32>
    %cst_558 = arith.constant 5.000000e-01 : f32
    %1007 = vector.broadcast %cst_558 : f32 to vector<8x128xf32>
    %1008 = arith.mulf %1007, %1006 : vector<8x128xf32>
    %1009 = vector.extract_strided_slice %1000 {offsets = [0, 128], sizes = [8, 128], strides = [1, 1]} : vector<8x512xf32> to vector<8x128xf32>
    %cst_559 = arith.constant 5.000000e-01 : f32
    %1010 = vector.broadcast %cst_559 : f32 to vector<8x128xf32>
    %1011 = arith.mulf %1010, %1009 : vector<8x128xf32>
    %1012 = math.tanh %1011 : vector<8x128xf32>
    %cst_560 = arith.constant 1.000000e+00 : f32
    %1013 = vector.broadcast %cst_560 : f32 to vector<8x128xf32>
    %1014 = arith.addf %1012, %1013 : vector<8x128xf32>
    %cst_561 = arith.constant 5.000000e-01 : f32
    %1015 = vector.broadcast %cst_561 : f32 to vector<8x128xf32>
    %1016 = arith.mulf %1015, %1014 : vector<8x128xf32>
    %1017 = vector.extract_strided_slice %1000 {offsets = [0, 256], sizes = [8, 128], strides = [1, 1]} : vector<8x512xf32> to vector<8x128xf32>
    %1018 = math.tanh %1017 : vector<8x128xf32>
    %1019 = vector.extract_strided_slice %1000 {offsets = [0, 384], sizes = [8, 128], strides = [1, 1]} : vector<8x512xf32> to vector<8x128xf32>
    %cst_562 = arith.constant 5.000000e-01 : f32
    %1020 = vector.broadcast %cst_562 : f32 to vector<8x128xf32>
    %1021 = arith.mulf %1020, %1019 : vector<8x128xf32>
    %1022 = math.tanh %1021 : vector<8x128xf32>
    %cst_563 = arith.constant 1.000000e+00 : f32
    %1023 = vector.broadcast %cst_563 : f32 to vector<8x128xf32>
    %1024 = arith.addf %1022, %1023 : vector<8x128xf32>
    %cst_564 = arith.constant 5.000000e-01 : f32
    %1025 = vector.broadcast %cst_564 : f32 to vector<8x128xf32>
    %1026 = arith.mulf %1025, %1024 : vector<8x128xf32>
    %1027 = arith.mulf %1016, %995 : vector<8x128xf32>
    %1028 = arith.mulf %1008, %1018 : vector<8x128xf32>
    %1029 = arith.addf %1027, %1028 : vector<8x128xf32>
    %1030 = math.tanh %1029 : vector<8x128xf32>
    %1031 = arith.mulf %1026, %1030 : vector<8x128xf32>
    %c0_565 = arith.constant 0 : index
    %c0_566 = arith.constant 0 : index
    %1032 = vector.load %arg10[%c0_565, %c0_566] : memref<8x128xf32, #tpu.memory_space<vmem>>, vector<8x128xf32>
    tpu.vector_store %arg10[%c0_565, %c0_566], %1031 {strides = array<i32>} : memref<8x128xf32, #tpu.memory_space<vmem>>, vector<8x128xf32>,
    %c0_567 = arith.constant 0 : index
    %c0_568 = arith.constant 0 : index
    %1033 = vector.load %arg11[%c0_567, %c0_568] : memref<8x128xf32, #tpu.memory_space<vmem>>, vector<8x128xf32>
    tpu.vector_store %arg11[%c0_567, %c0_568], %1029 {strides = array<i32>} : memref<8x128xf32, #tpu.memory_space<vmem>>, vector<8x128xf32>,
    %c7_i32_569 = arith.constant 7 : i32
    %c0_570 = arith.constant 0 : index
    %c0_571 = arith.constant 0 : index
    %1034 = vector.load %arg10[%c0_570, %c0_571] : memref<8x128xf32, #tpu.memory_space<vmem>>, vector<8x128xf32>
    %c0_572 = arith.constant 0 : index
    %c0_573 = arith.constant 0 : index
    %1035 = vector.load %arg11[%c0_572, %c0_573] : memref<8x128xf32, #tpu.memory_space<vmem>>, vector<8x128xf32>
    %1036 = arith.index_cast %c7_i32_569 : i32 to index
    %c0_574 = arith.constant 0 : index
    %c0_575 = arith.constant 0 : index
    %1037 = vector.load %arg9[%1036, %c0_574, %c0_575] : memref<8x8x512xf32, #tpu.memory_space<vmem>>, vector<1x8x512xf32>
    %1038 = vector.shape_cast %1037 : vector<1x8x512xf32> to vector<8x512xf32>
    %cst_576 = arith.constant dense<0.000000e+00> : vector<8x512xf32>
    %1039 = tpu.matmul %1034, %738, %cst_576 {dimension_numbers = #tpu.dot_dimension_numbers<[1], [0], [0], [1], [0, 0, 1, 1], [], []>} : vector<8x128xf32>, vector<128x512xf32>, vector<8x512xf32> -> vector<8x512xf32>
    %1040 = arith.addf %1038, %1039 : vector<8x512xf32>
    %1041 = vector.extract_strided_slice %1040 {offsets = [0, 0], sizes = [8, 128], strides = [1, 1]} : vector<8x512xf32> to vector<8x128xf32>
    %cst_577 = arith.constant 5.000000e-01 : f32
    %1042 = vector.broadcast %cst_577 : f32 to vector<8x128xf32>
    %1043 = arith.mulf %1042, %1041 : vector<8x128xf32>
    %1044 = math.tanh %1043 : vector<8x128xf32>
    %cst_578 = arith.constant 1.000000e+00 : f32
    %1045 = vector.broadcast %cst_578 : f32 to vector<8x128xf32>
    %1046 = arith.addf %1044, %1045 : vector<8x128xf32>
    %cst_579 = arith.constant 5.000000e-01 : f32
    %1047 = vector.broadcast %cst_579 : f32 to vector<8x128xf32>
    %1048 = arith.mulf %1047, %1046 : vector<8x128xf32>
    %1049 = vector.extract_strided_slice %1040 {offsets = [0, 128], sizes = [8, 128], strides = [1, 1]} : vector<8x512xf32> to vector<8x128xf32>
    %cst_580 = arith.constant 5.000000e-01 : f32
    %1050 = vector.broadcast %cst_580 : f32 to vector<8x128xf32>
    %1051 = arith.mulf %1050, %1049 : vector<8x128xf32>
    %1052 = math.tanh %1051 : vector<8x128xf32>
    %cst_581 = arith.constant 1.000000e+00 : f32
    %1053 = vector.broadcast %cst_581 : f32 to vector<8x128xf32>
    %1054 = arith.addf %1052, %1053 : vector<8x128xf32>
    %cst_582 = arith.constant 5.000000e-01 : f32
    %1055 = vector.broadcast %cst_582 : f32 to vector<8x128xf32>
    %1056 = arith.mulf %1055, %1054 : vector<8x128xf32>
    %1057 = vector.extract_strided_slice %1040 {offsets = [0, 256], sizes = [8, 128], strides = [1, 1]} : vector<8x512xf32> to vector<8x128xf32>
    %1058 = math.tanh %1057 : vector<8x128xf32>
    %1059 = vector.extract_strided_slice %1040 {offsets = [0, 384], sizes = [8, 128], strides = [1, 1]} : vector<8x512xf32> to vector<8x128xf32>
    %cst_583 = arith.constant 5.000000e-01 : f32
    %1060 = vector.broadcast %cst_583 : f32 to vector<8x128xf32>
    %1061 = arith.mulf %1060, %1059 : vector<8x128xf32>
    %1062 = math.tanh %1061 : vector<8x128xf32>
    %cst_584 = arith.constant 1.000000e+00 : f32
    %1063 = vector.broadcast %cst_584 : f32 to vector<8x128xf32>
    %1064 = arith.addf %1062, %1063 : vector<8x128xf32>
    %cst_585 = arith.constant 5.000000e-01 : f32
    %1065 = vector.broadcast %cst_585 : f32 to vector<8x128xf32>
    %1066 = arith.mulf %1065, %1064 : vector<8x128xf32>
    %1067 = arith.mulf %1056, %1035 : vector<8x128xf32>
    %1068 = arith.mulf %1048, %1058 : vector<8x128xf32>
    %1069 = arith.addf %1067, %1068 : vector<8x128xf32>
    %1070 = math.tanh %1069 : vector<8x128xf32>
    %1071 = arith.mulf %1066, %1070 : vector<8x128xf32>
    %c0_586 = arith.constant 0 : index
    %c0_587 = arith.constant 0 : index
    %1072 = vector.load %arg10[%c0_586, %c0_587] : memref<8x128xf32, #tpu.memory_space<vmem>>, vector<8x128xf32>
    tpu.vector_store %arg10[%c0_586, %c0_587], %1071 {strides = array<i32>} : memref<8x128xf32, #tpu.memory_space<vmem>>, vector<8x128xf32>,
    %c0_588 = arith.constant 0 : index
    %c0_589 = arith.constant 0 : index
    %1073 = vector.load %arg11[%c0_588, %c0_589] : memref<8x128xf32, #tpu.memory_space<vmem>>, vector<8x128xf32>
    tpu.vector_store %arg11[%c0_588, %c0_589], %1069 {strides = array<i32>} : memref<8x128xf32, #tpu.memory_space<vmem>>, vector<8x128xf32>,
    %c8_i32_590 = arith.constant 8 : i32
    %c0_591 = arith.constant 0 : index
    %c0_592 = arith.constant 0 : index
    %1074 = vector.load %arg10[%c0_591, %c0_592] : memref<8x128xf32, #tpu.memory_space<vmem>>, vector<8x128xf32>
    %c0_593 = arith.constant 0 : index
    %c0_594 = arith.constant 0 : index
    %1075 = vector.load %arg5[%c0_593, %c0_594] : memref<128x16xf32, #tpu.memory_space<vmem>>, vector<128x16xf32>
    %cst_595 = arith.constant dense<0.000000e+00> : vector<8x16xf32>
    %1076 = tpu.matmul %1074, %1075, %cst_595 {dimension_numbers = #tpu.dot_dimension_numbers<[1], [0], [0], [1], [0, 0, 1, 1], [], []>} : vector<8x128xf32>, vector<128x16xf32>, vector<8x16xf32> -> vector<8x16xf32>
    %c0_596 = arith.constant 0 : index
    %c0_597 = arith.constant 0 : index
    %1077 = vector.load %arg6[%c0_596, %c0_597] : memref<1x16xf32, #tpu.memory_space<vmem>>, vector<1x16xf32>
    %1078 = vector.broadcast %1077 : vector<1x16xf32> to vector<8x16xf32>
    %1079 = arith.addf %1076, %1078 : vector<8x16xf32>
    %1080 = vector.extract_strided_slice %1079 {offsets = [0, 0], sizes = [8, 8], strides = [1, 1]} : vector<8x16xf32> to vector<8x8xf32>
    %1081 = vector.extract_strided_slice %1079 {offsets = [0, 8], sizes = [8, 8], strides = [1, 1]} : vector<8x16xf32> to vector<8x8xf32>
    %1082 = arith.maximumf %1080, %1081 : vector<8x8xf32>
    %1083 = arith.subf %1080, %1082 : vector<8x8xf32>
    %1084 = math.exp %1083 : vector<8x8xf32>
    %1085 = arith.subf %1081, %1082 : vector<8x8xf32>
    %1086 = math.exp %1085 : vector<8x8xf32>
    %1087 = arith.addf %1084, %1086 : vector<8x8xf32>
    %1088 = math.log %1087 : vector<8x8xf32>
    %1089 = arith.addf %1082, %1088 : vector<8x8xf32>
    %1090 = arith.subf %1080, %1089 : vector<8x8xf32>
    %c0_598 = arith.constant 0 : index
    %c0_599 = arith.constant 0 : index
    %1091 = vector.load %arg7[%c0_598, %c0_599] : memref<8x16xf32, #tpu.memory_space<vmem>>, vector<8x8xf32>
    tpu.vector_store %arg7[%c0_598, %c0_599], %1090 {strides = array<i32>} : memref<8x16xf32, #tpu.memory_space<vmem>>, vector<8x8xf32>,
    %1092 = arith.subf %1081, %1089 : vector<8x8xf32>
    %c0_600 = arith.constant 0 : index
    %c8 = arith.constant 8 : index
    %1093 = vector.load %arg7[%c0_600, %c8] : memref<8x16xf32, #tpu.memory_space<vmem>>, vector<8x8xf32>
    tpu.vector_store %arg7[%c0_600, %c8], %1092 {strides = array<i32>} : memref<8x16xf32, #tpu.memory_space<vmem>>, vector<8x8xf32>,
    return
  }
}

</mosaic_0001>

<bundles_post_ra>
// kernel: tpu_custom_call.1
= control target key start
LH: loop header
LB: loop body
LE: loop exit
PB: predicated region body
PF: predicated region fallthrough
CT: control target
= control target key end

     0   :  { %12 = vsyncpa [#allocation7], 0  ;;  %s9338_s0 = inlined_call_operand.vmem [shape: f32[8,8,128], index: 0, kind: input, shape index: {}]   ;;  %s9339_s1 = inlined_call_operand.hbm [shape: f32[128,512], index: 1, kind: input, shape index: {}]   ;;  %s9340_s2 = inlined_call_operand.hbm [shape: f32[2,128,512], index: 2, kind: input, shape index: {}]   ;;  %s9341_s3 = inlined_call_operand.hbm [shape: f32[3,128,512], index: 3, kind: input, shape index: {}]   ;;  %s9342_s4 = inlined_call_operand.vmem [shape: f32[3,1,512], index: 4, kind: input, shape index: {}]   ;;  %s9343_s5 = inlined_call_operand.vmem [shape: f32[128,16], index: 5, kind: input, shape index: {}]   ;;  %s9344_s6 = inlined_call_operand.vmem [shape: f32[1,16], index: 6, kind: input, shape index: {}]   ;;  %s9345_s7 = inlined_call_operand.hbm [shape: f32[8,16], index: 7, kind: output, shape index: {}]  }
   0x1   :  { %13 = vsyncpa [#allocation10], 0 }
   0x2   :  { %14 = vsyncpa [#allocation8], 0  ;;  %s6217_s24 = smov [#allocation9]   ;;  %s6218_s26 = smov [#allocation6]  }
   0x3   :  { %s34_s25 = sshll.u32 %s6217_s24, 4  ;;  %s22_s27 = sshll.u32 %s6218_s26, 4  ;;  %s35_s25 = int_to_ptr.vmem [resolvable:$true] %s34_s25  ;;  %s23_s27 = int_to_ptr.vmem [resolvable:$true] %s22_s27 }
   0x4   :  { %s6139_s28 = scalar_lea.vmem %s35_s25, 16384  ;;  %p6144_p1 = scmp.lt.s32.totalorder %s35_s25, %s35_s25 }
   0x5   :  { %p6140_p0 = scmp.ne.s32.totalorder %s35_s25, %s6139_s28  ;;  %p6145_p2 = scmp.lt.s32.totalorder %s6139_s28, %s6139_s28 }
   0x7   :  { %p6146_p3 = por %p6145_p2, %p6144_p1 }
   0x9   :  { %p6147_p4 = pnand %p6146_p3, %p6140_p0 }
   0xb   :  { %6150 = shalt.err (!%p6147_p4)
}
   0xc   :  { %s6219_s29 = smov 512   ;;  %s6220_s30 = smov 32  }
   0xd   :  { %40 = dma.hbm_to_vmem [thread:$0]  %s9340_s2, 16384, %s35_s25, [#allocation10], %s6219_s29, %s6219_s29, %s6220_s30  }
   0xe   :  { %s6159_s10 = scalar_lea.vmem %s23_s27, 8192  ;;  %p6164_p6 = scmp.lt.s32.totalorder %s23_s27, %s23_s27 }
   0xf   :  { %p6160_p5 = scmp.ne.s32.totalorder %s23_s27, %s6159_s10  ;;  %p6165_p7 = scmp.lt.s32.totalorder %s6159_s10, %s6159_s10 }
  0x11   :  { %p6166_p8 = por %p6165_p7, %p6164_p6 }
  0x13   :  { %p6167_p9 = pnand %p6166_p8, %p6160_p5 }
  0x15   :  { %6170 = shalt.err (!%p6167_p9)
}
  0x16   :  { %28 = dma.hbm_to_vmem [thread:$0]  %s9339_s1, 8192, %s23_s27, [#allocation7], %s6219_s29, %s6219_s29, %s6220_s30  }
  0x17   :  { %s6221_s13 = smov [#allocation11]  }
  0x18   :  { %s46_s14 = sshll.u32 %s6221_s13, 4  ;;  %s47_s14 = int_to_ptr.vmem [resolvable:$true] %s46_s14 }
  0x19   :  { %s6179_s15 = scalar_lea.vmem %s47_s14, 24576  ;;  %p6184_p11 = scmp.lt.s32.totalorder %s47_s14, %s47_s14 }
  0x1a   :  { %p6180_p10 = scmp.ne.s32.totalorder %s47_s14, %s6179_s15  ;;  %p6185_p12 = scmp.lt.s32.totalorder %s6179_s15, %s6179_s15 }
  0x1c   :  { %p6186_p13 = por %p6185_p12, %p6184_p11 }
  0x1e   :  { %p6187_p0 = pnand %p6186_p13, %p6180_p10 }
  0x20   :  { %6190 = shalt.err (!%p6187_p0)
}
  0x21   :  { %52 = dma.hbm_to_vmem [thread:$0]  %s9341_s3, 24576, %s47_s14, [#allocation10], %s6219_s29, %s6219_s29, %s6220_s30  }
  0x22   :  { %6211 = dma.done.wait [#allocation7], 8192  }
  0x23   :  { %6212 = vsyncadd [#allocation7], 4294959104 }
  0x24   :  { %6213 = dma.done.wait [#allocation10], 40960  }
  0x25   :  { %6214 = vsyncadd [#allocation10], 4294926336  ;;  %v9346_v0 = vmov 0.0   ;;  %v202_v1 = vld [vmem:[#allocation6 + $0x1e8] sm:$0xff]  ;;  %v204_v2 = vld [vmem:[#allocation6 + $0x1f8] sm:$0xff]  ;;  %vm6223_vm0 = vmmov 0  }
  0x26   :  { %290 = vmatprep.mubr.f32.mxu0 %v9346_v0  ;;  %403 = vmatprep.mubr.f32.mxu1 %v9346_v0  ;;  %v201_v3 = vld [vmem:[#allocation6 + $0x1e0] sm:$0xff]  ;;  %v203_v4 = vld [vmem:[#allocation6 + $0x1f0] sm:$0xff]  ;;  %v198_v5 = vld [vmem:[#allocation6 + $0x1c8] sm:$0xff]  ;;  %s6224_s16 = smov 120   ;;  %s6225_s1 = smov 8   ;;  %vm5603_vm1 = vcmask 64512  }
  0x27   :  { %226 = vmatprep.subr.mxu0 %v202_v1  ;;  %339 = vmatprep.subr.mxu1 %v204_v2  ;;  %v200_v6 = vld [vmem:[#allocation6 + $0x1d8] sm:$0xff]  ;;  %v197_v7 = vld [vmem:[#allocation6 + $0x1c0] sm:$0xff]  ;;  %v199_v8 = vld [vmem:[#allocation6 + $0x1d0] sm:$0xff]  ;;  %vm5610_vm2 = vcmask 130112  }
  0x28   :  { %227 = vmatpush1.msra.mxu0 %v201_v3  ;;  %340 = vmatpush1.msra.mxu1 %v203_v4  ;;  %v194_v9 = vld [vmem:[#allocation6 + $0x1a8] sm:$0xff]  ;;  %v196_v10 = vld [vmem:[#allocation6 + $0x1b8] sm:$0xff]  ;;  %v193_v11 = vld [vmem:[#allocation6 + $0x1a0] sm:$0xff] }
  0x29   :  { %228 = vmatprep.subr.mxu0 %v198_v5  ;;  %341 = vmatprep.subr.mxu1 %v200_v6  ;;  %v195_v12 = vld [vmem:[#allocation6 + $0x1b0] sm:$0xff]  ;;  %v190_v13 = vld [vmem:[#allocation6 + $0x188] sm:$0xff]  ;;  %v192_v14 = vld [vmem:[#allocation6 + $0x198] sm:$0xff] }
  0x2a   :  { %229 = vmatpush1.msra.mxu0 %v197_v7  ;;  %342 = vmatpush1.msra.mxu1 %v199_v8  ;;  %v189_v15 = vld [vmem:[#allocation6 + $0x180] sm:$0xff]  ;;  %v191_v16 = vld [vmem:[#allocation6 + $0x190] sm:$0xff]  ;;  %v186_v17 = vld [vmem:[#allocation6 + $0x168] sm:$0xff] }
  0x2b   :  { %230 = vmatprep.subr.mxu0 %v194_v9  ;;  %343 = vmatprep.subr.mxu1 %v196_v10  ;;  %v188_v18 = vld [vmem:[#allocation6 + $0x178] sm:$0xff]  ;;  %v185_v19 = vld [vmem:[#allocation6 + $0x160] sm:$0xff]  ;;  %v187_v20 = vld [vmem:[#allocation6 + $0x170] sm:$0xff] }
  0x2c   :  { %231 = vmatpush1.msra.mxu0 %v193_v11  ;;  %344 = vmatpush1.msra.mxu1 %v195_v12  ;;  %v182_v21 = vld [vmem:[#allocation6 + $0x148] sm:$0xff]  ;;  %v184_v22 = vld [vmem:[#allocation6 + $0x158] sm:$0xff]  ;;  %v181_v23 = vld [vmem:[#allocation6 + $0x140] sm:$0xff] }
  0x2d   :  { %232 = vmatprep.subr.mxu0 %v190_v13  ;;  %345 = vmatprep.subr.mxu1 %v192_v14  ;;  %v183_v24 = vld [vmem:[#allocation6 + $0x150] sm:$0xff]  ;;  %v178_v25 = vld [vmem:[#allocation6 + $0x128] sm:$0xff]  ;;  %v180_v26 = vld [vmem:[#allocation6 + $0x138] sm:$0xff] }
  0x2e   :  { %233 = vmatpush1.msra.mxu0 %v189_v15  ;;  %346 = vmatpush1.msra.mxu1 %v191_v16  ;;  %v177_v27 = vld [vmem:[#allocation6 + $0x120] sm:$0xff]  ;;  %v179_v28 = vld [vmem:[#allocation6 + $0x130] sm:$0xff]  ;;  %v174_v29 = vld [vmem:[#allocation6 + $0x108] sm:$0xff] }
  0x2f   :  { %234 = vmatprep.subr.mxu0 %v186_v17  ;;  %347 = vmatprep.subr.mxu1 %v188_v18  ;;  %v176_v30 = vld [vmem:[#allocation6 + $0x118] sm:$0xff]  ;;  %v173_v31 = vld [vmem:[#allocation6 + $0x100] sm:$0xff]  ;;  %v175_v32 = vld [vmem:[#allocation6 + $0x110] sm:$0xff] }
  0x30   :  { %235 = vmatpush1.msra.mxu0 %v185_v19  ;;  %348 = vmatpush1.msra.mxu1 %v187_v20  ;;  %v170_v33 = vld [vmem:[#allocation6 + $0xe8] sm:$0xff]  ;;  %v172_v34 = vld [vmem:[#allocation6 + $0xf8] sm:$0xff]  ;;  %v169_v35 = vld [vmem:[#allocation6 + $0xe0] sm:$0xff] }
  0x31   :  { %236 = vmatprep.subr.mxu0 %v182_v21  ;;  %349 = vmatprep.subr.mxu1 %v184_v22  ;;  %v171_v36 = vld [vmem:[#allocation6 + $0xf0] sm:$0xff]  ;;  %v166_v37 = vld [vmem:[#allocation6 + $0xc8] sm:$0xff]  ;;  %v168_v38 = vld [vmem:[#allocation6 + $0xd8] sm:$0xff] }
  0x32   :  { %237 = vmatpush1.msra.mxu0 %v181_v23  ;;  %350 = vmatpush1.msra.mxu1 %v183_v24  ;;  %v165_v39 = vld [vmem:[#allocation6 + $0xc0] sm:$0xff]  ;;  %v167_v40 = vld [vmem:[#allocation6 + $0xd0] sm:$0xff]  ;;  %v162_v41 = vld [vmem:[#allocation6 + $0xa8] sm:$0xff] }
  0x33   :  { %238 = vmatprep.subr.mxu0 %v178_v25  ;;  %351 = vmatprep.subr.mxu1 %v180_v26  ;;  %v164_v42 = vld [vmem:[#allocation6 + $0xb8] sm:$0xff]  ;;  %v161_v43 = vld [vmem:[#allocation6 + $0xa0] sm:$0xff]  ;;  %v163_v44 = vld [vmem:[#allocation6 + $0xb0] sm:$0xff] }
  0x34   :  { %239 = vmatpush1.msra.mxu0 %v177_v27  ;;  %352 = vmatpush1.msra.mxu1 %v179_v28  ;;  %v158_v45 = vld [vmem:[#allocation6 + $0x88] sm:$0xff]  ;;  %v160_v46 = vld [vmem:[#allocation6 + $0x98] sm:$0xff]  ;;  %v157_v47 = vld [vmem:[#allocation6 + $0x80] sm:$0xff] }
  0x35   :  { %240 = vmatprep.subr.mxu0 %v174_v29  ;;  %353 = vmatprep.subr.mxu1 %v176_v30  ;;  %v159_v48 = vld [vmem:[#allocation6 + $0x90] sm:$0xff]  ;;  %v154_v49 = vld [vmem:[#allocation6 + $0x68] sm:$0xff]  ;;  %v156_v50 = vld [vmem:[#allocation6 + $0x78] sm:$0xff] }
  0x36   :  { %241 = vmatpush1.msra.mxu0 %v173_v31  ;;  %354 = vmatpush1.msra.mxu1 %v175_v32  ;;  %v153_v51 = vld [vmem:[#allocation6 + $0x60] sm:$0xff]  ;;  %v155_v52 = vld [vmem:[#allocation6 + $0x70] sm:$0xff]  ;;  %v150_v53 = vld [vmem:[#allocation6 + $0x48] sm:$0xff] }
  0x37   :  { %242 = vmatprep.subr.mxu0 %v170_v33  ;;  %355 = vmatprep.subr.mxu1 %v172_v34  ;;  %v152_v54 = vld [vmem:[#allocation6 + $0x58] sm:$0xff]  ;;  %v149_v55 = vld [vmem:[#allocation6 + $0x40] sm:$0xff]  ;;  %v151_v56 = vld [vmem:[#allocation6 + $0x50] sm:$0xff] }
  0x38   :  { %243 = vmatpush1.msra.mxu0 %v169_v35  ;;  %356 = vmatpush1.msra.mxu1 %v171_v36  ;;  %v146_v57 = vld [vmem:[#allocation6 + $0x28] sm:$0xff]  ;;  %v148_v58 = vld [vmem:[#allocation6 + $0x38] sm:$0xff]  ;;  %v145_v59 = vld [vmem:[#allocation6 + $0x20] sm:$0xff] }
  0x39   :  { %244 = vmatprep.subr.mxu0 %v166_v37  ;;  %357 = vmatprep.subr.mxu1 %v168_v38  ;;  %v147_v60 = vld [vmem:[#allocation6 + $0x30] sm:$0xff]  ;;  %v142_v61 = vld [vmem:[#allocation6 + $0x8] sm:$0xff]  ;;  %v144_v62 = vld [vmem:[#allocation6 + $0x18] sm:$0xff] }
  0x3a   :  { %245 = vmatpush1.msra.mxu0 %v165_v39  ;;  %358 = vmatpush1.msra.mxu1 %v167_v40  ;;  %v141_v63 = vld [vmem:[#allocation6] sm:$0xff]  ;;  %v143_v1 = vld [vmem:[#allocation6 + $0x10] sm:$0xff]  ;;  %v6281_v3 = vld [vmem:[#allocation11 + $0x1e8] sm:$0xff] }
  0x3b   :  { %246 = vmatprep.subr.mxu0 %v162_v41  ;;  %359 = vmatprep.subr.mxu1 %v164_v42  ;;  %v133_v2 = vld [vmem:[%s9338_s0] sm:$0xff]  ;;  %9673 = vst [vmem:[#allocation16_spill] sm:$0xff] %v6281_v3  ;;  %v6283_v4 = vld [vmem:[#allocation11 + $0x1f8] sm:$0xff]  ;;  %v6287_v6 = vld [vmem:[#allocation11 + $0x1f0] sm:$0xff] }
  0x3c   :  { %247 = vmatpush1.msra.mxu0 %v161_v43  ;;  %360 = vmatpush1.msra.mxu1 %v163_v44  ;;  %9674 = vst [vmem:[#allocation17_spill] sm:$0xff] %v6283_v4  ;;  %v6285_v5 = vld [vmem:[#allocation11 + $0x1e0] sm:$0xff]  ;;  %v6289_v7 = vld [vmem:[#allocation11 + $0x1c8] sm:$0xff]  ;;  %v6291_v8 = vld [vmem:[#allocation11 + $0x1d8] sm:$0xff] }
  0x3d   :  { %248 = vmatprep.subr.mxu0 %v158_v45  ;;  %361 = vmatprep.subr.mxu1 %v160_v46  ;;  %v6297_v9 = vld [vmem:[#allocation11 + $0x1c0] sm:$0xff]  ;;  %v6299_v10 = vld [vmem:[#allocation11 + $0x1d0] sm:$0xff]  ;;  %v134_v11 = vld [vmem:[%s9338_s0 + $0x8] sm:$0xff] }
  0x3e   :  { %249 = vmatpush1.msra.mxu0 %v157_v47  ;;  %362 = vmatpush1.msra.mxu1 %v159_v48  ;;  %v6308_v12 = vld [vmem:[#allocation11 + $0x1a8] sm:$0xff]  ;;  %v6310_v13 = vld [vmem:[#allocation11 + $0x1b8] sm:$0xff]  ;;  %v6314_v14 = vld [vmem:[#allocation11 + $0x1a0] sm:$0xff] }
  0x3f   :  { %250 = vmatprep.subr.mxu0 %v154_v49  ;;  %363 = vmatprep.subr.mxu1 %v156_v50  ;;  %v6316_v15 = vld [vmem:[#allocation11 + $0x1b0] sm:$0xff]  ;;  %v6318_v16 = vld [vmem:[#allocation11 + $0x188] sm:$0xff]  ;;  %v6320_v17 = vld [vmem:[#allocation11 + $0x198] sm:$0xff] }
  0x40   :  { %251 = vmatpush1.msra.mxu0 %v153_v51  ;;  %364 = vmatpush1.msra.mxu1 %v155_v52  ;;  %v6326_v18 = vld [vmem:[#allocation11 + $0x180] sm:$0xff]  ;;  %v6328_v19 = vld [vmem:[#allocation11 + $0x190] sm:$0xff]  ;;  %v6337_v21 = vld [vmem:[#allocation11 + $0x168] sm:$0xff] }
  0x41   :  { %252 = vmatprep.subr.mxu0 %v150_v53  ;;  %365 = vmatprep.subr.mxu1 %v152_v54  ;;  %v135_v20 = vld [vmem:[%s9338_s0 + $0x10] sm:$0xff]  ;;  %v6339_v22 = vld [vmem:[#allocation11 + $0x178] sm:$0xff]  ;;  %v6343_v23 = vld [vmem:[#allocation11 + $0x160] sm:$0xff] }
  0x42   :  { %253 = vmatpush1.msra.mxu0 %v149_v55  ;;  %366 = vmatpush1.msra.mxu1 %v151_v56  ;;  %v6345_v24 = vld [vmem:[#allocation11 + $0x170] sm:$0xff]  ;;  %v6347_v25 = vld [vmem:[#allocation11 + $0x148] sm:$0xff]  ;;  %v6349_v26 = vld [vmem:[#allocation11 + $0x158] sm:$0xff] }
  0x43   :  { %254 = vmatprep.subr.mxu0 %v146_v57  ;;  %367 = vmatprep.subr.mxu1 %v148_v58  ;;  %v6355_v27 = vld [vmem:[#allocation11 + $0x140] sm:$0xff]  ;;  %v6357_v28 = vld [vmem:[#allocation11 + $0x150] sm:$0xff]  ;;  %v136_v29 = vld [vmem:[%s9338_s0 + $0x18] sm:$0xff] }
  0x44   :  { %255 = vmatpush1.msra.mxu0 %v145_v59  ;;  %368 = vmatpush1.msra.mxu1 %v147_v60  ;;  %v6366_v30 = vld [vmem:[#allocation11 + $0x128] sm:$0xff]  ;;  %v6368_v31 = vld [vmem:[#allocation11 + $0x138] sm:$0xff]  ;;  %v6372_v32 = vld [vmem:[#allocation11 + $0x120] sm:$0xff] }
  0x45   :  { %256 = vmatprep.subr.mxu0 %v142_v61  ;;  %369 = vmatprep.subr.mxu1 %v144_v62  ;;  %v6374_v33 = vld [vmem:[#allocation11 + $0x130] sm:$0xff]  ;;  %v6376_v34 = vld [vmem:[#allocation11 + $0x108] sm:$0xff]  ;;  %v6378_v35 = vld [vmem:[#allocation11 + $0x118] sm:$0xff] }
  0x46   :  { %257 = vmatpush1.msra.mxu0 %v141_v63  ;;  %370 = vmatpush1.msra.mxu1 %v143_v1  ;;  %v6384_v36 = vld [vmem:[#allocation11 + $0x100] sm:$0xff]  ;;  %v6386_v37 = vld [vmem:[#allocation11 + $0x110] sm:$0xff]  ;;  %v6395_v39 = vld [vmem:[#allocation11 + $0xe8] sm:$0xff] }
  0x47   :  { %291 = vmatmul.mubr.f32.vlgmr.msra.gmra.mxu0 %v133_v2  ;;  %404 = vmatmul.mubr.f32.vlgmr.msra.gmra.mxu1 %v133_v2  ;;  %v137_v38 = vld [vmem:[%s9338_s0 + $0x20] sm:$0xff]  ;;  %v6397_v40 = vld [vmem:[#allocation11 + $0xf8] sm:$0xff]  ;;  %v6403_v42 = vld [vmem:[#allocation11 + $0xf0] sm:$0xff] }
  0x48   :  { %492 = vmatprep.subr.mxu0 %v6281_v3  ;;  %563 = vmatprep.subr.mxu1 %v6283_v4  ;;  %v6401_v41 = vld [vmem:[#allocation11 + $0xe0] sm:$0xff]  ;;  %v6405_v43 = vld [vmem:[#allocation11 + $0xc8] sm:$0xff]  ;;  %v6407_v44 = vld [vmem:[#allocation11 + $0xd8] sm:$0xff] }
  0x49   :  { %493 = vmatpush1.msra.mxu0 %v6285_v5  ;;  %564 = vmatpush1.msra.mxu1 %v6287_v6  ;;  %v6413_v45 = vld [vmem:[#allocation11 + $0xc0] sm:$0xff]  ;;  %v6415_v46 = vld [vmem:[#allocation11 + $0xd0] sm:$0xff]  ;;  %v138_v47 = vld [vmem:[%s9338_s0 + $0x28] sm:$0xff] }
  0x4a   :  { %494 = vmatprep.subr.mxu0 %v6289_v7  ;;  %565 = vmatprep.subr.mxu1 %v6291_v8  ;;  %v6424_v48 = vld [vmem:[#allocation11 + $0xa8] sm:$0xff]  ;;  %v6426_v49 = vld [vmem:[#allocation11 + $0xb8] sm:$0xff]  ;;  %v6430_v50 = vld [vmem:[#allocation11 + $0xa0] sm:$0xff] }
  0x4b   :  { %296 = vmatprep.mubr.f32.mxu0 %v9346_v0  ;;  %409 = vmatprep.mubr.f32.mxu1 %v9346_v0  ;;  %v6432_v51 = vld [vmem:[#allocation11 + $0xb0] sm:$0xff]  ;;  %v6434_v52 = vld [vmem:[#allocation11 + $0x88] sm:$0xff]  ;;  %v6436_v53 = vld [vmem:[#allocation11 + $0x98] sm:$0xff] }
  0x4c   :  { %495 = vmatpush1.msra.mxu0 %v6297_v9  ;;  %566 = vmatpush1.msra.mxu1 %v6299_v10  ;;  %9675 = vst [vmem:[#allocation18_spill] sm:$0xff] %v6434_v52  ;;  %9676 = vst [vmem:[#allocation19_spill] sm:$0xff] %v6436_v53  ;;  %v6442_v54 = vld [vmem:[#allocation11 + $0x80] sm:$0xff]  ;;  %v6444_v55 = vld [vmem:[#allocation11 + $0x90] sm:$0xff] }
  0x4d   :  { %297 = vmatmul.mubr.f32.gmra.mxu0 %v134_v11  ;;  %410 = vmatmul.mubr.f32.gmra.mxu1 %v134_v11  ;;  %9677 = vst [vmem:[#allocation20_spill] sm:$0xff] %v6442_v54  ;;  %9678 = vst [vmem:[#allocation21_spill] sm:$0xff] %v6444_v55  ;;  %v139_v56 = vld [vmem:[%s9338_s0 + $0x30] sm:$0xff]  ;;  %v6453_v57 = vld [vmem:[#allocation11 + $0x68] sm:$0xff] }
  0x4e   :  { %496 = vmatprep.subr.mxu0 %v6308_v12  ;;  %567 = vmatprep.subr.mxu1 %v6310_v13  ;;  %9679 = vst [vmem:[#allocation22_spill] sm:$0xff] %v6453_v57  ;;  %v6455_v58 = vld [vmem:[#allocation11 + $0x78] sm:$0xff]  ;;  %v6459_v59 = vld [vmem:[#allocation11 + $0x60] sm:$0xff]  ;;  %v6461_v60 = vld [vmem:[#allocation11 + $0x70] sm:$0xff] }
  0x4f   :  { %497 = vmatpush1.msra.mxu0 %v6314_v14  ;;  %568 = vmatpush1.msra.mxu1 %v6316_v15  ;;  %9680 = vst [vmem:[#allocation23_spill] sm:$0xff] %v6455_v58  ;;  %9681 = vst [vmem:[#allocation24_spill] sm:$0xff] %v6459_v59  ;;  %v6463_v61 = vld [vmem:[#allocation11 + $0x48] sm:$0xff]  ;;  %v6465_v62 = vld [vmem:[#allocation11 + $0x58] sm:$0xff] }
  0x50   :  { %498 = vmatprep.subr.mxu0 %v6318_v16  ;;  %569 = vmatprep.subr.mxu1 %v6320_v17  ;;  %9682 = vst [vmem:[#allocation25_spill] sm:$0xff] %v6461_v60  ;;  %9683 = vst [vmem:[#allocation26_spill] sm:$0xff] %v6463_v61  ;;  %v6471_v63 = vld [vmem:[#allocation11 + $0x40] sm:$0xff]  ;;  %v6473_v1 = vld [vmem:[#allocation11 + $0x50] sm:$0xff] }
  0x51   :  { %302 = vmatprep.mubr.f32.mxu0 %v9346_v0  ;;  %415 = vmatprep.mubr.f32.mxu1 %v9346_v0  ;;  %9684 = vst [vmem:[#allocation27_spill] sm:$0xff] %v6465_v62  ;;  %9685 = vst [vmem:[#allocation28_spill] sm:$0xff] %v6471_v63  ;;  %v140_v2 = vld [vmem:[%s9338_s0 + $0x38] sm:$0xff]  ;;  %v6482_v11 = vld [vmem:[#allocation11 + $0x28] sm:$0xff] }
  0x52   :  { %499 = vmatpush1.msra.mxu0 %v6326_v18  ;;  %570 = vmatpush1.msra.mxu1 %v6328_v19  ;;  %9686 = vst [vmem:[#allocation29_spill] sm:$0xff] %v6473_v1  ;;  %9687 = vst [vmem:[#allocation30_spill] sm:$0xff] %v6482_v11 }
  0x53   :  { %303 = vmatmul.mubr.f32.gmra.mxu0 %v135_v20  ;;  %416 = vmatmul.mubr.f32.gmra.mxu1 %v135_v20  ;;  %v6484_v20 = vld [vmem:[#allocation11 + $0x38] sm:$0xff] }
  0x54   :  { %500 = vmatprep.subr.mxu0 %v6337_v21  ;;  %571 = vmatprep.subr.mxu1 %v6339_v22  ;;  %9688 = vst [vmem:[#allocation31_spill] sm:$0xff] %v6484_v20 }
  0x55   :  { %501 = vmatpush1.msra.mxu0 %v6343_v23  ;;  %572 = vmatpush1.msra.mxu1 %v6345_v24 }
  0x56   :  { %502 = vmatprep.subr.mxu0 %v6347_v25  ;;  %573 = vmatprep.subr.mxu1 %v6349_v26 }
  0x57   :  { %308 = vmatprep.mubr.f32.mxu0 %v9346_v0  ;;  %421 = vmatprep.mubr.f32.mxu1 %v9346_v0 }
  0x58   :  { %503 = vmatpush1.msra.mxu0 %v6355_v27  ;;  %574 = vmatpush1.msra.mxu1 %v6357_v28 }
  0x59   :  { %309 = vmatmul.mubr.f32.gmra.mxu0 %v136_v29  ;;  %422 = vmatmul.mubr.f32.gmra.mxu1 %v136_v29  ;;  %v6488_v29 = vld [vmem:[#allocation11 + $0x20] sm:$0xff] }
  0x5a   :  { %504 = vmatprep.subr.mxu0 %v6366_v30  ;;  %575 = vmatprep.subr.mxu1 %v6368_v31  ;;  %9689 = vst [vmem:[#allocation32_spill] sm:$0xff] %v6488_v29 }
  0x5b   :  { %505 = vmatpush1.msra.mxu0 %v6372_v32  ;;  %576 = vmatpush1.msra.mxu1 %v6374_v33 }
  0x5c   :  { %506 = vmatprep.subr.mxu0 %v6376_v34  ;;  %577 = vmatprep.subr.mxu1 %v6378_v35 }
  0x5d   :  { %314 = vmatprep.mubr.f32.mxu0 %v9346_v0  ;;  %427 = vmatprep.mubr.f32.mxu1 %v9346_v0 }
  0x5e   :  { %507 = vmatpush1.msra.mxu0 %v6384_v36  ;;  %578 = vmatpush1.msra.mxu1 %v6386_v37 }
  0x5f   :  { %315 = vmatmul.mubr.f32.gmra.mxu0 %v137_v38  ;;  %428 = vmatmul.mubr.f32.gmra.mxu1 %v137_v38  ;;  %v6490_v38 = vld [vmem:[#allocation11 + $0x30] sm:$0xff] }
  0x60   :  { %508 = vmatprep.subr.mxu0 %v6395_v39  ;;  %579 = vmatprep.subr.mxu1 %v6397_v40  ;;  %9690 = vst [vmem:[#allocation33_spill] sm:$0xff] %v6490_v38 }
  0x61   :  { %509 = vmatpush1.msra.mxu0 %v6401_v41  ;;  %580 = vmatpush1.msra.mxu1 %v6403_v42 }
  0x62   :  { %510 = vmatprep.subr.mxu0 %v6405_v43  ;;  %581 = vmatprep.subr.mxu1 %v6407_v44 }
  0x63   :  { %320 = vmatprep.mubr.f32.mxu0 %v9346_v0  ;;  %433 = vmatprep.mubr.f32.mxu1 %v9346_v0 }
  0x64   :  { %511 = vmatpush1.msra.mxu0 %v6413_v45  ;;  %582 = vmatpush1.msra.mxu1 %v6415_v46 }
  0x65   :  { %321 = vmatmul.mubr.f32.gmra.mxu0 %v138_v47  ;;  %434 = vmatmul.mubr.f32.gmra.mxu1 %v138_v47  ;;  %v6492_v47 = vld [vmem:[#allocation11 + $0x8] sm:$0xff] }
  0x66   :  { %512 = vmatprep.subr.mxu0 %v6424_v48  ;;  %583 = vmatprep.subr.mxu1 %v6426_v49  ;;  %9691 = vst [vmem:[#allocation34_spill] sm:$0xff] %v6492_v47 }
  0x67   :  { %513 = vmatpush1.msra.mxu0 %v6430_v50  ;;  %584 = vmatpush1.msra.mxu1 %v6432_v51 }
  0x68   :  { %514 = vmatprep.subr.mxu0 %v6434_v52  ;;  %585 = vmatprep.subr.mxu1 %v6436_v53 }
  0x69   :  { %326 = vmatprep.mubr.f32.mxu0 %v9346_v0  ;;  %439 = vmatprep.mubr.f32.mxu1 %v9346_v0 }
  0x6a   :  { %515 = vmatpush1.msra.mxu0 %v6442_v54  ;;  %586 = vmatpush1.msra.mxu1 %v6444_v55 }
  0x6b   :  { %327 = vmatmul.mubr.f32.gmra.mxu0 %v139_v56  ;;  %440 = vmatmul.mubr.f32.gmra.mxu1 %v139_v56  ;;  %v6494_v56 = vld [vmem:[#allocation11 + $0x18] sm:$0xff] }
  0x6c   :  { %516 = vmatprep.subr.mxu0 %v6453_v57  ;;  %587 = vmatprep.subr.mxu1 %v6455_v58  ;;  %9692 = vst [vmem:[#allocation35_spill] sm:$0xff] %v6494_v56 }
  0x6d   :  { %517 = vmatpush1.msra.mxu0 %v6459_v59  ;;  %588 = vmatpush1.msra.mxu1 %v6461_v60 }
  0x6e   :  { %518 = vmatprep.subr.mxu0 %v6463_v61  ;;  %589 = vmatprep.subr.mxu1 %v6465_v62 }
  0x6f   :  { %332 = vmatprep.mubr.f32.mxu0 %v9346_v0  ;;  %445 = vmatprep.mubr.f32.mxu1 %v9346_v0  ;;  %v6498_v0 = vld [vmem:[#allocation11] sm:$0xff] }
  0x70   :  { %519 = vmatpush1.msra.mxu0 %v6471_v63  ;;  %590 = vmatpush1.msra.mxu1 %v6473_v1  ;;  %9693 = vst [vmem:[#allocation36_spill] sm:$0xff] %v6498_v0  ;;  %v6502_v1 = vld [vmem:[#allocation11 + $0x10] sm:$0xff] }
  0x71   :  { %333 = vmatmul.mubr.f32.gmra.mxu0 %v140_v2  ;;  %446 = vmatmul.mubr.f32.gmra.mxu1 %v140_v2  ;;  %9694 = vst [vmem:[#allocation37_spill] sm:$0xff] %v6502_v1  ;;  %v9695_v2 = vmov 0.0  }
  0x72   :  { %520 = vmatprep.subr.mxu0 %v6482_v11  ;;  %591 = vmatprep.subr.mxu1 %v6484_v20 }
  0x73   :  { %521 = vmatpush1.msra.mxu0 %v6488_v29  ;;  %592 = vmatpush1.msra.mxu1 %v6490_v38 }
  0x74   :  { %522 = vmatprep.subr.mxu0 %v6492_v47  ;;  %593 = vmatprep.subr.mxu1 %v6494_v56 }
  0x75   :  { %523 = vmatpush1.msra.mxu0 %v6498_v0  ;;  %556 = vmatprep.mubr.f32.mxu0 %v9695_v2 }
  0x76   :  { %594 = vmatpush1.msra.mxu1 %v6502_v1  ;;  %627 = vmatprep.mubr.f32.mxu1 %v9695_v2 }
  0x77   :  { %557 = vmatmul.mubr.f32.vlgmr.msra.gmra.mxu0 %v9695_v2  ;;  %628 = vmatmul.mubr.f32.vlgmr.msra.gmra.mxu1 %v9695_v2 }
  0x78   :  { %666 = vmatprep.subr.mxu0 %v6281_v3  ;;  %737 = vmatprep.subr.mxu1 %v6283_v4 }
  0x79   :  { %667 = vmatpush1.msra.mxu0 %v6285_v5  ;;  %738 = vmatpush1.msra.mxu1 %v6287_v6 }
  0x7a   :  { %668 = vmatprep.subr.mxu0 %v6289_v7  ;;  %739 = vmatprep.subr.mxu1 %v6291_v8 }
  0x7b   :  { %669 = vmatpush1.msra.mxu0 %v6297_v9  ;;  %740 = vmatpush1.msra.mxu1 %v6299_v10 }
  0x7c   :  { %670 = vmatprep.subr.mxu0 %v6308_v12  ;;  %741 = vmatprep.subr.mxu1 %v6310_v13 }
  0x7d   :  { %671 = vmatpush1.msra.mxu0 %v6314_v14  ;;  %742 = vmatpush1.msra.mxu1 %v6316_v15 }
  0x7e   :  { %672 = vmatprep.subr.mxu0 %v6318_v16  ;;  %743 = vmatprep.subr.mxu1 %v6320_v17 }
  0x7f   :  { %673 = vmatpush1.msra.mxu0 %v6326_v18  ;;  %744 = vmatpush1.msra.mxu1 %v6328_v19 }
  0x80   :  { %674 = vmatprep.subr.mxu0 %v6337_v21  ;;  %745 = vmatprep.subr.mxu1 %v6339_v22 }
  0x81   :  { %675 = vmatpush1.msra.mxu0 %v6343_v23  ;;  %746 = vmatpush1.msra.mxu1 %v6345_v24 }
  0x82   :  { %676 = vmatprep.subr.mxu0 %v6347_v25  ;;  %747 = vmatprep.subr.mxu1 %v6349_v26 }
  0x83   :  { %677 = vmatpush1.msra.mxu0 %v6355_v27  ;;  %748 = vmatpush1.msra.mxu1 %v6357_v28 }
  0x84   :  { %678 = vmatprep.subr.mxu0 %v6366_v30  ;;  %749 = vmatprep.subr.mxu1 %v6368_v31 }
  0x85   :  { %679 = vmatpush1.msra.mxu0 %v6372_v32  ;;  %750 = vmatpush1.msra.mxu1 %v6374_v33 }
  0x86   :  { %680 = vmatprep.subr.mxu0 %v6376_v34  ;;  %751 = vmatprep.subr.mxu1 %v6378_v35 }
  0x87   :  { %681 = vmatpush1.msra.mxu0 %v6384_v36  ;;  %752 = vmatpush1.msra.mxu1 %v6386_v37 }
  0x88   :  { %682 = vmatprep.subr.mxu0 %v6395_v39  ;;  %753 = vmatprep.subr.mxu1 %v6397_v40 }
  0x89   :  { %683 = vmatpush1.msra.mxu0 %v6401_v41  ;;  %754 = vmatpush1.msra.mxu1 %v6403_v42 }
  0x8a   :  { %684 = vmatprep.subr.mxu0 %v6405_v43  ;;  %755 = vmatprep.subr.mxu1 %v6407_v44 }
  0x8b   :  { %685 = vmatpush1.msra.mxu0 %v6413_v45  ;;  %756 = vmatpush1.msra.mxu1 %v6415_v46 }
  0x8c   :  { %686 = vmatprep.subr.mxu0 %v6424_v48  ;;  %757 = vmatprep.subr.mxu1 %v6426_v49 }
  0x8d   :  { %687 = vmatpush1.msra.mxu0 %v6430_v50  ;;  %758 = vmatpush1.msra.mxu1 %v6432_v51 }
  0x8e   :  { %688 = vmatprep.subr.mxu0 %v6434_v52  ;;  %759 = vmatprep.subr.mxu1 %v6436_v53  ;;  %v9696_v52 = vld [vmem:[#allocation29_spill] sm:$0xff] }
  0x8f   :  { %689 = vmatpush1.msra.mxu0 %v6442_v54  ;;  %760 = vmatpush1.msra.mxu1 %v6444_v55 }
  0x90   :  { %690 = vmatprep.subr.mxu0 %v6453_v57  ;;  %761 = vmatprep.subr.mxu1 %v6455_v58 }
  0x91   :  { %691 = vmatpush1.msra.mxu0 %v6459_v59  ;;  %762 = vmatpush1.msra.mxu1 %v6461_v60 }
  0x92   :  { %692 = vmatprep.subr.mxu0 %v6463_v61  ;;  %763 = vmatprep.subr.mxu1 %v6465_v62 }
  0x93   :  { %693 = vmatpush1.msra.mxu0 %v6471_v63  ;;  %764 = vmatpush1.msra.mxu1 %v9696_v52 }
  0x94   :  { %694 = vmatprep.subr.mxu0 %v6482_v11  ;;  %765 = vmatprep.subr.mxu1 %v6484_v20  ;;  %v206_v20 = vlaneseq }
  0x95   :  { %695 = vmatpush1.msra.mxu0 %v6488_v29  ;;  %766 = vmatpush1.msra.mxu1 %v6490_v38 }
  0x96   :  { %696 = vmatprep.subr.mxu0 %v6492_v47  ;;  %767 = vmatprep.subr.mxu1 %v6494_v56  ;;  %v207_v29 = vshrl.u32 %v206_v20, 7 }
  0x97   :  { %697 = vmatpush1.msra.mxu0 %v6498_v0  ;;  %730 = vmatprep.mubr.f32.mxu0 %v9695_v2 }
  0x98   :  { %768 = vmatpush1.msra.mxu1 %v6502_v1  ;;  %801 = vmatprep.mubr.f32.mxu1 %v9695_v2  ;;  %v6584_v47 = vsub.s32 0, %v207_v29  ;;  %v6586_v56 = vsub.s32 2, %v207_v29  ;;  %v132_v1 = vld [vmem:[%s9342_s4] sm:$0xf] }
  0x99   :  { %841 = vmatprep.subr.mxu0 %v6281_v3  ;;  %912 = vmatprep.subr.mxu1 %v6283_v4  ;;  %v6595_v3 = vsub.s32 1, %v207_v29  ;;  %v6597_v4 = vsub.s32 3, %v207_v29 }
  0x9a   :  { %9697 = vst [vmem:[#allocation38_spill] sm:$0xff] %v6584_v47  ;;  %9698 = vst [vmem:[#allocation39_spill] sm:$0xff] %v6586_v56  ;;  %v209_v20 = vrot.slane %v132_v1, %v6584_v47  ;;  %v6601_v52 = vrot.slane %v132_v1, %v6586_v56 }
  0x9b   :  { %9699 = vst [vmem:[#allocation40_spill] sm:$0xff] %v6595_v3  ;;  %9700 = vst [vmem:[#allocation41_spill] sm:$0xff] %v6597_v4  ;;  %v213_v61 = vrot.slane %v132_v1, %v6595_v3  ;;  %v6605_v60 = vrot.slane %v132_v1, %v6597_v4 }
 0x107   :  { %v6580_v11 = vpop.f32.mrf.mxu0  ;;  %v6582_v38 = vpop.f32.mrf.mxu1 }
 0x109   :  { %v6591_v0 = vpop.f32.mrf.mxu0  ;;  %v6593_v2 = vpop.f32.mrf.mxu1 }
 0x10d   :  { %v298_v63 = vpop.f32.mrf.mxu0  ;;  %v411_v62 = vpop.f32.mrf.mxu1 }
 0x10e   :  { %v6607_v59 = vadd.f32 %v298_v63, %v209_v20  ;;  %v6610_v58 = vadd.f32 %v411_v62, %v6601_v52 }
 0x10f   :  { %v300_v57 = vpop.f32.mrf.mxu0  ;;  %v413_v29 = vpop.f32.mrf.mxu1 }
 0x110   :  { %9701 = vst [vmem:[#allocation42_spill] sm:$0xff] %v6607_v59  ;;  %9702 = vst [vmem:[#allocation43_spill] sm:$0xff] %v6610_v58  ;;  %v6612_v55 = vadd.f32 %v300_v57, %v213_v61  ;;  %v6615_v47 = vadd.f32 %v413_v29, %v6605_v60 }
 0x112   :  { %9703 = vst [vmem:[#allocation44_spill] sm:$0xff] %v6612_v55  ;;  %9704 = vst [vmem:[#allocation45_spill] sm:$0xff] %v6615_v47 }
 0x113   :  { %v304_v56 = vpop.f32.mrf.mxu0  ;;  %v417_v54 = vpop.f32.mrf.mxu1 }
 0x114   :  { %v6617_v53 = vadd.f32 %v304_v56, %v209_v20  ;;  %v6620_v3 = vadd.f32 %v417_v54, %v6601_v52 }
 0x115   :  { %v306_v1 = vpop.f32.mrf.mxu0  ;;  %v419_v63 = vpop.f32.mrf.mxu1 }
 0x116   :  { %9705 = vst [vmem:[#allocation46_spill] sm:$0xff] %v6617_v53  ;;  %9706 = vst [vmem:[#allocation47_spill] sm:$0xff] %v6620_v3  ;;  %v6622_v4 = vadd.f32 %v306_v1, %v213_v61  ;;  %v6625_v62 = vadd.f32 %v419_v63, %v6605_v60 }
 0x118   :  { %9707 = vst [vmem:[#allocation48_spill] sm:$0xff] %v6622_v4  ;;  %9708 = vst [vmem:[#allocation49_spill] sm:$0xff] %v6625_v62 }
 0x119   :  { %v310_v58 = vpop.f32.mrf.mxu0  ;;  %v423_v57 = vpop.f32.mrf.mxu1 }
 0x11a   :  { %v6627_v55 = vadd.f32 %v310_v58, %v209_v20  ;;  %v6630_v29 = vadd.f32 %v423_v57, %v6601_v52 }
 0x11b   :  { %v312_v47 = vpop.f32.mrf.mxu0  ;;  %v425_v56 = vpop.f32.mrf.mxu1 }
 0x11c   :  { %9709 = vst [vmem:[#allocation50_spill] sm:$0xff] %v6627_v55  ;;  %9710 = vst [vmem:[#allocation51_spill] sm:$0xff] %v6630_v29  ;;  %v6632_v53 = vadd.f32 %v312_v47, %v213_v61  ;;  %v6635_v54 = vadd.f32 %v425_v56, %v6605_v60 }
 0x11e   :  { %9711 = vst [vmem:[#allocation52_spill] sm:$0xff] %v6632_v53  ;;  %9712 = vst [vmem:[#allocation53_spill] sm:$0xff] %v6635_v54 }
 0x11f   :  { %v316_v3 = vpop.f32.mrf.mxu0  ;;  %v429_v1 = vpop.f32.mrf.mxu1 }
 0x120   :  { %v6637_v4 = vadd.f32 %v316_v3, %v209_v20  ;;  %v6640_v63 = vadd.f32 %v429_v1, %v6601_v52 }
 0x121   :  { %v318_v62 = vpop.f32.mrf.mxu0  ;;  %v431_v58 = vpop.f32.mrf.mxu1 }
 0x122   :  { %9713 = vst [vmem:[#allocation54_spill] sm:$0xff] %v6637_v4  ;;  %9714 = vst [vmem:[#allocation55_spill] sm:$0xff] %v6640_v63  ;;  %v6642_v55 = vadd.f32 %v318_v62, %v213_v61  ;;  %v6645_v57 = vadd.f32 %v431_v58, %v6605_v60 }
 0x124   :  { %9715 = vst [vmem:[#allocation56_spill] sm:$0xff] %v6642_v55  ;;  %9716 = vst [vmem:[#allocation57_spill] sm:$0xff] %v6645_v57 }
 0x125   :  { %v322_v29 = vpop.f32.mrf.mxu0  ;;  %v435_v47 = vpop.f32.mrf.mxu1 }
 0x126   :  { %v6647_v53 = vadd.f32 %v322_v29, %v209_v20  ;;  %v6650_v56 = vadd.f32 %v435_v47, %v6601_v52 }
 0x127   :  { %v324_v54 = vpop.f32.mrf.mxu0  ;;  %v437_v3 = vpop.f32.mrf.mxu1 }
 0x128   :  { %9717 = vst [vmem:[#allocation58_spill] sm:$0xff] %v6647_v53  ;;  %9718 = vst [vmem:[#allocation59_spill] sm:$0xff] %v6650_v56  ;;  %v6652_v4 = vadd.f32 %v324_v54, %v213_v61  ;;  %v6655_v1 = vadd.f32 %v437_v3, %v6605_v60 }
 0x12a   :  { %9719 = vst [vmem:[#allocation60_spill] sm:$0xff] %v6652_v4  ;;  %9720 = vst [vmem:[#allocation61_spill] sm:$0xff] %v6655_v1 }
 0x12b   :  { %v328_v63 = vpop.f32.mrf.mxu0  ;;  %v441_v62 = vpop.f32.mrf.mxu1 }
 0x12c   :  { %v6657_v55 = vadd.f32 %v328_v63, %v209_v20  ;;  %v6660_v58 = vadd.f32 %v441_v62, %v6601_v52 }
 0x12d   :  { %v330_v57 = vpop.f32.mrf.mxu0  ;;  %v443_v29 = vpop.f32.mrf.mxu1 }
 0x12e   :  { %9721 = vst [vmem:[#allocation62_spill] sm:$0xff] %v6657_v55  ;;  %9722 = vst [vmem:[#allocation63_spill] sm:$0xff] %v6660_v58  ;;  %v6662_v53 = vadd.f32 %v330_v57, %v213_v61  ;;  %v6665_v47 = vadd.f32 %v443_v29, %v6605_v60  ;;  %v293_v57 = vadd.f32 %v6580_v11, %v209_v20 }
 0x12f   :  { %v295_v29 = vadd.f32 %v6591_v0, %v213_v61 }
 0x130   :  { %9723 = vst [vmem:[#allocation64_spill] sm:$0xff] %v6662_v53  ;;  %9724 = vst [vmem:[#allocation65_spill] sm:$0xff] %v6665_v47 }
 0x131   :  { %v334_v56 = vpop.f32.mrf.mxu0  ;;  %v447_v54 = vpop.f32.mrf.mxu1 }
 0x132   :  { %v6667_v4 = vadd.f32 %v334_v56, %v209_v20  ;;  %v6670_v3 = vadd.f32 %v447_v54, %v6601_v52  ;;  %v406_v54 = vadd.f32 %v6582_v38, %v6601_v52 }
 0x133   :  { %v336_v1 = vpop.f32.mrf.mxu0  ;;  %v449_v63 = vpop.f32.mrf.mxu1 }
 0x134   :  { %9725 = vst [vmem:[#allocation66_spill] sm:$0xff] %v6667_v4  ;;  %9726 = vst [vmem:[#allocation67_spill] sm:$0xff] %v6670_v3  ;;  %v6672_v55 = vadd.f32 %v336_v1, %v213_v61  ;;  %v6675_v62 = vadd.f32 %v449_v63, %v6605_v60  ;;  %v408_v63 = vadd.f32 %v6593_v2, %v6605_v60 }
 0x136   :  { %9727 = vst [vmem:[#allocation68_spill] sm:$0xff] %v6672_v55  ;;  %9728 = vst [vmem:[#allocation69_spill] sm:$0xff] %v6675_v62  ;;  %v9749_v62 = vmov 0.0  }
 0x137   :  { %v558_v58 = vpop.f32.mrf.mxu0  ;;  %v629_v4 = vpop.f32.mrf.mxu1 }
 0x138   :  { %v634_v47 = vadd.f32 %v558_v58, %v293_v57  ;;  %v636_v1 = vadd.f32 %v629_v4, %v406_v54  ;;  %v9731_v54 = vld [vmem:[#allocation19_spill] sm:$0xff] }
 0x139   :  { %v560_v53 = vpop.f32.mrf.mxu0  ;;  %v631_v55 = vpop.f32.mrf.mxu1 }
 0x13a   :  { %v638_v59 = vmul.f32 0.5, %v634_v47  ;;  %v635_v56 = vadd.f32 %v560_v53, %v295_v29  ;;  %v637_v11 = vadd.f32 %v631_v55, %v408_v63  ;;  %v9733_v63 = vld [vmem:[#allocation21_spill] sm:$0xff] }
 0x13c   :  { %5693 = vtanh.f32 %v638_v59  ;;  %v642_v3 = vmul.f32 0.5, %v635_v56  ;;  %v647_v20 = vmul.f32 0.5, %v637_v11  ;;  %v9730_v56 = vld [vmem:[#allocation18_spill] sm:$0xff] }
 0x13d   :  { %v9734_v11 = vld [vmem:[#allocation22_spill] sm:$0xff] }
 0x13e   :  { %5695 = vtanh.f32 %v642_v3 }
 0x13f   :  { %5697 = vtanh.f32 %v636_v1  ;;  %v9732_v1 = vld [vmem:[#allocation20_spill] sm:$0xff] }
 0x140   :  { %5699 = vtanh.f32 %v647_v20  ;;  %v9735_v20 = vld [vmem:[#allocation23_spill] sm:$0xff] }
 0x149   :  { %v5694_v0 = vpop.eup %5693 }
 0x14a   :  { %v640_v61 = vadd.f32 1.0, %v5694_v0  ;;  %v9736_v0 = vld [vmem:[#allocation24_spill] sm:$0xff] }
 0x14b   :  { %v5696_v58 = vpop.eup %5695 }
 0x14c   :  { %v641_v47 = vmul.f32 0.5, %v640_v61  ;;  %v644_v53 = vadd.f32 1.0, %v5696_v58  ;;  %v5698_v29 = vpop.eup %5697  ;;  %v9737_v61 = vld [vmem:[#allocation25_spill] sm:$0xff]  ;;  %v9738_v58 = vld [vmem:[#allocation26_spill] sm:$0xff] }
 0x14d   :  { %v5700_v4 = vpop.eup %5699 }
 0x14e   :  { %v645_v57 = vmul.f32 0.5, %v644_v53  ;;  %v652_v59 = vmul.f32 %v5698_v29, %v641_v47  ;;  %v649_v3 = vadd.f32 1.0, %v5700_v4  ;;  %v9739_v47 = vld [vmem:[#allocation27_spill] sm:$0xff]  ;;  %v9740_v53 = vld [vmem:[#allocation28_spill] sm:$0xff]  ;;  %v9742_v29 = vld [vmem:[#allocation30_spill] sm:$0xff] }
 0x14f   :  { %v9745_v4 = vld [vmem:[#allocation33_spill] sm:$0xff] }
 0x150   :  { %v651_v52 = vmul.f32 0.0, %v645_v57  ;;  %v650_v60 = vmul.f32 0.5, %v649_v3  ;;  %v9741_v57 = vld [vmem:[#allocation29_spill] sm:$0xff]  ;;  %v9746_v3 = vld [vmem:[#allocation34_spill] sm:$0xff] }
 0x152   :  { %v6683_v38 = vadd.f32 %v652_v59, %v651_v52  ;;  %v9743_v52 = vld [vmem:[#allocation31_spill] sm:$0xff]  ;;  %v9744_v59 = vld [vmem:[#allocation32_spill] sm:$0xff] }
 0x154   :  { %5701 = vtanh.f32 %v6683_v38 }
 0x161   :  { %v5702_v2 = vpop.eup %5701 }
 0x162   :  { %v6686_v55 = vmul.f32 %v5702_v2, %v650_v60  ;;  %v9747_v60 = vld [vmem:[#allocation35_spill] sm:$0xff]  ;;  %v9748_v2 = vld [vmem:[#allocation36_spill] sm:$0xff] }
 0x164   :  { %9729 = vst [vmem:[#allocation70_spill] sm:$0xff] %v6686_v55  ;;  %731 = vmatmul.mubr.f32.vlgmr.msra.gmra.mxu0 %v6686_v55  ;;  %802 = vmatmul.mubr.f32.vlgmr.msra.gmra.mxu1 %v6686_v55  ;;  %v9750_v55 = vld [vmem:[#allocation37_spill] sm:$0xff] }
 0x165   :  { %842 = vmatpush1.msra.mxu0 %v6285_v5  ;;  %913 = vmatpush1.msra.mxu1 %v6287_v6 }
 0x166   :  { %843 = vmatprep.subr.mxu0 %v6289_v7  ;;  %914 = vmatprep.subr.mxu1 %v6291_v8 }
 0x167   :  { %844 = vmatpush1.msra.mxu0 %v6297_v9  ;;  %915 = vmatpush1.msra.mxu1 %v6299_v10 }
 0x168   :  { %845 = vmatprep.subr.mxu0 %v6308_v12  ;;  %916 = vmatprep.subr.mxu1 %v6310_v13 }
 0x169   :  { %846 = vmatpush1.msra.mxu0 %v6314_v14  ;;  %917 = vmatpush1.msra.mxu1 %v6316_v15 }
 0x16a   :  { %847 = vmatprep.subr.mxu0 %v6318_v16  ;;  %918 = vmatprep.subr.mxu1 %v6320_v17 }
 0x16b   :  { %848 = vmatpush1.msra.mxu0 %v6326_v18  ;;  %919 = vmatpush1.msra.mxu1 %v6328_v19 }
 0x16c   :  { %849 = vmatprep.subr.mxu0 %v6337_v21  ;;  %920 = vmatprep.subr.mxu1 %v6339_v22 }
 0x16d   :  { %850 = vmatpush1.msra.mxu0 %v6343_v23  ;;  %921 = vmatpush1.msra.mxu1 %v6345_v24 }
 0x16e   :  { %851 = vmatprep.subr.mxu0 %v6347_v25  ;;  %922 = vmatprep.subr.mxu1 %v6349_v26 }
 0x16f   :  { %852 = vmatpush1.msra.mxu0 %v6355_v27  ;;  %923 = vmatpush1.msra.mxu1 %v6357_v28 }
 0x170   :  { %853 = vmatprep.subr.mxu0 %v6366_v30  ;;  %924 = vmatprep.subr.mxu1 %v6368_v31 }
 0x171   :  { %854 = vmatpush1.msra.mxu0 %v6372_v32  ;;  %925 = vmatpush1.msra.mxu1 %v6374_v33 }
 0x172   :  { %855 = vmatprep.subr.mxu0 %v6376_v34  ;;  %926 = vmatprep.subr.mxu1 %v6378_v35 }
 0x173   :  { %856 = vmatpush1.msra.mxu0 %v6384_v36  ;;  %927 = vmatpush1.msra.mxu1 %v6386_v37 }
 0x174   :  { %857 = vmatprep.subr.mxu0 %v6395_v39  ;;  %928 = vmatprep.subr.mxu1 %v6397_v40 }
 0x175   :  { %858 = vmatpush1.msra.mxu0 %v6401_v41  ;;  %929 = vmatpush1.msra.mxu1 %v6403_v42 }
 0x176   :  { %859 = vmatprep.subr.mxu0 %v6405_v43  ;;  %930 = vmatprep.subr.mxu1 %v6407_v44 }
 0x177   :  { %860 = vmatpush1.msra.mxu0 %v6413_v45  ;;  %931 = vmatpush1.msra.mxu1 %v6415_v46 }
 0x178   :  { %861 = vmatprep.subr.mxu0 %v6424_v48  ;;  %932 = vmatprep.subr.mxu1 %v6426_v49 }
 0x179   :  { %862 = vmatpush1.msra.mxu0 %v6430_v50  ;;  %933 = vmatpush1.msra.mxu1 %v6432_v51 }
 0x17a   :  { %863 = vmatprep.subr.mxu0 %v9730_v56  ;;  %934 = vmatprep.subr.mxu1 %v9731_v54 }
 0x17b   :  { %864 = vmatpush1.msra.mxu0 %v9732_v1  ;;  %935 = vmatpush1.msra.mxu1 %v9733_v63 }
 0x17c   :  { %865 = vmatprep.subr.mxu0 %v9734_v11  ;;  %936 = vmatprep.subr.mxu1 %v9735_v20 }
 0x17d   :  { %866 = vmatpush1.msra.mxu0 %v9736_v0  ;;  %937 = vmatpush1.msra.mxu1 %v9737_v61 }
 0x17e   :  { %867 = vmatprep.subr.mxu0 %v9738_v58  ;;  %938 = vmatprep.subr.mxu1 %v9739_v47  ;;  %v9754_v58 = vld [vmem:[#allocation44_spill] sm:$0xff] }
 0x17f   :  { %868 = vmatpush1.msra.mxu0 %v9740_v53  ;;  %939 = vmatpush1.msra.mxu1 %v9741_v57  ;;  %v9751_v57 = vld [vmem:[#allocation16_spill] sm:$0xff] }
 0x180   :  { %869 = vmatprep.subr.mxu0 %v9742_v29  ;;  %940 = vmatprep.subr.mxu1 %v9743_v52  ;;  %v9752_v29 = vld [vmem:[#allocation17_spill] sm:$0xff] }
 0x181   :  { %870 = vmatpush1.msra.mxu0 %v9744_v59  ;;  %941 = vmatpush1.msra.mxu1 %v9745_v4  ;;  %v9753_v59 = vld [vmem:[#allocation42_spill] sm:$0xff] }
 0x182   :  { %871 = vmatprep.subr.mxu0 %v9746_v3  ;;  %942 = vmatprep.subr.mxu1 %v9747_v60 }
 0x183   :  { %872 = vmatpush1.msra.mxu0 %v9748_v2  ;;  %905 = vmatprep.mubr.f32.mxu0 %v9749_v62  ;;  %v9755_v2 = vld [vmem:[#allocation43_spill] sm:$0xff] }
 0x184   :  { %943 = vmatpush1.msra.mxu1 %v9750_v55  ;;  %976 = vmatprep.mubr.f32.mxu1 %v9749_v62  ;;  %v9756_v62 = vld [vmem:[#allocation45_spill] sm:$0xff] }
 0x185   :  { %1016 = vmatprep.subr.mxu0 %v9751_v57  ;;  %1087 = vmatprep.subr.mxu1 %v9752_v29 }
 0x224   :  { %v732_v52 = vpop.f32.mrf.mxu0  ;;  %v803_v4 = vpop.f32.mrf.mxu1 }
 0x225   :  { %v808_v53 = vadd.f32 %v732_v52, %v9753_v59  ;;  %v810_v61 = vadd.f32 %v803_v4, %v9755_v2  ;;  %v9782_v2 = vld [vmem:[#allocation47_spill] sm:$0xff] }
 0x226   :  { %v734_v47 = vpop.f32.mrf.mxu0  ;;  %v805_v55 = vpop.f32.mrf.mxu1 }
 0x227   :  { %v812_v3 = vmul.f32 0.5, %v808_v53  ;;  %v809_v60 = vadd.f32 %v734_v47, %v9754_v58  ;;  %v811_v20 = vadd.f32 %v805_v55, %v9756_v62 }
 0x229   :  { %5703 = vtanh.f32 %v812_v3  ;;  %v816_v0 = vmul.f32 0.5, %v809_v60  ;;  %v821_v57 = vmul.f32 0.5, %v811_v20  ;;  %v9781_v3 = vld [vmem:[#allocation48_spill] sm:$0xff] }
 0x22b   :  { %5705 = vtanh.f32 %v816_v0 }
 0x22c   :  { %5707 = vtanh.f32 %v810_v61 }
 0x22d   :  { %5709 = vtanh.f32 %v821_v57 }
 0x236   :  { %v5704_v11 = vpop.eup %5703 }
 0x237   :  { %v814_v29 = vadd.f32 1.0, %v5704_v11 }
 0x238   :  { %v5706_v63 = vpop.eup %5705 }
 0x239   :  { %v815_v1 = vmul.f32 0.5, %v814_v29  ;;  %v818_v52 = vadd.f32 1.0, %v5706_v63  ;;  %v5708_v59 = vpop.eup %5707  ;;  %v9780_v63 = vld [vmem:[#allocation46_spill] sm:$0xff] }
 0x23a   :  { %v5710_v0 = vpop.eup %5709 }
 0x23b   :  { %v819_v53 = vmul.f32 0.5, %v818_v52  ;;  %v826_v54 = vmul.f32 %v5708_v59, %v815_v1  ;;  %v823_v61 = vadd.f32 1.0, %v5710_v0 }
 0x23d   :  { %v825_v58 = vmul.f32 %v819_v53, %v6683_v38  ;;  %v824_v4 = vmul.f32 0.5, %v823_v61  ;;  %v9778_v38 = vld [vmem:[#allocation16_spill] sm:$0xff] }
 0x23f   :  { %v6761_v47 = vadd.f32 %v826_v54, %v825_v58  ;;  %v9779_v54 = vld [vmem:[#allocation17_spill] sm:$0xff] }
 0x240   :  { %v9783_v58 = vld [vmem:[#allocation49_spill] sm:$0xff] }
 0x241   :  { %5711 = vtanh.f32 %v6761_v47 }
 0x24e   :  { %v5712_v62 = vpop.eup %5711 }
 0x24f   :  { %v6764_v55 = vmul.f32 %v5712_v62, %v824_v4 }
 0x251   :  { %9757 = vst [vmem:[#allocation18_spill] sm:$0xff] %v6764_v55  ;;  %906 = vmatmul.mubr.f32.vlgmr.msra.gmra.mxu0 %v6764_v55  ;;  %977 = vmatmul.mubr.f32.vlgmr.msra.gmra.mxu1 %v6764_v55 }
 0x252   :  { %1017 = vmatpush1.msra.mxu0 %v6285_v5  ;;  %1088 = vmatpush1.msra.mxu1 %v6287_v6  ;;  %v9758_v5 = vld [vmem:[#allocation19_spill] sm:$0xff]  ;;  %v9759_v6 = vld [vmem:[#allocation20_spill] sm:$0xff] }
 0x253   :  { %1018 = vmatprep.subr.mxu0 %v6289_v7  ;;  %1089 = vmatprep.subr.mxu1 %v6291_v8  ;;  %v9760_v7 = vld [vmem:[#allocation21_spill] sm:$0xff]  ;;  %v9761_v8 = vld [vmem:[#allocation22_spill] sm:$0xff] }
 0x254   :  { %1019 = vmatpush1.msra.mxu0 %v6297_v9  ;;  %1090 = vmatpush1.msra.mxu1 %v6299_v10  ;;  %v9762_v9 = vld [vmem:[#allocation23_spill] sm:$0xff]  ;;  %v9763_v10 = vld [vmem:[#allocation24_spill] sm:$0xff] }
 0x255   :  { %1020 = vmatprep.subr.mxu0 %v6308_v12  ;;  %1091 = vmatprep.subr.mxu1 %v6310_v13  ;;  %v9764_v12 = vld [vmem:[#allocation25_spill] sm:$0xff]  ;;  %v9765_v13 = vld [vmem:[#allocation26_spill] sm:$0xff] }
 0x256   :  { %1021 = vmatpush1.msra.mxu0 %v6314_v14  ;;  %1092 = vmatpush1.msra.mxu1 %v6316_v15  ;;  %v9766_v14 = vld [vmem:[#allocation27_spill] sm:$0xff]  ;;  %v9767_v15 = vld [vmem:[#allocation28_spill] sm:$0xff] }
 0x257   :  { %1022 = vmatprep.subr.mxu0 %v6318_v16  ;;  %1093 = vmatprep.subr.mxu1 %v6320_v17  ;;  %v9768_v16 = vld [vmem:[#allocation29_spill] sm:$0xff]  ;;  %v9769_v17 = vld [vmem:[#allocation30_spill] sm:$0xff] }
 0x258   :  { %1023 = vmatpush1.msra.mxu0 %v6326_v18  ;;  %1094 = vmatpush1.msra.mxu1 %v6328_v19  ;;  %v9770_v18 = vld [vmem:[#allocation31_spill] sm:$0xff]  ;;  %v9771_v19 = vld [vmem:[#allocation32_spill] sm:$0xff] }
 0x259   :  { %1024 = vmatprep.subr.mxu0 %v6337_v21  ;;  %1095 = vmatprep.subr.mxu1 %v6339_v22  ;;  %v9772_v21 = vld [vmem:[#allocation33_spill] sm:$0xff]  ;;  %v9773_v22 = vld [vmem:[#allocation34_spill] sm:$0xff] }
 0x25a   :  { %1025 = vmatpush1.msra.mxu0 %v6343_v23  ;;  %1096 = vmatpush1.msra.mxu1 %v6345_v24  ;;  %v9774_v23 = vld [vmem:[#allocation35_spill] sm:$0xff]  ;;  %v9775_v24 = vld [vmem:[#allocation36_spill] sm:$0xff] }
 0x25b   :  { %1026 = vmatprep.subr.mxu0 %v6347_v25  ;;  %1097 = vmatprep.subr.mxu1 %v6349_v26  ;;  %v9776_v25 = vmov 0.0   ;;  %v9777_v26 = vld [vmem:[#allocation37_spill] sm:$0xff] }
 0x25c   :  { %1027 = vmatpush1.msra.mxu0 %v6355_v27  ;;  %1098 = vmatpush1.msra.mxu1 %v6357_v28 }
 0x25d   :  { %1028 = vmatprep.subr.mxu0 %v6366_v30  ;;  %1099 = vmatprep.subr.mxu1 %v6368_v31 }
 0x25e   :  { %1029 = vmatpush1.msra.mxu0 %v6372_v32  ;;  %1100 = vmatpush1.msra.mxu1 %v6374_v33 }
 0x25f   :  { %1030 = vmatprep.subr.mxu0 %v6376_v34  ;;  %1101 = vmatprep.subr.mxu1 %v6378_v35 }
 0x260   :  { %1031 = vmatpush1.msra.mxu0 %v6384_v36  ;;  %1102 = vmatpush1.msra.mxu1 %v6386_v37 }
 0x261   :  { %1032 = vmatprep.subr.mxu0 %v6395_v39  ;;  %1103 = vmatprep.subr.mxu1 %v6397_v40 }
 0x262   :  { %1033 = vmatpush1.msra.mxu0 %v6401_v41  ;;  %1104 = vmatpush1.msra.mxu1 %v6403_v42 }
 0x263   :  { %1034 = vmatprep.subr.mxu0 %v6405_v43  ;;  %1105 = vmatprep.subr.mxu1 %v6407_v44 }
 0x264   :  { %1035 = vmatpush1.msra.mxu0 %v6413_v45  ;;  %1106 = vmatpush1.msra.mxu1 %v6415_v46 }
 0x265   :  { %1036 = vmatprep.subr.mxu0 %v6424_v48  ;;  %1107 = vmatprep.subr.mxu1 %v6426_v49 }
 0x266   :  { %1037 = vmatpush1.msra.mxu0 %v6430_v50  ;;  %1108 = vmatpush1.msra.mxu1 %v6432_v51 }
 0x267   :  { %1038 = vmatprep.subr.mxu0 %v9730_v56  ;;  %1109 = vmatprep.subr.mxu1 %v9758_v5 }
 0x268   :  { %1039 = vmatpush1.msra.mxu0 %v9759_v6  ;;  %1110 = vmatpush1.msra.mxu1 %v9760_v7 }
 0x269   :  { %1040 = vmatprep.subr.mxu0 %v9761_v8  ;;  %1111 = vmatprep.subr.mxu1 %v9762_v9 }
 0x26a   :  { %1041 = vmatpush1.msra.mxu0 %v9763_v10  ;;  %1112 = vmatpush1.msra.mxu1 %v9764_v12 }
 0x26b   :  { %1042 = vmatprep.subr.mxu0 %v9765_v13  ;;  %1113 = vmatprep.subr.mxu1 %v9766_v14 }
 0x26c   :  { %1043 = vmatpush1.msra.mxu0 %v9767_v15  ;;  %1114 = vmatpush1.msra.mxu1 %v9768_v16 }
 0x26d   :  { %1044 = vmatprep.subr.mxu0 %v9769_v17  ;;  %1115 = vmatprep.subr.mxu1 %v9770_v18 }
 0x26e   :  { %1045 = vmatpush1.msra.mxu0 %v9771_v19  ;;  %1116 = vmatpush1.msra.mxu1 %v9772_v21 }
 0x26f   :  { %1046 = vmatprep.subr.mxu0 %v9773_v22  ;;  %1117 = vmatprep.subr.mxu1 %v9774_v23 }
 0x270   :  { %1047 = vmatpush1.msra.mxu0 %v9775_v24  ;;  %1080 = vmatprep.mubr.f32.mxu0 %v9776_v25 }
 0x271   :  { %1118 = vmatpush1.msra.mxu1 %v9777_v26  ;;  %1151 = vmatprep.mubr.f32.mxu1 %v9776_v25 }
 0x272   :  { %1191 = vmatprep.subr.mxu0 %v9778_v38  ;;  %1262 = vmatprep.subr.mxu1 %v9779_v54 }
 0x311   :  { %v907_v1 = vpop.f32.mrf.mxu0  ;;  %v978_v20 = vpop.f32.mrf.mxu1 }
 0x312   :  { %v983_v11 = vadd.f32 %v907_v1, %v9780_v63  ;;  %v985_v52 = vadd.f32 %v978_v20, %v9782_v2 }
 0x313   :  { %v909_v57 = vpop.f32.mrf.mxu0  ;;  %v980_v53 = vpop.f32.mrf.mxu1 }
 0x314   :  { %v987_v29 = vmul.f32 0.5, %v983_v11  ;;  %v984_v60 = vadd.f32 %v909_v57, %v9781_v3  ;;  %v986_v0 = vadd.f32 %v980_v53, %v9783_v58  ;;  %v6849_v53 = vld [vmem:[#allocation11 + $0x1f0] sm:$0xff]  ;;  %v6858_v58 = vld [vmem:[#allocation11 + $0x1c0] sm:$0xff] }
 0x316   :  { %5713 = vtanh.f32 %v987_v29  ;;  %v991_v59 = vmul.f32 0.5, %v984_v60  ;;  %v996_v61 = vmul.f32 0.5, %v986_v0  ;;  %v6861_v0 = vld [vmem:[#allocation11 + $0x1d0] sm:$0xff] }
 0x318   :  { %5715 = vtanh.f32 %v991_v59  ;;  %v6846_v59 = vld [vmem:[#allocation11 + $0x1e0] sm:$0xff] }
 0x319   :  { %5717 = vtanh.f32 %v985_v52 }
 0x31a   :  { %5719 = vtanh.f32 %v996_v61  ;;  %v6864_v61 = vld [vmem:[#allocation11 + $0x1a8] sm:$0xff] }
 0x323   :  { %v5714_v4 = vpop.eup %5713 }
 0x324   :  { %v989_v62 = vadd.f32 1.0, %v5714_v4  ;;  %v6867_v4 = vld [vmem:[#allocation11 + $0x1b8] sm:$0xff] }
 0x325   :  { %v5716_v38 = vpop.eup %5715 }
 0x326   :  { %v990_v54 = vmul.f32 0.5, %v989_v62  ;;  %v993_v1 = vadd.f32 1.0, %v5716_v38  ;;  %v5718_v63 = vpop.eup %5717  ;;  %v6870_v62 = vld [vmem:[#allocation11 + $0x1a0] sm:$0xff]  ;;  %v6873_v38 = vld [vmem:[#allocation11 + $0x1b0] sm:$0xff] }
 0x327   :  { %v5720_v20 = vpop.eup %5719 }
 0x328   :  { %v994_v11 = vmul.f32 0.5, %v993_v1  ;;  %v1001_v55 = vmul.f32 %v5718_v63, %v990_v54  ;;  %v998_v3 = vadd.f32 1.0, %v5720_v20  ;;  %v6876_v54 = vld [vmem:[#allocation11 + $0x188] sm:$0xff]  ;;  %v6879_v1 = vld [vmem:[#allocation11 + $0x198] sm:$0xff]  ;;  %v6882_v63 = vld [vmem:[#allocation11 + $0x180] sm:$0xff] }
 0x329   :  { %v6891_v20 = vld [vmem:[#allocation11 + $0x178] sm:$0xff] }
 0x32a   :  { %v1000_v57 = vmul.f32 %v994_v11, %v6761_v47  ;;  %v999_v60 = vmul.f32 0.5, %v998_v3  ;;  %v6852_v47 = vld [vmem:[#allocation11 + $0x1c8] sm:$0xff]  ;;  %v6885_v11 = vld [vmem:[#allocation11 + $0x190] sm:$0xff]  ;;  %v6894_v3 = vld [vmem:[#allocation11 + $0x160] sm:$0xff] }
 0x32c   :  { %v6839_v29 = vadd.f32 %v1001_v55, %v1000_v57  ;;  %v6855_v55 = vld [vmem:[#allocation11 + $0x1d8] sm:$0xff]  ;;  %v6888_v57 = vld [vmem:[#allocation11 + $0x168] sm:$0xff] }
 0x32e   :  { %5721 = vtanh.f32 %v6839_v29 }
 0x33b   :  { %v5722_v2 = vpop.eup %5721 }
 0x33c   :  { %v6842_v52 = vmul.f32 %v5722_v2, %v999_v60  ;;  %v6897_v60 = vld [vmem:[#allocation11 + $0x170] sm:$0xff]  ;;  %v6900_v2 = vld [vmem:[#allocation11 + $0x148] sm:$0xff] }
 0x33e   :  { %9784 = vst [vmem:[#allocation42_spill] sm:$0xff] %v6842_v52  ;;  %1081 = vmatmul.mubr.f32.vlgmr.msra.gmra.mxu0 %v6842_v52  ;;  %1152 = vmatmul.mubr.f32.vlgmr.msra.gmra.mxu1 %v6842_v52  ;;  %v6903_v52 = vld [vmem:[#allocation11 + $0x158] sm:$0xff] }
 0x33f   :  { %1192 = vmatpush1.msra.mxu0 %v6846_v59  ;;  %1263 = vmatpush1.msra.mxu1 %v6849_v53 }
 0x340   :  { %1193 = vmatprep.subr.mxu0 %v6852_v47  ;;  %1264 = vmatprep.subr.mxu1 %v6855_v55 }
 0x341   :  { %1194 = vmatpush1.msra.mxu0 %v6858_v58  ;;  %1265 = vmatpush1.msra.mxu1 %v6861_v0 }
 0x342   :  { %1195 = vmatprep.subr.mxu0 %v6864_v61  ;;  %1266 = vmatprep.subr.mxu1 %v6867_v4 }
 0x343   :  { %1196 = vmatpush1.msra.mxu0 %v6870_v62  ;;  %1267 = vmatpush1.msra.mxu1 %v6873_v38 }
 0x344   :  { %1197 = vmatprep.subr.mxu0 %v6876_v54  ;;  %1268 = vmatprep.subr.mxu1 %v6879_v1 }
 0x345   :  { %1198 = vmatpush1.msra.mxu0 %v6882_v63  ;;  %1269 = vmatpush1.msra.mxu1 %v6885_v11 }
 0x346   :  { %1199 = vmatprep.subr.mxu0 %v6888_v57  ;;  %1270 = vmatprep.subr.mxu1 %v6891_v20 }
 0x347   :  { %1200 = vmatpush1.msra.mxu0 %v6894_v3  ;;  %1271 = vmatpush1.msra.mxu1 %v6897_v60 }
 0x348   :  { %1201 = vmatprep.subr.mxu0 %v6900_v2  ;;  %1272 = vmatprep.subr.mxu1 %v6903_v52 }
 0x349   :  { %1202 = vmatpush1.msra.mxu0 %v6355_v27  ;;  %1273 = vmatpush1.msra.mxu1 %v6357_v28  ;;  %v6950_v27 = vld [vmem:[#allocation11 + $0x1e8] sm:$0xff]  ;;  %v6953_v28 = vld [vmem:[#allocation11 + $0x1f8] sm:$0xff] }
 0x34a   :  { %1203 = vmatprep.subr.mxu0 %v6366_v30  ;;  %1274 = vmatprep.subr.mxu1 %v6368_v31  ;;  %9785 = vst [vmem:[#allocation44_spill] sm:$0xff] %v6950_v27  ;;  %9786 = vst [vmem:[#allocation43_spill] sm:$0xff] %v6953_v28  ;;  %v9787_v31 = vld [vmem:[#allocation50_spill] sm:$0xff] }
 0x34b   :  { %1204 = vmatpush1.msra.mxu0 %v6372_v32  ;;  %1275 = vmatpush1.msra.mxu1 %v6374_v33 }
 0x34c   :  { %1205 = vmatprep.subr.mxu0 %v6376_v34  ;;  %1276 = vmatprep.subr.mxu1 %v6378_v35 }
 0x34d   :  { %1206 = vmatpush1.msra.mxu0 %v6384_v36  ;;  %1277 = vmatpush1.msra.mxu1 %v6386_v37  ;;  %v9788_v36 = vld [vmem:[#allocation52_spill] sm:$0xff] }
 0x34e   :  { %1207 = vmatprep.subr.mxu0 %v6395_v39  ;;  %1278 = vmatprep.subr.mxu1 %v6397_v40  ;;  %v9789_v39 = vld [vmem:[#allocation51_spill] sm:$0xff] }
 0x34f   :  { %1208 = vmatpush1.msra.mxu0 %v6401_v41  ;;  %1279 = vmatpush1.msra.mxu1 %v6403_v42 }
 0x350   :  { %1209 = vmatprep.subr.mxu0 %v6405_v43  ;;  %1280 = vmatprep.subr.mxu1 %v6407_v44  ;;  %v9790_v43 = vld [vmem:[#allocation53_spill] sm:$0xff] }
 0x351   :  { %1210 = vmatpush1.msra.mxu0 %v6413_v45  ;;  %1281 = vmatpush1.msra.mxu1 %v6415_v46 }
 0x352   :  { %1211 = vmatprep.subr.mxu0 %v6424_v48  ;;  %1282 = vmatprep.subr.mxu1 %v6426_v49 }
 0x353   :  { %1212 = vmatpush1.msra.mxu0 %v6430_v50  ;;  %1283 = vmatpush1.msra.mxu1 %v6432_v51 }
 0x354   :  { %1213 = vmatprep.subr.mxu0 %v9730_v56  ;;  %1284 = vmatprep.subr.mxu1 %v9758_v5 }
 0x355   :  { %1214 = vmatpush1.msra.mxu0 %v9759_v6  ;;  %1285 = vmatpush1.msra.mxu1 %v9760_v7 }
 0x356   :  { %1215 = vmatprep.subr.mxu0 %v9761_v8  ;;  %1286 = vmatprep.subr.mxu1 %v9762_v9 }
 0x357   :  { %1216 = vmatpush1.msra.mxu0 %v9763_v10  ;;  %1287 = vmatpush1.msra.mxu1 %v9764_v12 }
 0x358   :  { %1217 = vmatprep.subr.mxu0 %v9765_v13  ;;  %1288 = vmatprep.subr.mxu1 %v9766_v14 }
 0x359   :  { %1218 = vmatpush1.msra.mxu0 %v9767_v15  ;;  %1289 = vmatpush1.msra.mxu1 %v9768_v16  ;;  %v6988_v15 = vld [vmem:[#allocation11 + $0x140] sm:$0xff]  ;;  %v6991_v16 = vld [vmem:[#allocation11 + $0x150] sm:$0xff] }
 0x35a   :  { %1219 = vmatprep.subr.mxu0 %v9769_v17  ;;  %1290 = vmatprep.subr.mxu1 %v9770_v18  ;;  %v6994_v17 = vld [vmem:[#allocation11 + $0x128] sm:$0xff]  ;;  %v6997_v18 = vld [vmem:[#allocation11 + $0x138] sm:$0xff] }
 0x35b   :  { %1220 = vmatpush1.msra.mxu0 %v9771_v19  ;;  %1291 = vmatpush1.msra.mxu1 %v9772_v21  ;;  %v7000_v19 = vld [vmem:[#allocation11 + $0x120] sm:$0xff]  ;;  %v7003_v21 = vld [vmem:[#allocation11 + $0x130] sm:$0xff] }
 0x35c   :  { %1221 = vmatprep.subr.mxu0 %v9773_v22  ;;  %1292 = vmatprep.subr.mxu1 %v9774_v23  ;;  %v7006_v22 = vld [vmem:[#allocation11 + $0x108] sm:$0xff]  ;;  %v7009_v23 = vld [vmem:[#allocation11 + $0x118] sm:$0xff] }
 0x35d   :  { %1222 = vmatpush1.msra.mxu0 %v9775_v24  ;;  %1255 = vmatprep.mubr.f32.mxu0 %v9776_v25  ;;  %v7012_v24 = vld [vmem:[#allocation11 + $0x100] sm:$0xff] }
 0x35e   :  { %1293 = vmatpush1.msra.mxu1 %v9777_v26  ;;  %1326 = vmatprep.mubr.f32.mxu1 %v9776_v25  ;;  %v7015_v26 = vld [vmem:[#allocation11 + $0x110] sm:$0xff] }
 0x35f   :  { %1366 = vmatprep.subr.mxu0 %v6950_v27  ;;  %1437 = vmatprep.subr.mxu1 %v6953_v28 }
 0x3fe   :  { %v1082_v30 = vpop.f32.mrf.mxu0  ;;  %v1153_v33 = vpop.f32.mrf.mxu1 }
 0x3ff   :  { %v1158_v32 = vadd.f32 %v1082_v30, %v9787_v31  ;;  %v1160_v40 = vadd.f32 %v1153_v33, %v9789_v39  ;;  %v7021_v30 = vld [vmem:[#allocation11 + $0xf8] sm:$0xff]  ;;  %v7024_v31 = vld [vmem:[#allocation11 + $0xe0] sm:$0xff]  ;;  %v7030_v33 = vld [vmem:[#allocation11 + $0xc8] sm:$0xff] }
 0x400   :  { %v1084_v34 = vpop.f32.mrf.mxu0  ;;  %v1155_v42 = vpop.f32.mrf.mxu1  ;;  %v7045_v39 = vld [vmem:[#allocation11 + $0xb8] sm:$0xff] }
 0x401   :  { %v1162_v35 = vmul.f32 0.5, %v1158_v32  ;;  %v1159_v37 = vadd.f32 %v1084_v34, %v9788_v36  ;;  %v1161_v44 = vadd.f32 %v1155_v42, %v9790_v43  ;;  %v7027_v32 = vld [vmem:[#allocation11 + $0xf0] sm:$0xff]  ;;  %v7033_v34 = vld [vmem:[#allocation11 + $0xd8] sm:$0xff]  ;;  %v7054_v42 = vld [vmem:[#allocation11 + $0x88] sm:$0xff] }
 0x402   :  { %v7039_v36 = vld [vmem:[#allocation11 + $0xd0] sm:$0xff]  ;;  %v7057_v43 = vld [vmem:[#allocation11 + $0x98] sm:$0xff] }
 0x403   :  { %5723 = vtanh.f32 %v1162_v35  ;;  %v1166_v41 = vmul.f32 0.5, %v1159_v37  ;;  %v1171_v45 = vmul.f32 0.5, %v1161_v44  ;;  %v7036_v35 = vld [vmem:[#allocation11 + $0xc0] sm:$0xff]  ;;  %v7042_v37 = vld [vmem:[#allocation11 + $0xa8] sm:$0xff]  ;;  %9792 = vst [vmem:[#allocation19_spill] sm:$0xff] %v7057_v43 }
 0x404   :  { %v7060_v44 = vld [vmem:[#allocation11 + $0x80] sm:$0xff] }
 0x405   :  { %5725 = vtanh.f32 %v1166_v41  ;;  %v7051_v41 = vld [vmem:[#allocation11 + $0xb0] sm:$0xff]  ;;  %9793 = vst [vmem:[#allocation20_spill] sm:$0xff] %v7060_v44 }
 0x406   :  { %5727 = vtanh.f32 %v1160_v40  ;;  %v7048_v40 = vld [vmem:[#allocation11 + $0xa0] sm:$0xff] }
 0x407   :  { %5729 = vtanh.f32 %v1171_v45  ;;  %v7063_v45 = vld [vmem:[#allocation11 + $0x90] sm:$0xff] }
 0x408   :  { %9794 = vst [vmem:[#allocation21_spill] sm:$0xff] %v7063_v45 }
 0x410   :  { %v5724_v46 = vpop.eup %5723 }
 0x411   :  { %v1164_v48 = vadd.f32 1.0, %v5724_v46  ;;  %v7066_v46 = vld [vmem:[#allocation11 + $0x68] sm:$0xff] }
 0x412   :  { %v5726_v49 = vpop.eup %5725  ;;  %9795 = vst [vmem:[#allocation22_spill] sm:$0xff] %v7066_v46 }
 0x413   :  { %v1165_v50 = vmul.f32 0.5, %v1164_v48  ;;  %v1168_v51 = vadd.f32 1.0, %v5726_v49  ;;  %v5728_v56 = vpop.eup %5727  ;;  %v7069_v48 = vld [vmem:[#allocation11 + $0x78] sm:$0xff]  ;;  %v7072_v49 = vld [vmem:[#allocation11 + $0x60] sm:$0xff] }
 0x414   :  { %v5730_v9 = vpop.eup %5729  ;;  %9796 = vst [vmem:[#allocation23_spill] sm:$0xff] %v7069_v48  ;;  %9797 = vst [vmem:[#allocation24_spill] sm:$0xff] %v7072_v49 }
 0x415   :  { %v1169_v5 = vmul.f32 0.5, %v1168_v51  ;;  %v1176_v6 = vmul.f32 %v5728_v56, %v1165_v50  ;;  %v1173_v10 = vadd.f32 1.0, %v5730_v9  ;;  %v7075_v50 = vld [vmem:[#allocation11 + $0x70] sm:$0xff]  ;;  %v7078_v51 = vld [vmem:[#allocation11 + $0x48] sm:$0xff]  ;;  %v7081_v56 = vld [vmem:[#allocation11 + $0x58] sm:$0xff] }
 0x416   :  { %9798 = vst [vmem:[#allocation25_spill] sm:$0xff] %v7075_v50  ;;  %9799 = vst [vmem:[#allocation26_spill] sm:$0xff] %v7078_v51  ;;  %v7093_v9 = vld [vmem:[#allocation11 + $0x38] sm:$0xff] }
 0x417   :  { %v1175_v7 = vmul.f32 %v1169_v5, %v6839_v29  ;;  %v1174_v12 = vmul.f32 0.5, %v1173_v10  ;;  %v7018_v29 = vld [vmem:[#allocation11 + $0xe8] sm:$0xff]  ;;  %9800 = vst [vmem:[#allocation27_spill] sm:$0xff] %v7081_v56  ;;  %v7084_v5 = vld [vmem:[#allocation11 + $0x40] sm:$0xff]  ;;  %9804 = vst [vmem:[#allocation31_spill] sm:$0xff] %v7093_v9 }
 0x418   :  { %9801 = vst [vmem:[#allocation28_spill] sm:$0xff] %v7084_v5  ;;  %v7096_v10 = vld [vmem:[#allocation11 + $0x20] sm:$0xff] }
 0x419   :  { %v6961_v8 = vadd.f32 %v1176_v6, %v1175_v7  ;;  %v7087_v6 = vld [vmem:[#allocation11 + $0x50] sm:$0xff]  ;;  %v7090_v7 = vld [vmem:[#allocation11 + $0x28] sm:$0xff]  ;;  %9805 = vst [vmem:[#allocation32_spill] sm:$0xff] %v7096_v10 }
 0x41a   :  { %9802 = vst [vmem:[#allocation29_spill] sm:$0xff] %v7087_v6  ;;  %9803 = vst [vmem:[#allocation30_spill] sm:$0xff] %v7090_v7 }
 0x41b   :  { %5731 = vtanh.f32 %v6961_v8 }
 0x428   :  { %v5732_v13 = vpop.eup %5731 }
 0x429   :  { %v6964_v14 = vmul.f32 %v5732_v13, %v1174_v12  ;;  %v7099_v12 = vld [vmem:[#allocation11 + $0x30] sm:$0xff]  ;;  %v7102_v13 = vld [vmem:[#allocation11 + $0x8] sm:$0xff] }
 0x42a   :  { %9806 = vst [vmem:[#allocation33_spill] sm:$0xff] %v7099_v12  ;;  %9807 = vst [vmem:[#allocation34_spill] sm:$0xff] %v7102_v13 }
 0x42b   :  { %9791 = vst [vmem:[#allocation45_spill] sm:$0xff] %v6964_v14  ;;  %1256 = vmatmul.mubr.f32.vlgmr.msra.gmra.mxu0 %v6964_v14  ;;  %1327 = vmatmul.mubr.f32.vlgmr.msra.gmra.mxu1 %v6964_v14  ;;  %v7105_v14 = vld [vmem:[#allocation11 + $0x18] sm:$0xff] }
 0x42c   :  { %1367 = vmatpush1.msra.mxu0 %v6846_v59  ;;  %1438 = vmatpush1.msra.mxu1 %v6849_v53  ;;  %9808 = vst [vmem:[#allocation35_spill] sm:$0xff] %v7105_v14 }
 0x42d   :  { %1368 = vmatprep.subr.mxu0 %v6852_v47  ;;  %1439 = vmatprep.subr.mxu1 %v6855_v55 }
 0x42e   :  { %1369 = vmatpush1.msra.mxu0 %v6858_v58  ;;  %1440 = vmatpush1.msra.mxu1 %v6861_v0 }
 0x42f   :  { %1370 = vmatprep.subr.mxu0 %v6864_v61  ;;  %1441 = vmatprep.subr.mxu1 %v6867_v4 }
 0x430   :  { %1371 = vmatpush1.msra.mxu0 %v6870_v62  ;;  %1442 = vmatpush1.msra.mxu1 %v6873_v38 }
 0x431   :  { %1372 = vmatprep.subr.mxu0 %v6876_v54  ;;  %1443 = vmatprep.subr.mxu1 %v6879_v1 }
 0x432   :  { %1373 = vmatpush1.msra.mxu0 %v6882_v63  ;;  %1444 = vmatpush1.msra.mxu1 %v6885_v11 }
 0x433   :  { %1374 = vmatprep.subr.mxu0 %v6888_v57  ;;  %1445 = vmatprep.subr.mxu1 %v6891_v20 }
 0x434   :  { %1375 = vmatpush1.msra.mxu0 %v6894_v3  ;;  %1446 = vmatpush1.msra.mxu1 %v6897_v60 }
 0x435   :  { %1376 = vmatprep.subr.mxu0 %v6900_v2  ;;  %1447 = vmatprep.subr.mxu1 %v6903_v52 }
 0x436   :  { %1377 = vmatpush1.msra.mxu0 %v6988_v15  ;;  %1448 = vmatpush1.msra.mxu1 %v6991_v16 }
 0x437   :  { %1378 = vmatprep.subr.mxu0 %v6994_v17  ;;  %1449 = vmatprep.subr.mxu1 %v6997_v18 }
 0x438   :  { %1379 = vmatpush1.msra.mxu0 %v7000_v19  ;;  %1450 = vmatpush1.msra.mxu1 %v7003_v21 }
 0x439   :  { %1380 = vmatprep.subr.mxu0 %v7006_v22  ;;  %1451 = vmatprep.subr.mxu1 %v7009_v23 }
 0x43a   :  { %1381 = vmatpush1.msra.mxu0 %v7012_v24  ;;  %1452 = vmatpush1.msra.mxu1 %v7015_v26 }
 0x43b   :  { %1382 = vmatprep.subr.mxu0 %v7018_v29  ;;  %1453 = vmatprep.subr.mxu1 %v7021_v30 }
 0x43c   :  { %1383 = vmatpush1.msra.mxu0 %v7024_v31  ;;  %1454 = vmatpush1.msra.mxu1 %v7027_v32 }
 0x43d   :  { %1384 = vmatprep.subr.mxu0 %v7030_v33  ;;  %1455 = vmatprep.subr.mxu1 %v7033_v34 }
 0x43e   :  { %1385 = vmatpush1.msra.mxu0 %v7036_v35  ;;  %1456 = vmatpush1.msra.mxu1 %v7039_v36 }
 0x43f   :  { %1386 = vmatprep.subr.mxu0 %v7042_v37  ;;  %1457 = vmatprep.subr.mxu1 %v7045_v39 }
 0x440   :  { %1387 = vmatpush1.msra.mxu0 %v7048_v40  ;;  %1458 = vmatpush1.msra.mxu1 %v7051_v41 }
 0x441   :  { %1388 = vmatprep.subr.mxu0 %v7054_v42  ;;  %1459 = vmatprep.subr.mxu1 %v7057_v43 }
 0x442   :  { %1389 = vmatpush1.msra.mxu0 %v7060_v44  ;;  %1460 = vmatpush1.msra.mxu1 %v7063_v45 }
 0x443   :  { %1390 = vmatprep.subr.mxu0 %v7066_v46  ;;  %1461 = vmatprep.subr.mxu1 %v7069_v48 }
 0x444   :  { %1391 = vmatpush1.msra.mxu0 %v7072_v49  ;;  %1462 = vmatpush1.msra.mxu1 %v7075_v50 }
 0x445   :  { %1392 = vmatprep.subr.mxu0 %v7078_v51  ;;  %1463 = vmatprep.subr.mxu1 %v7081_v56  ;;  %v9812_v56 = vld [vmem:[#allocation56_spill] sm:$0xff]  ;;  %v9813_v51 = vld [vmem:[#allocation55_spill] sm:$0xff] }
 0x446   :  { %1393 = vmatpush1.msra.mxu0 %v7084_v5  ;;  %1464 = vmatpush1.msra.mxu1 %v7087_v6 }
 0x447   :  { %1394 = vmatprep.subr.mxu0 %v7090_v7  ;;  %1465 = vmatprep.subr.mxu1 %v7093_v9  ;;  %v7108_v7 = vld [vmem:[#allocation11] sm:$0xff]  ;;  %v7112_v9 = vld [vmem:[#allocation11 + $0x10] sm:$0xff] }
 0x448   :  { %1395 = vmatpush1.msra.mxu0 %v7096_v10  ;;  %1466 = vmatpush1.msra.mxu1 %v7099_v12  ;;  %9809 = vst [vmem:[#allocation36_spill] sm:$0xff] %v7108_v7  ;;  %9810 = vst [vmem:[#allocation37_spill] sm:$0xff] %v7112_v9  ;;  %v9811_v12 = vld [vmem:[#allocation54_spill] sm:$0xff] }
 0x449   :  { %1396 = vmatprep.subr.mxu0 %v7102_v13  ;;  %1467 = vmatprep.subr.mxu1 %v7105_v14 }
 0x44a   :  { %1397 = vmatpush1.msra.mxu0 %v7108_v7  ;;  %1430 = vmatprep.mubr.f32.mxu0 %v9776_v25 }
 0x44b   :  { %1468 = vmatpush1.msra.mxu1 %v7112_v9  ;;  %1501 = vmatprep.mubr.f32.mxu1 %v9776_v25  ;;  %v9814_v25 = vld [vmem:[#allocation57_spill] sm:$0xff] }
 0x44c   :  { %1541 = vmatprep.subr.mxu0 %v6950_v27  ;;  %1612 = vmatprep.subr.mxu1 %v6953_v28 }
 0x4eb   :  { %v1257_v13 = vpop.f32.mrf.mxu0  ;;  %v1328_v14 = vpop.f32.mrf.mxu1 }
 0x4ec   :  { %v1333_v10 = vadd.f32 %v1257_v13, %v9811_v12  ;;  %v1335_v50 = vadd.f32 %v1328_v14, %v9813_v51  ;;  %v9823_v51 = vld [vmem:[#allocation26_spill] sm:$0xff] }
 0x4ed   :  { %v1259_v6 = vpop.f32.mrf.mxu0  ;;  %v1330_v9 = vpop.f32.mrf.mxu1 }
 0x4ee   :  { %v1337_v5 = vmul.f32 0.5, %v1333_v10  ;;  %v1334_v7 = vadd.f32 %v1259_v6, %v9812_v56  ;;  %v1336_v48 = vadd.f32 %v1330_v9, %v9814_v25  ;;  %v9824_v6 = vld [vmem:[#allocation27_spill] sm:$0xff]  ;;  %v9826_v9 = vld [vmem:[#allocation29_spill] sm:$0xff] }
 0x4f0   :  { %5733 = vtanh.f32 %v1337_v5  ;;  %v1341_v49 = vmul.f32 0.5, %v1334_v7  ;;  %v1346_v27 = vmul.f32 0.5, %v1336_v48  ;;  %v9825_v7 = vld [vmem:[#allocation28_spill] sm:$0xff] }
 0x4f2   :  { %5735 = vtanh.f32 %v1341_v49 }
 0x4f3   :  { %5737 = vtanh.f32 %v1335_v50 }
 0x4f4   :  { %5739 = vtanh.f32 %v1346_v27  ;;  %v9816_v27 = vld [vmem:[#allocation19_spill] sm:$0xff] }
 0x4fd   :  { %v5734_v46 = vpop.eup %5733 }
 0x4fe   :  { %v1339_v28 = vadd.f32 1.0, %v5734_v46  ;;  %v9822_v46 = vld [vmem:[#allocation25_spill] sm:$0xff] }
 0x4ff   :  { %v5736_v45 = vpop.eup %5735 }
 0x500   :  { %v1340_v44 = vmul.f32 0.5, %v1339_v28  ;;  %v1343_v12 = vadd.f32 1.0, %v5736_v45  ;;  %v5738_v13 = vpop.eup %5737  ;;  %v9817_v28 = vld [vmem:[#allocation20_spill] sm:$0xff] }
 0x501   :  { %v5740_v14 = vpop.eup %5739  ;;  %v9821_v45 = vld [vmem:[#allocation24_spill] sm:$0xff] }
 0x502   :  { %v1344_v10 = vmul.f32 0.5, %v1343_v12  ;;  %v1351_v43 = vmul.f32 %v5738_v13, %v1340_v44  ;;  %v1348_v49 = vadd.f32 1.0, %v5740_v14  ;;  %v9820_v44 = vld [vmem:[#allocation23_spill] sm:$0xff]  ;;  %v9827_v12 = vld [vmem:[#allocation30_spill] sm:$0xff] }
 0x503   :  { %v9828_v13 = vld [vmem:[#allocation31_spill] sm:$0xff]  ;;  %v9831_v14 = vld [vmem:[#allocation34_spill] sm:$0xff] }
 0x504   :  { %v1350_v56 = vmul.f32 %v1344_v10, %v6961_v8  ;;  %v1349_v50 = vmul.f32 0.5, %v1348_v49  ;;  %v9818_v8 = vld [vmem:[#allocation21_spill] sm:$0xff]  ;;  %v9829_v10 = vld [vmem:[#allocation32_spill] sm:$0xff]  ;;  %v9832_v49 = vld [vmem:[#allocation35_spill] sm:$0xff] }
 0x506   :  { %v7123_v5 = vadd.f32 %v1351_v43, %v1350_v56  ;;  %v9819_v43 = vld [vmem:[#allocation22_spill] sm:$0xff]  ;;  %v9830_v56 = vld [vmem:[#allocation33_spill] sm:$0xff] }
 0x508   :  { %5741 = vtanh.f32 %v7123_v5 }
 0x515   :  { %v5742_v25 = vpop.eup %5741 }
 0x516   :  { %v7126_v48 = vmul.f32 %v5742_v25, %v1349_v50  ;;  %v9833_v50 = vld [vmem:[#allocation36_spill] sm:$0xff]  ;;  %v9834_v25 = vmov 0.0  }
 0x518   :  { %9815 = vst [vmem:[#allocation16_spill] sm:$0xff] %v7126_v48  ;;  %1431 = vmatmul.mubr.f32.vlgmr.msra.gmra.mxu0 %v7126_v48  ;;  %1502 = vmatmul.mubr.f32.vlgmr.msra.gmra.mxu1 %v7126_v48  ;;  %v9835_v48 = vld [vmem:[#allocation37_spill] sm:$0xff] }
 0x519   :  { %1542 = vmatpush1.msra.mxu0 %v6846_v59  ;;  %1613 = vmatpush1.msra.mxu1 %v6849_v53 }
 0x51a   :  { %1543 = vmatprep.subr.mxu0 %v6852_v47  ;;  %1614 = vmatprep.subr.mxu1 %v6855_v55 }
 0x51b   :  { %1544 = vmatpush1.msra.mxu0 %v6858_v58  ;;  %1615 = vmatpush1.msra.mxu1 %v6861_v0 }
 0x51c   :  { %1545 = vmatprep.subr.mxu0 %v6864_v61  ;;  %1616 = vmatprep.subr.mxu1 %v6867_v4 }
 0x51d   :  { %1546 = vmatpush1.msra.mxu0 %v6870_v62  ;;  %1617 = vmatpush1.msra.mxu1 %v6873_v38 }
 0x51e   :  { %1547 = vmatprep.subr.mxu0 %v6876_v54  ;;  %1618 = vmatprep.subr.mxu1 %v6879_v1 }
 0x51f   :  { %1548 = vmatpush1.msra.mxu0 %v6882_v63  ;;  %1619 = vmatpush1.msra.mxu1 %v6885_v11 }
 0x520   :  { %1549 = vmatprep.subr.mxu0 %v6888_v57  ;;  %1620 = vmatprep.subr.mxu1 %v6891_v20 }
 0x521   :  { %1550 = vmatpush1.msra.mxu0 %v6894_v3  ;;  %1621 = vmatpush1.msra.mxu1 %v6897_v60 }
 0x522   :  { %1551 = vmatprep.subr.mxu0 %v6900_v2  ;;  %1622 = vmatprep.subr.mxu1 %v6903_v52 }
 0x523   :  { %1552 = vmatpush1.msra.mxu0 %v6988_v15  ;;  %1623 = vmatpush1.msra.mxu1 %v6991_v16 }
 0x524   :  { %1553 = vmatprep.subr.mxu0 %v6994_v17  ;;  %1624 = vmatprep.subr.mxu1 %v6997_v18 }
 0x525   :  { %1554 = vmatpush1.msra.mxu0 %v7000_v19  ;;  %1625 = vmatpush1.msra.mxu1 %v7003_v21 }
 0x526   :  { %1555 = vmatprep.subr.mxu0 %v7006_v22  ;;  %1626 = vmatprep.subr.mxu1 %v7009_v23 }
 0x527   :  { %1556 = vmatpush1.msra.mxu0 %v7012_v24  ;;  %1627 = vmatpush1.msra.mxu1 %v7015_v26 }
 0x528   :  { %1557 = vmatprep.subr.mxu0 %v7018_v29  ;;  %1628 = vmatprep.subr.mxu1 %v7021_v30 }
 0x529   :  { %1558 = vmatpush1.msra.mxu0 %v7024_v31  ;;  %1629 = vmatpush1.msra.mxu1 %v7027_v32 }
 0x52a   :  { %1559 = vmatprep.subr.mxu0 %v7030_v33  ;;  %1630 = vmatprep.subr.mxu1 %v7033_v34 }
 0x52b   :  { %1560 = vmatpush1.msra.mxu0 %v7036_v35  ;;  %1631 = vmatpush1.msra.mxu1 %v7039_v36 }
 0x52c   :  { %1561 = vmatprep.subr.mxu0 %v7042_v37  ;;  %1632 = vmatprep.subr.mxu1 %v7045_v39 }
 0x52d   :  { %1562 = vmatpush1.msra.mxu0 %v7048_v40  ;;  %1633 = vmatpush1.msra.mxu1 %v7051_v41 }
 0x52e   :  { %1563 = vmatprep.subr.mxu0 %v7054_v42  ;;  %1634 = vmatprep.subr.mxu1 %v9816_v27 }
 0x52f   :  { %1564 = vmatpush1.msra.mxu0 %v9817_v28  ;;  %1635 = vmatpush1.msra.mxu1 %v9818_v8 }
 0x530   :  { %1565 = vmatprep.subr.mxu0 %v9819_v43  ;;  %1636 = vmatprep.subr.mxu1 %v9820_v44 }
 0x531   :  { %1566 = vmatpush1.msra.mxu0 %v9821_v45  ;;  %1637 = vmatpush1.msra.mxu1 %v9822_v46 }
 0x532   :  { %1567 = vmatprep.subr.mxu0 %v9823_v51  ;;  %1638 = vmatprep.subr.mxu1 %v9824_v6  ;;  %v9839_v51 = vld [vmem:[#allocation60_spill] sm:$0xff] }
 0x533   :  { %1568 = vmatpush1.msra.mxu0 %v9825_v7  ;;  %1639 = vmatpush1.msra.mxu1 %v9826_v9  ;;  %v9836_v9 = vld [vmem:[#allocation44_spill] sm:$0xff] }
 0x534   :  { %1569 = vmatprep.subr.mxu0 %v9827_v12  ;;  %1640 = vmatprep.subr.mxu1 %v9828_v13  ;;  %v9837_v12 = vld [vmem:[#allocation43_spill] sm:$0xff] }
 0x535   :  { %1570 = vmatpush1.msra.mxu0 %v9829_v10  ;;  %1641 = vmatpush1.msra.mxu1 %v9830_v56  ;;  %v9838_v10 = vld [vmem:[#allocation58_spill] sm:$0xff] }
 0x536   :  { %1571 = vmatprep.subr.mxu0 %v9831_v14  ;;  %1642 = vmatprep.subr.mxu1 %v9832_v49 }
 0x537   :  { %1572 = vmatpush1.msra.mxu0 %v9833_v50  ;;  %1605 = vmatprep.mubr.f32.mxu0 %v9834_v25  ;;  %v9840_v50 = vld [vmem:[#allocation59_spill] sm:$0xff] }
 0x538   :  { %1643 = vmatpush1.msra.mxu1 %v9835_v48  ;;  %1676 = vmatprep.mubr.f32.mxu1 %v9834_v25  ;;  %v9841_v25 = vld [vmem:[#allocation61_spill] sm:$0xff] }
 0x539   :  { %1716 = vmatprep.subr.mxu0 %v9836_v9  ;;  %1787 = vmatprep.subr.mxu1 %v9837_v12 }
 0x5d8   :  { %v1432_v13 = vpop.f32.mrf.mxu0  ;;  %v1503_v56 = vpop.f32.mrf.mxu1 }
 0x5d9   :  { %v1508_v7 = vadd.f32 %v1432_v13, %v9838_v10  ;;  %v1510_v46 = vadd.f32 %v1503_v56, %v9840_v50 }
 0x5da   :  { %v1434_v6 = vpop.f32.mrf.mxu0  ;;  %v1505_v48 = vpop.f32.mrf.mxu1 }
 0x5db   :  { %v1512_v14 = vmul.f32 0.5, %v1508_v7  ;;  %v1509_v49 = vadd.f32 %v1434_v6, %v9839_v51  ;;  %v1511_v44 = vadd.f32 %v1505_v48, %v9841_v25 }
 0x5dd   :  { %5743 = vtanh.f32 %v1512_v14  ;;  %v1516_v45 = vmul.f32 0.5, %v1509_v49  ;;  %v1521_v9 = vmul.f32 0.5, %v1511_v44 }
 0x5df   :  { %5745 = vtanh.f32 %v1516_v45 }
 0x5e0   :  { %5747 = vtanh.f32 %v1510_v46 }
 0x5e1   :  { %5749 = vtanh.f32 %v1521_v9  ;;  %v2019_v9 = vld [vmem:[#allocation9 + $0x1e0] sm:$0xff] }
 0x5ea   :  { %v5744_v43 = vpop.eup %5743 }
 0x5eb   :  { %v1514_v12 = vadd.f32 1.0, %v5744_v43 }
 0x5ec   :  { %v5746_v8 = vpop.eup %5745 }
 0x5ed   :  { %v1515_v28 = vmul.f32 0.5, %v1514_v12  ;;  %v1518_v13 = vadd.f32 1.0, %v5746_v8  ;;  %v5748_v10 = vpop.eup %5747  ;;  %v2021_v12 = vld [vmem:[#allocation9 + $0x1f0] sm:$0xff] }
 0x5ee   :  { %v5750_v45 = vpop.eup %5749 }
 0x5ef   :  { %v1519_v7 = vmul.f32 0.5, %v1518_v13  ;;  %v1526_v27 = vmul.f32 %v5748_v10, %v1515_v28  ;;  %v1523_v46 = vadd.f32 1.0, %v5750_v45  ;;  %v2016_v13 = vld [vmem:[#allocation9 + $0x1c8] sm:$0xff]  ;;  %v2018_v10 = vld [vmem:[#allocation9 + $0x1d8] sm:$0xff] }
 0x5f0   :  { %v2014_v45 = vld [vmem:[#allocation9 + $0x1b8] sm:$0xff] }
 0x5f1   :  { %v1525_v51 = vmul.f32 %v1519_v7, %v7123_v5  ;;  %v1524_v56 = vmul.f32 0.5, %v1523_v46  ;;  %v2015_v7 = vld [vmem:[#allocation9 + $0x1c0] sm:$0xff] }
 0x5f2   :  { %v2011_v46 = vld [vmem:[#allocation9 + $0x1a0] sm:$0xff] }
 0x5f3   :  { %v7201_v6 = vadd.f32 %v1526_v27, %v1525_v51  ;;  %v2017_v51 = vld [vmem:[#allocation9 + $0x1d0] sm:$0xff] }
 0x5f5   :  { %5751 = vtanh.f32 %v7201_v6 }
 0x602   :  { %v5752_v48 = vpop.eup %5751 }
 0x603   :  { %v7204_v44 = vmul.f32 %v5752_v48, %v1524_v56  ;;  %v2013_v56 = vld [vmem:[#allocation9 + $0x1b0] sm:$0xff]  ;;  %v2008_v48 = vld [vmem:[#allocation9 + $0x188] sm:$0xff] }
 0x605   :  { %1606 = vmatmul.mubr.f32.vlgmr.msra.gmra.mxu0 %v7204_v44  ;;  %1677 = vmatmul.mubr.f32.vlgmr.msra.gmra.mxu1 %v7204_v44 }
 0x606   :  { %1717 = vmatpush1.msra.mxu0 %v6846_v59  ;;  %1788 = vmatpush1.msra.mxu1 %v6849_v53  ;;  %v9843_v59 = vld [vmem:[#allocation20_spill] sm:$0xff]  ;;  %v9844_v53 = vld [vmem:[#allocation21_spill] sm:$0xff] }
 0x607   :  { %1718 = vmatprep.subr.mxu0 %v6852_v47  ;;  %1789 = vmatprep.subr.mxu1 %v6855_v55  ;;  %v9845_v47 = vld [vmem:[#allocation22_spill] sm:$0xff]  ;;  %v9846_v55 = vld [vmem:[#allocation23_spill] sm:$0xff] }
 0x608   :  { %1719 = vmatpush1.msra.mxu0 %v6858_v58  ;;  %1790 = vmatpush1.msra.mxu1 %v6861_v0  ;;  %v9847_v58 = vld [vmem:[#allocation24_spill] sm:$0xff]  ;;  %v9848_v0 = vld [vmem:[#allocation25_spill] sm:$0xff] }
 0x609   :  { %1720 = vmatprep.subr.mxu0 %v6864_v61  ;;  %1791 = vmatprep.subr.mxu1 %v6867_v4  ;;  %v9849_v61 = vld [vmem:[#allocation26_spill] sm:$0xff]  ;;  %v9850_v4 = vld [vmem:[#allocation27_spill] sm:$0xff] }
 0x60a   :  { %1721 = vmatpush1.msra.mxu0 %v6870_v62  ;;  %1792 = vmatpush1.msra.mxu1 %v6873_v38  ;;  %v9851_v62 = vld [vmem:[#allocation28_spill] sm:$0xff]  ;;  %v9852_v38 = vld [vmem:[#allocation29_spill] sm:$0xff] }
 0x60b   :  { %1722 = vmatprep.subr.mxu0 %v6876_v54  ;;  %1793 = vmatprep.subr.mxu1 %v6879_v1  ;;  %v9853_v54 = vld [vmem:[#allocation30_spill] sm:$0xff]  ;;  %v9854_v1 = vld [vmem:[#allocation31_spill] sm:$0xff] }
 0x60c   :  { %1723 = vmatpush1.msra.mxu0 %v6882_v63  ;;  %1794 = vmatpush1.msra.mxu1 %v6885_v11  ;;  %v9855_v63 = vld [vmem:[#allocation32_spill] sm:$0xff]  ;;  %v9856_v11 = vld [vmem:[#allocation33_spill] sm:$0xff] }
 0x60d   :  { %1724 = vmatprep.subr.mxu0 %v6888_v57  ;;  %1795 = vmatprep.subr.mxu1 %v6891_v20  ;;  %v9857_v57 = vld [vmem:[#allocation34_spill] sm:$0xff]  ;;  %v9858_v20 = vld [vmem:[#allocation35_spill] sm:$0xff] }
 0x60e   :  { %1725 = vmatpush1.msra.mxu0 %v6894_v3  ;;  %1796 = vmatpush1.msra.mxu1 %v6897_v60  ;;  %v9859_v3 = vld [vmem:[#allocation36_spill] sm:$0xff]  ;;  %v9860_v60 = vld [vmem:[#allocation37_spill] sm:$0xff] }
 0x60f   :  { %1726 = vmatprep.subr.mxu0 %v6900_v2  ;;  %1797 = vmatprep.subr.mxu1 %v6903_v52  ;;  %v9842_v52 = vld [vmem:[#allocation19_spill] sm:$0xff]  ;;  %v9861_v2 = vmov 0.0  }
 0x610   :  { %1727 = vmatpush1.msra.mxu0 %v6988_v15  ;;  %1798 = vmatpush1.msra.mxu1 %v6991_v16  ;;  %v2020_v15 = vld [vmem:[#allocation9 + $0x1e8] sm:$0xff]  ;;  %v2022_v16 = vld [vmem:[#allocation9 + $0x1f8] sm:$0xff] }
 0x611   :  { %1728 = vmatprep.subr.mxu0 %v6994_v17  ;;  %1799 = vmatprep.subr.mxu1 %v6997_v18  ;;  %v9862_v18 = vld [vmem:[#allocation62_spill] sm:$0xff] }
 0x612   :  { %1729 = vmatpush1.msra.mxu0 %v7000_v19  ;;  %1800 = vmatpush1.msra.mxu1 %v7003_v21 }
 0x613   :  { %1730 = vmatprep.subr.mxu0 %v7006_v22  ;;  %1801 = vmatprep.subr.mxu1 %v7009_v23 }
 0x614   :  { %1731 = vmatpush1.msra.mxu0 %v7012_v24  ;;  %1802 = vmatpush1.msra.mxu1 %v7015_v26  ;;  %v9863_v24 = vld [vmem:[#allocation64_spill] sm:$0xff] }
 0x615   :  { %1732 = vmatprep.subr.mxu0 %v7018_v29  ;;  %1803 = vmatprep.subr.mxu1 %v7021_v30  ;;  %v9864_v29 = vld [vmem:[#allocation63_spill] sm:$0xff] }
 0x616   :  { %1733 = vmatpush1.msra.mxu0 %v7024_v31  ;;  %1804 = vmatpush1.msra.mxu1 %v7027_v32 }
 0x617   :  { %1734 = vmatprep.subr.mxu0 %v7030_v33  ;;  %1805 = vmatprep.subr.mxu1 %v7033_v34  ;;  %v9865_v33 = vld [vmem:[#allocation65_spill] sm:$0xff] }
 0x618   :  { %1735 = vmatpush1.msra.mxu0 %v7036_v35  ;;  %1806 = vmatpush1.msra.mxu1 %v7039_v36 }
 0x619   :  { %1736 = vmatprep.subr.mxu0 %v7042_v37  ;;  %1807 = vmatprep.subr.mxu1 %v7045_v39 }
 0x61a   :  { %1737 = vmatpush1.msra.mxu0 %v7048_v40  ;;  %1808 = vmatpush1.msra.mxu1 %v7051_v41 }
 0x61b   :  { %1738 = vmatprep.subr.mxu0 %v7054_v42  ;;  %1809 = vmatprep.subr.mxu1 %v9842_v52  ;;  %v2010_v52 = vld [vmem:[#allocation9 + $0x198] sm:$0xff] }
 0x61c   :  { %1739 = vmatpush1.msra.mxu0 %v9843_v59  ;;  %1810 = vmatpush1.msra.mxu1 %v9844_v53  ;;  %v2007_v59 = vld [vmem:[#allocation9 + $0x180] sm:$0xff]  ;;  %v2009_v53 = vld [vmem:[#allocation9 + $0x190] sm:$0xff] }
 0x61d   :  { %1740 = vmatprep.subr.mxu0 %v9845_v47  ;;  %1811 = vmatprep.subr.mxu1 %v9846_v55  ;;  %v2004_v47 = vld [vmem:[#allocation9 + $0x168] sm:$0xff]  ;;  %v2006_v55 = vld [vmem:[#allocation9 + $0x178] sm:$0xff] }
 0x61e   :  { %1741 = vmatpush1.msra.mxu0 %v9847_v58  ;;  %1812 = vmatpush1.msra.mxu1 %v9848_v0  ;;  %v2003_v58 = vld [vmem:[#allocation9 + $0x160] sm:$0xff]  ;;  %v2005_v0 = vld [vmem:[#allocation9 + $0x170] sm:$0xff] }
 0x61f   :  { %1742 = vmatprep.subr.mxu0 %v9849_v61  ;;  %1813 = vmatprep.subr.mxu1 %v9850_v4  ;;  %v2000_v61 = vld [vmem:[#allocation9 + $0x148] sm:$0xff]  ;;  %v2002_v4 = vld [vmem:[#allocation9 + $0x158] sm:$0xff] }
 0x620   :  { %1743 = vmatpush1.msra.mxu0 %v9851_v62  ;;  %1814 = vmatpush1.msra.mxu1 %v9852_v38  ;;  %v1999_v62 = vld [vmem:[#allocation9 + $0x140] sm:$0xff]  ;;  %v2001_v38 = vld [vmem:[#allocation9 + $0x150] sm:$0xff] }
 0x621   :  { %1744 = vmatprep.subr.mxu0 %v9853_v54  ;;  %1815 = vmatprep.subr.mxu1 %v9854_v1  ;;  %v1996_v54 = vld [vmem:[#allocation9 + $0x128] sm:$0xff]  ;;  %v1998_v1 = vld [vmem:[#allocation9 + $0x138] sm:$0xff] }
 0x622   :  { %1745 = vmatpush1.msra.mxu0 %v9855_v63  ;;  %1816 = vmatpush1.msra.mxu1 %v9856_v11  ;;  %v1995_v63 = vld [vmem:[#allocation9 + $0x120] sm:$0xff]  ;;  %v1997_v11 = vld [vmem:[#allocation9 + $0x130] sm:$0xff] }
 0x623   :  { %1746 = vmatprep.subr.mxu0 %v9857_v57  ;;  %1817 = vmatprep.subr.mxu1 %v9858_v20  ;;  %v1992_v57 = vld [vmem:[#allocation9 + $0x108] sm:$0xff]  ;;  %v1994_v20 = vld [vmem:[#allocation9 + $0x118] sm:$0xff] }
 0x624   :  { %1747 = vmatpush1.msra.mxu0 %v9859_v3  ;;  %1818 = vmatpush1.msra.mxu1 %v9860_v60  ;;  %v1991_v3 = vld [vmem:[#allocation9 + $0x100] sm:$0xff]  ;;  %v1993_v60 = vld [vmem:[#allocation9 + $0x110] sm:$0xff] }
 0x625   :  { %1780 = vmatprep.mubr.f32.mxu0 %v9861_v2  ;;  %1851 = vmatprep.mubr.f32.mxu1 %v9861_v2 }
 0x626   :  { %2044 = vmatprep.subr.mxu0 %v2020_v15  ;;  %2157 = vmatprep.subr.mxu1 %v2022_v16  ;;  %v1988_v15 = vld [vmem:[#allocation9 + $0xe8] sm:$0xff]  ;;  %v1990_v16 = vld [vmem:[#allocation9 + $0xf8] sm:$0xff] }
 0x6c5   :  { %v1607_v17 = vpop.f32.mrf.mxu0  ;;  %v1678_v21 = vpop.f32.mrf.mxu1 }
 0x6c6   :  { %v1683_v19 = vadd.f32 %v1607_v17, %v9862_v18  ;;  %v1685_v30 = vadd.f32 %v1678_v21, %v9864_v29  ;;  %v1987_v17 = vld [vmem:[#allocation9 + $0xe0] sm:$0xff]  ;;  %v1989_v18 = vld [vmem:[#allocation9 + $0xf0] sm:$0xff]  ;;  %v1986_v21 = vld [vmem:[#allocation9 + $0xd8] sm:$0xff] }
 0x6c7   :  { %v1609_v22 = vpop.f32.mrf.mxu0  ;;  %v1680_v32 = vpop.f32.mrf.mxu1  ;;  %v1979_v29 = vld [vmem:[#allocation9 + $0xa0] sm:$0xff] }
 0x6c8   :  { %v1687_v23 = vmul.f32 0.5, %v1683_v19  ;;  %v1684_v26 = vadd.f32 %v1609_v22, %v9863_v24  ;;  %v1686_v34 = vadd.f32 %v1680_v32, %v9865_v33  ;;  %v1984_v19 = vld [vmem:[#allocation9 + $0xc8] sm:$0xff]  ;;  %v1983_v22 = vld [vmem:[#allocation9 + $0xc0] sm:$0xff]  ;;  %v1978_v32 = vld [vmem:[#allocation9 + $0x98] sm:$0xff] }
 0x6c9   :  { %v1980_v24 = vld [vmem:[#allocation9 + $0xa8] sm:$0xff]  ;;  %v1975_v33 = vld [vmem:[#allocation9 + $0x80] sm:$0xff] }
 0x6ca   :  { %5753 = vtanh.f32 %v1687_v23  ;;  %v1691_v31 = vmul.f32 0.5, %v1684_v26  ;;  %v1696_v35 = vmul.f32 0.5, %v1686_v34  ;;  %v1985_v23 = vld [vmem:[#allocation9 + $0xd0] sm:$0xff]  ;;  %v1982_v26 = vld [vmem:[#allocation9 + $0xb8] sm:$0xff] }
 0x6cb   :  { %v1977_v34 = vld [vmem:[#allocation9 + $0x90] sm:$0xff] }
 0x6cc   :  { %5755 = vtanh.f32 %v1691_v31  ;;  %v1976_v31 = vld [vmem:[#allocation9 + $0x88] sm:$0xff] }
 0x6cd   :  { %5757 = vtanh.f32 %v1685_v30  ;;  %v1981_v30 = vld [vmem:[#allocation9 + $0xb0] sm:$0xff] }
 0x6ce   :  { %5759 = vtanh.f32 %v1696_v35  ;;  %v1972_v35 = vld [vmem:[#allocation9 + $0x68] sm:$0xff] }
 0x6d7   :  { %v5754_v36 = vpop.eup %5753 }
 0x6d8   :  { %v1689_v37 = vadd.f32 1.0, %v5754_v36  ;;  %v1974_v36 = vld [vmem:[#allocation9 + $0x78] sm:$0xff] }
 0x6d9   :  { %v5756_v39 = vpop.eup %5755 }
 0x6da   :  { %v1690_v40 = vmul.f32 0.5, %v1689_v37  ;;  %v1693_v41 = vadd.f32 1.0, %v5756_v39  ;;  %v5758_v42 = vpop.eup %5757  ;;  %v1971_v37 = vld [vmem:[#allocation9 + $0x60] sm:$0xff]  ;;  %v1973_v39 = vld [vmem:[#allocation9 + $0x70] sm:$0xff] }
 0x6db   :  { %v5760_v43 = vpop.eup %5759 }
 0x6dc   :  { %v1694_v5 = vmul.f32 0.5, %v1693_v41  ;;  %v1701_v27 = vmul.f32 %v5758_v42, %v1690_v40  ;;  %v1698_v14 = vadd.f32 1.0, %v5760_v43  ;;  %v1968_v40 = vld [vmem:[#allocation9 + $0x48] sm:$0xff]  ;;  %v1970_v41 = vld [vmem:[#allocation9 + $0x58] sm:$0xff]  ;;  %v1967_v42 = vld [vmem:[#allocation9 + $0x40] sm:$0xff] }
 0x6dd   :  { %v1963_v43 = vld [vmem:[#allocation9 + $0x20] sm:$0xff] }
 0x6de   :  { %v1700_v28 = vmul.f32 %v1694_v5, %v7201_v6  ;;  %v1699_v49 = vmul.f32 0.5, %v1698_v14  ;;  %v2012_v6 = vld [vmem:[#allocation9 + $0x1a8] sm:$0xff]  ;;  %v1969_v5 = vld [vmem:[#allocation9 + $0x50] sm:$0xff] }
 0x6df   :  { %v1965_v14 = vld [vmem:[#allocation9 + $0x30] sm:$0xff] }
 0x6e0   :  { %v7277_v8 = vadd.f32 %v1701_v27, %v1700_v28  ;;  %v1964_v27 = vld [vmem:[#allocation9 + $0x28] sm:$0xff]  ;;  %v1966_v28 = vld [vmem:[#allocation9 + $0x38] sm:$0xff] }
 0x6e2   :  { %5761 = vtanh.f32 %v7277_v8 }
 0x6ef   :  { %v5762_v50 = vpop.eup %5761 }
 0x6f0   :  { %v7280_v25 = vmul.f32 %v5762_v50, %v1699_v49  ;;  %v1960_v49 = vld [vmem:[#allocation9 + $0x8] sm:$0xff]  ;;  %v1962_v50 = vld [vmem:[#allocation9 + $0x18] sm:$0xff] }
 0x6f2   :  { %1781 = vmatmul.mubr.f32.vlgmr.msra.gmra.mxu0 %v7280_v25  ;;  %1852 = vmatmul.mubr.f32.vlgmr.msra.gmra.mxu1 %v7280_v25 }
 0x6f3   :  { %2045 = vmatpush1.msra.mxu0 %v2019_v9  ;;  %2158 = vmatpush1.msra.mxu1 %v2021_v12  ;;  %v1959_v9 = vld [vmem:[#allocation9] sm:$0xff]  ;;  %v1961_v12 = vld [vmem:[#allocation9 + $0x10] sm:$0xff] }
 0x6f4   :  { %2046 = vmatprep.subr.mxu0 %v2016_v13  ;;  %2159 = vmatprep.subr.mxu1 %v2018_v10  ;;  %v9866_v13 = vld [vmem:[#allocation70_spill] sm:$0xff] }
 0x6f5   :  { %2047 = vmatpush1.msra.mxu0 %v2015_v7  ;;  %2160 = vmatpush1.msra.mxu1 %v2017_v51  ;;  %v9867_v10 = vld [vmem:[#allocation18_spill] sm:$0xff]  ;;  %v9869_v51 = vld [vmem:[#allocation45_spill] sm:$0xff] }
 0x6f6   :  { %2048 = vmatprep.subr.mxu0 %v2012_v6  ;;  %2161 = vmatprep.subr.mxu1 %v2014_v45  ;;  %v9868_v7 = vld [vmem:[#allocation42_spill] sm:$0xff]  ;;  %v9870_v6 = vld [vmem:[#allocation16_spill] sm:$0xff] }
 0x6f7   :  { %2049 = vmatpush1.msra.mxu0 %v2011_v46  ;;  %2162 = vmatpush1.msra.mxu1 %v2013_v56  ;;  %v7314_v45 = vld [vmem:[#allocation11 + $0x3e8] sm:$0xff]  ;;  %v7316_v46 = vld [vmem:[#allocation11 + $0x3f8] sm:$0xff]  ;;  %v7322_v56 = vld [vmem:[#allocation11 + $0x3f0] sm:$0xff] }
 0x6f8   :  { %2050 = vmatprep.subr.mxu0 %v2008_v48  ;;  %2163 = vmatprep.subr.mxu1 %v2010_v52  ;;  %9871 = vst [vmem:[#allocation17_spill] sm:$0xff] %v7314_v45  ;;  %9872 = vst [vmem:[#allocation46_spill] sm:$0xff] %v7316_v46  ;;  %v7328_v48 = vld [vmem:[#allocation11 + $0x3d8] sm:$0xff]  ;;  %v7332_v52 = vld [vmem:[#allocation11 + $0x3c0] sm:$0xff] }
 0x6f9   :  { %2051 = vmatpush1.msra.mxu0 %v2007_v59  ;;  %2164 = vmatpush1.msra.mxu1 %v2009_v53  ;;  %v7334_v59 = vld [vmem:[#allocation11 + $0x3d0] sm:$0xff]  ;;  %v7338_v53 = vld [vmem:[#allocation11 + $0x3a8] sm:$0xff] }
 0x6fa   :  { %2052 = vmatprep.subr.mxu0 %v2004_v47  ;;  %2165 = vmatprep.subr.mxu1 %v2006_v55  ;;  %v7340_v47 = vld [vmem:[#allocation11 + $0x3b8] sm:$0xff]  ;;  %v7344_v55 = vld [vmem:[#allocation11 + $0x3a0] sm:$0xff] }
 0x6fb   :  { %2053 = vmatpush1.msra.mxu0 %v2003_v58  ;;  %2166 = vmatpush1.msra.mxu1 %v2005_v0  ;;  %v7346_v58 = vld [vmem:[#allocation11 + $0x3b0] sm:$0xff]  ;;  %v7350_v0 = vld [vmem:[#allocation11 + $0x388] sm:$0xff] }
 0x6fc   :  { %2054 = vmatprep.subr.mxu0 %v2000_v61  ;;  %2167 = vmatprep.subr.mxu1 %v2002_v4  ;;  %v7352_v61 = vld [vmem:[#allocation11 + $0x398] sm:$0xff]  ;;  %v7356_v4 = vld [vmem:[#allocation11 + $0x380] sm:$0xff] }
 0x6fd   :  { %2055 = vmatpush1.msra.mxu0 %v1999_v62  ;;  %2168 = vmatpush1.msra.mxu1 %v2001_v38  ;;  %v7358_v62 = vld [vmem:[#allocation11 + $0x390] sm:$0xff]  ;;  %v7362_v38 = vld [vmem:[#allocation11 + $0x368] sm:$0xff] }
 0x6fe   :  { %2056 = vmatprep.subr.mxu0 %v1996_v54  ;;  %2169 = vmatprep.subr.mxu1 %v1998_v1  ;;  %v7364_v54 = vld [vmem:[#allocation11 + $0x378] sm:$0xff]  ;;  %v7368_v1 = vld [vmem:[#allocation11 + $0x360] sm:$0xff] }
 0x6ff   :  { %2057 = vmatpush1.msra.mxu0 %v1995_v63  ;;  %2170 = vmatpush1.msra.mxu1 %v1997_v11  ;;  %v7370_v63 = vld [vmem:[#allocation11 + $0x370] sm:$0xff]  ;;  %v7374_v11 = vld [vmem:[#allocation11 + $0x348] sm:$0xff] }
 0x700   :  { %2058 = vmatprep.subr.mxu0 %v1992_v57  ;;  %2171 = vmatprep.subr.mxu1 %v1994_v20  ;;  %v7376_v57 = vld [vmem:[#allocation11 + $0x358] sm:$0xff]  ;;  %v7380_v20 = vld [vmem:[#allocation11 + $0x340] sm:$0xff] }
 0x701   :  { %2059 = vmatpush1.msra.mxu0 %v1991_v3  ;;  %2172 = vmatpush1.msra.mxu1 %v1993_v60  ;;  %v7382_v3 = vld [vmem:[#allocation11 + $0x350] sm:$0xff]  ;;  %v7384_v60 = vld [vmem:[#allocation11 + $0x328] sm:$0xff] }
 0x702   :  { %2060 = vmatprep.subr.mxu0 %v1988_v15  ;;  %2173 = vmatprep.subr.mxu1 %v1990_v16  ;;  %v7388_v15 = vld [vmem:[#allocation11 + $0x338] sm:$0xff]  ;;  %v7390_v16 = vld [vmem:[#allocation11 + $0x320] sm:$0xff] }
 0x703   :  { %2061 = vmatpush1.msra.mxu0 %v1987_v17  ;;  %2174 = vmatpush1.msra.mxu1 %v1989_v18  ;;  %v7392_v17 = vld [vmem:[#allocation11 + $0x330] sm:$0xff]  ;;  %v7398_v18 = vld [vmem:[#allocation11 + $0x308] sm:$0xff] }
 0x704   :  { %2062 = vmatprep.subr.mxu0 %v1984_v19  ;;  %2175 = vmatprep.subr.mxu1 %v1986_v21  ;;  %v7400_v19 = vld [vmem:[#allocation11 + $0x318] sm:$0xff]  ;;  %v7404_v21 = vld [vmem:[#allocation11 + $0x300] sm:$0xff] }
 0x705   :  { %2063 = vmatpush1.msra.mxu0 %v1983_v22  ;;  %2176 = vmatpush1.msra.mxu1 %v1985_v23  ;;  %v7406_v22 = vld [vmem:[#allocation11 + $0x310] sm:$0xff]  ;;  %v7410_v23 = vld [vmem:[#allocation11 + $0x2e8] sm:$0xff] }
 0x706   :  { %2064 = vmatprep.subr.mxu0 %v1980_v24  ;;  %2177 = vmatprep.subr.mxu1 %v1982_v26  ;;  %v7412_v24 = vld [vmem:[#allocation11 + $0x2f8] sm:$0xff]  ;;  %v7416_v26 = vld [vmem:[#allocation11 + $0x2e0] sm:$0xff] }
 0x707   :  { %2065 = vmatpush1.msra.mxu0 %v1979_v29  ;;  %2178 = vmatpush1.msra.mxu1 %v1981_v30  ;;  %v7418_v29 = vld [vmem:[#allocation11 + $0x2f0] sm:$0xff]  ;;  %v7422_v30 = vld [vmem:[#allocation11 + $0x2c8] sm:$0xff] }
 0x708   :  { %2066 = vmatprep.subr.mxu0 %v1976_v31  ;;  %2179 = vmatprep.subr.mxu1 %v1978_v32  ;;  %v7424_v31 = vld [vmem:[#allocation11 + $0x2d8] sm:$0xff]  ;;  %v7428_v32 = vld [vmem:[#allocation11 + $0x2c0] sm:$0xff] }
 0x709   :  { %2067 = vmatpush1.msra.mxu0 %v1975_v33  ;;  %2180 = vmatpush1.msra.mxu1 %v1977_v34  ;;  %v7430_v33 = vld [vmem:[#allocation11 + $0x2d0] sm:$0xff]  ;;  %v7434_v34 = vld [vmem:[#allocation11 + $0x2a8] sm:$0xff] }
 0x70a   :  { %2068 = vmatprep.subr.mxu0 %v1972_v35  ;;  %2181 = vmatprep.subr.mxu1 %v1974_v36  ;;  %v7436_v35 = vld [vmem:[#allocation11 + $0x2b8] sm:$0xff]  ;;  %v7440_v36 = vld [vmem:[#allocation11 + $0x2a0] sm:$0xff] }
 0x70b   :  { %2069 = vmatpush1.msra.mxu0 %v1971_v37  ;;  %2182 = vmatpush1.msra.mxu1 %v1973_v39  ;;  %v7442_v37 = vld [vmem:[#allocation11 + $0x2b0] sm:$0xff]  ;;  %v7446_v39 = vld [vmem:[#allocation11 + $0x288] sm:$0xff] }
 0x70c   :  { %2070 = vmatprep.subr.mxu0 %v1968_v40  ;;  %2183 = vmatprep.subr.mxu1 %v1970_v41  ;;  %9873 = vst [vmem:[#allocation48_spill] sm:$0xff] %v7442_v37  ;;  %9874 = vst [vmem:[#allocation47_spill] sm:$0xff] %v7446_v39  ;;  %v7448_v40 = vld [vmem:[#allocation11 + $0x298] sm:$0xff]  ;;  %v7452_v41 = vld [vmem:[#allocation11 + $0x280] sm:$0xff] }
 0x70d   :  { %2071 = vmatpush1.msra.mxu0 %v1967_v42  ;;  %2184 = vmatpush1.msra.mxu1 %v1969_v5  ;;  %9875 = vst [vmem:[#allocation49_spill] sm:$0xff] %v7448_v40  ;;  %9876 = vst [vmem:[#allocation50_spill] sm:$0xff] %v7452_v41  ;;  %v7454_v42 = vld [vmem:[#allocation11 + $0x290] sm:$0xff]  ;;  %v7458_v5 = vld [vmem:[#allocation11 + $0x268] sm:$0xff] }
 0x70e   :  { %2072 = vmatprep.subr.mxu0 %v1964_v27  ;;  %2185 = vmatprep.subr.mxu1 %v1966_v28  ;;  %9877 = vst [vmem:[#allocation52_spill] sm:$0xff] %v7454_v42  ;;  %9878 = vst [vmem:[#allocation51_spill] sm:$0xff] %v7458_v5  ;;  %v7460_v27 = vld [vmem:[#allocation11 + $0x278] sm:$0xff]  ;;  %v7464_v28 = vld [vmem:[#allocation11 + $0x260] sm:$0xff] }
 0x70f   :  { %2073 = vmatpush1.msra.mxu0 %v1963_v43  ;;  %2186 = vmatpush1.msra.mxu1 %v1965_v14  ;;  %9879 = vst [vmem:[#allocation53_spill] sm:$0xff] %v7460_v27  ;;  %9880 = vst [vmem:[#allocation54_spill] sm:$0xff] %v7464_v28  ;;  %v7466_v43 = vld [vmem:[#allocation11 + $0x270] sm:$0xff]  ;;  %v7470_v14 = vld [vmem:[#allocation11 + $0x248] sm:$0xff] }
 0x710   :  { %2074 = vmatprep.subr.mxu0 %v1960_v49  ;;  %2187 = vmatprep.subr.mxu1 %v1962_v50  ;;  %9881 = vst [vmem:[#allocation56_spill] sm:$0xff] %v7466_v43  ;;  %9882 = vst [vmem:[#allocation55_spill] sm:$0xff] %v7470_v14  ;;  %v7472_v49 = vld [vmem:[#allocation11 + $0x258] sm:$0xff]  ;;  %v7476_v50 = vld [vmem:[#allocation11 + $0x240] sm:$0xff] }
 0x711   :  { %2075 = vmatpush1.msra.mxu0 %v1959_v9  ;;  %2108 = vmatprep.mubr.f32.mxu0 %v9861_v2  ;;  %9883 = vst [vmem:[#allocation57_spill] sm:$0xff] %v7472_v49  ;;  %9884 = vst [vmem:[#allocation44_spill] sm:$0xff] %v7476_v50  ;;  %v7478_v9 = vld [vmem:[#allocation11 + $0x250] sm:$0xff] }
 0x712   :  { %2188 = vmatpush1.msra.mxu1 %v1961_v12  ;;  %2221 = vmatprep.mubr.f32.mxu1 %v9861_v2  ;;  %9885 = vst [vmem:[#allocation43_spill] sm:$0xff] %v7478_v9  ;;  %v7482_v12 = vld [vmem:[#allocation11 + $0x228] sm:$0xff] }
 0x713   :  { %2109 = vmatmul.mubr.f32.vlgmr.msra.gmra.mxu0 %v9866_v13  ;;  %2222 = vmatmul.mubr.f32.vlgmr.msra.gmra.mxu1 %v9866_v13  ;;  %9886 = vst [vmem:[#allocation58_spill] sm:$0xff] %v7482_v12  ;;  %v7484_v13 = vld [vmem:[#allocation11 + $0x238] sm:$0xff] }
 0x714   :  { %2114 = vmatprep.mubr.f32.mxu0 %v9861_v2  ;;  %2227 = vmatprep.mubr.f32.mxu1 %v9861_v2  ;;  %9887 = vst [vmem:[#allocation60_spill] sm:$0xff] %v7484_v13 }
 0x715   :  { %2310 = vmatprep.subr.mxu0 %v7314_v45  ;;  %2381 = vmatprep.subr.mxu1 %v7316_v46 }
 0x716   :  { %2382 = vmatpush1.msra.mxu1 %v7322_v56 }
 0x717   :  { %2115 = vmatmul.mubr.f32.gmra.mxu0 %v9867_v10  ;;  %2228 = vmatmul.mubr.f32.gmra.mxu1 %v9867_v10  ;;  %v7488_v10 = vld [vmem:[#allocation11 + $0x220] sm:$0xff] }
 0x718   :  { %2120 = vmatprep.mubr.f32.mxu0 %v9861_v2  ;;  %2233 = vmatprep.mubr.f32.mxu1 %v9861_v2  ;;  %9888 = vst [vmem:[#allocation59_spill] sm:$0xff] %v7488_v10 }
 0x719   :  { %2383 = vmatprep.subr.mxu1 %v7328_v48 }
 0x71a   :  { %2384 = vmatpush1.msra.mxu1 %v7334_v59 }
 0x71b   :  { %2121 = vmatmul.mubr.f32.gmra.mxu0 %v9868_v7  ;;  %2234 = vmatmul.mubr.f32.gmra.mxu1 %v9868_v7  ;;  %v7490_v7 = vld [vmem:[#allocation11 + $0x230] sm:$0xff] }
 0x71c   :  { %2126 = vmatprep.mubr.f32.mxu0 %v9861_v2  ;;  %2239 = vmatprep.mubr.f32.mxu1 %v9861_v2  ;;  %9889 = vst [vmem:[#allocation61_spill] sm:$0xff] %v7490_v7 }
 0x71d   :  { %2385 = vmatprep.subr.mxu1 %v7340_v47 }
 0x71e   :  { %2386 = vmatpush1.msra.mxu1 %v7346_v58 }
 0x71f   :  { %2127 = vmatmul.mubr.f32.gmra.mxu0 %v9869_v51  ;;  %2240 = vmatmul.mubr.f32.gmra.mxu1 %v9869_v51  ;;  %v7494_v51 = vld [vmem:[#allocation11 + $0x208] sm:$0xff] }
 0x720   :  { %2132 = vmatprep.mubr.f32.mxu0 %v9861_v2  ;;  %2245 = vmatprep.mubr.f32.mxu1 %v9861_v2  ;;  %9890 = vst [vmem:[#allocation19_spill] sm:$0xff] %v7494_v51 }
 0x721   :  { %2387 = vmatprep.subr.mxu1 %v7352_v61 }
 0x722   :  { %2388 = vmatpush1.msra.mxu1 %v7358_v62 }
 0x723   :  { %2133 = vmatmul.mubr.f32.gmra.mxu0 %v9870_v6  ;;  %2246 = vmatmul.mubr.f32.gmra.mxu1 %v9870_v6  ;;  %v7496_v6 = vld [vmem:[#allocation11 + $0x218] sm:$0xff] }
 0x724   :  { %2138 = vmatprep.mubr.f32.mxu0 %v9861_v2  ;;  %2251 = vmatprep.mubr.f32.mxu1 %v9861_v2  ;;  %9891 = vst [vmem:[#allocation20_spill] sm:$0xff] %v7496_v6 }
 0x725   :  { %2389 = vmatprep.subr.mxu1 %v7364_v54 }
 0x726   :  { %2390 = vmatpush1.msra.mxu1 %v7370_v63 }
 0x727   :  { %2139 = vmatmul.mubr.f32.gmra.mxu0 %v7204_v44  ;;  %2252 = vmatmul.mubr.f32.gmra.mxu1 %v7204_v44  ;;  %v7320_v44 = vld [vmem:[#allocation11 + $0x3e0] sm:$0xff] }
 0x728   :  { %2144 = vmatprep.mubr.f32.mxu0 %v9861_v2  ;;  %2257 = vmatprep.mubr.f32.mxu1 %v9861_v2 }
 0x729   :  { %2311 = vmatpush1.msra.mxu0 %v7320_v44  ;;  %2391 = vmatprep.subr.mxu1 %v7376_v57 }
 0x72a   :  { %2392 = vmatpush1.msra.mxu1 %v7382_v3 }
 0x72b   :  { %2145 = vmatmul.mubr.f32.gmra.mxu0 %v7280_v25  ;;  %2258 = vmatmul.mubr.f32.gmra.mxu1 %v7280_v25  ;;  %v7326_v25 = vld [vmem:[#allocation11 + $0x3c8] sm:$0xff] }
 0x72c   :  { %2150 = vmatprep.mubr.f32.mxu0 %v9861_v2  ;;  %2263 = vmatprep.mubr.f32.mxu1 %v9861_v2 }
 0x72d   :  { %2312 = vmatprep.subr.mxu0 %v7326_v25  ;;  %2393 = vmatprep.subr.mxu1 %v7388_v15 }
 0x72e   :  { %2313 = vmatpush1.msra.mxu0 %v7332_v52  ;;  %2394 = vmatpush1.msra.mxu1 %v7392_v17 }
 0x72f   :  { %2314 = vmatprep.subr.mxu0 %v7338_v53  ;;  %2395 = vmatprep.subr.mxu1 %v7400_v19 }
 0x730   :  { %2315 = vmatpush1.msra.mxu0 %v7344_v55  ;;  %2396 = vmatpush1.msra.mxu1 %v7406_v22 }
 0x731   :  { %2316 = vmatprep.subr.mxu0 %v7350_v0  ;;  %2397 = vmatprep.subr.mxu1 %v7412_v24 }
 0x732   :  { %2317 = vmatpush1.msra.mxu0 %v7356_v4  ;;  %2398 = vmatpush1.msra.mxu1 %v7418_v29 }
 0x733   :  { %2318 = vmatprep.subr.mxu0 %v7362_v38  ;;  %2399 = vmatprep.subr.mxu1 %v7424_v31 }
 0x734   :  { %2319 = vmatpush1.msra.mxu0 %v7368_v1  ;;  %2400 = vmatpush1.msra.mxu1 %v7430_v33 }
 0x735   :  { %2320 = vmatprep.subr.mxu0 %v7374_v11  ;;  %2401 = vmatprep.subr.mxu1 %v7436_v35 }
 0x736   :  { %2321 = vmatpush1.msra.mxu0 %v7380_v20  ;;  %2402 = vmatpush1.msra.mxu1 %v7442_v37 }
 0x737   :  { %2322 = vmatprep.subr.mxu0 %v7384_v60  ;;  %2403 = vmatprep.subr.mxu1 %v7448_v40 }
 0x738   :  { %2323 = vmatpush1.msra.mxu0 %v7390_v16  ;;  %2404 = vmatpush1.msra.mxu1 %v7454_v42 }
 0x739   :  { %2324 = vmatprep.subr.mxu0 %v7398_v18  ;;  %2405 = vmatprep.subr.mxu1 %v7460_v27 }
 0x73a   :  { %2325 = vmatpush1.msra.mxu0 %v7404_v21  ;;  %2406 = vmatpush1.msra.mxu1 %v7466_v43  ;;  %v9896_v43 = vld [vmem:[#allocation67_spill] sm:$0xff] }
 0x73b   :  { %2326 = vmatprep.subr.mxu0 %v7410_v23  ;;  %2407 = vmatprep.subr.mxu1 %v7472_v49 }
 0x73c   :  { %2327 = vmatpush1.msra.mxu0 %v7416_v26  ;;  %2408 = vmatpush1.msra.mxu1 %v7478_v9  ;;  %v7500_v9 = vld [vmem:[#allocation11 + $0x200] sm:$0xff] }
 0x73d   :  { %2328 = vmatprep.subr.mxu0 %v7422_v30  ;;  %2409 = vmatprep.subr.mxu1 %v7484_v13  ;;  %9892 = vst [vmem:[#allocation21_spill] sm:$0xff] %v7500_v9 }
 0x73e   :  { %2329 = vmatpush1.msra.mxu0 %v7428_v32  ;;  %2410 = vmatpush1.msra.mxu1 %v7490_v7 }
 0x73f   :  { %2330 = vmatprep.subr.mxu0 %v7434_v34  ;;  %2411 = vmatprep.subr.mxu1 %v7496_v6 }
 0x740   :  { %2331 = vmatpush1.msra.mxu0 %v7440_v36 }
 0x741   :  { %2332 = vmatprep.subr.mxu0 %v7446_v39 }
 0x742   :  { %2333 = vmatpush1.msra.mxu0 %v7452_v41 }
 0x743   :  { %2334 = vmatprep.subr.mxu0 %v7458_v5 }
 0x744   :  { %2335 = vmatpush1.msra.mxu0 %v7464_v28 }
 0x745   :  { %2336 = vmatprep.subr.mxu0 %v7470_v14  ;;  %v9895_v14 = vld [vmem:[#allocation68_spill] sm:$0xff] }
 0x746   :  { %2337 = vmatpush1.msra.mxu0 %v7476_v50 }
 0x747   :  { %2338 = vmatprep.subr.mxu0 %v7482_v12  ;;  %v7502_v12 = vld [vmem:[#allocation11 + $0x210] sm:$0xff] }
 0x748   :  { %2339 = vmatpush1.msra.mxu0 %v7488_v10  ;;  %9893 = vst [vmem:[#allocation22_spill] sm:$0xff] %v7502_v12  ;;  %2412 = vmatpush1.msra.mxu1 %v7502_v12  ;;  %v9894_v10 = vld [vmem:[#allocation66_spill] sm:$0xff]  ;;  %v9897_v12 = vld [vmem:[#allocation69_spill] sm:$0xff] }
 0x749   :  { %2340 = vmatprep.subr.mxu0 %v7494_v51  ;;  %2554 = vmatprep.subr.mxu1 %v7316_v46 }
 0x74a   :  { %2341 = vmatpush1.msra.mxu0 %v7500_v9 }
 0x74b   :  { %2483 = vmatprep.subr.mxu0 %v7314_v45 }
 0x7b2   :  { %v1782_v7 = vpop.f32.mrf.mxu0  ;;  %v1853_v50 = vpop.f32.mrf.mxu1 }
 0x7b3   :  { %v1858_v13 = vadd.f32 %v1782_v7, %v9894_v10  ;;  %v1860_v28 = vadd.f32 %v1853_v50, %v9896_v43 }
 0x7b4   :  { %v1784_v49 = vpop.f32.mrf.mxu0  ;;  %v1855_v9 = vpop.f32.mrf.mxu1 }
 0x7b5   :  { %v1862_v51 = vmul.f32 0.5, %v1858_v13  ;;  %v1859_v6 = vadd.f32 %v1784_v49, %v9895_v14  ;;  %v1861_v5 = vadd.f32 %v1855_v9, %v9897_v12  ;;  %v9906_v9 = vld [vmem:[#allocation55_spill] sm:$0xff]  ;;  %v9907_v12 = vld [vmem:[#allocation57_spill] sm:$0xff] }
 0x7b7   :  { %5763 = vtanh.f32 %v1862_v51  ;;  %v1866_v27 = vmul.f32 0.5, %v1859_v6  ;;  %v1871_v45 = vmul.f32 0.5, %v1861_v5  ;;  %v9905_v5 = vld [vmem:[#allocation56_spill] sm:$0xff] }
 0x7b8   :  { %v9908_v6 = vld [vmem:[#allocation44_spill] sm:$0xff] }
 0x7b9   :  { %5765 = vtanh.f32 %v1866_v27 }
 0x7ba   :  { %5767 = vtanh.f32 %v1860_v28 }
 0x7bb   :  { %5769 = vtanh.f32 %v1871_v45  ;;  %v9899_v45 = vld [vmem:[#allocation49_spill] sm:$0xff] }
 0x7c4   :  { %v5764_v42 = vpop.eup %5763 }
 0x7c5   :  { %v1864_v46 = vadd.f32 1.0, %v5764_v42  ;;  %v9904_v42 = vld [vmem:[#allocation54_spill] sm:$0xff] }
 0x7c6   :  { %v5766_v41 = vpop.eup %5765 }
 0x7c7   :  { %v1865_v40 = vmul.f32 0.5, %v1864_v46  ;;  %v1868_v10 = vadd.f32 1.0, %v5766_v41  ;;  %v5768_v7 = vpop.eup %5767  ;;  %v9900_v46 = vld [vmem:[#allocation50_spill] sm:$0xff]  ;;  %v9903_v41 = vld [vmem:[#allocation53_spill] sm:$0xff] }
 0x7c8   :  { %v5770_v43 = vpop.eup %5769 }
 0x7c9   :  { %v1869_v13 = vmul.f32 0.5, %v1868_v10  ;;  %v1876_v39 = vmul.f32 %v5768_v7, %v1865_v40  ;;  %v1873_v27 = vadd.f32 1.0, %v5770_v43  ;;  %v9902_v40 = vld [vmem:[#allocation51_spill] sm:$0xff]  ;;  %v9910_v7 = vld [vmem:[#allocation58_spill] sm:$0xff] }
 0x7ca   :  { %v9909_v10 = vld [vmem:[#allocation43_spill] sm:$0xff] }
 0x7cb   :  { %v1875_v14 = vmul.f32 %v1869_v13, %v7277_v8  ;;  %v1874_v28 = vmul.f32 0.5, %v1873_v27  ;;  %v9898_v8 = vld [vmem:[#allocation47_spill] sm:$0xff]  ;;  %v9911_v13 = vld [vmem:[#allocation60_spill] sm:$0xff] }
 0x7cc   :  { %v9914_v43 = vld [vmem:[#allocation19_spill] sm:$0xff]  ;;  %v9915_v27 = vld [vmem:[#allocation20_spill] sm:$0xff] }
 0x7cd   :  { %v1877_v49 = vadd.f32 %v1876_v39, %v1875_v14  ;;  %v9901_v39 = vld [vmem:[#allocation52_spill] sm:$0xff]  ;;  %v9912_v14 = vld [vmem:[#allocation59_spill] sm:$0xff] }
 0x7cf   :  { %5771 = vtanh.f32 %v1877_v49  ;;  %v9913_v49 = vld [vmem:[#allocation61_spill] sm:$0xff] }
 0x7dc   :  { %v5772_v50 = vpop.eup %5771 }
 0x7dd   :  { %v1879_v51 = vmul.f32 %v5772_v50, %v1874_v28  ;;  %v9916_v28 = vld [vmem:[#allocation21_spill] sm:$0xff]  ;;  %v9917_v50 = vld [vmem:[#allocation22_spill] sm:$0xff] }
 0x7df   :  { %2151 = vmatmul.mubr.f32.gmra.mxu0 %v1879_v51  ;;  %2264 = vmatmul.mubr.f32.gmra.mxu1 %v1879_v51  ;;  %v9918_v51 = vld [vmem:[#allocation17_spill] sm:$0xff] }
 0x7e0   :  { %2374 = vmatprep.mubr.f32.mxu0 %v9861_v2  ;;  %2445 = vmatprep.mubr.f32.mxu1 %v9861_v2 }
 0x7e3   :  { %2375 = vmatmul.mubr.f32.vlgmr.msra.gmra.mxu0 %v9861_v2  ;;  %2446 = vmatmul.mubr.f32.vlgmr.msra.gmra.mxu1 %v9861_v2 }
 0x7e4   :  { %2484 = vmatpush1.msra.mxu0 %v7320_v44  ;;  %2555 = vmatpush1.msra.mxu1 %v7322_v56 }
 0x7e5   :  { %2485 = vmatprep.subr.mxu0 %v7326_v25  ;;  %2556 = vmatprep.subr.mxu1 %v7328_v48 }
 0x7e6   :  { %2486 = vmatpush1.msra.mxu0 %v7332_v52  ;;  %2557 = vmatpush1.msra.mxu1 %v7334_v59 }
 0x7e7   :  { %2487 = vmatprep.subr.mxu0 %v7338_v53  ;;  %2558 = vmatprep.subr.mxu1 %v7340_v47 }
 0x7e8   :  { %2488 = vmatpush1.msra.mxu0 %v7344_v55  ;;  %2559 = vmatpush1.msra.mxu1 %v7346_v58 }
 0x7e9   :  { %2489 = vmatprep.subr.mxu0 %v7350_v0  ;;  %2560 = vmatprep.subr.mxu1 %v7352_v61 }
 0x7ea   :  { %2490 = vmatpush1.msra.mxu0 %v7356_v4  ;;  %2561 = vmatpush1.msra.mxu1 %v7358_v62 }
 0x7eb   :  { %2491 = vmatprep.subr.mxu0 %v7362_v38  ;;  %2562 = vmatprep.subr.mxu1 %v7364_v54 }
 0x7ec   :  { %2492 = vmatpush1.msra.mxu0 %v7368_v1  ;;  %2563 = vmatpush1.msra.mxu1 %v7370_v63 }
 0x7ed   :  { %2493 = vmatprep.subr.mxu0 %v7374_v11  ;;  %2564 = vmatprep.subr.mxu1 %v7376_v57 }
 0x7ee   :  { %2494 = vmatpush1.msra.mxu0 %v7380_v20  ;;  %2565 = vmatpush1.msra.mxu1 %v7382_v3 }
 0x7ef   :  { %2495 = vmatprep.subr.mxu0 %v7384_v60  ;;  %2566 = vmatprep.subr.mxu1 %v7388_v15 }
 0x7f0   :  { %2496 = vmatpush1.msra.mxu0 %v7390_v16  ;;  %2567 = vmatpush1.msra.mxu1 %v7392_v17 }
 0x7f1   :  { %2497 = vmatprep.subr.mxu0 %v7398_v18  ;;  %2568 = vmatprep.subr.mxu1 %v7400_v19 }
 0x7f2   :  { %2498 = vmatpush1.msra.mxu0 %v7404_v21  ;;  %2569 = vmatpush1.msra.mxu1 %v7406_v22 }
 0x7f3   :  { %2499 = vmatprep.subr.mxu0 %v7410_v23  ;;  %2570 = vmatprep.subr.mxu1 %v7412_v24 }
 0x7f4   :  { %2500 = vmatpush1.msra.mxu0 %v7416_v26  ;;  %2571 = vmatpush1.msra.mxu1 %v7418_v29 }
 0x7f5   :  { %2501 = vmatprep.subr.mxu0 %v7422_v30  ;;  %2572 = vmatprep.subr.mxu1 %v7424_v31 }
 0x7f6   :  { %2502 = vmatpush1.msra.mxu0 %v7428_v32  ;;  %2573 = vmatpush1.msra.mxu1 %v7430_v33 }
 0x7f7   :  { %2503 = vmatprep.subr.mxu0 %v7434_v34  ;;  %2574 = vmatprep.subr.mxu1 %v7436_v35 }
 0x7f8   :  { %2504 = vmatpush1.msra.mxu0 %v7440_v36  ;;  %2575 = vmatpush1.msra.mxu1 %v7442_v37 }
 0x7f9   :  { %2505 = vmatprep.subr.mxu0 %v9898_v8  ;;  %2576 = vmatprep.subr.mxu1 %v9899_v45 }
 0x7fa   :  { %2506 = vmatpush1.msra.mxu0 %v9900_v46  ;;  %2577 = vmatpush1.msra.mxu1 %v9901_v39 }
 0x7fb   :  { %2507 = vmatprep.subr.mxu0 %v9902_v40  ;;  %2578 = vmatprep.subr.mxu1 %v9903_v41 }
 0x7fc   :  { %2508 = vmatpush1.msra.mxu0 %v9904_v42  ;;  %2579 = vmatpush1.msra.mxu1 %v9905_v5 }
 0x7fd   :  { %2509 = vmatprep.subr.mxu0 %v9906_v9  ;;  %2580 = vmatprep.subr.mxu1 %v9907_v12 }
 0x7fe   :  { %2510 = vmatpush1.msra.mxu0 %v9908_v6  ;;  %2581 = vmatpush1.msra.mxu1 %v9909_v10 }
 0x7ff   :  { %2511 = vmatprep.subr.mxu0 %v9910_v7  ;;  %2582 = vmatprep.subr.mxu1 %v9911_v13  ;;  %v9919_v7 = vld [vmem:[#allocation46_spill] sm:$0xff]  ;;  %v2110_v13 = vpop.f32.mrf.mxu0 }
 0x800   :  { %2512 = vmatpush1.msra.mxu0 %v9912_v14  ;;  %2583 = vmatpush1.msra.mxu1 %v9913_v49  ;;  %v2223_v14 = vpop.f32.mrf.mxu1 }
 0x801   :  { %2513 = vmatprep.subr.mxu0 %v9914_v43  ;;  %2584 = vmatprep.subr.mxu1 %v9915_v27  ;;  %v2112_v10 = vpop.f32.mrf.mxu0 }
 0x802   :  { %2514 = vmatpush1.msra.mxu0 %v9916_v28  ;;  %2547 = vmatprep.mubr.f32.mxu0 %v9861_v2  ;;  %v2225_v49 = vpop.f32.mrf.mxu1 }
 0x803   :  { %2585 = vmatpush1.msra.mxu1 %v9917_v50  ;;  %2618 = vmatprep.mubr.f32.mxu1 %v9861_v2  ;;  %v7583_v6 = vpop.f32.mrf.mxu0 }
 0x804   :  { %2656 = vmatprep.subr.mxu0 %v9918_v51  ;;  %2727 = vmatprep.subr.mxu1 %v9919_v7  ;;  %9920 = vst [vmem:[#allocation23_spill] sm:$0xff] %v7583_v6  ;;  %v7585_v43 = vpop.f32.mrf.mxu1 }
 0x805   :  { %9921 = vst [vmem:[#allocation24_spill] sm:$0xff] %v7585_v43  ;;  %v7587_v27 = vpop.f32.mrf.mxu0 }
 0x806   :  { %9922 = vst [vmem:[#allocation25_spill] sm:$0xff] %v7587_v27  ;;  %v7589_v28 = vpop.f32.mrf.mxu1 }
 0x807   :  { %9923 = vst [vmem:[#allocation26_spill] sm:$0xff] %v7589_v28  ;;  %v7591_v12 = vpop.f32.mrf.mxu0 }
 0x808   :  { %9924 = vst [vmem:[#allocation27_spill] sm:$0xff] %v7591_v12  ;;  %v7593_v50 = vpop.f32.mrf.mxu1 }
 0x809   :  { %9925 = vst [vmem:[#allocation28_spill] sm:$0xff] %v7593_v50  ;;  %v7595_v2 = vpop.f32.mrf.mxu0 }
 0x80a   :  { %9926 = vst [vmem:[#allocation29_spill] sm:$0xff] %v7595_v2  ;;  %v7597_v51 = vpop.f32.mrf.mxu1 }
 0x80b   :  { %9927 = vst [vmem:[#allocation30_spill] sm:$0xff] %v7597_v51  ;;  %v7599_v7 = vpop.f32.mrf.mxu0 }
 0x80c   :  { %9928 = vst [vmem:[#allocation31_spill] sm:$0xff] %v7599_v7  ;;  %v7601_v9 = vpop.f32.mrf.mxu1 }
 0x80d   :  { %9929 = vst [vmem:[#allocation32_spill] sm:$0xff] %v7601_v9  ;;  %v7603_v5 = vpop.f32.mrf.mxu0 }
 0x80e   :  { %9930 = vst [vmem:[#allocation33_spill] sm:$0xff] %v7603_v5  ;;  %v7605_v6 = vpop.f32.mrf.mxu1 }
 0x80f   :  { %9931 = vst [vmem:[#allocation34_spill] sm:$0xff] %v7605_v6  ;;  %v7607_v43 = vpop.f32.mrf.mxu0 }
 0x810   :  { %9932 = vst [vmem:[#allocation35_spill] sm:$0xff] %v7607_v43  ;;  %v7609_v27 = vpop.f32.mrf.mxu1 }
 0x811   :  { %9933 = vst [vmem:[#allocation36_spill] sm:$0xff] %v7609_v27  ;;  %v7611_v28 = vpop.f32.mrf.mxu0  ;;  %v5628_v27 = vld [vmem:[%s9342_s4 + $0x4] sm:$0xf] }
 0x812   :  { %9934 = vst [vmem:[#allocation37_spill] sm:$0xff] %v7611_v28  ;;  %v7613_v12 = vpop.f32.mrf.mxu1 }
 0x813   :  { %9935 = vst [vmem:[#allocation62_spill] sm:$0xff] %v7613_v12  ;;  %v7615_v50 = vpop.f32.mrf.mxu0  ;;  %v9944_v12 = vld [vmem:[#allocation38_spill] sm:$0xff] }
 0x814   :  { %9936 = vst [vmem:[#allocation64_spill] sm:$0xff] %v7615_v50  ;;  %v7617_v2 = vpop.f32.mrf.mxu1  ;;  %v7635_v50 = vrot.slane %v5628_v27, %v9944_v12 }
 0x815   :  { %9937 = vst [vmem:[#allocation63_spill] sm:$0xff] %v7617_v2  ;;  %v7619_v51 = vpop.f32.mrf.mxu0 }
 0x816   :  { %9938 = vst [vmem:[#allocation65_spill] sm:$0xff] %v7619_v51  ;;  %v7621_v7 = vpop.f32.mrf.mxu1  ;;  %9945 = vst [vmem:[#allocation66_spill] sm:$0xff] %v7635_v50 }
 0x817   :  { %9939 = vst [vmem:[#allocation70_spill] sm:$0xff] %v7621_v7  ;;  %v7623_v9 = vpop.f32.mrf.mxu0  ;;  %v9948_v7 = vld [vmem:[#allocation40_spill] sm:$0xff] }
 0x818   :  { %9940 = vst [vmem:[#allocation18_spill] sm:$0xff] %v7623_v9  ;;  %v7625_v5 = vpop.f32.mrf.mxu1  ;;  %v7642_v6 = vrot.slane %v5628_v27, %v9948_v7 }
 0x819   :  { %9941 = vst [vmem:[#allocation42_spill] sm:$0xff] %v7625_v5  ;;  %v7630_v43 = vpop.f32.mrf.mxu0  ;;  %v2111_v5 = vadd.f32 %v2110_v13, %v7635_v50 }
 0x81a   :  { %9942 = vst [vmem:[#allocation45_spill] sm:$0xff] %v7630_v43  ;;  %v7632_v28 = vpop.f32.mrf.mxu1  ;;  %9949 = vst [vmem:[#allocation69_spill] sm:$0xff] %v7642_v6  ;;  %v9952_v43 = vld [vmem:[#allocation39_spill] sm:$0xff]  ;;  %v2113_v12 = vadd.f32 %v2112_v10, %v7642_v6 }
 0x81b   :  { %9943 = vst [vmem:[#allocation16_spill] sm:$0xff] %v7632_v28  ;;  %v7650_v40 = vrot.slane %v5628_v27, %v9952_v43 }
 0x81d   :  { %9953 = vst [vmem:[#allocation73_spill] sm:$0xff] %v7650_v40  ;;  %v2224_v7 = vadd.f32 %v2223_v14, %v7650_v40 }
 0x89f   :  { %v7637_v2 = vpop.f32.mrf.mxu0  ;;  %v7639_v51 = vpop.f32.mrf.mxu1 }
 0x8a0   :  { %9946 = vst [vmem:[#allocation68_spill] sm:$0xff] %v7637_v2  ;;  %9947 = vst [vmem:[#allocation67_spill] sm:$0xff] %v7639_v51 }
 0x8a1   :  { %v7644_v9 = vpop.f32.mrf.mxu0  ;;  %v7647_v42 = vpop.f32.mrf.mxu1 }
 0x8a2   :  { %9950 = vst [vmem:[#allocation71_spill] sm:$0xff] %v7644_v9  ;;  %9951 = vst [vmem:[#allocation72_spill] sm:$0xff] %v7647_v42  ;;  %v9954_v9 = vld [vmem:[#allocation41_spill] sm:$0xff] }
 0x8a3   :  { %v2376_v41 = vpop.f32.mrf.mxu0  ;;  %v2447_v51 = vpop.f32.mrf.mxu1  ;;  %v7655_v8 = vrot.slane %v5628_v27, %v9954_v9  ;;  %v9973_v9 = vld [vmem:[#allocation20_spill] sm:$0xff] }
 0x8a4   :  { %v2452_v28 = vadd.f32 %v2376_v41, %v2111_v5  ;;  %v2454_v13 = vadd.f32 %v2447_v51, %v2224_v7 }
 0x8a5   :  { %v2378_v39 = vpop.f32.mrf.mxu0  ;;  %v2449_v42 = vpop.f32.mrf.mxu1  ;;  %v2226_v43 = vadd.f32 %v2225_v49, %v7655_v8 }
 0x8a6   :  { %v2456_v2 = vmul.f32 0.5, %v2452_v28  ;;  %v2453_v46 = vadd.f32 %v2378_v39, %v2113_v12 }
 0x8a7   :  { %v2455_v50 = vadd.f32 %v2449_v42, %v2226_v43  ;;  %v9957_v43 = vld [vmem:[#allocation49_spill] sm:$0xff] }
 0x8a8   :  { %5773 = vtanh.f32 %v2456_v2  ;;  %v2460_v45 = vmul.f32 0.5, %v2453_v46 }
 0x8a9   :  { %v2465_v10 = vmul.f32 0.5, %v2455_v50  ;;  %v9958_v50 = vld [vmem:[#allocation50_spill] sm:$0xff] }
 0x8aa   :  { %5775 = vtanh.f32 %v2460_v45 }
 0x8ab   :  { %5777 = vtanh.f32 %v2454_v13  ;;  %v9959_v13 = vld [vmem:[#allocation52_spill] sm:$0xff] }
 0x8ac   :  { %5779 = vtanh.f32 %v2465_v10  ;;  %v9960_v10 = vld [vmem:[#allocation51_spill] sm:$0xff] }
 0x8b5   :  { %v5774_v41 = vpop.eup %5773 }
 0x8b6   :  { %v2458_v5 = vadd.f32 1.0, %v5774_v41  ;;  %v9961_v41 = vld [vmem:[#allocation53_spill] sm:$0xff] }
 0x8b7   :  { %v5776_v28 = vpop.eup %5775 }
 0x8b8   :  { %v2459_v39 = vmul.f32 0.5, %v2458_v5  ;;  %v2462_v12 = vadd.f32 1.0, %v5776_v28  ;;  %v5778_v2 = vpop.eup %5777  ;;  %v9962_v5 = vld [vmem:[#allocation54_spill] sm:$0xff]  ;;  %v9963_v28 = vld [vmem:[#allocation56_spill] sm:$0xff] }
 0x8b9   :  { %v5780_v45 = vpop.eup %5779 }
 0x8ba   :  { %v2463_v14 = vmul.f32 0.5, %v2462_v12  ;;  %v2470_v40 = vmul.f32 %v5778_v2, %v2459_v39  ;;  %v2467_v7 = vadd.f32 1.0, %v5780_v45  ;;  %v9964_v39 = vld [vmem:[#allocation55_spill] sm:$0xff]  ;;  %v9965_v12 = vld [vmem:[#allocation57_spill] sm:$0xff]  ;;  %v9969_v45 = vld [vmem:[#allocation60_spill] sm:$0xff] }
 0x8bb   :  { %v9967_v2 = vld [vmem:[#allocation43_spill] sm:$0xff] }
 0x8bc   :  { %v2469_v46 = vmul.f32 0.0, %v2463_v14  ;;  %v2468_v49 = vmul.f32 0.5, %v2467_v7  ;;  %v9966_v14 = vld [vmem:[#allocation44_spill] sm:$0xff]  ;;  %v9970_v7 = vld [vmem:[#allocation59_spill] sm:$0xff] }
 0x8be   :  { %v7658_v27 = vadd.f32 %v2470_v40, %v2469_v46  ;;  %v9956_v40 = vld [vmem:[#allocation47_spill] sm:$0xff]  ;;  %v9968_v46 = vld [vmem:[#allocation58_spill] sm:$0xff] }
 0x8c0   :  { %5781 = vtanh.f32 %v7658_v27 }
 0x8cd   :  { %v5782_v51 = vpop.eup %5781 }
 0x8ce   :  { %v7661_v42 = vmul.f32 %v5782_v51, %v2468_v49  ;;  %v9971_v49 = vld [vmem:[#allocation61_spill] sm:$0xff]  ;;  %v9972_v51 = vld [vmem:[#allocation19_spill] sm:$0xff] }
 0x8d0   :  { %9955 = vst [vmem:[#allocation74_spill] sm:$0xff] %v7661_v42  ;;  %2548 = vmatmul.mubr.f32.vlgmr.msra.gmra.mxu0 %v7661_v42  ;;  %2619 = vmatmul.mubr.f32.vlgmr.msra.gmra.mxu1 %v7661_v42  ;;  %v9974_v42 = vld [vmem:[#allocation21_spill] sm:$0xff] }
 0x8d1   :  { %2657 = vmatpush1.msra.mxu0 %v7320_v44  ;;  %2728 = vmatpush1.msra.mxu1 %v7322_v56 }
 0x8d2   :  { %2658 = vmatprep.subr.mxu0 %v7326_v25  ;;  %2729 = vmatprep.subr.mxu1 %v7328_v48 }
 0x8d3   :  { %2659 = vmatpush1.msra.mxu0 %v7332_v52  ;;  %2730 = vmatpush1.msra.mxu1 %v7334_v59 }
 0x8d4   :  { %2660 = vmatprep.subr.mxu0 %v7338_v53  ;;  %2731 = vmatprep.subr.mxu1 %v7340_v47 }
 0x8d5   :  { %2661 = vmatpush1.msra.mxu0 %v7344_v55  ;;  %2732 = vmatpush1.msra.mxu1 %v7346_v58 }
 0x8d6   :  { %2662 = vmatprep.subr.mxu0 %v7350_v0  ;;  %2733 = vmatprep.subr.mxu1 %v7352_v61 }
 0x8d7   :  { %2663 = vmatpush1.msra.mxu0 %v7356_v4  ;;  %2734 = vmatpush1.msra.mxu1 %v7358_v62 }
 0x8d8   :  { %2664 = vmatprep.subr.mxu0 %v7362_v38  ;;  %2735 = vmatprep.subr.mxu1 %v7364_v54 }
 0x8d9   :  { %2665 = vmatpush1.msra.mxu0 %v7368_v1  ;;  %2736 = vmatpush1.msra.mxu1 %v7370_v63 }
 0x8da   :  { %2666 = vmatprep.subr.mxu0 %v7374_v11  ;;  %2737 = vmatprep.subr.mxu1 %v7376_v57 }
 0x8db   :  { %2667 = vmatpush1.msra.mxu0 %v7380_v20  ;;  %2738 = vmatpush1.msra.mxu1 %v7382_v3 }
 0x8dc   :  { %2668 = vmatprep.subr.mxu0 %v7384_v60  ;;  %2739 = vmatprep.subr.mxu1 %v7388_v15 }
 0x8dd   :  { %2669 = vmatpush1.msra.mxu0 %v7390_v16  ;;  %2740 = vmatpush1.msra.mxu1 %v7392_v17 }
 0x8de   :  { %2670 = vmatprep.subr.mxu0 %v7398_v18  ;;  %2741 = vmatprep.subr.mxu1 %v7400_v19 }
 0x8df   :  { %2671 = vmatpush1.msra.mxu0 %v7404_v21  ;;  %2742 = vmatpush1.msra.mxu1 %v7406_v22 }
 0x8e0   :  { %2672 = vmatprep.subr.mxu0 %v7410_v23  ;;  %2743 = vmatprep.subr.mxu1 %v7412_v24 }
 0x8e1   :  { %2673 = vmatpush1.msra.mxu0 %v7416_v26  ;;  %2744 = vmatpush1.msra.mxu1 %v7418_v29 }
 0x8e2   :  { %2674 = vmatprep.subr.mxu0 %v7422_v30  ;;  %2745 = vmatprep.subr.mxu1 %v7424_v31 }
 0x8e3   :  { %2675 = vmatpush1.msra.mxu0 %v7428_v32  ;;  %2746 = vmatpush1.msra.mxu1 %v7430_v33 }
 0x8e4   :  { %2676 = vmatprep.subr.mxu0 %v7434_v34  ;;  %2747 = vmatprep.subr.mxu1 %v7436_v35 }
 0x8e5   :  { %2677 = vmatpush1.msra.mxu0 %v7440_v36  ;;  %2748 = vmatpush1.msra.mxu1 %v7442_v37 }
 0x8e6   :  { %2678 = vmatprep.subr.mxu0 %v9956_v40  ;;  %2749 = vmatprep.subr.mxu1 %v9957_v43 }
 0x8e7   :  { %2679 = vmatpush1.msra.mxu0 %v9958_v50  ;;  %2750 = vmatpush1.msra.mxu1 %v9959_v13 }
 0x8e8   :  { %2680 = vmatprep.subr.mxu0 %v9960_v10  ;;  %2751 = vmatprep.subr.mxu1 %v9961_v41  ;;  %v9982_v41 = vld [vmem:[#allocation73_spill] sm:$0xff]  ;;  %v9983_v10 = vld [vmem:[#allocation24_spill] sm:$0xff] }
 0x8e9   :  { %2681 = vmatpush1.msra.mxu0 %v9962_v5  ;;  %2752 = vmatpush1.msra.mxu1 %v9963_v28  ;;  %v2230_v13 = vadd.f32 %v9983_v10, %v9982_v41 }
 0x8ea   :  { %2682 = vmatprep.subr.mxu0 %v9964_v39  ;;  %2753 = vmatprep.subr.mxu1 %v9965_v12  ;;  %v9975_v39 = vmov 0.0   ;;  %v9976_v12 = vld [vmem:[#allocation22_spill] sm:$0xff] }
 0x8eb   :  { %2683 = vmatpush1.msra.mxu0 %v9966_v14  ;;  %2754 = vmatpush1.msra.mxu1 %v9967_v2  ;;  %v9977_v2 = vld [vmem:[#allocation17_spill] sm:$0xff] }
 0x8ec   :  { %2684 = vmatprep.subr.mxu0 %v9968_v46  ;;  %2755 = vmatprep.subr.mxu1 %v9969_v45  ;;  %v9978_v46 = vld [vmem:[#allocation46_spill] sm:$0xff] }
 0x8ed   :  { %2685 = vmatpush1.msra.mxu0 %v9970_v7  ;;  %2756 = vmatpush1.msra.mxu1 %v9971_v49  ;;  %v9979_v45 = vld [vmem:[#allocation66_spill] sm:$0xff]  ;;  %v9980_v7 = vld [vmem:[#allocation23_spill] sm:$0xff] }
 0x8ee   :  { %2686 = vmatprep.subr.mxu0 %v9972_v51  ;;  %2757 = vmatprep.subr.mxu1 %v9973_v9  ;;  %v2117_v14 = vadd.f32 %v9980_v7, %v9979_v45  ;;  %v9981_v51 = vld [vmem:[#allocation25_spill] sm:$0xff]  ;;  %v9984_v7 = vld [vmem:[#allocation26_spill] sm:$0xff] }
 0x8ef   :  { %2687 = vmatpush1.msra.mxu0 %v9974_v42  ;;  %2720 = vmatprep.mubr.f32.mxu0 %v9975_v39  ;;  %v2119_v28 = vadd.f32 %v9981_v51, %v7642_v6  ;;  %v2232_v45 = vadd.f32 %v9984_v7, %v7655_v8  ;;  %v9993_v7 = vld [vmem:[#allocation54_spill] sm:$0xff] }
 0x8f0   :  { %2758 = vmatpush1.msra.mxu1 %v9976_v12  ;;  %2791 = vmatprep.mubr.f32.mxu1 %v9975_v39 }
 0x8f1   :  { %2829 = vmatprep.subr.mxu0 %v9977_v2  ;;  %2900 = vmatprep.subr.mxu1 %v9978_v46 }
 0x990   :  { %v2549_v49 = vpop.f32.mrf.mxu0  ;;  %v2620_v5 = vpop.f32.mrf.mxu1 }
 0x991   :  { %v2625_v9 = vadd.f32 %v2549_v49, %v2117_v14  ;;  %v2627_v39 = vadd.f32 %v2620_v5, %v2230_v13 }
 0x992   :  { %v2551_v42 = vpop.f32.mrf.mxu0  ;;  %v2622_v46 = vpop.f32.mrf.mxu1 }
 0x993   :  { %v2629_v12 = vmul.f32 0.5, %v2625_v9  ;;  %v2626_v50 = vadd.f32 %v2551_v42, %v2119_v28  ;;  %v2628_v43 = vadd.f32 %v2622_v46, %v2232_v45  ;;  %v9991_v46 = vld [vmem:[#allocation51_spill] sm:$0xff]  ;;  %v9992_v45 = vld [vmem:[#allocation53_spill] sm:$0xff] }
 0x995   :  { %5783 = vtanh.f32 %v2629_v12  ;;  %v2633_v2 = vmul.f32 0.5, %v2626_v50  ;;  %v2638_v40 = vmul.f32 0.5, %v2628_v43 }
 0x997   :  { %5785 = vtanh.f32 %v2633_v2  ;;  %v9990_v2 = vld [vmem:[#allocation52_spill] sm:$0xff] }
 0x998   :  { %5787 = vtanh.f32 %v2627_v39 }
 0x999   :  { %5789 = vtanh.f32 %v2638_v40  ;;  %v9989_v40 = vld [vmem:[#allocation50_spill] sm:$0xff] }
 0x9a2   :  { %v5784_v51 = vpop.eup %5783 }
 0x9a3   :  { %v2631_v14 = vadd.f32 1.0, %v5784_v51  ;;  %v9994_v51 = vld [vmem:[#allocation56_spill] sm:$0xff] }
 0x9a4   :  { %v5786_v49 = vpop.eup %5785 }
 0x9a5   :  { %v2632_v6 = vmul.f32 0.5, %v2631_v14  ;;  %v2635_v37 = vadd.f32 1.0, %v5786_v49  ;;  %v5788_v10 = vpop.eup %5787  ;;  %v9995_v14 = vld [vmem:[#allocation55_spill] sm:$0xff]  ;;  %v9996_v49 = vld [vmem:[#allocation57_spill] sm:$0xff] }
 0x9a6   :  { %v5790_v5 = vpop.eup %5789 }
 0x9a7   :  { %v2636_v9 = vmul.f32 0.5, %v2635_v37  ;;  %v2643_v42 = vmul.f32 %v5788_v10, %v2632_v6  ;;  %v2640_v28 = vadd.f32 1.0, %v5790_v5  ;;  %v9986_v37 = vld [vmem:[#allocation48_spill] sm:$0xff]  ;;  %v9987_v6 = vld [vmem:[#allocation47_spill] sm:$0xff] }
 0x9a8   :  { %v9997_v10 = vld [vmem:[#allocation44_spill] sm:$0xff]  ;;  %v10001_v5 = vld [vmem:[#allocation59_spill] sm:$0xff] }
 0x9a9   :  { %v2642_v13 = vmul.f32 %v2636_v9, %v7658_v27  ;;  %v2641_v39 = vmul.f32 0.5, %v2640_v28  ;;  %v9988_v27 = vld [vmem:[#allocation49_spill] sm:$0xff]  ;;  %v9998_v9 = vld [vmem:[#allocation43_spill] sm:$0xff] }
 0x9aa   :  { %v10002_v28 = vld [vmem:[#allocation61_spill] sm:$0xff] }
 0x9ab   :  { %v7740_v50 = vadd.f32 %v2643_v42, %v2642_v13  ;;  %v9999_v42 = vld [vmem:[#allocation58_spill] sm:$0xff]  ;;  %v10000_v13 = vld [vmem:[#allocation60_spill] sm:$0xff] }
 0x9ad   :  { %5791 = vtanh.f32 %v7740_v50 }
 0x9ba   :  { %v5792_v12 = vpop.eup %5791 }
 0x9bb   :  { %v7743_v43 = vmul.f32 %v5792_v12, %v2641_v39  ;;  %v10003_v39 = vld [vmem:[#allocation19_spill] sm:$0xff]  ;;  %v10004_v12 = vld [vmem:[#allocation20_spill] sm:$0xff] }
 0x9bd   :  { %9985 = vst [vmem:[#allocation23_spill] sm:$0xff] %v7743_v43  ;;  %2721 = vmatmul.mubr.f32.vlgmr.msra.gmra.mxu0 %v7743_v43  ;;  %2792 = vmatmul.mubr.f32.vlgmr.msra.gmra.mxu1 %v7743_v43  ;;  %v10005_v43 = vld [vmem:[#allocation21_spill] sm:$0xff] }
 0x9be   :  { %2830 = vmatpush1.msra.mxu0 %v7320_v44  ;;  %2901 = vmatpush1.msra.mxu1 %v7322_v56 }
 0x9bf   :  { %2831 = vmatprep.subr.mxu0 %v7326_v25  ;;  %2902 = vmatprep.subr.mxu1 %v7328_v48 }
 0x9c0   :  { %2832 = vmatpush1.msra.mxu0 %v7332_v52  ;;  %2903 = vmatpush1.msra.mxu1 %v7334_v59 }
 0x9c1   :  { %2833 = vmatprep.subr.mxu0 %v7338_v53  ;;  %2904 = vmatprep.subr.mxu1 %v7340_v47 }
 0x9c2   :  { %2834 = vmatpush1.msra.mxu0 %v7344_v55  ;;  %2905 = vmatpush1.msra.mxu1 %v7346_v58 }
 0x9c3   :  { %2835 = vmatprep.subr.mxu0 %v7350_v0  ;;  %2906 = vmatprep.subr.mxu1 %v7352_v61 }
 0x9c4   :  { %2836 = vmatpush1.msra.mxu0 %v7356_v4  ;;  %2907 = vmatpush1.msra.mxu1 %v7358_v62 }
 0x9c5   :  { %2837 = vmatprep.subr.mxu0 %v7362_v38  ;;  %2908 = vmatprep.subr.mxu1 %v7364_v54 }
 0x9c6   :  { %2838 = vmatpush1.msra.mxu0 %v7368_v1  ;;  %2909 = vmatpush1.msra.mxu1 %v7370_v63 }
 0x9c7   :  { %2839 = vmatprep.subr.mxu0 %v7374_v11  ;;  %2910 = vmatprep.subr.mxu1 %v7376_v57 }
 0x9c8   :  { %2840 = vmatpush1.msra.mxu0 %v7380_v20  ;;  %2911 = vmatpush1.msra.mxu1 %v7382_v3 }
 0x9c9   :  { %2841 = vmatprep.subr.mxu0 %v7384_v60  ;;  %2912 = vmatprep.subr.mxu1 %v7388_v15 }
 0x9ca   :  { %2842 = vmatpush1.msra.mxu0 %v7390_v16  ;;  %2913 = vmatpush1.msra.mxu1 %v7392_v17 }
 0x9cb   :  { %2843 = vmatprep.subr.mxu0 %v7398_v18  ;;  %2914 = vmatprep.subr.mxu1 %v7400_v19 }
 0x9cc   :  { %2844 = vmatpush1.msra.mxu0 %v7404_v21  ;;  %2915 = vmatpush1.msra.mxu1 %v7406_v22 }
 0x9cd   :  { %2845 = vmatprep.subr.mxu0 %v7410_v23  ;;  %2916 = vmatprep.subr.mxu1 %v7412_v24 }
 0x9ce   :  { %2846 = vmatpush1.msra.mxu0 %v7416_v26  ;;  %2917 = vmatpush1.msra.mxu1 %v7418_v29 }
 0x9cf   :  { %2847 = vmatprep.subr.mxu0 %v7422_v30  ;;  %2918 = vmatprep.subr.mxu1 %v7424_v31 }
 0x9d0   :  { %2848 = vmatpush1.msra.mxu0 %v7428_v32  ;;  %2919 = vmatpush1.msra.mxu1 %v7430_v33 }
 0x9d1   :  { %2849 = vmatprep.subr.mxu0 %v7434_v34  ;;  %2920 = vmatprep.subr.mxu1 %v7436_v35 }
 0x9d2   :  { %2850 = vmatpush1.msra.mxu0 %v7440_v36  ;;  %2921 = vmatpush1.msra.mxu1 %v9986_v37 }
 0x9d3   :  { %2851 = vmatprep.subr.mxu0 %v9987_v6  ;;  %2922 = vmatprep.subr.mxu1 %v9988_v27 }
 0x9d4   :  { %2852 = vmatpush1.msra.mxu0 %v9989_v40  ;;  %2923 = vmatpush1.msra.mxu1 %v9990_v2 }
 0x9d5   :  { %2853 = vmatprep.subr.mxu0 %v9991_v46  ;;  %2924 = vmatprep.subr.mxu1 %v9992_v45  ;;  %v10014_v46 = vld [vmem:[#allocation28_spill] sm:$0xff] }
 0x9d6   :  { %2854 = vmatpush1.msra.mxu0 %v9993_v7  ;;  %2925 = vmatpush1.msra.mxu1 %v9994_v51  ;;  %v10012_v51 = vld [vmem:[#allocation69_spill] sm:$0xff]  ;;  %v2236_v2 = vadd.f32 %v10014_v46, %v9982_v41 }
 0x9d7   :  { %2855 = vmatprep.subr.mxu0 %v9995_v14  ;;  %2926 = vmatprep.subr.mxu1 %v9996_v49  ;;  %v10006_v14 = vmov 0.0   ;;  %v10007_v49 = vld [vmem:[#allocation22_spill] sm:$0xff] }
 0x9d8   :  { %2856 = vmatpush1.msra.mxu0 %v9997_v10  ;;  %2927 = vmatpush1.msra.mxu1 %v9998_v9  ;;  %v10008_v9 = vld [vmem:[#allocation17_spill] sm:$0xff] }
 0x9d9   :  { %2857 = vmatprep.subr.mxu0 %v9999_v42  ;;  %2928 = vmatprep.subr.mxu1 %v10000_v13  ;;  %v10009_v42 = vld [vmem:[#allocation46_spill] sm:$0xff] }
 0x9da   :  { %2858 = vmatpush1.msra.mxu0 %v10001_v5  ;;  %2929 = vmatpush1.msra.mxu1 %v10002_v28  ;;  %v10010_v13 = vld [vmem:[#allocation66_spill] sm:$0xff]  ;;  %v10011_v5 = vld [vmem:[#allocation27_spill] sm:$0xff] }
 0x9db   :  { %2859 = vmatprep.subr.mxu0 %v10003_v39  ;;  %2930 = vmatprep.subr.mxu1 %v10004_v12  ;;  %v2123_v10 = vadd.f32 %v10011_v5, %v10010_v13  ;;  %v10013_v39 = vld [vmem:[#allocation29_spill] sm:$0xff]  ;;  %v10015_v5 = vld [vmem:[#allocation30_spill] sm:$0xff] }
 0x9dc   :  { %2860 = vmatpush1.msra.mxu0 %v10005_v43  ;;  %2893 = vmatprep.mubr.f32.mxu0 %v10006_v14  ;;  %v2125_v7 = vadd.f32 %v10013_v39, %v10012_v51  ;;  %v2238_v13 = vadd.f32 %v10015_v5, %v7655_v8 }
 0x9dd   :  { %2931 = vmatpush1.msra.mxu1 %v10007_v49  ;;  %2964 = vmatprep.mubr.f32.mxu1 %v10006_v14 }
 0x9de   :  { %3002 = vmatprep.subr.mxu0 %v10008_v9  ;;  %3073 = vmatprep.subr.mxu1 %v10009_v42 }
 0xa7d   :  { %v2722_v28 = vpop.f32.mrf.mxu0  ;;  %v2793_v45 = vpop.f32.mrf.mxu1 }
 0xa7e   :  { %v2798_v12 = vadd.f32 %v2722_v28, %v2123_v10  ;;  %v2800_v14 = vadd.f32 %v2793_v45, %v2236_v2 }
 0xa7f   :  { %v2724_v43 = vpop.f32.mrf.mxu0  ;;  %v2795_v42 = vpop.f32.mrf.mxu1 }
 0xa80   :  { %v2802_v49 = vmul.f32 0.5, %v2798_v12  ;;  %v2799_v40 = vadd.f32 %v2724_v43, %v2125_v7  ;;  %v2801_v27 = vadd.f32 %v2795_v42, %v2238_v13 }
 0xa82   :  { %5793 = vtanh.f32 %v2802_v49  ;;  %v2806_v9 = vmul.f32 0.5, %v2799_v40  ;;  %v2811_v6 = vmul.f32 0.5, %v2801_v27 }
 0xa84   :  { %5795 = vtanh.f32 %v2806_v9 }
 0xa85   :  { %5797 = vtanh.f32 %v2800_v14 }
 0xa86   :  { %5799 = vtanh.f32 %v2811_v6 }
 0xa8f   :  { %v5794_v39 = vpop.eup %5793 }
 0xa90   :  { %v2804_v10 = vadd.f32 1.0, %v5794_v39 }
 0xa91   :  { %v5796_v28 = vpop.eup %5795 }
 0xa92   :  { %v2805_v51 = vmul.f32 0.5, %v2804_v10  ;;  %v2808_v37 = vadd.f32 1.0, %v5796_v28  ;;  %v5798_v46 = vpop.eup %5797 }
 0xa93   :  { %v5800_v45 = vpop.eup %5799 }
 0xa94   :  { %v2809_v12 = vmul.f32 0.5, %v2808_v37  ;;  %v2816_v43 = vmul.f32 %v5798_v46, %v2805_v51  ;;  %v2813_v7 = vadd.f32 1.0, %v5800_v45 }
 0xa96   :  { %v2815_v2 = vmul.f32 %v2809_v12, %v7740_v50  ;;  %v2814_v14 = vmul.f32 0.5, %v2813_v7  ;;  %v10046_v50 = vld [vmem:[#allocation34_spill] sm:$0xff] }
 0xa97   :  { %v2244_v37 = vadd.f32 %v10046_v50, %v7655_v8  ;;  %v8026_v50 = vld [vmem:[#allocation11 + $0x2d0] sm:$0xff] }
 0xa98   :  { %v7822_v40 = vadd.f32 %v2816_v43, %v2815_v2 }
 0xa9a   :  { %5801 = vtanh.f32 %v7822_v40 }
 0xaa7   :  { %v5802_v49 = vpop.eup %5801 }
 0xaa8   :  { %v7825_v27 = vmul.f32 %v5802_v49, %v2814_v14 }
 0xaaa   :  { %10016 = vst [vmem:[#allocation25_spill] sm:$0xff] %v7825_v27  ;;  %2894 = vmatmul.mubr.f32.vlgmr.msra.gmra.mxu0 %v7825_v27  ;;  %2965 = vmatmul.mubr.f32.vlgmr.msra.gmra.mxu1 %v7825_v27  ;;  %v8080_v27 = vld [vmem:[#allocation11 + $0x238] sm:$0xff] }
 0xaab   :  { %3003 = vmatpush1.msra.mxu0 %v7320_v44  ;;  %3074 = vmatpush1.msra.mxu1 %v7322_v56  ;;  %v10017_v44 = vld [vmem:[#allocation48_spill] sm:$0xff]  ;;  %v10018_v56 = vld [vmem:[#allocation47_spill] sm:$0xff] }
 0xaac   :  { %3004 = vmatprep.subr.mxu0 %v7326_v25  ;;  %3075 = vmatprep.subr.mxu1 %v7328_v48  ;;  %v10019_v25 = vld [vmem:[#allocation49_spill] sm:$0xff]  ;;  %v10020_v48 = vld [vmem:[#allocation50_spill] sm:$0xff] }
 0xaad   :  { %3005 = vmatpush1.msra.mxu0 %v7332_v52  ;;  %3076 = vmatpush1.msra.mxu1 %v7334_v59  ;;  %v10021_v52 = vld [vmem:[#allocation52_spill] sm:$0xff]  ;;  %v10022_v59 = vld [vmem:[#allocation51_spill] sm:$0xff] }
 0xaae   :  { %3006 = vmatprep.subr.mxu0 %v7338_v53  ;;  %3077 = vmatprep.subr.mxu1 %v7340_v47  ;;  %v10023_v53 = vld [vmem:[#allocation53_spill] sm:$0xff]  ;;  %v10024_v47 = vld [vmem:[#allocation54_spill] sm:$0xff] }
 0xaaf   :  { %3007 = vmatpush1.msra.mxu0 %v7344_v55  ;;  %3078 = vmatpush1.msra.mxu1 %v7346_v58  ;;  %v10025_v55 = vld [vmem:[#allocation56_spill] sm:$0xff]  ;;  %v10026_v58 = vld [vmem:[#allocation55_spill] sm:$0xff] }
 0xab0   :  { %3008 = vmatprep.subr.mxu0 %v7350_v0  ;;  %3079 = vmatprep.subr.mxu1 %v7352_v61  ;;  %v10027_v0 = vld [vmem:[#allocation57_spill] sm:$0xff]  ;;  %v10028_v61 = vld [vmem:[#allocation44_spill] sm:$0xff]  ;;  %10062 = vst [vmem:[#allocation56_spill] sm:$0xff] %v8080_v27 }
 0xab1   :  { %3009 = vmatpush1.msra.mxu0 %v7356_v4  ;;  %3080 = vmatpush1.msra.mxu1 %v7358_v62  ;;  %v10029_v4 = vld [vmem:[#allocation43_spill] sm:$0xff]  ;;  %v10030_v62 = vld [vmem:[#allocation58_spill] sm:$0xff] }
 0xab2   :  { %3010 = vmatprep.subr.mxu0 %v7362_v38  ;;  %3081 = vmatprep.subr.mxu1 %v7364_v54  ;;  %v10031_v38 = vld [vmem:[#allocation60_spill] sm:$0xff]  ;;  %v10032_v54 = vld [vmem:[#allocation59_spill] sm:$0xff] }
 0xab3   :  { %3011 = vmatpush1.msra.mxu0 %v7368_v1  ;;  %3082 = vmatpush1.msra.mxu1 %v7370_v63  ;;  %v10033_v1 = vld [vmem:[#allocation61_spill] sm:$0xff]  ;;  %v10034_v63 = vld [vmem:[#allocation19_spill] sm:$0xff] }
 0xab4   :  { %3012 = vmatprep.subr.mxu0 %v7374_v11  ;;  %3083 = vmatprep.subr.mxu1 %v7376_v57  ;;  %v10035_v11 = vld [vmem:[#allocation20_spill] sm:$0xff]  ;;  %v10036_v57 = vld [vmem:[#allocation21_spill] sm:$0xff] }
 0xab5   :  { %3013 = vmatpush1.msra.mxu0 %v7380_v20  ;;  %3084 = vmatpush1.msra.mxu1 %v7382_v3  ;;  %v10037_v20 = vmov 0.0   ;;  %v10038_v3 = vld [vmem:[#allocation22_spill] sm:$0xff] }
 0xab6   :  { %3014 = vmatprep.subr.mxu0 %v7384_v60  ;;  %3085 = vmatprep.subr.mxu1 %v7388_v15  ;;  %v7893_v60 = vld [vmem:[#allocation11 + $0x3e8] sm:$0xff]  ;;  %v7896_v15 = vld [vmem:[#allocation11 + $0x3f8] sm:$0xff] }
 0xab7   :  { %3015 = vmatpush1.msra.mxu0 %v7390_v16  ;;  %3086 = vmatpush1.msra.mxu1 %v7392_v17  ;;  %10039 = vst [vmem:[#allocation73_spill] sm:$0xff] %v7893_v60  ;;  %10040 = vst [vmem:[#allocation24_spill] sm:$0xff] %v7896_v15  ;;  %v10041_v16 = vld [vmem:[#allocation66_spill] sm:$0xff]  ;;  %v10042_v17 = vld [vmem:[#allocation31_spill] sm:$0xff] }
 0xab8   :  { %3016 = vmatprep.subr.mxu0 %v7398_v18  ;;  %3087 = vmatprep.subr.mxu1 %v7400_v19  ;;  %v2129_v18 = vadd.f32 %v10042_v17, %v10041_v16  ;;  %v7981_v17 = vld [vmem:[#allocation11 + $0x328] sm:$0xff] }
 0xab9   :  { %3017 = vmatpush1.msra.mxu0 %v7404_v21  ;;  %3088 = vmatpush1.msra.mxu1 %v7406_v22  ;;  %v10043_v21 = vld [vmem:[#allocation69_spill] sm:$0xff] }
 0xaba   :  { %3018 = vmatprep.subr.mxu0 %v7410_v23  ;;  %3089 = vmatprep.subr.mxu1 %v7412_v24  ;;  %v10044_v22 = vld [vmem:[#allocation33_spill] sm:$0xff] }
 0xabb   :  { %3019 = vmatpush1.msra.mxu0 %v7416_v26  ;;  %3090 = vmatpush1.msra.mxu1 %v7418_v29  ;;  %v2131_v23 = vadd.f32 %v10044_v22, %v10043_v21  ;;  %v7990_v22 = vld [vmem:[#allocation11 + $0x330] sm:$0xff] }
 0xabc   :  { %3020 = vmatprep.subr.mxu0 %v7422_v30  ;;  %3091 = vmatprep.subr.mxu1 %v7424_v31  ;;  %v10045_v30 = vld [vmem:[#allocation32_spill] sm:$0xff] }
 0xabd   :  { %3021 = vmatpush1.msra.mxu0 %v7428_v32  ;;  %3092 = vmatpush1.msra.mxu1 %v7430_v33  ;;  %v2242_v31 = vadd.f32 %v10045_v30, %v9982_v41  ;;  %v8005_v30 = vld [vmem:[#allocation11 + $0x2e8] sm:$0xff] }
 0xabe   :  { %3022 = vmatprep.subr.mxu0 %v7434_v34  ;;  %3093 = vmatprep.subr.mxu1 %v7436_v35 }
 0xabf   :  { %3023 = vmatpush1.msra.mxu0 %v7440_v36  ;;  %3094 = vmatpush1.msra.mxu1 %v10017_v44  ;;  %v7915_v44 = vld [vmem:[#allocation11 + $0x3e0] sm:$0xff] }
 0xac0   :  { %3024 = vmatprep.subr.mxu0 %v10018_v56  ;;  %3095 = vmatprep.subr.mxu1 %v10019_v25  ;;  %v7918_v56 = vld [vmem:[#allocation11 + $0x3f0] sm:$0xff]  ;;  %v7924_v25 = vld [vmem:[#allocation11 + $0x3d8] sm:$0xff] }
 0xac1   :  { %3025 = vmatpush1.msra.mxu0 %v10020_v48  ;;  %3096 = vmatpush1.msra.mxu1 %v10021_v52  ;;  %v7927_v48 = vld [vmem:[#allocation11 + $0x3c0] sm:$0xff]  ;;  %v7930_v52 = vld [vmem:[#allocation11 + $0x3d0] sm:$0xff] }
 0xac2   :  { %3026 = vmatprep.subr.mxu0 %v10022_v59  ;;  %3097 = vmatprep.subr.mxu1 %v10023_v53  ;;  %v7933_v59 = vld [vmem:[#allocation11 + $0x3a8] sm:$0xff]  ;;  %v7936_v53 = vld [vmem:[#allocation11 + $0x3b8] sm:$0xff] }
 0xac3   :  { %3027 = vmatpush1.msra.mxu0 %v10024_v47  ;;  %3098 = vmatpush1.msra.mxu1 %v10025_v55  ;;  %v7939_v47 = vld [vmem:[#allocation11 + $0x3a0] sm:$0xff]  ;;  %v7942_v55 = vld [vmem:[#allocation11 + $0x3b0] sm:$0xff] }
 0xac4   :  { %3028 = vmatprep.subr.mxu0 %v10026_v58  ;;  %3099 = vmatprep.subr.mxu1 %v10027_v0  ;;  %v7945_v58 = vld [vmem:[#allocation11 + $0x388] sm:$0xff]  ;;  %v7948_v0 = vld [vmem:[#allocation11 + $0x398] sm:$0xff] }
 0xac5   :  { %3029 = vmatpush1.msra.mxu0 %v10028_v61  ;;  %3100 = vmatpush1.msra.mxu1 %v10029_v4  ;;  %v7951_v61 = vld [vmem:[#allocation11 + $0x380] sm:$0xff]  ;;  %v7954_v4 = vld [vmem:[#allocation11 + $0x390] sm:$0xff] }
 0xac6   :  { %3030 = vmatprep.subr.mxu0 %v10030_v62  ;;  %3101 = vmatprep.subr.mxu1 %v10031_v38  ;;  %v7957_v62 = vld [vmem:[#allocation11 + $0x368] sm:$0xff]  ;;  %v7960_v38 = vld [vmem:[#allocation11 + $0x378] sm:$0xff] }
 0xac7   :  { %3031 = vmatpush1.msra.mxu0 %v10032_v54  ;;  %3102 = vmatpush1.msra.mxu1 %v10033_v1  ;;  %v7963_v54 = vld [vmem:[#allocation11 + $0x360] sm:$0xff]  ;;  %v7966_v1 = vld [vmem:[#allocation11 + $0x370] sm:$0xff] }
 0xac8   :  { %3032 = vmatprep.subr.mxu0 %v10034_v63  ;;  %3103 = vmatprep.subr.mxu1 %v10035_v11  ;;  %v7969_v63 = vld [vmem:[#allocation11 + $0x348] sm:$0xff]  ;;  %v7972_v11 = vld [vmem:[#allocation11 + $0x358] sm:$0xff] }
 0xac9   :  { %3033 = vmatpush1.msra.mxu0 %v10036_v57  ;;  %3066 = vmatprep.mubr.f32.mxu0 %v10037_v20  ;;  %v7975_v57 = vld [vmem:[#allocation11 + $0x340] sm:$0xff] }
 0xaca   :  { %3104 = vmatpush1.msra.mxu1 %v10038_v3  ;;  %3137 = vmatprep.mubr.f32.mxu1 %v10037_v20  ;;  %v7978_v3 = vld [vmem:[#allocation11 + $0x350] sm:$0xff] }
 0xacb   :  { %3175 = vmatprep.subr.mxu0 %v7893_v60  ;;  %3246 = vmatprep.subr.mxu1 %v7896_v15 }
 0xb6a   :  { %v2895_v19 = vpop.f32.mrf.mxu0  ;;  %v2966_v26 = vpop.f32.mrf.mxu1 }
 0xb6b   :  { %v2971_v24 = vadd.f32 %v2895_v19, %v2129_v18  ;;  %v2973_v34 = vadd.f32 %v2966_v26, %v2242_v31  ;;  %v7984_v18 = vld [vmem:[#allocation11 + $0x338] sm:$0xff]  ;;  %v7987_v19 = vld [vmem:[#allocation11 + $0x320] sm:$0xff] }
 0xb6c   :  { %v2897_v29 = vpop.f32.mrf.mxu0  ;;  %v2968_v36 = vpop.f32.mrf.mxu1  ;;  %v7999_v26 = vld [vmem:[#allocation11 + $0x300] sm:$0xff]  ;;  %v8008_v31 = vld [vmem:[#allocation11 + $0x2f8] sm:$0xff] }
 0xb6d   :  { %v2975_v32 = vmul.f32 0.5, %v2971_v24  ;;  %v2972_v33 = vadd.f32 %v2897_v29, %v2131_v23  ;;  %v2974_v6 = vadd.f32 %v2968_v36, %v2244_v37  ;;  %v7993_v23 = vld [vmem:[#allocation11 + $0x308] sm:$0xff]  ;;  %v7996_v24 = vld [vmem:[#allocation11 + $0x318] sm:$0xff]  ;;  %v8002_v29 = vld [vmem:[#allocation11 + $0x310] sm:$0xff] }
 0xb6e   :  { %v8023_v36 = vld [vmem:[#allocation11 + $0x2c0] sm:$0xff]  ;;  %v8029_v37 = vld [vmem:[#allocation11 + $0x2a8] sm:$0xff] }
 0xb6f   :  { %5803 = vtanh.f32 %v2975_v32  ;;  %v2979_v35 = vmul.f32 0.5, %v2972_v33  ;;  %v2984_v51 = vmul.f32 0.5, %v2974_v6  ;;  %v8011_v32 = vld [vmem:[#allocation11 + $0x2e0] sm:$0xff]  ;;  %v8014_v33 = vld [vmem:[#allocation11 + $0x2f0] sm:$0xff]  ;;  %v8032_v6 = vld [vmem:[#allocation11 + $0x2b8] sm:$0xff] }
 0xb71   :  { %5805 = vtanh.f32 %v2979_v35  ;;  %v8020_v35 = vld [vmem:[#allocation11 + $0x2d8] sm:$0xff] }
 0xb72   :  { %5807 = vtanh.f32 %v2973_v34  ;;  %v8017_v34 = vld [vmem:[#allocation11 + $0x2c8] sm:$0xff] }
 0xb73   :  { %5809 = vtanh.f32 %v2984_v51  ;;  %v8035_v51 = vld [vmem:[#allocation11 + $0x2a0] sm:$0xff] }
 0xb7c   :  { %v5804_v13 = vpop.eup %5803 }
 0xb7d   :  { %v2977_v9 = vadd.f32 1.0, %v5804_v13  ;;  %v8038_v13 = vld [vmem:[#allocation11 + $0x2b0] sm:$0xff] }
 0xb7e   :  { %v5806_v42 = vpop.eup %5805  ;;  %10048 = vst [vmem:[#allocation17_spill] sm:$0xff] %v8038_v13 }
 0xb7f   :  { %v2978_v5 = vmul.f32 0.5, %v2977_v9  ;;  %v2981_v39 = vadd.f32 1.0, %v5806_v42  ;;  %v5808_v10 = vpop.eup %5807  ;;  %v8041_v9 = vld [vmem:[#allocation11 + $0x288] sm:$0xff]  ;;  %v8044_v42 = vld [vmem:[#allocation11 + $0x298] sm:$0xff] }
 0xb80   :  { %v5810_v2 = vpop.eup %5809  ;;  %10049 = vst [vmem:[#allocation46_spill] sm:$0xff] %v8041_v9  ;;  %10050 = vst [vmem:[#allocation27_spill] sm:$0xff] %v8044_v42 }
 0xb81   :  { %v2982_v28 = vmul.f32 0.5, %v2981_v39  ;;  %v2989_v46 = vmul.f32 %v5808_v10, %v2978_v5  ;;  %v2986_v45 = vadd.f32 1.0, %v5810_v2  ;;  %v8047_v5 = vld [vmem:[#allocation11 + $0x280] sm:$0xff]  ;;  %v8050_v39 = vld [vmem:[#allocation11 + $0x290] sm:$0xff]  ;;  %v8053_v10 = vld [vmem:[#allocation11 + $0x268] sm:$0xff] }
 0xb82   :  { %10051 = vst [vmem:[#allocation29_spill] sm:$0xff] %v8047_v5  ;;  %10052 = vst [vmem:[#allocation28_spill] sm:$0xff] %v8050_v39  ;;  %v8065_v2 = vld [vmem:[#allocation11 + $0x248] sm:$0xff] }
 0xb83   :  { %v2988_v12 = vmul.f32 %v2982_v28, %v7822_v40  ;;  %v2987_v7 = vmul.f32 0.5, %v2986_v45  ;;  %v7921_v40 = vld [vmem:[#allocation11 + $0x3c8] sm:$0xff]  ;;  %10053 = vst [vmem:[#allocation30_spill] sm:$0xff] %v8053_v10  ;;  %v8056_v28 = vld [vmem:[#allocation11 + $0x278] sm:$0xff]  ;;  %10057 = vst [vmem:[#allocation50_spill] sm:$0xff] %v8065_v2 }
 0xb84   :  { %10054 = vst [vmem:[#allocation48_spill] sm:$0xff] %v8056_v28  ;;  %v8068_v45 = vld [vmem:[#allocation11 + $0x258] sm:$0xff] }
 0xb85   :  { %v7908_v43 = vadd.f32 %v2989_v46, %v2988_v12  ;;  %v8059_v46 = vld [vmem:[#allocation11 + $0x260] sm:$0xff]  ;;  %v8062_v12 = vld [vmem:[#allocation11 + $0x270] sm:$0xff]  ;;  %10058 = vst [vmem:[#allocation52_spill] sm:$0xff] %v8068_v45 }
 0xb86   :  { %10055 = vst [vmem:[#allocation47_spill] sm:$0xff] %v8059_v46  ;;  %10056 = vst [vmem:[#allocation49_spill] sm:$0xff] %v8062_v12 }
 0xb87   :  { %5811 = vtanh.f32 %v7908_v43 }
 0xb94   :  { %v5812_v14 = vpop.eup %5811 }
 0xb95   :  { %v7911_v49 = vmul.f32 %v5812_v14, %v2987_v7  ;;  %v8071_v7 = vld [vmem:[#allocation11 + $0x240] sm:$0xff]  ;;  %v8074_v14 = vld [vmem:[#allocation11 + $0x250] sm:$0xff] }
 0xb96   :  { %10059 = vst [vmem:[#allocation51_spill] sm:$0xff] %v8071_v7  ;;  %10060 = vst [vmem:[#allocation53_spill] sm:$0xff] %v8074_v14 }
 0xb97   :  { %10047 = vst [vmem:[#allocation26_spill] sm:$0xff] %v7911_v49  ;;  %3067 = vmatmul.mubr.f32.vlgmr.msra.gmra.mxu0 %v7911_v49  ;;  %3138 = vmatmul.mubr.f32.vlgmr.msra.gmra.mxu1 %v7911_v49  ;;  %v8077_v49 = vld [vmem:[#allocation11 + $0x228] sm:$0xff] }
 0xb98   :  { %3176 = vmatpush1.msra.mxu0 %v7915_v44  ;;  %3247 = vmatpush1.msra.mxu1 %v7918_v56  ;;  %10061 = vst [vmem:[#allocation54_spill] sm:$0xff] %v8077_v49 }
 0xb99   :  { %3177 = vmatprep.subr.mxu0 %v7921_v40  ;;  %3248 = vmatprep.subr.mxu1 %v7924_v25 }
 0xb9a   :  { %3178 = vmatpush1.msra.mxu0 %v7927_v48  ;;  %3249 = vmatpush1.msra.mxu1 %v7930_v52 }
 0xb9b   :  { %3179 = vmatprep.subr.mxu0 %v7933_v59  ;;  %3250 = vmatprep.subr.mxu1 %v7936_v53 }
 0xb9c   :  { %3180 = vmatpush1.msra.mxu0 %v7939_v47  ;;  %3251 = vmatpush1.msra.mxu1 %v7942_v55 }
 0xb9d   :  { %3181 = vmatprep.subr.mxu0 %v7945_v58  ;;  %3252 = vmatprep.subr.mxu1 %v7948_v0 }
 0xb9e   :  { %3182 = vmatpush1.msra.mxu0 %v7951_v61  ;;  %3253 = vmatpush1.msra.mxu1 %v7954_v4 }
 0xb9f   :  { %3183 = vmatprep.subr.mxu0 %v7957_v62  ;;  %3254 = vmatprep.subr.mxu1 %v7960_v38 }
 0xba0   :  { %3184 = vmatpush1.msra.mxu0 %v7963_v54  ;;  %3255 = vmatpush1.msra.mxu1 %v7966_v1 }
 0xba1   :  { %3185 = vmatprep.subr.mxu0 %v7969_v63  ;;  %3256 = vmatprep.subr.mxu1 %v7972_v11 }
 0xba2   :  { %3186 = vmatpush1.msra.mxu0 %v7975_v57  ;;  %3257 = vmatpush1.msra.mxu1 %v7978_v3 }
 0xba3   :  { %3187 = vmatprep.subr.mxu0 %v7981_v17  ;;  %3258 = vmatprep.subr.mxu1 %v7984_v18 }
 0xba4   :  { %3188 = vmatpush1.msra.mxu0 %v7987_v19  ;;  %3259 = vmatpush1.msra.mxu1 %v7990_v22 }
 0xba5   :  { %3189 = vmatprep.subr.mxu0 %v7993_v23  ;;  %3260 = vmatprep.subr.mxu1 %v7996_v24 }
 0xba6   :  { %3190 = vmatpush1.msra.mxu0 %v7999_v26  ;;  %3261 = vmatpush1.msra.mxu1 %v8002_v29 }
 0xba7   :  { %3191 = vmatprep.subr.mxu0 %v8005_v30  ;;  %3262 = vmatprep.subr.mxu1 %v8008_v31 }
 0xba8   :  { %3192 = vmatpush1.msra.mxu0 %v8011_v32  ;;  %3263 = vmatpush1.msra.mxu1 %v8014_v33 }
 0xba9   :  { %3193 = vmatprep.subr.mxu0 %v8017_v34  ;;  %3264 = vmatprep.subr.mxu1 %v8020_v35 }
 0xbaa   :  { %3194 = vmatpush1.msra.mxu0 %v8023_v36  ;;  %3265 = vmatpush1.msra.mxu1 %v8026_v50 }
 0xbab   :  { %3195 = vmatprep.subr.mxu0 %v8029_v37  ;;  %3266 = vmatprep.subr.mxu1 %v8032_v6 }
 0xbac   :  { %3196 = vmatpush1.msra.mxu0 %v8035_v51  ;;  %3267 = vmatpush1.msra.mxu1 %v8038_v13 }
 0xbad   :  { %3197 = vmatprep.subr.mxu0 %v8041_v9  ;;  %3268 = vmatprep.subr.mxu1 %v8044_v42 }
 0xbae   :  { %3198 = vmatpush1.msra.mxu0 %v8047_v5  ;;  %3269 = vmatpush1.msra.mxu1 %v8050_v39 }
 0xbaf   :  { %3199 = vmatprep.subr.mxu0 %v8053_v10  ;;  %3270 = vmatprep.subr.mxu1 %v8056_v28  ;;  %v10071_v10 = vld [vmem:[#allocation36_spill] sm:$0xff] }
 0xbb0   :  { %3200 = vmatpush1.msra.mxu0 %v8059_v46  ;;  %3271 = vmatpush1.msra.mxu1 %v8062_v12  ;;  %v2248_v39 = vadd.f32 %v10071_v10, %v9982_v41 }
 0xbb1   :  { %3201 = vmatprep.subr.mxu0 %v8065_v2  ;;  %3272 = vmatprep.subr.mxu1 %v8068_v45  ;;  %v8083_v2 = vld [vmem:[#allocation11 + $0x220] sm:$0xff]  ;;  %v8086_v45 = vld [vmem:[#allocation11 + $0x230] sm:$0xff] }
 0xbb2   :  { %3202 = vmatpush1.msra.mxu0 %v8071_v7  ;;  %3273 = vmatpush1.msra.mxu1 %v8074_v14  ;;  %10063 = vst [vmem:[#allocation55_spill] sm:$0xff] %v8083_v2  ;;  %10064 = vst [vmem:[#allocation57_spill] sm:$0xff] %v8086_v45  ;;  %v8089_v7 = vld [vmem:[#allocation11 + $0x208] sm:$0xff]  ;;  %v8092_v14 = vld [vmem:[#allocation11 + $0x218] sm:$0xff] }
 0xbb3   :  { %3203 = vmatprep.subr.mxu0 %v8077_v49  ;;  %3274 = vmatprep.subr.mxu1 %v8080_v27  ;;  %10065 = vst [vmem:[#allocation44_spill] sm:$0xff] %v8089_v7  ;;  %10066 = vst [vmem:[#allocation43_spill] sm:$0xff] %v8092_v14  ;;  %v8095_v49 = vld [vmem:[#allocation11 + $0x200] sm:$0xff]  ;;  %v8099_v27 = vld [vmem:[#allocation11 + $0x210] sm:$0xff] }
 0xbb4   :  { %3204 = vmatpush1.msra.mxu0 %v8083_v2  ;;  %3275 = vmatpush1.msra.mxu1 %v8086_v45  ;;  %10067 = vst [vmem:[#allocation58_spill] sm:$0xff] %v8095_v49  ;;  %10068 = vst [vmem:[#allocation60_spill] sm:$0xff] %v8099_v27  ;;  %v10070_v2 = vld [vmem:[#allocation37_spill] sm:$0xff] }
 0xbb5   :  { %3205 = vmatprep.subr.mxu0 %v8089_v7  ;;  %3276 = vmatprep.subr.mxu1 %v8092_v14  ;;  %v10069_v7 = vld [vmem:[#allocation35_spill] sm:$0xff]  ;;  %v2137_v12 = vadd.f32 %v10070_v2, %v10043_v21 }
 0xbb6   :  { %3206 = vmatpush1.msra.mxu0 %v8095_v49  ;;  %3239 = vmatprep.mubr.f32.mxu0 %v10037_v20  ;;  %v2135_v45 = vadd.f32 %v10069_v7, %v10041_v16  ;;  %v10072_v7 = vld [vmem:[#allocation62_spill] sm:$0xff] }
 0xbb7   :  { %3277 = vmatpush1.msra.mxu1 %v8099_v27  ;;  %3310 = vmatprep.mubr.f32.mxu1 %v10037_v20  ;;  %v2250_v16 = vadd.f32 %v10072_v7, %v7655_v8  ;;  %v10081_v7 = vld [vmem:[#allocation47_spill] sm:$0xff] }
 0xbb8   :  { %3348 = vmatprep.subr.mxu0 %v7893_v60  ;;  %3419 = vmatprep.subr.mxu1 %v7896_v15 }
 0xc57   :  { %v3068_v14 = vpop.f32.mrf.mxu0  ;;  %v3139_v46 = vpop.f32.mrf.mxu1 }
 0xc58   :  { %v3144_v49 = vadd.f32 %v3068_v14, %v2135_v45  ;;  %v3146_v20 = vadd.f32 %v3139_v46, %v2248_v39  ;;  %v10079_v46 = vld [vmem:[#allocation30_spill] sm:$0xff] }
 0xc59   :  { %v3070_v28 = vpop.f32.mrf.mxu0  ;;  %v3141_v15 = vpop.f32.mrf.mxu1 }
 0xc5a   :  { %v3148_v27 = vmul.f32 0.5, %v3144_v49  ;;  %v3145_v5 = vadd.f32 %v3070_v28, %v2137_v12  ;;  %v3147_v42 = vadd.f32 %v3141_v15, %v2250_v16  ;;  %v10080_v12 = vld [vmem:[#allocation48_spill] sm:$0xff] }
 0xc5c   :  { %5813 = vtanh.f32 %v3148_v27  ;;  %v3152_v60 = vmul.f32 0.5, %v3145_v5  ;;  %v3157_v9 = vmul.f32 0.5, %v3147_v42  ;;  %v10078_v42 = vld [vmem:[#allocation28_spill] sm:$0xff] }
 0xc5e   :  { %5815 = vtanh.f32 %v3152_v60 }
 0xc5f   :  { %5817 = vtanh.f32 %v3146_v20 }
 0xc60   :  { %5819 = vtanh.f32 %v3157_v9  ;;  %v10077_v9 = vld [vmem:[#allocation29_spill] sm:$0xff] }
 0xc69   :  { %v5814_v2 = vpop.eup %5813 }
 0xc6a   :  { %v3150_v45 = vadd.f32 1.0, %v5814_v2  ;;  %v10082_v2 = vld [vmem:[#allocation49_spill] sm:$0xff] }
 0xc6b   :  { %v5816_v14 = vpop.eup %5815 }
 0xc6c   :  { %v3151_v21 = vmul.f32 0.5, %v3150_v45  ;;  %v3154_v13 = vadd.f32 1.0, %v5816_v14  ;;  %v5818_v10 = vpop.eup %5817  ;;  %v10083_v45 = vld [vmem:[#allocation50_spill] sm:$0xff]  ;;  %v10084_v14 = vld [vmem:[#allocation52_spill] sm:$0xff] }
 0xc6d   :  { %v5820_v20 = vpop.eup %5819 }
 0xc6e   :  { %v3155_v49 = vmul.f32 0.5, %v3154_v13  ;;  %v3162_v28 = vmul.f32 %v5818_v10, %v3151_v21  ;;  %v3159_v60 = vadd.f32 1.0, %v5820_v20  ;;  %v10074_v21 = vld [vmem:[#allocation17_spill] sm:$0xff]  ;;  %v10076_v13 = vld [vmem:[#allocation27_spill] sm:$0xff] }
 0xc6f   :  { %v10085_v10 = vld [vmem:[#allocation51_spill] sm:$0xff] }
 0xc70   :  { %v3161_v27 = vmul.f32 %v3155_v49, %v7908_v43  ;;  %v3160_v39 = vmul.f32 0.5, %v3159_v60  ;;  %v10075_v43 = vld [vmem:[#allocation46_spill] sm:$0xff]  ;;  %v10086_v49 = vld [vmem:[#allocation53_spill] sm:$0xff]  ;;  %v10089_v20 = vld [vmem:[#allocation55_spill] sm:$0xff] }
 0xc71   :  { %v10090_v60 = vld [vmem:[#allocation57_spill] sm:$0xff] }
 0xc72   :  { %v8114_v5 = vadd.f32 %v3162_v28, %v3161_v27  ;;  %v10087_v28 = vld [vmem:[#allocation54_spill] sm:$0xff]  ;;  %v10088_v27 = vld [vmem:[#allocation56_spill] sm:$0xff] }
 0xc74   :  { %5821 = vtanh.f32 %v8114_v5 }
 0xc81   :  { %v5822_v15 = vpop.eup %5821 }
 0xc82   :  { %v8117_v16 = vmul.f32 %v5822_v15, %v3160_v39  ;;  %v10091_v39 = vld [vmem:[#allocation44_spill] sm:$0xff]  ;;  %v10092_v15 = vld [vmem:[#allocation43_spill] sm:$0xff] }
 0xc84   :  { %10073 = vst [vmem:[#allocation59_spill] sm:$0xff] %v8117_v16  ;;  %3240 = vmatmul.mubr.f32.vlgmr.msra.gmra.mxu0 %v8117_v16  ;;  %3311 = vmatmul.mubr.f32.vlgmr.msra.gmra.mxu1 %v8117_v16  ;;  %v10093_v16 = vld [vmem:[#allocation58_spill] sm:$0xff] }
 0xc85   :  { %3349 = vmatpush1.msra.mxu0 %v7915_v44  ;;  %3420 = vmatpush1.msra.mxu1 %v7918_v56 }
 0xc86   :  { %3350 = vmatprep.subr.mxu0 %v7921_v40  ;;  %3421 = vmatprep.subr.mxu1 %v7924_v25 }
 0xc87   :  { %3351 = vmatpush1.msra.mxu0 %v7927_v48  ;;  %3422 = vmatpush1.msra.mxu1 %v7930_v52 }
 0xc88   :  { %3352 = vmatprep.subr.mxu0 %v7933_v59  ;;  %3423 = vmatprep.subr.mxu1 %v7936_v53 }
 0xc89   :  { %3353 = vmatpush1.msra.mxu0 %v7939_v47  ;;  %3424 = vmatpush1.msra.mxu1 %v7942_v55 }
 0xc8a   :  { %3354 = vmatprep.subr.mxu0 %v7945_v58  ;;  %3425 = vmatprep.subr.mxu1 %v7948_v0 }
 0xc8b   :  { %3355 = vmatpush1.msra.mxu0 %v7951_v61  ;;  %3426 = vmatpush1.msra.mxu1 %v7954_v4 }
 0xc8c   :  { %3356 = vmatprep.subr.mxu0 %v7957_v62  ;;  %3427 = vmatprep.subr.mxu1 %v7960_v38 }
 0xc8d   :  { %3357 = vmatpush1.msra.mxu0 %v7963_v54  ;;  %3428 = vmatpush1.msra.mxu1 %v7966_v1 }
 0xc8e   :  { %3358 = vmatprep.subr.mxu0 %v7969_v63  ;;  %3429 = vmatprep.subr.mxu1 %v7972_v11 }
 0xc8f   :  { %3359 = vmatpush1.msra.mxu0 %v7975_v57  ;;  %3430 = vmatpush1.msra.mxu1 %v7978_v3 }
 0xc90   :  { %3360 = vmatprep.subr.mxu0 %v7981_v17  ;;  %3431 = vmatprep.subr.mxu1 %v7984_v18 }
 0xc91   :  { %3361 = vmatpush1.msra.mxu0 %v7987_v19  ;;  %3432 = vmatpush1.msra.mxu1 %v7990_v22 }
 0xc92   :  { %3362 = vmatprep.subr.mxu0 %v7993_v23  ;;  %3433 = vmatprep.subr.mxu1 %v7996_v24 }
 0xc93   :  { %3363 = vmatpush1.msra.mxu0 %v7999_v26  ;;  %3434 = vmatpush1.msra.mxu1 %v8002_v29 }
 0xc94   :  { %3364 = vmatprep.subr.mxu0 %v8005_v30  ;;  %3435 = vmatprep.subr.mxu1 %v8008_v31 }
 0xc95   :  { %3365 = vmatpush1.msra.mxu0 %v8011_v32  ;;  %3436 = vmatpush1.msra.mxu1 %v8014_v33 }
 0xc96   :  { %3366 = vmatprep.subr.mxu0 %v8017_v34  ;;  %3437 = vmatprep.subr.mxu1 %v8020_v35 }
 0xc97   :  { %3367 = vmatpush1.msra.mxu0 %v8023_v36  ;;  %3438 = vmatpush1.msra.mxu1 %v8026_v50 }
 0xc98   :  { %3368 = vmatprep.subr.mxu0 %v8029_v37  ;;  %3439 = vmatprep.subr.mxu1 %v8032_v6 }
 0xc99   :  { %3369 = vmatpush1.msra.mxu0 %v8035_v51  ;;  %3440 = vmatpush1.msra.mxu1 %v10074_v21 }
 0xc9a   :  { %3370 = vmatprep.subr.mxu0 %v10075_v43  ;;  %3441 = vmatprep.subr.mxu1 %v10076_v13 }
 0xc9b   :  { %3371 = vmatpush1.msra.mxu0 %v10077_v9  ;;  %3442 = vmatpush1.msra.mxu1 %v10078_v42 }
 0xc9c   :  { %3372 = vmatprep.subr.mxu0 %v10079_v46  ;;  %3443 = vmatprep.subr.mxu1 %v10080_v12  ;;  %v10102_v46 = vld [vmem:[#allocation63_spill] sm:$0xff] }
 0xc9d   :  { %3373 = vmatpush1.msra.mxu0 %v10081_v7  ;;  %3444 = vmatpush1.msra.mxu1 %v10082_v2  ;;  %v10100_v2 = vld [vmem:[#allocation69_spill] sm:$0xff]  ;;  %v2254_v42 = vadd.f32 %v10102_v46, %v9982_v41 }
 0xc9e   :  { %3374 = vmatprep.subr.mxu0 %v10083_v45  ;;  %3445 = vmatprep.subr.mxu1 %v10084_v14  ;;  %v10094_v45 = vmov 0.0   ;;  %v10095_v14 = vld [vmem:[#allocation60_spill] sm:$0xff] }
 0xc9f   :  { %3375 = vmatpush1.msra.mxu0 %v10085_v10  ;;  %3446 = vmatpush1.msra.mxu1 %v10086_v49  ;;  %v10096_v49 = vld [vmem:[#allocation73_spill] sm:$0xff] }
 0xca0   :  { %3376 = vmatprep.subr.mxu0 %v10087_v28  ;;  %3447 = vmatprep.subr.mxu1 %v10088_v27  ;;  %v10097_v28 = vld [vmem:[#allocation24_spill] sm:$0xff]  ;;  %v10098_v27 = vld [vmem:[#allocation66_spill] sm:$0xff] }
 0xca1   :  { %3377 = vmatpush1.msra.mxu0 %v10089_v20  ;;  %3448 = vmatpush1.msra.mxu1 %v10090_v60  ;;  %v10099_v20 = vld [vmem:[#allocation64_spill] sm:$0xff] }
 0xca2   :  { %3378 = vmatprep.subr.mxu0 %v10091_v39  ;;  %3449 = vmatprep.subr.mxu1 %v10092_v15  ;;  %v2141_v10 = vadd.f32 %v10099_v20, %v10098_v27  ;;  %v10101_v39 = vld [vmem:[#allocation65_spill] sm:$0xff]  ;;  %v10103_v20 = vld [vmem:[#allocation70_spill] sm:$0xff] }
 0xca3   :  { %3379 = vmatpush1.msra.mxu0 %v10093_v16  ;;  %3412 = vmatprep.mubr.f32.mxu0 %v10094_v45  ;;  %v2143_v7 = vadd.f32 %v10101_v39, %v10100_v2  ;;  %v2256_v27 = vadd.f32 %v10103_v20, %v7655_v8 }
 0xca4   :  { %3450 = vmatpush1.msra.mxu1 %v10095_v14  ;;  %3483 = vmatprep.mubr.f32.mxu1 %v10094_v45 }
 0xca5   :  { %3521 = vmatprep.subr.mxu0 %v10096_v49  ;;  %3592 = vmatprep.subr.mxu1 %v10097_v28 }
 0xd44   :  { %v3241_v60 = vpop.f32.mrf.mxu0  ;;  %v3312_v12 = vpop.f32.mrf.mxu1 }
 0xd45   :  { %v3317_v15 = vadd.f32 %v3241_v60, %v2141_v10  ;;  %v3319_v45 = vadd.f32 %v3312_v12, %v2254_v42 }
 0xd46   :  { %v3243_v16 = vpop.f32.mrf.mxu0  ;;  %v3314_v28 = vpop.f32.mrf.mxu1 }
 0xd47   :  { %v3321_v14 = vmul.f32 0.5, %v3317_v15  ;;  %v3318_v9 = vadd.f32 %v3243_v16, %v2143_v7  ;;  %v3320_v13 = vadd.f32 %v3314_v28, %v2256_v27 }
 0xd49   :  { %5823 = vtanh.f32 %v3321_v14  ;;  %v3325_v49 = vmul.f32 0.5, %v3318_v9  ;;  %v3330_v43 = vmul.f32 0.5, %v3320_v13 }
 0xd4b   :  { %5825 = vtanh.f32 %v3325_v49 }
 0xd4c   :  { %5827 = vtanh.f32 %v3319_v45 }
 0xd4d   :  { %5829 = vtanh.f32 %v3330_v43 }
 0xd56   :  { %v5824_v39 = vpop.eup %5823 }
 0xd57   :  { %v3323_v10 = vadd.f32 1.0, %v5824_v39 }
 0xd58   :  { %v5826_v60 = vpop.eup %5825 }
 0xd59   :  { %v3324_v2 = vmul.f32 0.5, %v3323_v10  ;;  %v3327_v21 = vadd.f32 1.0, %v5826_v60  ;;  %v5828_v46 = vpop.eup %5827 }
 0xd5a   :  { %v5830_v12 = vpop.eup %5829 }
 0xd5b   :  { %v3328_v15 = vmul.f32 0.5, %v3327_v21  ;;  %v3335_v16 = vmul.f32 %v5828_v46, %v3324_v2  ;;  %v3332_v7 = vadd.f32 1.0, %v5830_v12 }
 0xd5d   :  { %v3334_v42 = vmul.f32 %v3328_v15, %v8114_v5  ;;  %v3333_v45 = vmul.f32 0.5, %v3332_v7  ;;  %v10131_v5 = vld [vmem:[#allocation16_spill] sm:$0xff] }
 0xd5e   :  { %v2262_v21 = vadd.f32 %v10131_v5, %v7655_v8  ;;  %v3787_v5 = vld [vmem:[#allocation9 + $0x2b8] sm:$0xff] }
 0xd5f   :  { %v8196_v9 = vadd.f32 %v3335_v16, %v3334_v42 }
 0xd61   :  { %5831 = vtanh.f32 %v8196_v9 }
 0xd6e   :  { %v5832_v14 = vpop.eup %5831 }
 0xd6f   :  { %v8199_v13 = vmul.f32 %v5832_v14, %v3333_v45 }
 0xd71   :  { %3413 = vmatmul.mubr.f32.vlgmr.msra.gmra.mxu0 %v8199_v13  ;;  %3484 = vmatmul.mubr.f32.vlgmr.msra.gmra.mxu1 %v8199_v13 }
 0xd72   :  { %3522 = vmatpush1.msra.mxu0 %v7915_v44  ;;  %3593 = vmatpush1.msra.mxu1 %v7918_v56  ;;  %v10104_v44 = vld [vmem:[#allocation17_spill] sm:$0xff]  ;;  %v10105_v56 = vld [vmem:[#allocation46_spill] sm:$0xff] }
 0xd73   :  { %3523 = vmatprep.subr.mxu0 %v7921_v40  ;;  %3594 = vmatprep.subr.mxu1 %v7924_v25  ;;  %v10106_v40 = vld [vmem:[#allocation27_spill] sm:$0xff]  ;;  %v10107_v25 = vld [vmem:[#allocation29_spill] sm:$0xff] }
 0xd74   :  { %3524 = vmatpush1.msra.mxu0 %v7927_v48  ;;  %3595 = vmatpush1.msra.mxu1 %v7930_v52  ;;  %v10108_v48 = vld [vmem:[#allocation28_spill] sm:$0xff]  ;;  %v10109_v52 = vld [vmem:[#allocation30_spill] sm:$0xff] }
 0xd75   :  { %3525 = vmatprep.subr.mxu0 %v7933_v59  ;;  %3596 = vmatprep.subr.mxu1 %v7936_v53  ;;  %v10110_v59 = vld [vmem:[#allocation48_spill] sm:$0xff]  ;;  %v10111_v53 = vld [vmem:[#allocation47_spill] sm:$0xff] }
 0xd76   :  { %3526 = vmatpush1.msra.mxu0 %v7939_v47  ;;  %3597 = vmatpush1.msra.mxu1 %v7942_v55  ;;  %v10112_v47 = vld [vmem:[#allocation49_spill] sm:$0xff]  ;;  %v10113_v55 = vld [vmem:[#allocation50_spill] sm:$0xff] }
 0xd77   :  { %3527 = vmatprep.subr.mxu0 %v7945_v58  ;;  %3598 = vmatprep.subr.mxu1 %v7948_v0  ;;  %v10114_v58 = vld [vmem:[#allocation52_spill] sm:$0xff]  ;;  %v10115_v0 = vld [vmem:[#allocation51_spill] sm:$0xff] }
 0xd78   :  { %3528 = vmatpush1.msra.mxu0 %v7951_v61  ;;  %3599 = vmatpush1.msra.mxu1 %v7954_v4  ;;  %v10116_v61 = vld [vmem:[#allocation53_spill] sm:$0xff]  ;;  %v10117_v4 = vld [vmem:[#allocation54_spill] sm:$0xff] }
 0xd79   :  { %3529 = vmatprep.subr.mxu0 %v7957_v62  ;;  %3600 = vmatprep.subr.mxu1 %v7960_v38  ;;  %v10118_v62 = vld [vmem:[#allocation56_spill] sm:$0xff]  ;;  %v10119_v38 = vld [vmem:[#allocation55_spill] sm:$0xff] }
 0xd7a   :  { %3530 = vmatpush1.msra.mxu0 %v7963_v54  ;;  %3601 = vmatpush1.msra.mxu1 %v7966_v1  ;;  %v10120_v54 = vld [vmem:[#allocation57_spill] sm:$0xff]  ;;  %v10121_v1 = vld [vmem:[#allocation44_spill] sm:$0xff] }
 0xd7b   :  { %3531 = vmatprep.subr.mxu0 %v7969_v63  ;;  %3602 = vmatprep.subr.mxu1 %v7972_v11  ;;  %v10122_v63 = vld [vmem:[#allocation43_spill] sm:$0xff]  ;;  %v10123_v11 = vld [vmem:[#allocation58_spill] sm:$0xff] }
 0xd7c   :  { %3532 = vmatpush1.msra.mxu0 %v7975_v57  ;;  %3603 = vmatpush1.msra.mxu1 %v7978_v3  ;;  %v10124_v57 = vld [vmem:[#allocation60_spill] sm:$0xff]  ;;  %v10125_v3 = vmov 0.0  }
 0xd7d   :  { %3533 = vmatprep.subr.mxu0 %v7981_v17  ;;  %3604 = vmatprep.subr.mxu1 %v7984_v18  ;;  %v3825_v17 = vld [vmem:[#allocation9 + $0x3e8] sm:$0xff]  ;;  %v3827_v18 = vld [vmem:[#allocation9 + $0x3f8] sm:$0xff] }
 0xd7e   :  { %3534 = vmatpush1.msra.mxu0 %v7987_v19  ;;  %3605 = vmatpush1.msra.mxu1 %v7990_v22  ;;  %v10126_v19 = vld [vmem:[#allocation66_spill] sm:$0xff] }
 0xd7f   :  { %3535 = vmatprep.subr.mxu0 %v7993_v23  ;;  %3606 = vmatprep.subr.mxu1 %v7996_v24  ;;  %v10127_v22 = vld [vmem:[#allocation18_spill] sm:$0xff] }
 0xd80   :  { %3536 = vmatpush1.msra.mxu0 %v7999_v26  ;;  %3607 = vmatpush1.msra.mxu1 %v8002_v29  ;;  %v2147_v23 = vadd.f32 %v10127_v22, %v10126_v19  ;;  %v10128_v26 = vld [vmem:[#allocation69_spill] sm:$0xff]  ;;  %v3800_v22 = vld [vmem:[#allocation9 + $0x320] sm:$0xff] }
 0xd81   :  { %3537 = vmatprep.subr.mxu0 %v8005_v30  ;;  %3608 = vmatprep.subr.mxu1 %v8008_v31  ;;  %v10129_v29 = vld [vmem:[#allocation45_spill] sm:$0xff] }
 0xd82   :  { %3538 = vmatpush1.msra.mxu0 %v8011_v32  ;;  %3609 = vmatpush1.msra.mxu1 %v8014_v33  ;;  %v2149_v30 = vadd.f32 %v10129_v29, %v10128_v26  ;;  %v3799_v29 = vld [vmem:[#allocation9 + $0x318] sm:$0xff] }
 0xd83   :  { %3539 = vmatprep.subr.mxu0 %v8017_v34  ;;  %3610 = vmatprep.subr.mxu1 %v8020_v35  ;;  %v10130_v34 = vld [vmem:[#allocation42_spill] sm:$0xff] }
 0xd84   :  { %3540 = vmatpush1.msra.mxu0 %v8023_v36  ;;  %3611 = vmatpush1.msra.mxu1 %v8026_v50  ;;  %v2260_v35 = vadd.f32 %v10130_v34, %v9982_v41  ;;  %v3792_v34 = vld [vmem:[#allocation9 + $0x2e0] sm:$0xff] }
 0xd85   :  { %3541 = vmatprep.subr.mxu0 %v8029_v37  ;;  %3612 = vmatprep.subr.mxu1 %v8032_v6 }
 0xd86   :  { %3542 = vmatpush1.msra.mxu0 %v8035_v51  ;;  %3613 = vmatpush1.msra.mxu1 %v10104_v44  ;;  %v3824_v44 = vld [vmem:[#allocation9 + $0x3e0] sm:$0xff] }
 0xd87   :  { %3543 = vmatprep.subr.mxu0 %v10105_v56  ;;  %3614 = vmatprep.subr.mxu1 %v10106_v40  ;;  %v3826_v56 = vld [vmem:[#allocation9 + $0x3f0] sm:$0xff]  ;;  %v3821_v40 = vld [vmem:[#allocation9 + $0x3c8] sm:$0xff] }
 0xd88   :  { %3544 = vmatpush1.msra.mxu0 %v10107_v25  ;;  %3615 = vmatpush1.msra.mxu1 %v10108_v48  ;;  %v3823_v25 = vld [vmem:[#allocation9 + $0x3d8] sm:$0xff]  ;;  %v3820_v48 = vld [vmem:[#allocation9 + $0x3c0] sm:$0xff] }
 0xd89   :  { %3545 = vmatprep.subr.mxu0 %v10109_v52  ;;  %3616 = vmatprep.subr.mxu1 %v10110_v59  ;;  %v3817_v52 = vld [vmem:[#allocation9 + $0x3a8] sm:$0xff]  ;;  %v3819_v59 = vld [vmem:[#allocation9 + $0x3b8] sm:$0xff] }
 0xd8a   :  { %3546 = vmatpush1.msra.mxu0 %v10111_v53  ;;  %3617 = vmatpush1.msra.mxu1 %v10112_v47  ;;  %v3816_v53 = vld [vmem:[#allocation9 + $0x3a0] sm:$0xff]  ;;  %v3818_v47 = vld [vmem:[#allocation9 + $0x3b0] sm:$0xff] }
 0xd8b   :  { %3547 = vmatprep.subr.mxu0 %v10113_v55  ;;  %3618 = vmatprep.subr.mxu1 %v10114_v58  ;;  %v3813_v55 = vld [vmem:[#allocation9 + $0x388] sm:$0xff]  ;;  %v3815_v58 = vld [vmem:[#allocation9 + $0x398] sm:$0xff] }
 0xd8c   :  { %3548 = vmatpush1.msra.mxu0 %v10115_v0  ;;  %3619 = vmatpush1.msra.mxu1 %v10116_v61  ;;  %v3812_v0 = vld [vmem:[#allocation9 + $0x380] sm:$0xff]  ;;  %v3814_v61 = vld [vmem:[#allocation9 + $0x390] sm:$0xff] }
 0xd8d   :  { %3549 = vmatprep.subr.mxu0 %v10117_v4  ;;  %3620 = vmatprep.subr.mxu1 %v10118_v62  ;;  %v3809_v4 = vld [vmem:[#allocation9 + $0x368] sm:$0xff]  ;;  %v3811_v62 = vld [vmem:[#allocation9 + $0x378] sm:$0xff] }
 0xd8e   :  { %3550 = vmatpush1.msra.mxu0 %v10119_v38  ;;  %3621 = vmatpush1.msra.mxu1 %v10120_v54  ;;  %v3808_v38 = vld [vmem:[#allocation9 + $0x360] sm:$0xff]  ;;  %v3810_v54 = vld [vmem:[#allocation9 + $0x370] sm:$0xff] }
 0xd8f   :  { %3551 = vmatprep.subr.mxu0 %v10121_v1  ;;  %3622 = vmatprep.subr.mxu1 %v10122_v63  ;;  %v3805_v1 = vld [vmem:[#allocation9 + $0x348] sm:$0xff]  ;;  %v3807_v63 = vld [vmem:[#allocation9 + $0x358] sm:$0xff] }
 0xd90   :  { %3552 = vmatpush1.msra.mxu0 %v10123_v11  ;;  %3623 = vmatpush1.msra.mxu1 %v10124_v57  ;;  %v3804_v11 = vld [vmem:[#allocation9 + $0x340] sm:$0xff]  ;;  %v3806_v57 = vld [vmem:[#allocation9 + $0x350] sm:$0xff] }
 0xd91   :  { %3585 = vmatprep.mubr.f32.mxu0 %v10125_v3  ;;  %3656 = vmatprep.mubr.f32.mxu1 %v10125_v3 }
 0xd92   :  { %3849 = vmatprep.subr.mxu0 %v3825_v17  ;;  %3962 = vmatprep.subr.mxu1 %v3827_v18  ;;  %v3801_v17 = vld [vmem:[#allocation9 + $0x328] sm:$0xff]  ;;  %v3803_v18 = vld [vmem:[#allocation9 + $0x338] sm:$0xff] }
 0xe31   :  { %v3414_v24 = vpop.f32.mrf.mxu0  ;;  %v3485_v32 = vpop.f32.mrf.mxu1 }
 0xe32   :  { %v3490_v31 = vadd.f32 %v3414_v24, %v2147_v23  ;;  %v3492_v37 = vadd.f32 %v3485_v32, %v2260_v35  ;;  %v3802_v23 = vld [vmem:[#allocation9 + $0x330] sm:$0xff]  ;;  %v3797_v24 = vld [vmem:[#allocation9 + $0x308] sm:$0xff] }
 0xe33   :  { %v3416_v33 = vpop.f32.mrf.mxu0  ;;  %v3487_v51 = vpop.f32.mrf.mxu1  ;;  %v3793_v32 = vld [vmem:[#allocation9 + $0x2e8] sm:$0xff]  ;;  %v3794_v35 = vld [vmem:[#allocation9 + $0x2f0] sm:$0xff] }
 0xe34   :  { %v3494_v36 = vmul.f32 0.5, %v3490_v31  ;;  %v3491_v50 = vadd.f32 %v3416_v33, %v2149_v30  ;;  %v3493_v43 = vadd.f32 %v3487_v51, %v2262_v21  ;;  %v3796_v30 = vld [vmem:[#allocation9 + $0x300] sm:$0xff]  ;;  %v3798_v31 = vld [vmem:[#allocation9 + $0x310] sm:$0xff]  ;;  %v3795_v33 = vld [vmem:[#allocation9 + $0x2f8] sm:$0xff] }
 0xe35   :  { %v3785_v51 = vld [vmem:[#allocation9 + $0x2a8] sm:$0xff]  ;;  %v3784_v21 = vld [vmem:[#allocation9 + $0x2a0] sm:$0xff] }
 0xe36   :  { %5833 = vtanh.f32 %v3494_v36  ;;  %v3498_v6 = vmul.f32 0.5, %v3491_v50  ;;  %v3503_v2 = vmul.f32 0.5, %v3493_v43  ;;  %v3789_v36 = vld [vmem:[#allocation9 + $0x2c8] sm:$0xff]  ;;  %v3791_v50 = vld [vmem:[#allocation9 + $0x2d8] sm:$0xff]  ;;  %v3786_v43 = vld [vmem:[#allocation9 + $0x2b0] sm:$0xff] }
 0xe38   :  { %5835 = vtanh.f32 %v3498_v6  ;;  %v3790_v6 = vld [vmem:[#allocation9 + $0x2d0] sm:$0xff] }
 0xe39   :  { %5837 = vtanh.f32 %v3492_v37  ;;  %v3788_v37 = vld [vmem:[#allocation9 + $0x2c0] sm:$0xff] }
 0xe3a   :  { %5839 = vtanh.f32 %v3503_v2  ;;  %v3781_v2 = vld [vmem:[#allocation9 + $0x288] sm:$0xff] }
 0xe43   :  { %v5834_v27 = vpop.eup %5833 }
 0xe44   :  { %v3496_v49 = vadd.f32 1.0, %v5834_v27  ;;  %v3783_v27 = vld [vmem:[#allocation9 + $0x298] sm:$0xff] }
 0xe45   :  { %v5836_v28 = vpop.eup %5835 }
 0xe46   :  { %v3497_v20 = vmul.f32 0.5, %v3496_v49  ;;  %v3500_v39 = vadd.f32 1.0, %v5836_v28  ;;  %v5838_v10 = vpop.eup %5837  ;;  %v3780_v49 = vld [vmem:[#allocation9 + $0x280] sm:$0xff]  ;;  %v3782_v28 = vld [vmem:[#allocation9 + $0x290] sm:$0xff] }
 0xe47   :  { %v5840_v42 = vpop.eup %5839 }
 0xe48   :  { %v3501_v60 = vmul.f32 0.5, %v3500_v39  ;;  %v3508_v46 = vmul.f32 %v5838_v10, %v3497_v20  ;;  %v3505_v12 = vadd.f32 1.0, %v5840_v42  ;;  %v3777_v20 = vld [vmem:[#allocation9 + $0x268] sm:$0xff]  ;;  %v3779_v39 = vld [vmem:[#allocation9 + $0x278] sm:$0xff]  ;;  %v3776_v10 = vld [vmem:[#allocation9 + $0x260] sm:$0xff] }
 0xe49   :  { %v3772_v42 = vld [vmem:[#allocation9 + $0x240] sm:$0xff] }
 0xe4a   :  { %v3507_v15 = vmul.f32 %v3501_v60, %v8196_v9  ;;  %v3506_v7 = vmul.f32 0.5, %v3505_v12  ;;  %v3822_v9 = vld [vmem:[#allocation9 + $0x3d0] sm:$0xff] }
 0xe4b   :  { %v3778_v60 = vld [vmem:[#allocation9 + $0x270] sm:$0xff] }
 0xe4c   :  { %v8276_v16 = vadd.f32 %v3508_v46, %v3507_v15  ;;  %v3773_v46 = vld [vmem:[#allocation9 + $0x248] sm:$0xff]  ;;  %v3775_v15 = vld [vmem:[#allocation9 + $0x258] sm:$0xff]  ;;  %v3774_v12 = vld [vmem:[#allocation9 + $0x250] sm:$0xff] }
 0xe4e   :  { %5841 = vtanh.f32 %v8276_v16 }
 0xe5b   :  { %v5842_v45 = vpop.eup %5841 }
 0xe5c   :  { %v8279_v14 = vmul.f32 %v5842_v45, %v3506_v7  ;;  %v3769_v7 = vld [vmem:[#allocation9 + $0x228] sm:$0xff]  ;;  %v3771_v45 = vld [vmem:[#allocation9 + $0x238] sm:$0xff] }
 0xe5e   :  { %3586 = vmatmul.mubr.f32.vlgmr.msra.gmra.mxu0 %v8279_v14  ;;  %3657 = vmatmul.mubr.f32.vlgmr.msra.gmra.mxu1 %v8279_v14 }
 0xe5f   :  { %3850 = vmatpush1.msra.mxu0 %v3824_v44  ;;  %3963 = vmatpush1.msra.mxu1 %v3826_v56  ;;  %v3768_v44 = vld [vmem:[#allocation9 + $0x220] sm:$0xff]  ;;  %v3770_v56 = vld [vmem:[#allocation9 + $0x230] sm:$0xff] }
 0xe60   :  { %3851 = vmatprep.subr.mxu0 %v3821_v40  ;;  %3964 = vmatprep.subr.mxu1 %v3823_v25  ;;  %v3765_v40 = vld [vmem:[#allocation9 + $0x208] sm:$0xff]  ;;  %v3767_v25 = vld [vmem:[#allocation9 + $0x218] sm:$0xff] }
 0xe61   :  { %3852 = vmatpush1.msra.mxu0 %v3820_v48  ;;  %3965 = vmatpush1.msra.mxu1 %v3822_v9  ;;  %v3764_v48 = vld [vmem:[#allocation9 + $0x200] sm:$0xff]  ;;  %v3766_v9 = vld [vmem:[#allocation9 + $0x210] sm:$0xff] }
 0xe62   :  { %3853 = vmatprep.subr.mxu0 %v3817_v52  ;;  %3966 = vmatprep.subr.mxu1 %v3819_v59  ;;  %v10132_v52 = vld [vmem:[#allocation74_spill] sm:$0xff]  ;;  %v10133_v59 = vld [vmem:[#allocation23_spill] sm:$0xff] }
 0xe63   :  { %3854 = vmatpush1.msra.mxu0 %v3816_v53  ;;  %3967 = vmatpush1.msra.mxu1 %v3818_v47  ;;  %v10134_v53 = vld [vmem:[#allocation25_spill] sm:$0xff]  ;;  %v10135_v47 = vld [vmem:[#allocation26_spill] sm:$0xff] }
 0xe64   :  { %3855 = vmatprep.subr.mxu0 %v3813_v55  ;;  %3968 = vmatprep.subr.mxu1 %v3815_v58  ;;  %v10136_v55 = vld [vmem:[#allocation59_spill] sm:$0xff]  ;;  %v8313_v58 = vld [vmem:[#allocation11 + $0x5e8] sm:$0xff] }
 0xe65   :  { %3856 = vmatpush1.msra.mxu0 %v3812_v0  ;;  %3969 = vmatpush1.msra.mxu1 %v3814_v61  ;;  %10137 = vst [vmem:[#allocation61_spill] sm:$0xff] %v8313_v58  ;;  %v8315_v0 = vld [vmem:[#allocation11 + $0x5f8] sm:$0xff]  ;;  %v8321_v61 = vld [vmem:[#allocation11 + $0x5f0] sm:$0xff] }
 0xe66   :  { %3857 = vmatprep.subr.mxu0 %v3809_v4  ;;  %3970 = vmatprep.subr.mxu1 %v3811_v62  ;;  %10138 = vst [vmem:[#allocation19_spill] sm:$0xff] %v8315_v0  ;;  %v8327_v4 = vld [vmem:[#allocation11 + $0x5d8] sm:$0xff]  ;;  %v8331_v62 = vld [vmem:[#allocation11 + $0x5c0] sm:$0xff] }
 0xe67   :  { %3858 = vmatpush1.msra.mxu0 %v3808_v38  ;;  %3971 = vmatpush1.msra.mxu1 %v3810_v54  ;;  %v8333_v38 = vld [vmem:[#allocation11 + $0x5d0] sm:$0xff]  ;;  %v8337_v54 = vld [vmem:[#allocation11 + $0x5a8] sm:$0xff] }
 0xe68   :  { %3859 = vmatprep.subr.mxu0 %v3805_v1  ;;  %3972 = vmatprep.subr.mxu1 %v3807_v63  ;;  %v8339_v1 = vld [vmem:[#allocation11 + $0x5b8] sm:$0xff]  ;;  %v8343_v63 = vld [vmem:[#allocation11 + $0x5a0] sm:$0xff] }
 0xe69   :  { %3860 = vmatpush1.msra.mxu0 %v3804_v11  ;;  %3973 = vmatpush1.msra.mxu1 %v3806_v57  ;;  %v8345_v11 = vld [vmem:[#allocation11 + $0x5b0] sm:$0xff]  ;;  %v8349_v57 = vld [vmem:[#allocation11 + $0x588] sm:$0xff] }
 0xe6a   :  { %3861 = vmatprep.subr.mxu0 %v3801_v17  ;;  %3974 = vmatprep.subr.mxu1 %v3803_v18  ;;  %v8351_v17 = vld [vmem:[#allocation11 + $0x598] sm:$0xff]  ;;  %v8355_v18 = vld [vmem:[#allocation11 + $0x580] sm:$0xff] }
 0xe6b   :  { %3862 = vmatpush1.msra.mxu0 %v3800_v22  ;;  %3975 = vmatpush1.msra.mxu1 %v3802_v23  ;;  %v8357_v22 = vld [vmem:[#allocation11 + $0x590] sm:$0xff]  ;;  %v8361_v23 = vld [vmem:[#allocation11 + $0x568] sm:$0xff] }
 0xe6c   :  { %3863 = vmatprep.subr.mxu0 %v3797_v24  ;;  %3976 = vmatprep.subr.mxu1 %v3799_v29  ;;  %v8363_v24 = vld [vmem:[#allocation11 + $0x578] sm:$0xff]  ;;  %v8367_v29 = vld [vmem:[#allocation11 + $0x560] sm:$0xff] }
 0xe6d   :  { %3864 = vmatpush1.msra.mxu0 %v3796_v30  ;;  %3977 = vmatpush1.msra.mxu1 %v3798_v31  ;;  %v8369_v30 = vld [vmem:[#allocation11 + $0x570] sm:$0xff]  ;;  %v8373_v31 = vld [vmem:[#allocation11 + $0x548] sm:$0xff] }
 0xe6e   :  { %3865 = vmatprep.subr.mxu0 %v3793_v32  ;;  %3978 = vmatprep.subr.mxu1 %v3795_v33  ;;  %v8375_v32 = vld [vmem:[#allocation11 + $0x558] sm:$0xff]  ;;  %v8379_v33 = vld [vmem:[#allocation11 + $0x540] sm:$0xff] }
 0xe6f   :  { %3866 = vmatpush1.msra.mxu0 %v3792_v34  ;;  %3979 = vmatpush1.msra.mxu1 %v3794_v35  ;;  %v8381_v34 = vld [vmem:[#allocation11 + $0x550] sm:$0xff]  ;;  %v8383_v35 = vld [vmem:[#allocation11 + $0x528] sm:$0xff] }
 0xe70   :  { %3867 = vmatprep.subr.mxu0 %v3789_v36  ;;  %3980 = vmatprep.subr.mxu1 %v3791_v50  ;;  %v8387_v36 = vld [vmem:[#allocation11 + $0x538] sm:$0xff]  ;;  %v8389_v50 = vld [vmem:[#allocation11 + $0x520] sm:$0xff] }
 0xe71   :  { %3868 = vmatpush1.msra.mxu0 %v3788_v37  ;;  %3981 = vmatpush1.msra.mxu1 %v3790_v6  ;;  %v8391_v37 = vld [vmem:[#allocation11 + $0x530] sm:$0xff]  ;;  %v8397_v6 = vld [vmem:[#allocation11 + $0x508] sm:$0xff] }
 0xe72   :  { %3869 = vmatprep.subr.mxu0 %v3785_v51  ;;  %3982 = vmatprep.subr.mxu1 %v3787_v5  ;;  %v8399_v51 = vld [vmem:[#allocation11 + $0x518] sm:$0xff]  ;;  %v8403_v5 = vld [vmem:[#allocation11 + $0x500] sm:$0xff] }
 0xe73   :  { %3870 = vmatpush1.msra.mxu0 %v3784_v21  ;;  %3983 = vmatpush1.msra.mxu1 %v3786_v43  ;;  %v8405_v21 = vld [vmem:[#allocation11 + $0x510] sm:$0xff]  ;;  %v8409_v43 = vld [vmem:[#allocation11 + $0x4e8] sm:$0xff] }
 0xe74   :  { %3871 = vmatprep.subr.mxu0 %v3781_v2  ;;  %3984 = vmatprep.subr.mxu1 %v3783_v27  ;;  %v8411_v2 = vld [vmem:[#allocation11 + $0x4f8] sm:$0xff]  ;;  %v8415_v27 = vld [vmem:[#allocation11 + $0x4e0] sm:$0xff] }
 0xe75   :  { %3872 = vmatpush1.msra.mxu0 %v3780_v49  ;;  %3985 = vmatpush1.msra.mxu1 %v3782_v28  ;;  %v8417_v49 = vld [vmem:[#allocation11 + $0x4f0] sm:$0xff]  ;;  %v8421_v28 = vld [vmem:[#allocation11 + $0x4c8] sm:$0xff] }
 0xe76   :  { %3873 = vmatprep.subr.mxu0 %v3777_v20  ;;  %3986 = vmatprep.subr.mxu1 %v3779_v39  ;;  %v8423_v20 = vld [vmem:[#allocation11 + $0x4d8] sm:$0xff]  ;;  %v8427_v39 = vld [vmem:[#allocation11 + $0x4c0] sm:$0xff] }
 0xe77   :  { %3874 = vmatpush1.msra.mxu0 %v3776_v10  ;;  %3987 = vmatpush1.msra.mxu1 %v3778_v60  ;;  %v8429_v10 = vld [vmem:[#allocation11 + $0x4d0] sm:$0xff]  ;;  %v8433_v60 = vld [vmem:[#allocation11 + $0x4a8] sm:$0xff] }
 0xe78   :  { %3875 = vmatprep.subr.mxu0 %v3773_v46  ;;  %3988 = vmatprep.subr.mxu1 %v3775_v15  ;;  %v8435_v46 = vld [vmem:[#allocation11 + $0x4b8] sm:$0xff]  ;;  %v8439_v15 = vld [vmem:[#allocation11 + $0x4a0] sm:$0xff] }
 0xe79   :  { %3876 = vmatpush1.msra.mxu0 %v3772_v42  ;;  %3989 = vmatpush1.msra.mxu1 %v3774_v12  ;;  %10139 = vst [vmem:[#allocation20_spill] sm:$0xff] %v8439_v15  ;;  %v8441_v42 = vld [vmem:[#allocation11 + $0x4b0] sm:$0xff]  ;;  %v8445_v12 = vld [vmem:[#allocation11 + $0x488] sm:$0xff] }
 0xe7a   :  { %3877 = vmatprep.subr.mxu0 %v3769_v7  ;;  %3990 = vmatprep.subr.mxu1 %v3771_v45  ;;  %10140 = vst [vmem:[#allocation21_spill] sm:$0xff] %v8441_v42  ;;  %10141 = vst [vmem:[#allocation22_spill] sm:$0xff] %v8445_v12  ;;  %v8447_v7 = vld [vmem:[#allocation11 + $0x498] sm:$0xff]  ;;  %v8451_v45 = vld [vmem:[#allocation11 + $0x480] sm:$0xff] }
 0xe7b   :  { %3878 = vmatpush1.msra.mxu0 %v3768_v44  ;;  %3991 = vmatpush1.msra.mxu1 %v3770_v56  ;;  %10142 = vst [vmem:[#allocation31_spill] sm:$0xff] %v8447_v7  ;;  %10143 = vst [vmem:[#allocation33_spill] sm:$0xff] %v8451_v45  ;;  %v8453_v44 = vld [vmem:[#allocation11 + $0x490] sm:$0xff]  ;;  %v8457_v56 = vld [vmem:[#allocation11 + $0x468] sm:$0xff] }
 0xe7c   :  { %3879 = vmatprep.subr.mxu0 %v3765_v40  ;;  %3992 = vmatprep.subr.mxu1 %v3767_v25  ;;  %10144 = vst [vmem:[#allocation32_spill] sm:$0xff] %v8453_v44  ;;  %10145 = vst [vmem:[#allocation34_spill] sm:$0xff] %v8457_v56  ;;  %v8459_v40 = vld [vmem:[#allocation11 + $0x478] sm:$0xff]  ;;  %v8463_v25 = vld [vmem:[#allocation11 + $0x460] sm:$0xff] }
 0xe7d   :  { %3880 = vmatpush1.msra.mxu0 %v3764_v48  ;;  %3913 = vmatprep.mubr.f32.mxu0 %v10125_v3  ;;  %10146 = vst [vmem:[#allocation35_spill] sm:$0xff] %v8459_v40  ;;  %10147 = vst [vmem:[#allocation37_spill] sm:$0xff] %v8463_v25  ;;  %v8465_v48 = vld [vmem:[#allocation11 + $0x470] sm:$0xff] }
 0xe7e   :  { %3993 = vmatpush1.msra.mxu1 %v3766_v9  ;;  %4026 = vmatprep.mubr.f32.mxu1 %v10125_v3  ;;  %10148 = vst [vmem:[#allocation36_spill] sm:$0xff] %v8465_v48  ;;  %v8469_v9 = vld [vmem:[#allocation11 + $0x448] sm:$0xff] }
 0xe7f   :  { %3914 = vmatmul.mubr.f32.vlgmr.msra.gmra.mxu0 %v10132_v52  ;;  %4027 = vmatmul.mubr.f32.vlgmr.msra.gmra.mxu1 %v10132_v52  ;;  %10149 = vst [vmem:[#allocation62_spill] sm:$0xff] %v8469_v9  ;;  %v8471_v52 = vld [vmem:[#allocation11 + $0x458] sm:$0xff] }
 0xe80   :  { %3919 = vmatprep.mubr.f32.mxu0 %v10125_v3  ;;  %4032 = vmatprep.mubr.f32.mxu1 %v10125_v3  ;;  %10150 = vst [vmem:[#allocation73_spill] sm:$0xff] %v8471_v52 }
 0xe81   :  { %4115 = vmatprep.subr.mxu0 %v8313_v58  ;;  %4186 = vmatprep.subr.mxu1 %v8315_v0 }
 0xe82   :  { %4187 = vmatpush1.msra.mxu1 %v8321_v61 }
 0xe83   :  { %3920 = vmatmul.mubr.f32.gmra.mxu0 %v10133_v59  ;;  %4033 = vmatmul.mubr.f32.gmra.mxu1 %v10133_v59  ;;  %v8475_v59 = vld [vmem:[#allocation11 + $0x440] sm:$0xff] }
 0xe84   :  { %3925 = vmatprep.mubr.f32.mxu0 %v10125_v3  ;;  %4038 = vmatprep.mubr.f32.mxu1 %v10125_v3  ;;  %10151 = vst [vmem:[#allocation24_spill] sm:$0xff] %v8475_v59 }
 0xe85   :  { %4188 = vmatprep.subr.mxu1 %v8327_v4 }
 0xe86   :  { %4189 = vmatpush1.msra.mxu1 %v8333_v38 }
 0xe87   :  { %3926 = vmatmul.mubr.f32.gmra.mxu0 %v10134_v53  ;;  %4039 = vmatmul.mubr.f32.gmra.mxu1 %v10134_v53  ;;  %v8477_v53 = vld [vmem:[#allocation11 + $0x450] sm:$0xff] }
 0xe88   :  { %3931 = vmatprep.mubr.f32.mxu0 %v10125_v3  ;;  %4044 = vmatprep.mubr.f32.mxu1 %v10125_v3  ;;  %10152 = vst [vmem:[#allocation64_spill] sm:$0xff] %v8477_v53 }
 0xe89   :  { %4190 = vmatprep.subr.mxu1 %v8339_v1 }
 0xe8a   :  { %4191 = vmatpush1.msra.mxu1 %v8345_v11 }
 0xe8b   :  { %3932 = vmatmul.mubr.f32.gmra.mxu0 %v10135_v47  ;;  %4045 = vmatmul.mubr.f32.gmra.mxu1 %v10135_v47  ;;  %v8481_v47 = vld [vmem:[#allocation11 + $0x428] sm:$0xff] }
 0xe8c   :  { %3937 = vmatprep.mubr.f32.mxu0 %v10125_v3  ;;  %4050 = vmatprep.mubr.f32.mxu1 %v10125_v3  ;;  %10153 = vst [vmem:[#allocation65_spill] sm:$0xff] %v8481_v47 }
 0xe8d   :  { %4192 = vmatprep.subr.mxu1 %v8351_v17 }
 0xe8e   :  { %4193 = vmatpush1.msra.mxu1 %v8357_v22 }
 0xe8f   :  { %3938 = vmatmul.mubr.f32.gmra.mxu0 %v10136_v55  ;;  %4051 = vmatmul.mubr.f32.gmra.mxu1 %v10136_v55  ;;  %v8483_v55 = vld [vmem:[#allocation11 + $0x438] sm:$0xff] }
 0xe90   :  { %3943 = vmatprep.mubr.f32.mxu0 %v10125_v3  ;;  %4056 = vmatprep.mubr.f32.mxu1 %v10125_v3  ;;  %10154 = vst [vmem:[#allocation63_spill] sm:$0xff] %v8483_v55 }
 0xe91   :  { %4194 = vmatprep.subr.mxu1 %v8363_v24 }
 0xe92   :  { %4195 = vmatpush1.msra.mxu1 %v8369_v30 }
 0xe93   :  { %3944 = vmatmul.mubr.f32.gmra.mxu0 %v8199_v13  ;;  %4057 = vmatmul.mubr.f32.gmra.mxu1 %v8199_v13  ;;  %v8319_v13 = vld [vmem:[#allocation11 + $0x5e0] sm:$0xff] }
 0xe94   :  { %3949 = vmatprep.mubr.f32.mxu0 %v10125_v3  ;;  %4062 = vmatprep.mubr.f32.mxu1 %v10125_v3 }
 0xe95   :  { %4116 = vmatpush1.msra.mxu0 %v8319_v13  ;;  %4196 = vmatprep.subr.mxu1 %v8375_v32 }
 0xe96   :  { %4197 = vmatpush1.msra.mxu1 %v8381_v34 }
 0xe97   :  { %3950 = vmatmul.mubr.f32.gmra.mxu0 %v8279_v14  ;;  %4063 = vmatmul.mubr.f32.gmra.mxu1 %v8279_v14  ;;  %v8325_v14 = vld [vmem:[#allocation11 + $0x5c8] sm:$0xff] }
 0xe98   :  { %3955 = vmatprep.mubr.f32.mxu0 %v10125_v3  ;;  %4068 = vmatprep.mubr.f32.mxu1 %v10125_v3 }
 0xe99   :  { %4117 = vmatprep.subr.mxu0 %v8325_v14  ;;  %4198 = vmatprep.subr.mxu1 %v8387_v36 }
 0xe9a   :  { %4118 = vmatpush1.msra.mxu0 %v8331_v62  ;;  %4199 = vmatpush1.msra.mxu1 %v8391_v37 }
 0xe9b   :  { %4119 = vmatprep.subr.mxu0 %v8337_v54  ;;  %4200 = vmatprep.subr.mxu1 %v8399_v51 }
 0xe9c   :  { %4120 = vmatpush1.msra.mxu0 %v8343_v63  ;;  %4201 = vmatpush1.msra.mxu1 %v8405_v21 }
 0xe9d   :  { %4121 = vmatprep.subr.mxu0 %v8349_v57  ;;  %4202 = vmatprep.subr.mxu1 %v8411_v2 }
 0xe9e   :  { %4122 = vmatpush1.msra.mxu0 %v8355_v18  ;;  %4203 = vmatpush1.msra.mxu1 %v8417_v49 }
 0xe9f   :  { %4123 = vmatprep.subr.mxu0 %v8361_v23  ;;  %4204 = vmatprep.subr.mxu1 %v8423_v20 }
 0xea0   :  { %4124 = vmatpush1.msra.mxu0 %v8367_v29  ;;  %4205 = vmatpush1.msra.mxu1 %v8429_v10 }
 0xea1   :  { %4125 = vmatprep.subr.mxu0 %v8373_v31  ;;  %4206 = vmatprep.subr.mxu1 %v8435_v46 }
 0xea2   :  { %4126 = vmatpush1.msra.mxu0 %v8379_v33  ;;  %4207 = vmatpush1.msra.mxu1 %v8441_v42 }
 0xea3   :  { %4127 = vmatprep.subr.mxu0 %v8383_v35  ;;  %4208 = vmatprep.subr.mxu1 %v8447_v7 }
 0xea4   :  { %4128 = vmatpush1.msra.mxu0 %v8389_v50  ;;  %4209 = vmatpush1.msra.mxu1 %v8453_v44  ;;  %v10163_v44 = vld [vmem:[#allocation67_spill] sm:$0xff] }
 0xea5   :  { %4129 = vmatprep.subr.mxu0 %v8397_v6  ;;  %4210 = vmatprep.subr.mxu1 %v8459_v40 }
 0xea6   :  { %4130 = vmatpush1.msra.mxu0 %v8403_v5  ;;  %4211 = vmatpush1.msra.mxu1 %v8465_v48  ;;  %v8487_v48 = vld [vmem:[#allocation11 + $0x420] sm:$0xff] }
 0xea7   :  { %4131 = vmatprep.subr.mxu0 %v8409_v43  ;;  %4212 = vmatprep.subr.mxu1 %v8471_v52  ;;  %10155 = vst [vmem:[#allocation70_spill] sm:$0xff] %v8487_v48  ;;  %v8493_v52 = vld [vmem:[#allocation11 + $0x408] sm:$0xff] }
 0xea8   :  { %4132 = vmatpush1.msra.mxu0 %v8415_v27  ;;  %4213 = vmatpush1.msra.mxu1 %v8477_v53  ;;  %10157 = vst [vmem:[#allocation46_spill] sm:$0xff] %v8493_v52  ;;  %v8499_v53 = vld [vmem:[#allocation11 + $0x400] sm:$0xff] }
 0xea9   :  { %4133 = vmatprep.subr.mxu0 %v8421_v28  ;;  %4214 = vmatprep.subr.mxu1 %v8483_v55  ;;  %10159 = vst [vmem:[#allocation29_spill] sm:$0xff] %v8499_v53 }
 0xeaa   :  { %4134 = vmatpush1.msra.mxu0 %v8427_v39 }
 0xeab   :  { %4135 = vmatprep.subr.mxu0 %v8433_v60 }
 0xeac   :  { %4136 = vmatpush1.msra.mxu0 %v8439_v15 }
 0xead   :  { %4137 = vmatprep.subr.mxu0 %v8445_v12 }
 0xeae   :  { %4138 = vmatpush1.msra.mxu0 %v8451_v45  ;;  %v2266_v45 = vadd.f32 %v10163_v44, %v9982_v41 }
 0xeaf   :  { %4139 = vmatprep.subr.mxu0 %v8457_v56 }
 0xeb0   :  { %4140 = vmatpush1.msra.mxu0 %v8463_v25 }
 0xeb1   :  { %4141 = vmatprep.subr.mxu0 %v8469_v9  ;;  %v8489_v9 = vld [vmem:[#allocation11 + $0x430] sm:$0xff] }
 0xeb2   :  { %4142 = vmatpush1.msra.mxu0 %v8475_v59  ;;  %10156 = vst [vmem:[#allocation17_spill] sm:$0xff] %v8489_v9  ;;  %4215 = vmatpush1.msra.mxu1 %v8489_v9  ;;  %v8495_v59 = vld [vmem:[#allocation11 + $0x418] sm:$0xff]  ;;  %v10161_v9 = vld [vmem:[#allocation68_spill] sm:$0xff] }
 0xeb3   :  { %4143 = vmatprep.subr.mxu0 %v8481_v47  ;;  %10158 = vst [vmem:[#allocation27_spill] sm:$0xff] %v8495_v59  ;;  %4216 = vmatprep.subr.mxu1 %v8495_v59  ;;  %v8501_v47 = vld [vmem:[#allocation11 + $0x410] sm:$0xff] }
 0xeb4   :  { %4144 = vmatpush1.msra.mxu0 %v8487_v48  ;;  %10160 = vst [vmem:[#allocation28_spill] sm:$0xff] %v8501_v47  ;;  %4217 = vmatpush1.msra.mxu1 %v8501_v47  ;;  %v2153_v48 = vadd.f32 %v10161_v9, %v10126_v19  ;;  %v10164_v19 = vld [vmem:[#allocation72_spill] sm:$0xff] }
 0xeb5   :  { %4145 = vmatprep.subr.mxu0 %v8493_v52  ;;  %4358 = vmatprep.subr.mxu1 %v8315_v0  ;;  %v10162_v52 = vld [vmem:[#allocation71_spill] sm:$0xff]  ;;  %v2268_v9 = vadd.f32 %v10164_v19, %v7655_v8 }
 0xeb6   :  { %4146 = vmatpush1.msra.mxu0 %v8499_v53  ;;  %v2155_v25 = vadd.f32 %v10162_v52, %v10128_v26  ;;  %v10172_v19 = vld [vmem:[#allocation35_spill] sm:$0xff] }
 0xeb7   :  { %4287 = vmatprep.subr.mxu0 %v8313_v58 }
 0xf1e   :  { %v3587_v55 = vpop.f32.mrf.mxu0  ;;  %v3658_v40 = vpop.f32.mrf.mxu1 }
 0xf1f   :  { %v3663_v59 = vadd.f32 %v3587_v55, %v2153_v48  ;;  %v3665_v47 = vadd.f32 %v3658_v40, %v2266_v45 }
 0xf20   :  { %v3589_v56 = vpop.f32.mrf.mxu0  ;;  %v3660_v0 = vpop.f32.mrf.mxu1 }
 0xf21   :  { %v3667_v53 = vmul.f32 0.5, %v3663_v59  ;;  %v3664_v7 = vadd.f32 %v3589_v56, %v2155_v25  ;;  %v3666_v12 = vadd.f32 %v3660_v0, %v2268_v9  ;;  %v10166_v0 = vld [vmem:[#allocation21_spill] sm:$0xff] }
 0xf22   :  { %v10173_v9 = vld [vmem:[#allocation37_spill] sm:$0xff] }
 0xf23   :  { %5843 = vtanh.f32 %v3667_v53  ;;  %v3671_v58 = vmul.f32 0.5, %v3664_v7  ;;  %v3676_v42 = vmul.f32 0.5, %v3666_v12  ;;  %v10169_v12 = vld [vmem:[#allocation33_spill] sm:$0xff]  ;;  %v10170_v53 = vld [vmem:[#allocation32_spill] sm:$0xff] }
 0xf25   :  { %5845 = vtanh.f32 %v3671_v58 }
 0xf26   :  { %5847 = vtanh.f32 %v3665_v47  ;;  %v10171_v47 = vld [vmem:[#allocation34_spill] sm:$0xff] }
 0xf27   :  { %5849 = vtanh.f32 %v3676_v42  ;;  %v10168_v42 = vld [vmem:[#allocation31_spill] sm:$0xff] }
 0xf30   :  { %v5844_v26 = vpop.eup %5843 }
 0xf31   :  { %v3669_v48 = vadd.f32 1.0, %v5844_v26  ;;  %v10174_v26 = vld [vmem:[#allocation36_spill] sm:$0xff] }
 0xf32   :  { %v5846_v52 = vpop.eup %5845 }
 0xf33   :  { %v3670_v55 = vmul.f32 0.5, %v3669_v48  ;;  %v3673_v15 = vadd.f32 1.0, %v5846_v52  ;;  %v5848_v41 = vpop.eup %5847  ;;  %v10175_v48 = vld [vmem:[#allocation62_spill] sm:$0xff]  ;;  %v10176_v52 = vld [vmem:[#allocation73_spill] sm:$0xff] }
 0xf34   :  { %v5850_v58 = vpop.eup %5849 }
 0xf35   :  { %v3674_v44 = vmul.f32 0.5, %v3673_v15  ;;  %v3681_v56 = vmul.f32 %v5848_v41, %v3670_v55  ;;  %v3678_v40 = vadd.f32 1.0, %v5850_v58  ;;  %v10167_v15 = vld [vmem:[#allocation22_spill] sm:$0xff]  ;;  %v10177_v55 = vld [vmem:[#allocation24_spill] sm:$0xff] }
 0xf36   :  { %v10178_v41 = vld [vmem:[#allocation64_spill] sm:$0xff]  ;;  %v10183_v58 = vld [vmem:[#allocation46_spill] sm:$0xff] }
 0xf37   :  { %v3680_v45 = vmul.f32 %v3674_v44, %v8276_v16  ;;  %v3679_v25 = vmul.f32 0.5, %v3678_v40  ;;  %v10165_v16 = vld [vmem:[#allocation20_spill] sm:$0xff]  ;;  %v10179_v44 = vld [vmem:[#allocation65_spill] sm:$0xff]  ;;  %v10184_v40 = vld [vmem:[#allocation27_spill] sm:$0xff] }
 0xf39   :  { %v3682_v7 = vadd.f32 %v3681_v56, %v3680_v45  ;;  %v10180_v56 = vld [vmem:[#allocation63_spill] sm:$0xff]  ;;  %v10181_v45 = vld [vmem:[#allocation70_spill] sm:$0xff] }
 0xf3b   :  { %5851 = vtanh.f32 %v3682_v7  ;;  %v10182_v7 = vld [vmem:[#allocation17_spill] sm:$0xff] }
 0xf48   :  { %v5852_v59 = vpop.eup %5851 }
 0xf49   :  { %v3684_v8 = vmul.f32 %v5852_v59, %v3679_v25  ;;  %v10185_v25 = vld [vmem:[#allocation29_spill] sm:$0xff]  ;;  %v10186_v59 = vld [vmem:[#allocation28_spill] sm:$0xff] }
 0xf4b   :  { %3956 = vmatmul.mubr.f32.gmra.mxu0 %v3684_v8  ;;  %4069 = vmatmul.mubr.f32.gmra.mxu1 %v3684_v8  ;;  %v10187_v8 = vld [vmem:[#allocation61_spill] sm:$0xff] }
 0xf4c   :  { %4179 = vmatprep.mubr.f32.mxu0 %v10125_v3  ;;  %4250 = vmatprep.mubr.f32.mxu1 %v10125_v3 }
 0xf4f   :  { %4180 = vmatmul.mubr.f32.vlgmr.msra.gmra.mxu0 %v10125_v3  ;;  %4251 = vmatmul.mubr.f32.vlgmr.msra.gmra.mxu1 %v10125_v3 }
 0xf50   :  { %4288 = vmatpush1.msra.mxu0 %v8319_v13  ;;  %4359 = vmatpush1.msra.mxu1 %v8321_v61 }
 0xf51   :  { %4289 = vmatprep.subr.mxu0 %v8325_v14  ;;  %4360 = vmatprep.subr.mxu1 %v8327_v4 }
 0xf52   :  { %4290 = vmatpush1.msra.mxu0 %v8331_v62  ;;  %4361 = vmatpush1.msra.mxu1 %v8333_v38 }
 0xf53   :  { %4291 = vmatprep.subr.mxu0 %v8337_v54  ;;  %4362 = vmatprep.subr.mxu1 %v8339_v1 }
 0xf54   :  { %4292 = vmatpush1.msra.mxu0 %v8343_v63  ;;  %4363 = vmatpush1.msra.mxu1 %v8345_v11 }
 0xf55   :  { %4293 = vmatprep.subr.mxu0 %v8349_v57  ;;  %4364 = vmatprep.subr.mxu1 %v8351_v17 }
 0xf56   :  { %4294 = vmatpush1.msra.mxu0 %v8355_v18  ;;  %4365 = vmatpush1.msra.mxu1 %v8357_v22 }
 0xf57   :  { %4295 = vmatprep.subr.mxu0 %v8361_v23  ;;  %4366 = vmatprep.subr.mxu1 %v8363_v24 }
 0xf58   :  { %4296 = vmatpush1.msra.mxu0 %v8367_v29  ;;  %4367 = vmatpush1.msra.mxu1 %v8369_v30 }
 0xf59   :  { %4297 = vmatprep.subr.mxu0 %v8373_v31  ;;  %4368 = vmatprep.subr.mxu1 %v8375_v32 }
 0xf5a   :  { %4298 = vmatpush1.msra.mxu0 %v8379_v33  ;;  %4369 = vmatpush1.msra.mxu1 %v8381_v34 }
 0xf5b   :  { %4299 = vmatprep.subr.mxu0 %v8383_v35  ;;  %4370 = vmatprep.subr.mxu1 %v8387_v36 }
 0xf5c   :  { %4300 = vmatpush1.msra.mxu0 %v8389_v50  ;;  %4371 = vmatpush1.msra.mxu1 %v8391_v37 }
 0xf5d   :  { %4301 = vmatprep.subr.mxu0 %v8397_v6  ;;  %4372 = vmatprep.subr.mxu1 %v8399_v51 }
 0xf5e   :  { %4302 = vmatpush1.msra.mxu0 %v8403_v5  ;;  %4373 = vmatpush1.msra.mxu1 %v8405_v21 }
 0xf5f   :  { %4303 = vmatprep.subr.mxu0 %v8409_v43  ;;  %4374 = vmatprep.subr.mxu1 %v8411_v2 }
 0xf60   :  { %4304 = vmatpush1.msra.mxu0 %v8415_v27  ;;  %4375 = vmatpush1.msra.mxu1 %v8417_v49 }
 0xf61   :  { %4305 = vmatprep.subr.mxu0 %v8421_v28  ;;  %4376 = vmatprep.subr.mxu1 %v8423_v20 }
 0xf62   :  { %4306 = vmatpush1.msra.mxu0 %v8427_v39  ;;  %4377 = vmatpush1.msra.mxu1 %v8429_v10 }
 0xf63   :  { %4307 = vmatprep.subr.mxu0 %v8433_v60  ;;  %4378 = vmatprep.subr.mxu1 %v8435_v46 }
 0xf64   :  { %4308 = vmatpush1.msra.mxu0 %v10165_v16  ;;  %4379 = vmatpush1.msra.mxu1 %v10166_v0 }
 0xf65   :  { %4309 = vmatprep.subr.mxu0 %v10167_v15  ;;  %4380 = vmatprep.subr.mxu1 %v10168_v42 }
 0xf66   :  { %4310 = vmatpush1.msra.mxu0 %v10169_v12  ;;  %4381 = vmatpush1.msra.mxu1 %v10170_v53 }
 0xf67   :  { %4311 = vmatprep.subr.mxu0 %v10171_v47  ;;  %4382 = vmatprep.subr.mxu1 %v10172_v19 }
 0xf68   :  { %4312 = vmatpush1.msra.mxu0 %v10173_v9  ;;  %4383 = vmatpush1.msra.mxu1 %v10174_v26 }
 0xf69   :  { %4313 = vmatprep.subr.mxu0 %v10175_v48  ;;  %4384 = vmatprep.subr.mxu1 %v10176_v52 }
 0xf6a   :  { %4314 = vmatpush1.msra.mxu0 %v10177_v55  ;;  %4385 = vmatpush1.msra.mxu1 %v10178_v41 }
 0xf6b   :  { %4315 = vmatprep.subr.mxu0 %v10179_v44  ;;  %4386 = vmatprep.subr.mxu1 %v10180_v56  ;;  %v10188_v44 = vld [vmem:[#allocation19_spill] sm:$0xff]  ;;  %v3915_v56 = vpop.f32.mrf.mxu0 }
 0xf6c   :  { %4316 = vmatpush1.msra.mxu0 %v10181_v45  ;;  %4387 = vmatpush1.msra.mxu1 %v10182_v7  ;;  %v4028_v45 = vpop.f32.mrf.mxu1 }
 0xf6d   :  { %4317 = vmatprep.subr.mxu0 %v10183_v58  ;;  %4388 = vmatprep.subr.mxu1 %v10184_v40  ;;  %v3917_v41 = vpop.f32.mrf.mxu0 }
 0xf6e   :  { %4318 = vmatpush1.msra.mxu0 %v10185_v25  ;;  %4351 = vmatprep.mubr.f32.mxu0 %v10125_v3  ;;  %v4030_v7 = vpop.f32.mrf.mxu1 }
 0xf6f   :  { %4389 = vmatpush1.msra.mxu1 %v10186_v59  ;;  %4422 = vmatprep.mubr.f32.mxu1 %v10125_v3  ;;  %v8586_v55 = vpop.f32.mrf.mxu0 }
 0xf70   :  { %4459 = vmatprep.subr.mxu0 %v10187_v8  ;;  %4530 = vmatprep.subr.mxu1 %v10188_v44  ;;  %10189 = vst [vmem:[#allocation30_spill] sm:$0xff] %v8586_v55  ;;  %v8588_v58 = vpop.f32.mrf.mxu1 }
 0xf71   :  { %10190 = vst [vmem:[#allocation48_spill] sm:$0xff] %v8588_v58  ;;  %v8590_v40 = vpop.f32.mrf.mxu0 }
 0xf72   :  { %10191 = vst [vmem:[#allocation47_spill] sm:$0xff] %v8590_v40  ;;  %v8592_v25 = vpop.f32.mrf.mxu1 }
 0xf73   :  { %10192 = vst [vmem:[#allocation49_spill] sm:$0xff] %v8592_v25  ;;  %v8594_v52 = vpop.f32.mrf.mxu0 }
 0xf74   :  { %10193 = vst [vmem:[#allocation50_spill] sm:$0xff] %v8594_v52  ;;  %v8596_v59 = vpop.f32.mrf.mxu1 }
 0xf75   :  { %10194 = vst [vmem:[#allocation52_spill] sm:$0xff] %v8596_v59  ;;  %v8598_v3 = vpop.f32.mrf.mxu0 }
 0xf76   :  { %10195 = vst [vmem:[#allocation51_spill] sm:$0xff] %v8598_v3  ;;  %v8600_v8 = vpop.f32.mrf.mxu1 }
 0xf77   :  { %10196 = vst [vmem:[#allocation53_spill] sm:$0xff] %v8600_v8  ;;  %v8602_v44 = vpop.f32.mrf.mxu0 }
 0xf78   :  { %10197 = vst [vmem:[#allocation54_spill] sm:$0xff] %v8602_v44  ;;  %v8604_v48 = vpop.f32.mrf.mxu1 }
 0xf79   :  { %10198 = vst [vmem:[#allocation56_spill] sm:$0xff] %v8604_v48  ;;  %v8606_v26 = vpop.f32.mrf.mxu0 }
 0xf7a   :  { %10199 = vst [vmem:[#allocation55_spill] sm:$0xff] %v8606_v26  ;;  %v8608_v55 = vpop.f32.mrf.mxu1 }
 0xf7b   :  { %10200 = vst [vmem:[#allocation57_spill] sm:$0xff] %v8608_v55  ;;  %v8610_v58 = vpop.f32.mrf.mxu0 }
 0xf7c   :  { %10201 = vst [vmem:[#allocation44_spill] sm:$0xff] %v8610_v58  ;;  %v8612_v40 = vpop.f32.mrf.mxu1 }
 0xf7d   :  { %10202 = vst [vmem:[#allocation43_spill] sm:$0xff] %v8612_v40  ;;  %v8614_v25 = vpop.f32.mrf.mxu0  ;;  %v5629_v40 = vld [vmem:[%s9342_s4 + $0x8] sm:$0xf] }
 0xf7e   :  { %10203 = vst [vmem:[#allocation58_spill] sm:$0xff] %v8614_v25  ;;  %v8616_v52 = vpop.f32.mrf.mxu1 }
 0xf7f   :  { %10204 = vst [vmem:[#allocation60_spill] sm:$0xff] %v8616_v52  ;;  %v8618_v59 = vpop.f32.mrf.mxu0  ;;  %v10213_v52 = vld [vmem:[#allocation38_spill] sm:$0xff] }
 0xf80   :  { %10205 = vst [vmem:[#allocation66_spill] sm:$0xff] %v8618_v59  ;;  %v8620_v3 = vpop.f32.mrf.mxu1  ;;  %v8638_v59 = vrot.slane %v5629_v40, %v10213_v52 }
 0xf81   :  { %10206 = vst [vmem:[#allocation18_spill] sm:$0xff] %v8620_v3  ;;  %v8622_v8 = vpop.f32.mrf.mxu0 }
 0xf82   :  { %10207 = vst [vmem:[#allocation69_spill] sm:$0xff] %v8622_v8  ;;  %v8624_v44 = vpop.f32.mrf.mxu1  ;;  %10214 = vst [vmem:[#allocation25_spill] sm:$0xff] %v8638_v59 }
 0xf83   :  { %10208 = vst [vmem:[#allocation45_spill] sm:$0xff] %v8624_v44  ;;  %v8626_v48 = vpop.f32.mrf.mxu0  ;;  %v10217_v44 = vld [vmem:[#allocation40_spill] sm:$0xff] }
 0xf84   :  { %10209 = vst [vmem:[#allocation42_spill] sm:$0xff] %v8626_v48  ;;  %v8628_v26 = vpop.f32.mrf.mxu1  ;;  %v8645_v55 = vrot.slane %v5629_v40, %v10217_v44 }
 0xf85   :  { %10210 = vst [vmem:[#allocation16_spill] sm:$0xff] %v8628_v26  ;;  %v8633_v58 = vpop.f32.mrf.mxu0  ;;  %v3916_v26 = vadd.f32 %v3915_v56, %v8638_v59 }
 0xf86   :  { %10211 = vst [vmem:[#allocation74_spill] sm:$0xff] %v8633_v58  ;;  %v8635_v25 = vpop.f32.mrf.mxu1  ;;  %10218 = vst [vmem:[#allocation68_spill] sm:$0xff] %v8645_v55  ;;  %v10221_v58 = vld [vmem:[#allocation39_spill] sm:$0xff]  ;;  %v3918_v52 = vadd.f32 %v3917_v41, %v8645_v55 }
 0xf87   :  { %10212 = vst [vmem:[#allocation23_spill] sm:$0xff] %v8635_v25  ;;  %v8653_v47 = vrot.slane %v5629_v40, %v10221_v58 }
 0xf89   :  { %10222 = vst [vmem:[#allocation72_spill] sm:$0xff] %v8653_v47  ;;  %v4029_v44 = vadd.f32 %v4028_v45, %v8653_v47 }
0x100b   :  { %v8640_v3 = vpop.f32.mrf.mxu0  ;;  %v8642_v8 = vpop.f32.mrf.mxu1 }
0x100c   :  { %10215 = vst [vmem:[#allocation26_spill] sm:$0xff] %v8640_v3  ;;  %10216 = vst [vmem:[#allocation59_spill] sm:$0xff] %v8642_v8 }
0x100d   :  { %v8647_v48 = vpop.f32.mrf.mxu0  ;;  %v8650_v9 = vpop.f32.mrf.mxu1 }
0x100e   :  { %10219 = vst [vmem:[#allocation71_spill] sm:$0xff] %v8647_v48  ;;  %10220 = vst [vmem:[#allocation67_spill] sm:$0xff] %v8650_v9  ;;  %v10223_v48 = vld [vmem:[#allocation41_spill] sm:$0xff] }
0x100f   :  { %v4181_v19 = vpop.f32.mrf.mxu0  ;;  %v4252_v8 = vpop.f32.mrf.mxu1  ;;  %v8658_v15 = vrot.slane %v5629_v40, %v10223_v48 }
0x1010   :  { %v4257_v25 = vadd.f32 %v4181_v19, %v3916_v26  ;;  %v4259_v56 = vadd.f32 %v4252_v8, %v4029_v44  ;;  %v10226_v44 = vld [vmem:[#allocation33_spill] sm:$0xff] }
0x1011   :  { %v4183_v53 = vpop.f32.mrf.mxu0  ;;  %v4254_v9 = vpop.f32.mrf.mxu1  ;;  %v4031_v58 = vadd.f32 %v4030_v7, %v8658_v15 }
0x1012   :  { %v4261_v3 = vmul.f32 0.5, %v4257_v25  ;;  %v4258_v12 = vadd.f32 %v4183_v53, %v3918_v52 }
0x1013   :  { %v4260_v59 = vadd.f32 %v4254_v9, %v4031_v58  ;;  %v10228_v58 = vld [vmem:[#allocation34_spill] sm:$0xff] }
0x1014   :  { %5853 = vtanh.f32 %v4261_v3  ;;  %v4265_v42 = vmul.f32 0.5, %v4258_v12 }
0x1015   :  { %v4270_v41 = vmul.f32 0.5, %v4260_v59  ;;  %v10225_v59 = vld [vmem:[#allocation31_spill] sm:$0xff] }
0x1016   :  { %5855 = vtanh.f32 %v4265_v42 }
0x1017   :  { %5857 = vtanh.f32 %v4259_v56  ;;  %v10227_v56 = vld [vmem:[#allocation32_spill] sm:$0xff] }
0x1018   :  { %5859 = vtanh.f32 %v4270_v41  ;;  %v10229_v41 = vld [vmem:[#allocation35_spill] sm:$0xff] }
0x1021   :  { %v5854_v19 = vpop.eup %5853 }
0x1022   :  { %v4263_v26 = vadd.f32 1.0, %v5854_v19  ;;  %v10230_v19 = vld [vmem:[#allocation37_spill] sm:$0xff] }
0x1023   :  { %v5856_v25 = vpop.eup %5855 }
0x1024   :  { %v4264_v53 = vmul.f32 0.5, %v4263_v26  ;;  %v4267_v52 = vadd.f32 1.0, %v5856_v25  ;;  %v5858_v3 = vpop.eup %5857  ;;  %v10231_v26 = vld [vmem:[#allocation36_spill] sm:$0xff]  ;;  %v10232_v25 = vld [vmem:[#allocation62_spill] sm:$0xff] }
0x1025   :  { %v5860_v42 = vpop.eup %5859 }
0x1026   :  { %v4268_v45 = vmul.f32 0.5, %v4267_v52  ;;  %v4275_v47 = vmul.f32 %v5858_v3, %v4264_v53  ;;  %v4272_v40 = vadd.f32 1.0, %v5860_v42  ;;  %v10233_v53 = vld [vmem:[#allocation73_spill] sm:$0xff]  ;;  %v10234_v52 = vld [vmem:[#allocation24_spill] sm:$0xff]  ;;  %v10238_v42 = vld [vmem:[#allocation70_spill] sm:$0xff] }
0x1027   :  { %v10236_v3 = vld [vmem:[#allocation65_spill] sm:$0xff] }
0x1028   :  { %v4274_v12 = vmul.f32 0.0, %v4268_v45  ;;  %v4273_v7 = vmul.f32 0.5, %v4272_v40  ;;  %v10235_v45 = vld [vmem:[#allocation64_spill] sm:$0xff]  ;;  %v10239_v40 = vld [vmem:[#allocation17_spill] sm:$0xff] }
0x102a   :  { %v8661_v48 = vadd.f32 %v4275_v47, %v4274_v12  ;;  %v10224_v47 = vld [vmem:[#allocation22_spill] sm:$0xff]  ;;  %v10237_v12 = vld [vmem:[#allocation63_spill] sm:$0xff] }
0x102c   :  { %5861 = vtanh.f32 %v8661_v48 }
0x1039   :  { %v5862_v8 = vpop.eup %5861 }
0x103a   :  { %v4278_v9 = vmul.f32 %v5862_v8, %v4273_v7  ;;  %v10240_v7 = vld [vmem:[#allocation46_spill] sm:$0xff]  ;;  %v10241_v8 = vld [vmem:[#allocation27_spill] sm:$0xff] }
0x103c   :  { %4352 = vmatmul.mubr.f32.vlgmr.msra.gmra.mxu0 %v4278_v9  ;;  %4423 = vmatmul.mubr.f32.vlgmr.msra.gmra.mxu1 %v4278_v9  ;;  %v10242_v9 = vld [vmem:[#allocation29_spill] sm:$0xff] }
0x103d   :  { %4460 = vmatpush1.msra.mxu0 %v8319_v13  ;;  %4531 = vmatpush1.msra.mxu1 %v8321_v61 }
0x103e   :  { %4461 = vmatprep.subr.mxu0 %v8325_v14  ;;  %4532 = vmatprep.subr.mxu1 %v8327_v4 }
0x103f   :  { %4462 = vmatpush1.msra.mxu0 %v8331_v62  ;;  %4533 = vmatpush1.msra.mxu1 %v8333_v38 }
0x1040   :  { %4463 = vmatprep.subr.mxu0 %v8337_v54  ;;  %4534 = vmatprep.subr.mxu1 %v8339_v1 }
0x1041   :  { %4464 = vmatpush1.msra.mxu0 %v8343_v63  ;;  %4535 = vmatpush1.msra.mxu1 %v8345_v11 }
0x1042   :  { %4465 = vmatprep.subr.mxu0 %v8349_v57  ;;  %4536 = vmatprep.subr.mxu1 %v8351_v17 }
0x1043   :  { %4466 = vmatpush1.msra.mxu0 %v8355_v18  ;;  %4537 = vmatpush1.msra.mxu1 %v8357_v22 }
0x1044   :  { %4467 = vmatprep.subr.mxu0 %v8361_v23  ;;  %4538 = vmatprep.subr.mxu1 %v8363_v24 }
0x1045   :  { %4468 = vmatpush1.msra.mxu0 %v8367_v29  ;;  %4539 = vmatpush1.msra.mxu1 %v8369_v30 }
0x1046   :  { %4469 = vmatprep.subr.mxu0 %v8373_v31  ;;  %4540 = vmatprep.subr.mxu1 %v8375_v32 }
0x1047   :  { %4470 = vmatpush1.msra.mxu0 %v8379_v33  ;;  %4541 = vmatpush1.msra.mxu1 %v8381_v34 }
0x1048   :  { %4471 = vmatprep.subr.mxu0 %v8383_v35  ;;  %4542 = vmatprep.subr.mxu1 %v8387_v36 }
0x1049   :  { %4472 = vmatpush1.msra.mxu0 %v8389_v50  ;;  %4543 = vmatpush1.msra.mxu1 %v8391_v37 }
0x104a   :  { %4473 = vmatprep.subr.mxu0 %v8397_v6  ;;  %4544 = vmatprep.subr.mxu1 %v8399_v51 }
0x104b   :  { %4474 = vmatpush1.msra.mxu0 %v8403_v5  ;;  %4545 = vmatpush1.msra.mxu1 %v8405_v21 }
0x104c   :  { %4475 = vmatprep.subr.mxu0 %v8409_v43  ;;  %4546 = vmatprep.subr.mxu1 %v8411_v2 }
0x104d   :  { %4476 = vmatpush1.msra.mxu0 %v8415_v27  ;;  %4547 = vmatpush1.msra.mxu1 %v8417_v49 }
0x104e   :  { %4477 = vmatprep.subr.mxu0 %v8421_v28  ;;  %4548 = vmatprep.subr.mxu1 %v8423_v20 }
0x104f   :  { %4478 = vmatpush1.msra.mxu0 %v8427_v39  ;;  %4549 = vmatpush1.msra.mxu1 %v8429_v10 }
0x1050   :  { %4479 = vmatprep.subr.mxu0 %v8433_v60  ;;  %4550 = vmatprep.subr.mxu1 %v8435_v46 }
0x1051   :  { %4480 = vmatpush1.msra.mxu0 %v10165_v16  ;;  %4551 = vmatpush1.msra.mxu1 %v10166_v0 }
0x1052   :  { %4481 = vmatprep.subr.mxu0 %v10224_v47  ;;  %4552 = vmatprep.subr.mxu1 %v10225_v59 }
0x1053   :  { %4482 = vmatpush1.msra.mxu0 %v10226_v44  ;;  %4553 = vmatpush1.msra.mxu1 %v10227_v56 }
0x1054   :  { %4483 = vmatprep.subr.mxu0 %v10228_v58  ;;  %4554 = vmatprep.subr.mxu1 %v10229_v41  ;;  %v10250_v41 = vld [vmem:[#allocation72_spill] sm:$0xff] }
0x1055   :  { %4484 = vmatpush1.msra.mxu0 %v10230_v19  ;;  %4555 = vmatpush1.msra.mxu1 %v10231_v26  ;;  %v10251_v58 = vld [vmem:[#allocation48_spill] sm:$0xff] }
0x1056   :  { %4485 = vmatprep.subr.mxu0 %v10232_v25  ;;  %4556 = vmatprep.subr.mxu1 %v10233_v53  ;;  %v10243_v25 = vmov 0.0   ;;  %v10244_v53 = vld [vmem:[#allocation28_spill] sm:$0xff]  ;;  %v4035_v56 = vadd.f32 %v10251_v58, %v10250_v41 }
0x1057   :  { %4486 = vmatpush1.msra.mxu0 %v10234_v52  ;;  %4557 = vmatpush1.msra.mxu1 %v10235_v45  ;;  %v10245_v45 = vld [vmem:[#allocation61_spill] sm:$0xff] }
0x1058   :  { %4487 = vmatprep.subr.mxu0 %v10236_v3  ;;  %4558 = vmatprep.subr.mxu1 %v10237_v12  ;;  %v10246_v3 = vld [vmem:[#allocation19_spill] sm:$0xff]  ;;  %v10247_v12 = vld [vmem:[#allocation25_spill] sm:$0xff] }
0x1059   :  { %4488 = vmatpush1.msra.mxu0 %v10238_v42  ;;  %4559 = vmatpush1.msra.mxu1 %v10239_v40  ;;  %v10248_v42 = vld [vmem:[#allocation30_spill] sm:$0xff] }
0x105a   :  { %4489 = vmatprep.subr.mxu0 %v10240_v7  ;;  %4560 = vmatprep.subr.mxu1 %v10241_v8  ;;  %v3922_v52 = vadd.f32 %v10248_v42, %v10247_v12  ;;  %v10249_v7 = vld [vmem:[#allocation47_spill] sm:$0xff]  ;;  %v10252_v42 = vld [vmem:[#allocation49_spill] sm:$0xff] }
0x105b   :  { %4490 = vmatpush1.msra.mxu0 %v10242_v9  ;;  %4523 = vmatprep.mubr.f32.mxu0 %v10243_v25  ;;  %v3924_v26 = vadd.f32 %v10249_v7, %v8645_v55  ;;  %v4037_v12 = vadd.f32 %v10252_v42, %v8658_v15  ;;  %v10262_v42 = vld [vmem:[#allocation62_spill] sm:$0xff] }
0x105c   :  { %4561 = vmatpush1.msra.mxu1 %v10244_v53  ;;  %4594 = vmatprep.mubr.f32.mxu1 %v10243_v25 }
0x105d   :  { %4631 = vmatprep.subr.mxu0 %v10245_v45  ;;  %4702 = vmatprep.subr.mxu1 %v10246_v3 }
0x10fc   :  { %v4353_v40 = vpop.f32.mrf.mxu0  ;;  %v4424_v19 = vpop.f32.mrf.mxu1 }
0x10fd   :  { %v4429_v8 = vadd.f32 %v4353_v40, %v3922_v52  ;;  %v4431_v25 = vadd.f32 %v4424_v19, %v4035_v56 }
0x10fe   :  { %v4355_v9 = vpop.f32.mrf.mxu0  ;;  %v4426_v3 = vpop.f32.mrf.mxu1 }
0x10ff   :  { %v4433_v53 = vmul.f32 0.5, %v4429_v8  ;;  %v4430_v44 = vadd.f32 %v4355_v9, %v3924_v26  ;;  %v4432_v59 = vadd.f32 %v4426_v3, %v4037_v12  ;;  %v10259_v3 = vld [vmem:[#allocation35_spill] sm:$0xff]  ;;  %v10260_v12 = vld [vmem:[#allocation37_spill] sm:$0xff]  ;;  %v10261_v9 = vld [vmem:[#allocation36_spill] sm:$0xff] }
0x1101   :  { %5863 = vtanh.f32 %v4433_v53  ;;  %v4437_v45 = vmul.f32 0.5, %v4430_v44  ;;  %v4442_v47 = vmul.f32 0.5, %v4432_v59 }
0x1103   :  { %5865 = vtanh.f32 %v4437_v45 }
0x1104   :  { %5867 = vtanh.f32 %v4431_v25 }
0x1105   :  { %5869 = vtanh.f32 %v4442_v47  ;;  %v10258_v47 = vld [vmem:[#allocation34_spill] sm:$0xff] }
0x110e   :  { %v5864_v7 = vpop.eup %5863 }
0x110f   :  { %v4435_v52 = vadd.f32 1.0, %v5864_v7  ;;  %v10263_v7 = vld [vmem:[#allocation73_spill] sm:$0xff] }
0x1110   :  { %v5866_v40 = vpop.eup %5865 }
0x1111   :  { %v4436_v55 = vmul.f32 0.5, %v4435_v52  ;;  %v4439_v0 = vadd.f32 1.0, %v5866_v40  ;;  %v5868_v58 = vpop.eup %5867  ;;  %v10264_v52 = vld [vmem:[#allocation24_spill] sm:$0xff] }
0x1112   :  { %v5870_v19 = vpop.eup %5869  ;;  %v10265_v40 = vld [vmem:[#allocation64_spill] sm:$0xff] }
0x1113   :  { %v4440_v8 = vmul.f32 0.5, %v4439_v0  ;;  %v4447_v26 = vmul.f32 %v5868_v58, %v4436_v55  ;;  %v4444_v25 = vadd.f32 1.0, %v5870_v19  ;;  %v10255_v0 = vld [vmem:[#allocation31_spill] sm:$0xff]  ;;  %v10256_v55 = vld [vmem:[#allocation33_spill] sm:$0xff]  ;;  %v10270_v19 = vld [vmem:[#allocation46_spill] sm:$0xff] }
0x1114   :  { %v10266_v58 = vld [vmem:[#allocation65_spill] sm:$0xff] }
0x1115   :  { %v4446_v56 = vmul.f32 %v4440_v8, %v8661_v48  ;;  %v4445_v53 = vmul.f32 0.5, %v4444_v25  ;;  %v10257_v48 = vld [vmem:[#allocation32_spill] sm:$0xff]  ;;  %v10267_v8 = vld [vmem:[#allocation63_spill] sm:$0xff] }
0x1116   :  { %v10271_v25 = vld [vmem:[#allocation27_spill] sm:$0xff] }
0x1117   :  { %v8739_v44 = vadd.f32 %v4447_v26, %v4446_v56  ;;  %v10268_v26 = vld [vmem:[#allocation70_spill] sm:$0xff]  ;;  %v10269_v56 = vld [vmem:[#allocation17_spill] sm:$0xff] }
0x1119   :  { %5871 = vtanh.f32 %v8739_v44 }
0x1126   :  { %v5872_v45 = vpop.eup %5871 }
0x1127   :  { %v4450_v59 = vmul.f32 %v5872_v45, %v4445_v53  ;;  %v10272_v53 = vld [vmem:[#allocation29_spill] sm:$0xff]  ;;  %v10273_v45 = vmov 0.0  }
0x1129   :  { %4524 = vmatmul.mubr.f32.vlgmr.msra.gmra.mxu0 %v4450_v59  ;;  %4595 = vmatmul.mubr.f32.vlgmr.msra.gmra.mxu1 %v4450_v59  ;;  %v10274_v59 = vld [vmem:[#allocation28_spill] sm:$0xff] }
0x112a   :  { %4632 = vmatpush1.msra.mxu0 %v8319_v13  ;;  %4703 = vmatpush1.msra.mxu1 %v8321_v61  ;;  %v10253_v13 = vld [vmem:[#allocation21_spill] sm:$0xff]  ;;  %v10254_v61 = vld [vmem:[#allocation22_spill] sm:$0xff] }
0x112b   :  { %4633 = vmatprep.subr.mxu0 %v8325_v14  ;;  %4704 = vmatprep.subr.mxu1 %v8327_v4 }
0x112c   :  { %4634 = vmatpush1.msra.mxu0 %v8331_v62  ;;  %4705 = vmatpush1.msra.mxu1 %v8333_v38 }
0x112d   :  { %4635 = vmatprep.subr.mxu0 %v8337_v54  ;;  %4706 = vmatprep.subr.mxu1 %v8339_v1 }
0x112e   :  { %4636 = vmatpush1.msra.mxu0 %v8343_v63  ;;  %4707 = vmatpush1.msra.mxu1 %v8345_v11 }
0x112f   :  { %4637 = vmatprep.subr.mxu0 %v8349_v57  ;;  %4708 = vmatprep.subr.mxu1 %v8351_v17 }
0x1130   :  { %4638 = vmatpush1.msra.mxu0 %v8355_v18  ;;  %4709 = vmatpush1.msra.mxu1 %v8357_v22 }
0x1131   :  { %4639 = vmatprep.subr.mxu0 %v8361_v23  ;;  %4710 = vmatprep.subr.mxu1 %v8363_v24 }
0x1132   :  { %4640 = vmatpush1.msra.mxu0 %v8367_v29  ;;  %4711 = vmatpush1.msra.mxu1 %v8369_v30 }
0x1133   :  { %4641 = vmatprep.subr.mxu0 %v8373_v31  ;;  %4712 = vmatprep.subr.mxu1 %v8375_v32 }
0x1134   :  { %4642 = vmatpush1.msra.mxu0 %v8379_v33  ;;  %4713 = vmatpush1.msra.mxu1 %v8381_v34 }
0x1135   :  { %4643 = vmatprep.subr.mxu0 %v8383_v35  ;;  %4714 = vmatprep.subr.mxu1 %v8387_v36 }
0x1136   :  { %4644 = vmatpush1.msra.mxu0 %v8389_v50  ;;  %4715 = vmatpush1.msra.mxu1 %v8391_v37 }
0x1137   :  { %4645 = vmatprep.subr.mxu0 %v8397_v6  ;;  %4716 = vmatprep.subr.mxu1 %v8399_v51 }
0x1138   :  { %4646 = vmatpush1.msra.mxu0 %v8403_v5  ;;  %4717 = vmatpush1.msra.mxu1 %v8405_v21 }
0x1139   :  { %4647 = vmatprep.subr.mxu0 %v8409_v43  ;;  %4718 = vmatprep.subr.mxu1 %v8411_v2 }
0x113a   :  { %4648 = vmatpush1.msra.mxu0 %v8415_v27  ;;  %4719 = vmatpush1.msra.mxu1 %v8417_v49 }
0x113b   :  { %4649 = vmatprep.subr.mxu0 %v8421_v28  ;;  %4720 = vmatprep.subr.mxu1 %v8423_v20 }
0x113c   :  { %4650 = vmatpush1.msra.mxu0 %v8427_v39  ;;  %4721 = vmatpush1.msra.mxu1 %v8429_v10 }
0x113d   :  { %4651 = vmatprep.subr.mxu0 %v8433_v60  ;;  %4722 = vmatprep.subr.mxu1 %v8435_v46 }
0x113e   :  { %4652 = vmatpush1.msra.mxu0 %v10165_v16  ;;  %4723 = vmatpush1.msra.mxu1 %v10253_v13 }
0x113f   :  { %4653 = vmatprep.subr.mxu0 %v10254_v61  ;;  %4724 = vmatprep.subr.mxu1 %v10255_v0 }
0x1140   :  { %4654 = vmatpush1.msra.mxu0 %v10256_v55  ;;  %4725 = vmatpush1.msra.mxu1 %v10257_v48 }
0x1141   :  { %4655 = vmatprep.subr.mxu0 %v10258_v47  ;;  %4726 = vmatprep.subr.mxu1 %v10259_v3 }
0x1142   :  { %4656 = vmatpush1.msra.mxu0 %v10260_v12  ;;  %4727 = vmatpush1.msra.mxu1 %v10261_v9  ;;  %v10281_v12 = vld [vmem:[#allocation52_spill] sm:$0xff] }
0x1143   :  { %4657 = vmatprep.subr.mxu0 %v10262_v42  ;;  %4728 = vmatprep.subr.mxu1 %v10263_v7  ;;  %v10279_v7 = vld [vmem:[#allocation68_spill] sm:$0xff]  ;;  %v4041_v3 = vadd.f32 %v10281_v12, %v10250_v41 }
0x1144   :  { %4658 = vmatpush1.msra.mxu0 %v10264_v52  ;;  %4729 = vmatpush1.msra.mxu1 %v10265_v40  ;;  %v10275_v40 = vld [vmem:[#allocation61_spill] sm:$0xff] }
0x1145   :  { %4659 = vmatprep.subr.mxu0 %v10266_v58  ;;  %4730 = vmatprep.subr.mxu1 %v10267_v8  ;;  %v10276_v58 = vld [vmem:[#allocation19_spill] sm:$0xff]  ;;  %v10277_v8 = vld [vmem:[#allocation25_spill] sm:$0xff] }
0x1146   :  { %4660 = vmatpush1.msra.mxu0 %v10268_v26  ;;  %4731 = vmatpush1.msra.mxu1 %v10269_v56  ;;  %v10278_v26 = vld [vmem:[#allocation50_spill] sm:$0xff] }
0x1147   :  { %4661 = vmatprep.subr.mxu0 %v10270_v19  ;;  %4732 = vmatprep.subr.mxu1 %v10271_v25  ;;  %v3928_v52 = vadd.f32 %v10278_v26, %v10277_v8  ;;  %v10280_v19 = vld [vmem:[#allocation51_spill] sm:$0xff]  ;;  %v10282_v26 = vld [vmem:[#allocation53_spill] sm:$0xff] }
0x1148   :  { %4662 = vmatpush1.msra.mxu0 %v10272_v53  ;;  %4695 = vmatprep.mubr.f32.mxu0 %v10273_v45  ;;  %v3930_v42 = vadd.f32 %v10280_v19, %v10279_v7  ;;  %v4043_v8 = vadd.f32 %v10282_v26, %v8658_v15 }
0x1149   :  { %4733 = vmatpush1.msra.mxu1 %v10274_v59  ;;  %4766 = vmatprep.mubr.f32.mxu1 %v10273_v45 }
0x114a   :  { %4803 = vmatprep.subr.mxu0 %v10275_v40  ;;  %4874 = vmatprep.subr.mxu1 %v10276_v58 }
0x11e9   :  { %v4525_v56 = vpop.f32.mrf.mxu0  ;;  %v4596_v9 = vpop.f32.mrf.mxu1 }
0x11ea   :  { %v4601_v25 = vadd.f32 %v4525_v56, %v3928_v52  ;;  %v4603_v45 = vadd.f32 %v4596_v9, %v4041_v3 }
0x11eb   :  { %v4527_v53 = vpop.f32.mrf.mxu0  ;;  %v4598_v58 = vpop.f32.mrf.mxu1 }
0x11ec   :  { %v4605_v59 = vmul.f32 0.5, %v4601_v25  ;;  %v4602_v47 = vadd.f32 %v4527_v53, %v3930_v42  ;;  %v4604_v48 = vadd.f32 %v4598_v58, %v4043_v8 }
0x11ee   :  { %5873 = vtanh.f32 %v4605_v59  ;;  %v4609_v40 = vmul.f32 0.5, %v4602_v47  ;;  %v4614_v55 = vmul.f32 0.5, %v4604_v48  ;;  %v8820_v59 = vld [vmem:[#allocation11 + $0x5e0] sm:$0xff] }
0x11f0   :  { %5875 = vtanh.f32 %v4609_v40 }
0x11f1   :  { %5877 = vtanh.f32 %v4603_v45 }
0x11f2   :  { %5879 = vtanh.f32 %v4614_v55  ;;  %v8823_v55 = vld [vmem:[#allocation11 + $0x5f0] sm:$0xff] }
0x11fb   :  { %v5874_v19 = vpop.eup %5873 }
0x11fc   :  { %v4607_v52 = vadd.f32 1.0, %v5874_v19 }
0x11fd   :  { %v5876_v56 = vpop.eup %5875 }
0x11fe   :  { %v4608_v7 = vmul.f32 0.5, %v4607_v52  ;;  %v4611_v0 = vadd.f32 1.0, %v5876_v56  ;;  %v5878_v12 = vpop.eup %5877 }
0x11ff   :  { %v5880_v9 = vpop.eup %5879 }
0x1200   :  { %v4612_v25 = vmul.f32 0.5, %v4611_v0  ;;  %v4619_v42 = vmul.f32 %v5878_v12, %v4608_v7  ;;  %v4616_v53 = vadd.f32 1.0, %v5880_v9 }
0x1202   :  { %v4618_v3 = vmul.f32 %v4612_v25, %v8739_v44  ;;  %v4617_v45 = vmul.f32 0.5, %v4616_v53  ;;  %v10310_v44 = vld [vmem:[#allocation57_spill] sm:$0xff] }
0x1204   :  { %v8817_v47 = vadd.f32 %v4619_v42, %v4618_v3 }
0x1206   :  { %5881 = vtanh.f32 %v8817_v47 }
0x1213   :  { %v5882_v8 = vpop.eup %5881 }
0x1214   :  { %v4622_v48 = vmul.f32 %v5882_v8, %v4617_v45 }
0x1216   :  { %4696 = vmatmul.mubr.f32.vlgmr.msra.gmra.mxu0 %v4622_v48  ;;  %4767 = vmatmul.mubr.f32.vlgmr.msra.gmra.mxu1 %v4622_v48  ;;  %v8908_v48 = vld [vmem:[#allocation11 + $0x5c8] sm:$0xff] }
0x1217   :  { %4804 = vmatpush1.msra.mxu0 %v8820_v59  ;;  %4875 = vmatpush1.msra.mxu1 %v8823_v55 }
0x1218   :  { %4805 = vmatprep.subr.mxu0 %v8325_v14  ;;  %4876 = vmatprep.subr.mxu1 %v8327_v4  ;;  %v10283_v14 = vld [vmem:[#allocation31_spill] sm:$0xff]  ;;  %v10284_v4 = vld [vmem:[#allocation33_spill] sm:$0xff] }
0x1219   :  { %4806 = vmatpush1.msra.mxu0 %v8331_v62  ;;  %4877 = vmatpush1.msra.mxu1 %v8333_v38  ;;  %v10285_v62 = vld [vmem:[#allocation32_spill] sm:$0xff]  ;;  %v10286_v38 = vld [vmem:[#allocation34_spill] sm:$0xff] }
0x121a   :  { %4807 = vmatprep.subr.mxu0 %v8337_v54  ;;  %4878 = vmatprep.subr.mxu1 %v8339_v1  ;;  %v10287_v54 = vld [vmem:[#allocation35_spill] sm:$0xff]  ;;  %v10288_v1 = vld [vmem:[#allocation37_spill] sm:$0xff] }
0x121b   :  { %4808 = vmatpush1.msra.mxu0 %v8343_v63  ;;  %4879 = vmatpush1.msra.mxu1 %v8345_v11  ;;  %v10289_v63 = vld [vmem:[#allocation36_spill] sm:$0xff]  ;;  %v10290_v11 = vld [vmem:[#allocation62_spill] sm:$0xff] }
0x121c   :  { %4809 = vmatprep.subr.mxu0 %v8349_v57  ;;  %4880 = vmatprep.subr.mxu1 %v8351_v17  ;;  %v10291_v57 = vld [vmem:[#allocation73_spill] sm:$0xff]  ;;  %v10292_v17 = vld [vmem:[#allocation24_spill] sm:$0xff] }
0x121d   :  { %4810 = vmatpush1.msra.mxu0 %v8355_v18  ;;  %4881 = vmatpush1.msra.mxu1 %v8357_v22  ;;  %v10293_v18 = vld [vmem:[#allocation64_spill] sm:$0xff]  ;;  %v10294_v22 = vld [vmem:[#allocation65_spill] sm:$0xff] }
0x121e   :  { %4811 = vmatprep.subr.mxu0 %v8361_v23  ;;  %4882 = vmatprep.subr.mxu1 %v8363_v24  ;;  %v10295_v23 = vld [vmem:[#allocation63_spill] sm:$0xff]  ;;  %v10296_v24 = vld [vmem:[#allocation70_spill] sm:$0xff] }
0x121f   :  { %4812 = vmatpush1.msra.mxu0 %v8367_v29  ;;  %4883 = vmatpush1.msra.mxu1 %v8369_v30  ;;  %v10297_v29 = vld [vmem:[#allocation17_spill] sm:$0xff]  ;;  %v10298_v30 = vld [vmem:[#allocation46_spill] sm:$0xff] }
0x1220   :  { %4813 = vmatprep.subr.mxu0 %v8373_v31  ;;  %4884 = vmatprep.subr.mxu1 %v8375_v32  ;;  %v10299_v31 = vld [vmem:[#allocation27_spill] sm:$0xff]  ;;  %v10300_v32 = vld [vmem:[#allocation29_spill] sm:$0xff] }
0x1221   :  { %4814 = vmatpush1.msra.mxu0 %v8379_v33  ;;  %4885 = vmatpush1.msra.mxu1 %v8381_v34  ;;  %v10301_v33 = vmov 0.0   ;;  %v10302_v34 = vld [vmem:[#allocation28_spill] sm:$0xff] }
0x1222   :  { %4815 = vmatprep.subr.mxu0 %v8383_v35  ;;  %4886 = vmatprep.subr.mxu1 %v8387_v36  ;;  %v8888_v35 = vld [vmem:[#allocation11 + $0x5e8] sm:$0xff]  ;;  %v8891_v36 = vld [vmem:[#allocation11 + $0x5f8] sm:$0xff] }
0x1223   :  { %4816 = vmatpush1.msra.mxu0 %v8389_v50  ;;  %4887 = vmatpush1.msra.mxu1 %v8391_v37  ;;  %10303 = vst [vmem:[#allocation20_spill] sm:$0xff] %v8888_v35  ;;  %10304 = vst [vmem:[#allocation38_spill] sm:$0xff] %v8891_v36  ;;  %v10305_v50 = vld [vmem:[#allocation25_spill] sm:$0xff]  ;;  %v10306_v37 = vld [vmem:[#allocation54_spill] sm:$0xff] }
0x1224   :  { %4817 = vmatprep.subr.mxu0 %v8397_v6  ;;  %4888 = vmatprep.subr.mxu1 %v8399_v51  ;;  %v3934_v6 = vadd.f32 %v10306_v37, %v10305_v50  ;;  %v8971_v37 = vld [vmem:[#allocation11 + $0x538] sm:$0xff] }
0x1225   :  { %4818 = vmatpush1.msra.mxu0 %v8403_v5  ;;  %4889 = vmatpush1.msra.mxu1 %v8405_v21  ;;  %v10307_v5 = vld [vmem:[#allocation68_spill] sm:$0xff]  ;;  %v10308_v21 = vld [vmem:[#allocation55_spill] sm:$0xff] }
0x1226   :  { %4819 = vmatprep.subr.mxu0 %v8409_v43  ;;  %4890 = vmatprep.subr.mxu1 %v8411_v2  ;;  %v3936_v43 = vadd.f32 %v10308_v21, %v10307_v5  ;;  %v8980_v21 = vld [vmem:[#allocation11 + $0x508] sm:$0xff] }
0x1227   :  { %4820 = vmatpush1.msra.mxu0 %v8415_v27  ;;  %4891 = vmatpush1.msra.mxu1 %v8417_v49 }
0x1228   :  { %4821 = vmatprep.subr.mxu0 %v8421_v28  ;;  %4892 = vmatprep.subr.mxu1 %v8423_v20  ;;  %v10309_v28 = vld [vmem:[#allocation56_spill] sm:$0xff] }
0x1229   :  { %4822 = vmatpush1.msra.mxu0 %v8427_v39  ;;  %4893 = vmatpush1.msra.mxu1 %v8429_v10  ;;  %v4047_v20 = vadd.f32 %v10309_v28, %v10250_v41  ;;  %v8995_v28 = vld [vmem:[#allocation11 + $0x4f8] sm:$0xff] }
0x122a   :  { %4823 = vmatprep.subr.mxu0 %v8433_v60  ;;  %4894 = vmatprep.subr.mxu1 %v8435_v46 }
0x122b   :  { %4824 = vmatpush1.msra.mxu0 %v10165_v16  ;;  %4895 = vmatpush1.msra.mxu1 %v10253_v13  ;;  %v4049_v13 = vadd.f32 %v10310_v44, %v8658_v15  ;;  %v9016_v44 = vld [vmem:[#allocation11 + $0x4a8] sm:$0xff] }
0x122c   :  { %4825 = vmatprep.subr.mxu0 %v10254_v61  ;;  %4896 = vmatprep.subr.mxu1 %v10283_v14  ;;  %v8914_v14 = vld [vmem:[#allocation11 + $0x5c0] sm:$0xff] }
0x122d   :  { %4826 = vmatpush1.msra.mxu0 %v10284_v4  ;;  %4897 = vmatpush1.msra.mxu1 %v10285_v62  ;;  %v8917_v4 = vld [vmem:[#allocation11 + $0x5d0] sm:$0xff]  ;;  %v8920_v62 = vld [vmem:[#allocation11 + $0x5a8] sm:$0xff] }
0x122e   :  { %4827 = vmatprep.subr.mxu0 %v10286_v38  ;;  %4898 = vmatprep.subr.mxu1 %v10287_v54  ;;  %v8923_v38 = vld [vmem:[#allocation11 + $0x5b8] sm:$0xff]  ;;  %v8926_v54 = vld [vmem:[#allocation11 + $0x5a0] sm:$0xff] }
0x122f   :  { %4828 = vmatpush1.msra.mxu0 %v10288_v1  ;;  %4899 = vmatpush1.msra.mxu1 %v10289_v63  ;;  %v8929_v1 = vld [vmem:[#allocation11 + $0x5b0] sm:$0xff]  ;;  %v8932_v63 = vld [vmem:[#allocation11 + $0x588] sm:$0xff] }
0x1230   :  { %4829 = vmatprep.subr.mxu0 %v10290_v11  ;;  %4900 = vmatprep.subr.mxu1 %v10291_v57  ;;  %v8935_v11 = vld [vmem:[#allocation11 + $0x598] sm:$0xff]  ;;  %v8938_v57 = vld [vmem:[#allocation11 + $0x580] sm:$0xff] }
0x1231   :  { %4830 = vmatpush1.msra.mxu0 %v10292_v17  ;;  %4901 = vmatpush1.msra.mxu1 %v10293_v18  ;;  %v8941_v17 = vld [vmem:[#allocation11 + $0x590] sm:$0xff]  ;;  %v8944_v18 = vld [vmem:[#allocation11 + $0x568] sm:$0xff] }
0x1232   :  { %4831 = vmatprep.subr.mxu0 %v10294_v22  ;;  %4902 = vmatprep.subr.mxu1 %v10295_v23  ;;  %v8947_v22 = vld [vmem:[#allocation11 + $0x578] sm:$0xff]  ;;  %v8950_v23 = vld [vmem:[#allocation11 + $0x560] sm:$0xff] }
0x1233   :  { %4832 = vmatpush1.msra.mxu0 %v10296_v24  ;;  %4903 = vmatpush1.msra.mxu1 %v10297_v29  ;;  %v8953_v24 = vld [vmem:[#allocation11 + $0x570] sm:$0xff]  ;;  %v8956_v29 = vld [vmem:[#allocation11 + $0x548] sm:$0xff] }
0x1234   :  { %4833 = vmatprep.subr.mxu0 %v10298_v30  ;;  %4904 = vmatprep.subr.mxu1 %v10299_v31  ;;  %v8959_v30 = vld [vmem:[#allocation11 + $0x558] sm:$0xff]  ;;  %v8962_v31 = vld [vmem:[#allocation11 + $0x540] sm:$0xff] }
0x1235   :  { %4834 = vmatpush1.msra.mxu0 %v10300_v32  ;;  %4867 = vmatprep.mubr.f32.mxu0 %v10301_v33  ;;  %v8965_v32 = vld [vmem:[#allocation11 + $0x550] sm:$0xff] }
0x1236   :  { %4905 = vmatpush1.msra.mxu1 %v10302_v34  ;;  %4938 = vmatprep.mubr.f32.mxu1 %v10301_v33  ;;  %v8968_v34 = vld [vmem:[#allocation11 + $0x528] sm:$0xff] }
0x1237   :  { %4975 = vmatprep.subr.mxu0 %v8888_v35  ;;  %5046 = vmatprep.subr.mxu1 %v8891_v36 }
0x12d6   :  { %v4697_v51 = vpop.f32.mrf.mxu0  ;;  %v4768_v27 = vpop.f32.mrf.mxu1 }
0x12d7   :  { %v4773_v2 = vadd.f32 %v4697_v51, %v3934_v6  ;;  %v4775_v60 = vadd.f32 %v4768_v27, %v4047_v20  ;;  %v8974_v6 = vld [vmem:[#allocation11 + $0x520] sm:$0xff]  ;;  %v8977_v51 = vld [vmem:[#allocation11 + $0x530] sm:$0xff] }
0x12d8   :  { %v4699_v49 = vpop.f32.mrf.mxu0  ;;  %v4770_v16 = vpop.f32.mrf.mxu1  ;;  %v8989_v27 = vld [vmem:[#allocation11 + $0x510] sm:$0xff]  ;;  %v8998_v20 = vld [vmem:[#allocation11 + $0x4e0] sm:$0xff] }
0x12d9   :  { %v4777_v39 = vmul.f32 0.5, %v4773_v2  ;;  %v4774_v10 = vadd.f32 %v4699_v49, %v3936_v43  ;;  %v4776_v61 = vadd.f32 %v4770_v16, %v4049_v13  ;;  %v8983_v43 = vld [vmem:[#allocation11 + $0x518] sm:$0xff]  ;;  %v8986_v2 = vld [vmem:[#allocation11 + $0x500] sm:$0xff]  ;;  %v8992_v49 = vld [vmem:[#allocation11 + $0x4e8] sm:$0xff] }
0x12da   :  { %v9013_v16 = vld [vmem:[#allocation11 + $0x4d0] sm:$0xff]  ;;  %v9019_v13 = vld [vmem:[#allocation11 + $0x4b8] sm:$0xff] }
0x12db   :  { %5883 = vtanh.f32 %v4777_v39  ;;  %v4781_v46 = vmul.f32 0.5, %v4774_v10  ;;  %v4786_v0 = vmul.f32 0.5, %v4776_v61  ;;  %v9001_v39 = vld [vmem:[#allocation11 + $0x4f0] sm:$0xff]  ;;  %v9004_v10 = vld [vmem:[#allocation11 + $0x4c8] sm:$0xff]  ;;  %v9022_v61 = vld [vmem:[#allocation11 + $0x4a0] sm:$0xff] }
0x12dd   :  { %5885 = vtanh.f32 %v4781_v46  ;;  %v9010_v46 = vld [vmem:[#allocation11 + $0x4c0] sm:$0xff] }
0x12de   :  { %5887 = vtanh.f32 %v4775_v60  ;;  %v9007_v60 = vld [vmem:[#allocation11 + $0x4d8] sm:$0xff] }
0x12df   :  { %5889 = vtanh.f32 %v4786_v0  ;;  %v9025_v0 = vld [vmem:[#allocation11 + $0x4b0] sm:$0xff] }
0x12e0   :  { %10311 = vst [vmem:[#allocation40_spill] sm:$0xff] %v9025_v0 }
0x12e8   :  { %v5884_v7 = vpop.eup %5883 }
0x12e9   :  { %v4779_v40 = vadd.f32 1.0, %v5884_v7  ;;  %v9028_v7 = vld [vmem:[#allocation11 + $0x488] sm:$0xff] }
0x12ea   :  { %v5886_v58 = vpop.eup %5885  ;;  %10312 = vst [vmem:[#allocation39_spill] sm:$0xff] %v9028_v7 }
0x12eb   :  { %v4780_v26 = vmul.f32 0.5, %v4779_v40  ;;  %v4783_v19 = vadd.f32 1.0, %v5886_v58  ;;  %v5888_v52 = vpop.eup %5887  ;;  %v9031_v40 = vld [vmem:[#allocation11 + $0x498] sm:$0xff]  ;;  %v9034_v58 = vld [vmem:[#allocation11 + $0x480] sm:$0xff] }
0x12ec   :  { %v5890_v3 = vpop.eup %5889  ;;  %10313 = vst [vmem:[#allocation41_spill] sm:$0xff] %v9031_v40  ;;  %10314 = vst [vmem:[#allocation30_spill] sm:$0xff] %v9034_v58 }
0x12ed   :  { %v4784_v56 = vmul.f32 0.5, %v4783_v19  ;;  %v4791_v12 = vmul.f32 %v5888_v52, %v4780_v26  ;;  %v4788_v9 = vadd.f32 1.0, %v5890_v3  ;;  %v9037_v26 = vld [vmem:[#allocation11 + $0x490] sm:$0xff]  ;;  %v9040_v19 = vld [vmem:[#allocation11 + $0x468] sm:$0xff]  ;;  %v9043_v52 = vld [vmem:[#allocation11 + $0x478] sm:$0xff] }
0x12ee   :  { %10315 = vst [vmem:[#allocation47_spill] sm:$0xff] %v9037_v26  ;;  %10316 = vst [vmem:[#allocation72_spill] sm:$0xff] %v9040_v19  ;;  %v9055_v3 = vld [vmem:[#allocation11 + $0x458] sm:$0xff] }
0x12ef   :  { %v4790_v25 = vmul.f32 %v4784_v56, %v8817_v47  ;;  %v4789_v53 = vmul.f32 0.5, %v4788_v9  ;;  %v8911_v47 = vld [vmem:[#allocation11 + $0x5d8] sm:$0xff]  ;;  %10317 = vst [vmem:[#allocation48_spill] sm:$0xff] %v9043_v52  ;;  %v9046_v56 = vld [vmem:[#allocation11 + $0x460] sm:$0xff]  ;;  %10321 = vst [vmem:[#allocation61_spill] sm:$0xff] %v9055_v3 }
0x12f0   :  { %10318 = vst [vmem:[#allocation49_spill] sm:$0xff] %v9046_v56  ;;  %v9058_v9 = vld [vmem:[#allocation11 + $0x440] sm:$0xff] }
0x12f1   :  { %v8903_v42 = vadd.f32 %v4791_v12, %v4790_v25  ;;  %v9049_v12 = vld [vmem:[#allocation11 + $0x470] sm:$0xff]  ;;  %v9052_v25 = vld [vmem:[#allocation11 + $0x448] sm:$0xff]  ;;  %10322 = vst [vmem:[#allocation19_spill] sm:$0xff] %v9058_v9 }
0x12f2   :  { %10319 = vst [vmem:[#allocation21_spill] sm:$0xff] %v9049_v12  ;;  %10320 = vst [vmem:[#allocation22_spill] sm:$0xff] %v9052_v25 }
0x12f3   :  { %5891 = vtanh.f32 %v8903_v42 }
0x1300   :  { %v5892_v45 = vpop.eup %5891 }
0x1301   :  { %v4794_v8 = vmul.f32 %v5892_v45, %v4789_v53  ;;  %v9061_v53 = vld [vmem:[#allocation11 + $0x450] sm:$0xff]  ;;  %v9064_v45 = vld [vmem:[#allocation11 + $0x428] sm:$0xff] }
0x1302   :  { %10323 = vst [vmem:[#allocation50_spill] sm:$0xff] %v9061_v53  ;;  %10324 = vst [vmem:[#allocation51_spill] sm:$0xff] %v9064_v45 }
0x1303   :  { %4868 = vmatmul.mubr.f32.vlgmr.msra.gmra.mxu0 %v4794_v8  ;;  %4939 = vmatmul.mubr.f32.vlgmr.msra.gmra.mxu1 %v4794_v8  ;;  %v9067_v8 = vld [vmem:[#allocation11 + $0x438] sm:$0xff] }
0x1304   :  { %4976 = vmatpush1.msra.mxu0 %v8820_v59  ;;  %5047 = vmatpush1.msra.mxu1 %v8823_v55  ;;  %10325 = vst [vmem:[#allocation52_spill] sm:$0xff] %v9067_v8 }
0x1305   :  { %4977 = vmatprep.subr.mxu0 %v8908_v48  ;;  %5048 = vmatprep.subr.mxu1 %v8911_v47 }
0x1306   :  { %4978 = vmatpush1.msra.mxu0 %v8914_v14  ;;  %5049 = vmatpush1.msra.mxu1 %v8917_v4 }
0x1307   :  { %4979 = vmatprep.subr.mxu0 %v8920_v62  ;;  %5050 = vmatprep.subr.mxu1 %v8923_v38 }
0x1308   :  { %4980 = vmatpush1.msra.mxu0 %v8926_v54  ;;  %5051 = vmatpush1.msra.mxu1 %v8929_v1 }
0x1309   :  { %4981 = vmatprep.subr.mxu0 %v8932_v63  ;;  %5052 = vmatprep.subr.mxu1 %v8935_v11 }
0x130a   :  { %4982 = vmatpush1.msra.mxu0 %v8938_v57  ;;  %5053 = vmatpush1.msra.mxu1 %v8941_v17 }
0x130b   :  { %4983 = vmatprep.subr.mxu0 %v8944_v18  ;;  %5054 = vmatprep.subr.mxu1 %v8947_v22 }
0x130c   :  { %4984 = vmatpush1.msra.mxu0 %v8950_v23  ;;  %5055 = vmatpush1.msra.mxu1 %v8953_v24 }
0x130d   :  { %4985 = vmatprep.subr.mxu0 %v8956_v29  ;;  %5056 = vmatprep.subr.mxu1 %v8959_v30 }
0x130e   :  { %4986 = vmatpush1.msra.mxu0 %v8962_v31  ;;  %5057 = vmatpush1.msra.mxu1 %v8965_v32 }
0x130f   :  { %4987 = vmatprep.subr.mxu0 %v8968_v34  ;;  %5058 = vmatprep.subr.mxu1 %v8971_v37 }
0x1310   :  { %4988 = vmatpush1.msra.mxu0 %v8974_v6  ;;  %5059 = vmatpush1.msra.mxu1 %v8977_v51 }
0x1311   :  { %4989 = vmatprep.subr.mxu0 %v8980_v21  ;;  %5060 = vmatprep.subr.mxu1 %v8983_v43 }
0x1312   :  { %4990 = vmatpush1.msra.mxu0 %v8986_v2  ;;  %5061 = vmatpush1.msra.mxu1 %v8989_v27 }
0x1313   :  { %4991 = vmatprep.subr.mxu0 %v8992_v49  ;;  %5062 = vmatprep.subr.mxu1 %v8995_v28 }
0x1314   :  { %4992 = vmatpush1.msra.mxu0 %v8998_v20  ;;  %5063 = vmatpush1.msra.mxu1 %v9001_v39 }
0x1315   :  { %4993 = vmatprep.subr.mxu0 %v9004_v10  ;;  %5064 = vmatprep.subr.mxu1 %v9007_v60 }
0x1316   :  { %4994 = vmatpush1.msra.mxu0 %v9010_v46  ;;  %5065 = vmatpush1.msra.mxu1 %v9013_v16 }
0x1317   :  { %4995 = vmatprep.subr.mxu0 %v9016_v44  ;;  %5066 = vmatprep.subr.mxu1 %v9019_v13 }
0x1318   :  { %4996 = vmatpush1.msra.mxu0 %v9022_v61  ;;  %5067 = vmatpush1.msra.mxu1 %v9025_v0 }
0x1319   :  { %4997 = vmatprep.subr.mxu0 %v9028_v7  ;;  %5068 = vmatprep.subr.mxu1 %v9031_v40 }
0x131a   :  { %4998 = vmatpush1.msra.mxu0 %v9034_v58  ;;  %5069 = vmatpush1.msra.mxu1 %v9037_v26 }
0x131b   :  { %4999 = vmatprep.subr.mxu0 %v9040_v19  ;;  %5070 = vmatprep.subr.mxu1 %v9043_v52  ;;  %v10334_v19 = vld [vmem:[#allocation43_spill] sm:$0xff] }
0x131c   :  { %5000 = vmatpush1.msra.mxu0 %v9046_v56  ;;  %5071 = vmatpush1.msra.mxu1 %v9049_v12  ;;  %v4053_v26 = vadd.f32 %v10334_v19, %v10250_v41 }
0x131d   :  { %5001 = vmatprep.subr.mxu0 %v9052_v25  ;;  %5072 = vmatprep.subr.mxu1 %v9055_v3  ;;  %v9070_v25 = vld [vmem:[#allocation11 + $0x420] sm:$0xff]  ;;  %v9073_v3 = vld [vmem:[#allocation11 + $0x430] sm:$0xff] }
0x131e   :  { %5002 = vmatpush1.msra.mxu0 %v9058_v9  ;;  %5073 = vmatpush1.msra.mxu1 %v9061_v53  ;;  %10326 = vst [vmem:[#allocation53_spill] sm:$0xff] %v9070_v25  ;;  %10327 = vst [vmem:[#allocation31_spill] sm:$0xff] %v9073_v3  ;;  %v9076_v9 = vld [vmem:[#allocation11 + $0x408] sm:$0xff]  ;;  %v9079_v53 = vld [vmem:[#allocation11 + $0x418] sm:$0xff] }
0x131f   :  { %5003 = vmatprep.subr.mxu0 %v9064_v45  ;;  %5074 = vmatprep.subr.mxu1 %v9067_v8  ;;  %10328 = vst [vmem:[#allocation33_spill] sm:$0xff] %v9076_v9  ;;  %10329 = vst [vmem:[#allocation32_spill] sm:$0xff] %v9079_v53  ;;  %v9082_v45 = vld [vmem:[#allocation11 + $0x400] sm:$0xff]  ;;  %v9086_v8 = vld [vmem:[#allocation11 + $0x410] sm:$0xff] }
0x1320   :  { %5004 = vmatpush1.msra.mxu0 %v9070_v25  ;;  %5075 = vmatpush1.msra.mxu1 %v9073_v3  ;;  %10330 = vst [vmem:[#allocation34_spill] sm:$0xff] %v9082_v45  ;;  %10331 = vst [vmem:[#allocation35_spill] sm:$0xff] %v9086_v8  ;;  %v10333_v25 = vld [vmem:[#allocation58_spill] sm:$0xff] }
0x1321   :  { %5005 = vmatprep.subr.mxu0 %v9076_v9  ;;  %5076 = vmatprep.subr.mxu1 %v9079_v53  ;;  %v10332_v9 = vld [vmem:[#allocation44_spill] sm:$0xff]  ;;  %v3942_v12 = vadd.f32 %v10333_v25, %v10307_v5 }
0x1322   :  { %5006 = vmatpush1.msra.mxu0 %v9082_v45  ;;  %5039 = vmatprep.mubr.f32.mxu0 %v10301_v33  ;;  %v3940_v3 = vadd.f32 %v10332_v9, %v10305_v50  ;;  %v10335_v9 = vld [vmem:[#allocation60_spill] sm:$0xff] }
0x1323   :  { %5077 = vmatpush1.msra.mxu1 %v9086_v8  ;;  %5110 = vmatprep.mubr.f32.mxu1 %v10301_v33  ;;  %v4055_v50 = vadd.f32 %v10335_v9, %v8658_v15  ;;  %v10343_v9 = vld [vmem:[#allocation49_spill] sm:$0xff] }
0x1324   :  { %5147 = vmatprep.subr.mxu0 %v8888_v35  ;;  %5218 = vmatprep.subr.mxu1 %v8891_v36 }
0x13c3   :  { %v4869_v53 = vpop.f32.mrf.mxu0  ;;  %v4940_v56 = vpop.f32.mrf.mxu1 }
0x13c4   :  { %v4945_v45 = vadd.f32 %v4869_v53, %v3940_v3  ;;  %v4947_v33 = vadd.f32 %v4940_v56, %v4053_v26 }
0x13c5   :  { %v4871_v52 = vpop.f32.mrf.mxu0  ;;  %v4942_v36 = vpop.f32.mrf.mxu1 }
0x13c6   :  { %v4949_v8 = vmul.f32 0.5, %v4945_v45  ;;  %v4946_v58 = vadd.f32 %v4871_v52, %v3942_v12  ;;  %v4948_v40 = vadd.f32 %v4942_v36, %v4055_v50  ;;  %v10341_v12 = vld [vmem:[#allocation72_spill] sm:$0xff] }
0x13c8   :  { %5893 = vtanh.f32 %v4949_v8  ;;  %v4953_v35 = vmul.f32 0.5, %v4946_v58  ;;  %v4958_v7 = vmul.f32 0.5, %v4948_v40  ;;  %v10340_v40 = vld [vmem:[#allocation47_spill] sm:$0xff]  ;;  %v10342_v8 = vld [vmem:[#allocation48_spill] sm:$0xff] }
0x13ca   :  { %5895 = vtanh.f32 %v4953_v35 }
0x13cb   :  { %5897 = vtanh.f32 %v4947_v33 }
0x13cc   :  { %5899 = vtanh.f32 %v4958_v7  ;;  %v10339_v7 = vld [vmem:[#allocation30_spill] sm:$0xff] }
0x13d5   :  { %v5894_v25 = vpop.eup %5893 }
0x13d6   :  { %v4951_v3 = vadd.f32 1.0, %v5894_v25  ;;  %v10344_v25 = vld [vmem:[#allocation21_spill] sm:$0xff] }
0x13d7   :  { %v5896_v53 = vpop.eup %5895 }
0x13d8   :  { %v4952_v5 = vmul.f32 0.5, %v4951_v3  ;;  %v4955_v0 = vadd.f32 1.0, %v5896_v53  ;;  %v5898_v19 = vpop.eup %5897  ;;  %v10345_v3 = vld [vmem:[#allocation22_spill] sm:$0xff]  ;;  %v10346_v53 = vld [vmem:[#allocation61_spill] sm:$0xff] }
0x13d9   :  { %v5900_v33 = vpop.eup %5899 }
0x13da   :  { %v4956_v45 = vmul.f32 0.5, %v4955_v0  ;;  %v4963_v52 = vmul.f32 %v5898_v19, %v4952_v5  ;;  %v4960_v35 = vadd.f32 1.0, %v5900_v33  ;;  %v10336_v5 = vld [vmem:[#allocation40_spill] sm:$0xff]  ;;  %v10338_v0 = vld [vmem:[#allocation41_spill] sm:$0xff]  ;;  %v10347_v19 = vld [vmem:[#allocation19_spill] sm:$0xff] }
0x13db   :  { %v10351_v33 = vld [vmem:[#allocation53_spill] sm:$0xff] }
0x13dc   :  { %v4962_v26 = vmul.f32 %v4956_v45, %v8903_v42  ;;  %v4961_v56 = vmul.f32 0.5, %v4960_v35  ;;  %v10337_v42 = vld [vmem:[#allocation39_spill] sm:$0xff]  ;;  %v10348_v45 = vld [vmem:[#allocation50_spill] sm:$0xff] }
0x13dd   :  { %v10352_v35 = vld [vmem:[#allocation31_spill] sm:$0xff] }
0x13de   :  { %v9101_v58 = vadd.f32 %v4963_v52, %v4962_v26  ;;  %v10349_v52 = vld [vmem:[#allocation51_spill] sm:$0xff]  ;;  %v10350_v26 = vld [vmem:[#allocation52_spill] sm:$0xff] }
0x13e0   :  { %5901 = vtanh.f32 %v9101_v58 }
0x13ed   :  { %v5902_v36 = vpop.eup %5901 }
0x13ee   :  { %v4966_v50 = vmul.f32 %v5902_v36, %v4961_v56  ;;  %v10353_v56 = vld [vmem:[#allocation33_spill] sm:$0xff]  ;;  %v10354_v36 = vld [vmem:[#allocation32_spill] sm:$0xff] }
0x13f0   :  { %5040 = vmatmul.mubr.f32.vlgmr.msra.gmra.mxu0 %v4966_v50  ;;  %5111 = vmatmul.mubr.f32.vlgmr.msra.gmra.mxu1 %v4966_v50  ;;  %v10355_v50 = vld [vmem:[#allocation34_spill] sm:$0xff] }
0x13f1   :  { %5148 = vmatpush1.msra.mxu0 %v8820_v59  ;;  %5219 = vmatpush1.msra.mxu1 %v8823_v55 }
0x13f2   :  { %5149 = vmatprep.subr.mxu0 %v8908_v48  ;;  %5220 = vmatprep.subr.mxu1 %v8911_v47 }
0x13f3   :  { %5150 = vmatpush1.msra.mxu0 %v8914_v14  ;;  %5221 = vmatpush1.msra.mxu1 %v8917_v4 }
0x13f4   :  { %5151 = vmatprep.subr.mxu0 %v8920_v62  ;;  %5222 = vmatprep.subr.mxu1 %v8923_v38 }
0x13f5   :  { %5152 = vmatpush1.msra.mxu0 %v8926_v54  ;;  %5223 = vmatpush1.msra.mxu1 %v8929_v1 }
0x13f6   :  { %5153 = vmatprep.subr.mxu0 %v8932_v63  ;;  %5224 = vmatprep.subr.mxu1 %v8935_v11 }
0x13f7   :  { %5154 = vmatpush1.msra.mxu0 %v8938_v57  ;;  %5225 = vmatpush1.msra.mxu1 %v8941_v17 }
0x13f8   :  { %5155 = vmatprep.subr.mxu0 %v8944_v18  ;;  %5226 = vmatprep.subr.mxu1 %v8947_v22 }
0x13f9   :  { %5156 = vmatpush1.msra.mxu0 %v8950_v23  ;;  %5227 = vmatpush1.msra.mxu1 %v8953_v24 }
0x13fa   :  { %5157 = vmatprep.subr.mxu0 %v8956_v29  ;;  %5228 = vmatprep.subr.mxu1 %v8959_v30 }
0x13fb   :  { %5158 = vmatpush1.msra.mxu0 %v8962_v31  ;;  %5229 = vmatpush1.msra.mxu1 %v8965_v32 }
0x13fc   :  { %5159 = vmatprep.subr.mxu0 %v8968_v34  ;;  %5230 = vmatprep.subr.mxu1 %v8971_v37 }
0x13fd   :  { %5160 = vmatpush1.msra.mxu0 %v8974_v6  ;;  %5231 = vmatpush1.msra.mxu1 %v8977_v51 }
0x13fe   :  { %5161 = vmatprep.subr.mxu0 %v8980_v21  ;;  %5232 = vmatprep.subr.mxu1 %v8983_v43 }
0x13ff   :  { %5162 = vmatpush1.msra.mxu0 %v8986_v2  ;;  %5233 = vmatpush1.msra.mxu1 %v8989_v27 }
0x1400   :  { %5163 = vmatprep.subr.mxu0 %v8992_v49  ;;  %5234 = vmatprep.subr.mxu1 %v8995_v28 }
0x1401   :  { %5164 = vmatpush1.msra.mxu0 %v8998_v20  ;;  %5235 = vmatpush1.msra.mxu1 %v9001_v39 }
0x1402   :  { %5165 = vmatprep.subr.mxu0 %v9004_v10  ;;  %5236 = vmatprep.subr.mxu1 %v9007_v60 }
0x1403   :  { %5166 = vmatpush1.msra.mxu0 %v9010_v46  ;;  %5237 = vmatpush1.msra.mxu1 %v9013_v16 }
0x1404   :  { %5167 = vmatprep.subr.mxu0 %v9016_v44  ;;  %5238 = vmatprep.subr.mxu1 %v9019_v13 }
0x1405   :  { %5168 = vmatpush1.msra.mxu0 %v9022_v61  ;;  %5239 = vmatpush1.msra.mxu1 %v10336_v5 }
0x1406   :  { %5169 = vmatprep.subr.mxu0 %v10337_v42  ;;  %5240 = vmatprep.subr.mxu1 %v10338_v0 }
0x1407   :  { %5170 = vmatpush1.msra.mxu0 %v10339_v7  ;;  %5241 = vmatpush1.msra.mxu1 %v10340_v40 }
0x1408   :  { %5171 = vmatprep.subr.mxu0 %v10341_v12  ;;  %5242 = vmatprep.subr.mxu1 %v10342_v8  ;;  %v10364_v12 = vld [vmem:[#allocation18_spill] sm:$0xff] }
0x1409   :  { %5172 = vmatpush1.msra.mxu0 %v10343_v9  ;;  %5243 = vmatpush1.msra.mxu1 %v10344_v25  ;;  %v10362_v25 = vld [vmem:[#allocation68_spill] sm:$0xff]  ;;  %v4059_v40 = vadd.f32 %v10364_v12, %v10250_v41 }
0x140a   :  { %5173 = vmatprep.subr.mxu0 %v10345_v3  ;;  %5244 = vmatprep.subr.mxu1 %v10346_v53  ;;  %v10356_v3 = vmov 0.0   ;;  %v10357_v53 = vld [vmem:[#allocation35_spill] sm:$0xff] }
0x140b   :  { %5174 = vmatpush1.msra.mxu0 %v10347_v19  ;;  %5245 = vmatpush1.msra.mxu1 %v10348_v45  ;;  %v10358_v45 = vld [vmem:[#allocation20_spill] sm:$0xff] }
0x140c   :  { %5175 = vmatprep.subr.mxu0 %v10349_v52  ;;  %5246 = vmatprep.subr.mxu1 %v10350_v26  ;;  %v10359_v52 = vld [vmem:[#allocation38_spill] sm:$0xff]  ;;  %v10360_v26 = vld [vmem:[#allocation25_spill] sm:$0xff] }
0x140d   :  { %5176 = vmatpush1.msra.mxu0 %v10351_v33  ;;  %5247 = vmatpush1.msra.mxu1 %v10352_v35  ;;  %v10361_v33 = vld [vmem:[#allocation66_spill] sm:$0xff] }
0x140e   :  { %5177 = vmatprep.subr.mxu0 %v10353_v56  ;;  %5248 = vmatprep.subr.mxu1 %v10354_v36  ;;  %v3946_v19 = vadd.f32 %v10361_v33, %v10360_v26  ;;  %v10363_v56 = vld [vmem:[#allocation69_spill] sm:$0xff] }
0x140f   :  { %5178 = vmatpush1.msra.mxu0 %v10355_v50  ;;  %5211 = vmatprep.mubr.f32.mxu0 %v10356_v3  ;;  %v3948_v9 = vadd.f32 %v10363_v56, %v10362_v25  ;;  %v10365_v33 = vld [vmem:[#allocation45_spill] sm:$0xff] }
0x1410   :  { %5249 = vmatpush1.msra.mxu1 %v10357_v53  ;;  %5282 = vmatprep.mubr.f32.mxu1 %v10356_v3  ;;  %v4061_v26 = vadd.f32 %v10365_v33, %v8658_v15 }
0x1411   :  { %5319 = vmatprep.subr.mxu0 %v10358_v45  ;;  %5390 = vmatprep.subr.mxu1 %v10359_v52 }
0x14b0   :  { %v5041_v35 = vpop.f32.mrf.mxu0  ;;  %v5112_v8 = vpop.f32.mrf.mxu1 }
0x14b1   :  { %v5117_v36 = vadd.f32 %v5041_v35, %v3946_v19  ;;  %v5119_v3 = vadd.f32 %v5112_v8, %v4059_v40 }
0x14b2   :  { %v5043_v50 = vpop.f32.mrf.mxu0  ;;  %v5114_v52 = vpop.f32.mrf.mxu1 }
0x14b3   :  { %v5121_v53 = vmul.f32 0.5, %v5117_v36  ;;  %v5118_v7 = vadd.f32 %v5043_v50, %v3948_v9  ;;  %v5120_v0 = vadd.f32 %v5114_v52, %v4061_v26 }
0x14b5   :  { %5903 = vtanh.f32 %v5121_v53  ;;  %v5125_v45 = vmul.f32 0.5, %v5118_v7  ;;  %v5130_v42 = vmul.f32 0.5, %v5120_v0 }
0x14b7   :  { %5905 = vtanh.f32 %v5125_v45 }
0x14b8   :  { %5907 = vtanh.f32 %v5119_v3 }
0x14b9   :  { %5909 = vtanh.f32 %v5130_v42 }
0x14c2   :  { %v5904_v56 = vpop.eup %5903 }
0x14c3   :  { %v5123_v19 = vadd.f32 1.0, %v5904_v56 }
0x14c4   :  { %v5906_v35 = vpop.eup %5905 }
0x14c5   :  { %v5124_v25 = vmul.f32 0.5, %v5123_v19  ;;  %v5127_v5 = vadd.f32 1.0, %v5906_v35  ;;  %v5908_v12 = vpop.eup %5907 }
0x14c6   :  { %v5910_v8 = vpop.eup %5909 }
0x14c7   :  { %v5128_v36 = vmul.f32 0.5, %v5127_v5  ;;  %v5135_v9 = vmul.f32 %v5908_v12, %v5124_v25  ;;  %v5132_v3 = vadd.f32 1.0, %v5910_v8 }
0x14c9   :  { %v5134_v40 = vmul.f32 %v5128_v36, %v9101_v58  ;;  %v5133_v53 = vmul.f32 0.5, %v5132_v3 }
0x14cb   :  { %v9179_v7 = vadd.f32 %v5135_v9, %v5134_v40 }
0x14cd   :  { %5911 = vtanh.f32 %v9179_v7 }
0x14da   :  { %v5912_v26 = vpop.eup %5911 }
0x14db   :  { %v5138_v0 = vmul.f32 %v5912_v26, %v5133_v53  ;;  %v5501_v53 = vld [vmem:[%s9343_s5 + $0x78] sm:$0xff]  ;;  %v5499_v26 = vld [vmem:[%s9343_s5 + $0x68] sm:$0xff] }
0x14dd   :  { %5212 = vmatmul.mubr.f32.vlgmr.msra.gmra.mxu0 %v5138_v0  ;;  %5283 = vmatmul.mubr.f32.vlgmr.msra.gmra.mxu1 %v5138_v0  ;;  %v5498_v0 = vld [vmem:[%s9343_s5 + $0x60] sm:$0xff] }
0x14de   :  { %5320 = vmatpush1.msra.mxu0 %v8820_v59  ;;  %5391 = vmatpush1.msra.mxu1 %v8823_v55  ;;  %v10366_v59 = vld [vmem:[#allocation40_spill] sm:$0xff]  ;;  %v10367_v55 = vld [vmem:[#allocation39_spill] sm:$0xff] }
0x14df   :  { %5321 = vmatprep.subr.mxu0 %v8908_v48  ;;  %5392 = vmatprep.subr.mxu1 %v8911_v47  ;;  %v10368_v48 = vld [vmem:[#allocation41_spill] sm:$0xff]  ;;  %v10369_v47 = vld [vmem:[#allocation30_spill] sm:$0xff] }
0x14e0   :  { %5322 = vmatpush1.msra.mxu0 %v8914_v14  ;;  %5393 = vmatpush1.msra.mxu1 %v8917_v4  ;;  %v10370_v14 = vld [vmem:[#allocation47_spill] sm:$0xff]  ;;  %v10371_v4 = vld [vmem:[#allocation72_spill] sm:$0xff] }
0x14e1   :  { %5323 = vmatprep.subr.mxu0 %v8920_v62  ;;  %5394 = vmatprep.subr.mxu1 %v8923_v38  ;;  %v10372_v62 = vld [vmem:[#allocation48_spill] sm:$0xff]  ;;  %v10373_v38 = vld [vmem:[#allocation49_spill] sm:$0xff] }
0x14e2   :  { %5324 = vmatpush1.msra.mxu0 %v8926_v54  ;;  %5395 = vmatpush1.msra.mxu1 %v8929_v1  ;;  %v10374_v54 = vld [vmem:[#allocation21_spill] sm:$0xff]  ;;  %v10375_v1 = vld [vmem:[#allocation22_spill] sm:$0xff] }
0x14e3   :  { %5325 = vmatprep.subr.mxu0 %v8932_v63  ;;  %5396 = vmatprep.subr.mxu1 %v8935_v11  ;;  %v10376_v63 = vld [vmem:[#allocation61_spill] sm:$0xff]  ;;  %v10377_v11 = vld [vmem:[#allocation19_spill] sm:$0xff] }
0x14e4   :  { %5326 = vmatpush1.msra.mxu0 %v8938_v57  ;;  %5397 = vmatpush1.msra.mxu1 %v8941_v17  ;;  %v10378_v57 = vld [vmem:[#allocation50_spill] sm:$0xff]  ;;  %v10379_v17 = vld [vmem:[#allocation51_spill] sm:$0xff] }
0x14e5   :  { %5327 = vmatprep.subr.mxu0 %v8944_v18  ;;  %5398 = vmatprep.subr.mxu1 %v8947_v22  ;;  %v10380_v18 = vld [vmem:[#allocation52_spill] sm:$0xff]  ;;  %v10381_v22 = vld [vmem:[#allocation53_spill] sm:$0xff] }
0x14e6   :  { %5328 = vmatpush1.msra.mxu0 %v8950_v23  ;;  %5399 = vmatpush1.msra.mxu1 %v8953_v24  ;;  %v10382_v23 = vld [vmem:[#allocation31_spill] sm:$0xff]  ;;  %v10383_v24 = vld [vmem:[#allocation33_spill] sm:$0xff] }
0x14e7   :  { %5329 = vmatprep.subr.mxu0 %v8956_v29  ;;  %5400 = vmatprep.subr.mxu1 %v8959_v30  ;;  %v10384_v29 = vld [vmem:[#allocation32_spill] sm:$0xff]  ;;  %v10385_v30 = vld [vmem:[#allocation34_spill] sm:$0xff] }
0x14e8   :  { %5330 = vmatpush1.msra.mxu0 %v8962_v31  ;;  %5401 = vmatpush1.msra.mxu1 %v8965_v32  ;;  %v10386_v31 = vmov 0.0   ;;  %v10387_v32 = vld [vmem:[#allocation35_spill] sm:$0xff] }
0x14e9   :  { %5331 = vmatprep.subr.mxu0 %v8968_v34  ;;  %5402 = vmatprep.subr.mxu1 %v8971_v37  ;;  %v10388_v34 = vld [vmem:[#allocation25_spill] sm:$0xff]  ;;  %v10389_v37 = vld [vmem:[#allocation42_spill] sm:$0xff] }
0x14ea   :  { %5332 = vmatpush1.msra.mxu0 %v8974_v6  ;;  %5403 = vmatpush1.msra.mxu1 %v8977_v51  ;;  %v3952_v6 = vadd.f32 %v10389_v37, %v10388_v34 }
0x14eb   :  { %5333 = vmatprep.subr.mxu0 %v8980_v21  ;;  %5404 = vmatprep.subr.mxu1 %v8983_v43  ;;  %v10390_v21 = vld [vmem:[#allocation68_spill] sm:$0xff]  ;;  %v10391_v43 = vld [vmem:[#allocation74_spill] sm:$0xff] }
0x14ec   :  { %5334 = vmatpush1.msra.mxu0 %v8986_v2  ;;  %5405 = vmatpush1.msra.mxu1 %v8989_v27  ;;  %v3954_v2 = vadd.f32 %v10391_v43, %v10390_v21 }
0x14ed   :  { %5335 = vmatprep.subr.mxu0 %v8992_v49  ;;  %5406 = vmatprep.subr.mxu1 %v8995_v28 }
0x14ee   :  { %5336 = vmatpush1.msra.mxu0 %v8998_v20  ;;  %5407 = vmatpush1.msra.mxu1 %v9001_v39  ;;  %v10392_v20 = vld [vmem:[#allocation16_spill] sm:$0xff] }
0x14ef   :  { %5337 = vmatprep.subr.mxu0 %v9004_v10  ;;  %5408 = vmatprep.subr.mxu1 %v9007_v60  ;;  %v4065_v39 = vadd.f32 %v10392_v20, %v10250_v41 }
0x14f0   :  { %5338 = vmatpush1.msra.mxu0 %v9010_v46  ;;  %5409 = vmatpush1.msra.mxu1 %v9013_v16 }
0x14f1   :  { %5339 = vmatprep.subr.mxu0 %v9016_v44  ;;  %5410 = vmatprep.subr.mxu1 %v9019_v13  ;;  %v10393_v13 = vld [vmem:[#allocation23_spill] sm:$0xff] }
0x14f2   :  { %5340 = vmatpush1.msra.mxu0 %v9022_v61  ;;  %5411 = vmatpush1.msra.mxu1 %v10366_v59  ;;  %v4067_v61 = vadd.f32 %v10393_v13, %v8658_v15  ;;  %v5497_v59 = vld [vmem:[%s9343_s5 + $0x58] sm:$0xff] }
0x14f3   :  { %5341 = vmatprep.subr.mxu0 %v10367_v55  ;;  %5412 = vmatprep.subr.mxu1 %v10368_v48  ;;  %v5496_v55 = vld [vmem:[%s9343_s5 + $0x50] sm:$0xff]  ;;  %v5495_v48 = vld [vmem:[%s9343_s5 + $0x48] sm:$0xff] }
0x14f4   :  { %5342 = vmatpush1.msra.mxu0 %v10369_v47  ;;  %5413 = vmatpush1.msra.mxu1 %v10370_v14  ;;  %v5494_v47 = vld [vmem:[%s9343_s5 + $0x40] sm:$0xff]  ;;  %v5493_v14 = vld [vmem:[%s9343_s5 + $0x38] sm:$0xff] }
0x14f5   :  { %5343 = vmatprep.subr.mxu0 %v10371_v4  ;;  %5414 = vmatprep.subr.mxu1 %v10372_v62  ;;  %v5492_v4 = vld [vmem:[%s9343_s5 + $0x30] sm:$0xff]  ;;  %v5491_v62 = vld [vmem:[%s9343_s5 + $0x28] sm:$0xff] }
0x14f6   :  { %5344 = vmatpush1.msra.mxu0 %v10373_v38  ;;  %5415 = vmatpush1.msra.mxu1 %v10374_v54  ;;  %v5490_v38 = vld [vmem:[%s9343_s5 + $0x20] sm:$0xff]  ;;  %v5489_v54 = vld [vmem:[%s9343_s5 + $0x18] sm:$0xff] }
0x14f7   :  { %5345 = vmatprep.subr.mxu0 %v10375_v1  ;;  %5416 = vmatprep.subr.mxu1 %v10376_v63  ;;  %v5488_v1 = vld [vmem:[%s9343_s5 + $0x10] sm:$0xff]  ;;  %v5487_v63 = vld [vmem:[%s9343_s5 + $0x8] sm:$0xff] }
0x14f8   :  { %5346 = vmatpush1.msra.mxu0 %v10377_v11  ;;  %5417 = vmatpush1.msra.mxu1 %v10378_v57  ;;  %v5486_v11 = vld [vmem:[%s9343_s5] sm:$0xff]  ;;  %v10394_v57 = vld [vmem:[#allocation26_spill] sm:$0xff] }
0x14f9   :  { %5347 = vmatprep.subr.mxu0 %v10379_v17  ;;  %5418 = vmatprep.subr.mxu1 %v10380_v18  ;;  %v3958_v17 = vadd.f32 %v10394_v57, %v10388_v34  ;;  %v10397_v34 = vld [vmem:[#allocation67_spill] sm:$0xff] }
0x14fa   :  { %5348 = vmatpush1.msra.mxu0 %v10381_v22  ;;  %5419 = vmatpush1.msra.mxu1 %v10382_v23  ;;  %v10395_v22 = vld [vmem:[#allocation71_spill] sm:$0xff] }
0x14fb   :  { %5349 = vmatprep.subr.mxu0 %v10383_v24  ;;  %5420 = vmatprep.subr.mxu1 %v10384_v29  ;;  %v3960_v23 = vadd.f32 %v10395_v22, %v10390_v21 }
0x14fc   :  { %5350 = vmatpush1.msra.mxu0 %v10385_v30  ;;  %5383 = vmatprep.mubr.f32.mxu0 %v10386_v31 }
0x14fd   :  { %5421 = vmatpush1.msra.mxu1 %v10387_v32  ;;  %5454 = vmatprep.mubr.f32.mxu1 %v10386_v31  ;;  %v10396_v32 = vld [vmem:[#allocation59_spill] sm:$0xff] }
0x14fe   :  { %5648 = vmatprep.subr.mxu0 %v10386_v31  ;;  %v4071_v37 = vadd.f32 %v10396_v32, %v10250_v41 }
0x159d   :  { %v5213_v51 = vpop.f32.mrf.mxu0  ;;  %v5284_v49 = vpop.f32.mrf.mxu1 }
0x159e   :  { %v5289_v27 = vadd.f32 %v5213_v51, %v3952_v6  ;;  %v5291_v46 = vadd.f32 %v5284_v49, %v4065_v39 }
0x159f   :  { %v5215_v28 = vpop.f32.mrf.mxu0  ;;  %v5286_v44 = vpop.f32.mrf.mxu1 }
0x15a0   :  { %v5293_v10 = vmul.f32 0.5, %v5289_v27  ;;  %v5290_v60 = vadd.f32 %v5215_v28, %v3954_v2  ;;  %v5292_v58 = vadd.f32 %v5286_v44, %v4067_v61  ;;  %v4073_v27 = vadd.f32 %v10397_v34, %v8658_v15 }
0x15a2   :  { %5913 = vtanh.f32 %v5293_v10  ;;  %v5297_v16 = vmul.f32 0.5, %v5290_v60  ;;  %v5302_v5 = vmul.f32 0.5, %v5292_v58 }
0x15a4   :  { %5915 = vtanh.f32 %v5297_v16 }
0x15a5   :  { %5917 = vtanh.f32 %v5291_v46 }
0x15a6   :  { %5919 = vtanh.f32 %v5302_v5 }
0x15af   :  { %v5914_v42 = vpop.eup %5913 }
0x15b0   :  { %v5295_v25 = vadd.f32 1.0, %v5914_v42 }
0x15b1   :  { %v5916_v50 = vpop.eup %5915 }
0x15b2   :  { %v5296_v45 = vmul.f32 0.5, %v5295_v25  ;;  %v5299_v52 = vadd.f32 1.0, %v5916_v50  ;;  %v5918_v33 = vpop.eup %5917  ;;  %v5630_v25 = vld [vmem:[%s9344_s6] ss:$0 sm:$0xff]  ;;  %s6226_s6 = smov [#allocation12]  }
0x15b3   :  { %v5920_v36 = vpop.eup %5919  ;;  %s5618_s3 = sshll.u32 %s6226_s6, 4  ;;  %s5619_s3 = int_to_ptr.vmem [resolvable:$true] %s5618_s3 }
0x15b4   :  { %v5300_v56 = vmul.f32 0.5, %v5299_v52  ;;  %v5307_v19 = vmul.f32 %v5918_v33, %v5296_v45  ;;  %v5304_v9 = vadd.f32 1.0, %v5920_v36  ;;  %s6191_s17 = scalar_lea.vmem %s5619_s3, 128  ;;  %p6196_p2 = scmp.lt.s32.totalorder %s5619_s3, %s5619_s3 }
0x15b5   :  { %p6192_p1 = scmp.ne.s32.totalorder %s5619_s3, %s6191_s17  ;;  %p6197_p3 = scmp.lt.s32.totalorder %s6191_s17, %s6191_s17 }
0x15b6   :  { %v5306_v35 = vmul.f32 %v5300_v56, %v9179_v7  ;;  %v5305_v40 = vmul.f32 0.5, %v5304_v9  ;;  %v5500_v7 = vld [vmem:[%s9343_s5 + $0x70] sm:$0xff] }
0x15b7   :  { %p6198_p4 = por %p6197_p3, %p6196_p2 }
0x15b8   :  { %v9256_v12 = vadd.f32 %v5307_v19, %v5306_v35 }
0x15b9   :  { %p6199_p5 = pnand %p6198_p4, %p6192_p1 }
0x15ba   :  { %5921 = vtanh.f32 %v9256_v12 }
0x15c7   :  { %v5922_v8 = vpop.eup %5921 }
0x15c8   :  { %v5310_v3 = vmul.f32 %v5922_v8, %v5305_v40 }
0x15ca   :  { %5384 = vmatmul.mubr.f32.vlgmr.msra.gmra.mxu0 %v5310_v3  ;;  %5455 = vmatmul.mubr.f32.vlgmr.msra.gmra.mxu1 %v5310_v3 }
0x15cb   :  { %5649 = vmatpush3.msra.mxu0 %v5501_v53  ;;  %5680 = vmatprep.mubr.msk.f32.mxu0 %vm6223_vm0, %v10386_v31 }
0x15cc   :  { %5650 = vmatprep.subr.mxu0 %v10386_v31 }
0x15cd   :  { %5651 = vmatpush3.msra.mxu0 %v5500_v7 }
0x15ce   :  { %5652 = vmatprep.subr.mxu0 %v10386_v31 }
0x15cf   :  { %5653 = vmatpush3.msra.mxu0 %v5499_v26 }
0x15d0   :  { %5654 = vmatprep.subr.mxu0 %v10386_v31 }
0x15d1   :  { %5655 = vmatpush3.msra.mxu0 %v5498_v0 }
0x15d2   :  { %5656 = vmatprep.subr.mxu0 %v10386_v31 }
0x15d3   :  { %5657 = vmatpush3.msra.mxu0 %v5497_v59 }
0x15d4   :  { %5658 = vmatprep.subr.mxu0 %v10386_v31 }
0x15d5   :  { %5659 = vmatpush3.msra.mxu0 %v5496_v55 }
0x15d6   :  { %5660 = vmatprep.subr.mxu0 %v10386_v31 }
0x15d7   :  { %5661 = vmatpush3.msra.mxu0 %v5495_v48 }
0x15d8   :  { %5662 = vmatprep.subr.mxu0 %v10386_v31 }
0x15d9   :  { %5663 = vmatpush3.msra.mxu0 %v5494_v47 }
0x15da   :  { %5664 = vmatprep.subr.mxu0 %v10386_v31 }
0x15db   :  { %5665 = vmatpush3.msra.mxu0 %v5493_v14 }
0x15dc   :  { %5666 = vmatprep.subr.mxu0 %v10386_v31 }
0x15dd   :  { %5667 = vmatpush3.msra.mxu0 %v5492_v4 }
0x15de   :  { %5668 = vmatprep.subr.mxu0 %v10386_v31 }
0x15df   :  { %5669 = vmatpush3.msra.mxu0 %v5491_v62 }
0x15e0   :  { %5670 = vmatprep.subr.mxu0 %v10386_v31 }
0x15e1   :  { %5671 = vmatpush3.msra.mxu0 %v5490_v38 }
0x15e2   :  { %5672 = vmatprep.subr.mxu0 %v10386_v31 }
0x15e3   :  { %5673 = vmatpush3.msra.mxu0 %v5489_v54 }
0x15e4   :  { %5674 = vmatprep.subr.mxu0 %v10386_v31 }
0x15e5   :  { %5675 = vmatpush3.msra.mxu0 %v5488_v1 }
0x15e6   :  { %5676 = vmatprep.subr.mxu0 %v10386_v31 }
0x15e7   :  { %5677 = vmatpush3.msra.mxu0 %v5487_v63 }
0x15e8   :  { %5678 = vmatprep.subr.mxu0 %v10386_v31 }
0x15e9   :  { %5679 = vmatpush3.msra.mxu0 %v5486_v11 }
0x168a   :  { %v5385_v18 = vpop.f32.mrf.mxu0  ;;  %v5456_v29 = vpop.f32.mrf.mxu1 }
0x168b   :  { %v5461_v24 = vadd.f32 %v5385_v18, %v3958_v17  ;;  %v5463_v43 = vadd.f32 %v5456_v29, %v4071_v37 }
0x168c   :  { %v5387_v30 = vpop.f32.mrf.mxu0  ;;  %v5458_v31 = vpop.f32.mrf.mxu1 }
0x168d   :  { %v5465_v6 = vmul.f32 0.5, %v5461_v24  ;;  %v5462_v51 = vadd.f32 %v5387_v30, %v3960_v23  ;;  %v5464_v49 = vadd.f32 %v5458_v31, %v4073_v27 }
0x168f   :  { %5923 = vtanh.f32 %v5465_v6  ;;  %v5469_v2 = vmul.f32 0.5, %v5462_v51  ;;  %v5474_v28 = vmul.f32 0.5, %v5464_v49 }
0x1691   :  { %5925 = vtanh.f32 %v5469_v2 }
0x1692   :  { %5927 = vtanh.f32 %v5463_v43 }
0x1693   :  { %5929 = vtanh.f32 %v5474_v28 }
0x169c   :  { %v5924_v21 = vpop.eup %5923 }
0x169d   :  { %v5467_v20 = vadd.f32 1.0, %v5924_v21 }
0x169e   :  { %v5926_v39 = vpop.eup %5925 }
0x169f   :  { %v5468_v10 = vmul.f32 0.5, %v5467_v20  ;;  %v5471_v60 = vadd.f32 1.0, %v5926_v39  ;;  %v5928_v41 = vpop.eup %5927 }
0x16a0   :  { %v5930_v61 = vpop.eup %5929 }
0x16a1   :  { %v5472_v46 = vmul.f32 0.5, %v5471_v60  ;;  %v5479_v16 = vmul.f32 %v5928_v41, %v5468_v10  ;;  %v5476_v58 = vadd.f32 1.0, %v5930_v61 }
0x16a3   :  { %v5478_v44 = vmul.f32 %v5472_v46, %v9256_v12  ;;  %v5477_v5 = vmul.f32 0.5, %v5476_v58 }
0x16a5   :  { %v5480_v13 = vadd.f32 %v5479_v16, %v5478_v44 }
0x16a7   :  { %5931 = vtanh.f32 %v5480_v13 }
0x16b4   :  { %v5932_v42 = vpop.eup %5931 }
0x16b5   :  { %v5482_v15 = vmul.f32 %v5932_v42, %v5477_v5 }
0x16b7   :  { %5681 = vmatmul.mubr.f32.vlgmr.msra.gmra.mxu0 %v5482_v15 }
0x1777   :  { %v5575_v50 = vpop.f32.mrf.mxu0 }
0x1778   :  { %v5576_v45 = vadd.f32 %v5630_v25, %v5575_v50 }
0x1779   :  { %v5682_v52 = vpop.f32.mrf.mxu0 }
0x177a   :  { %5580 = vrot.lane.b32.xlu0 %v5576_v45, %s6224_s16 }
0x17ec   :  { %v5581_v33 = vpop.permute.xlu0 %5580 }
0x17ed   :  { %v5583_v56 = vmax.f32 %v5576_v45, %v5581_v33 }
0x17ef   :  { %5588 = vrot.lane.b32.xlu0 %v5583_v56, %s6225_s1  ;;  %v5584_v9 = vsub.f32 %v5576_v45, %v5583_v56 }
0x17f1   :  { %v5585_v40 = vmul.f32 1.442695, %v5584_v9 }
0x1861   :  { %v5589_v19 = vpop.permute.xlu0 %5588 }
0x1862   :  { %v5591_v35 = vsub.f32 %v5576_v45, %v5589_v19 }
0x1864   :  { %v5592_v12 = vmul.f32 1.442695, %v5591_v35 }
0x1866   :  { %5933 = vpow2.f32 %v5592_v12 }
0x1867   :  { %5935 = vpow2.f32 %v5585_v40 }
0x1873   :  { %v5934_v36 = vpop.eup %5933 }
0x1874   :  { %5595 = vrot.lane.b32.xlu1 %v5934_v36, %s6224_s16  ;;  %v5936_v8 = vpop.eup %5935 }
0x18e6   :  { %v5596_v3 = vpop.permute.xlu1 %5595 }
0x18e7   :  { %v5598_v53 = vadd.f32 %v5936_v8, %v5596_v3 }
0x18e9   :  { %5937 = vlog2.f32 %v5598_v53 }
0x18f6   :  { %v5938_v7 = vpop.eup %5937 }
0x18f7   :  { %v5600_v26 = vmul.f32 0.6931472, %v5938_v7 }
0x18f9   :  { %v5601_v0 = vadd.f32 %v5600_v26, %v5583_v56 }
0x18fb   :  { %5606 = vrot.lane.b32.xlu1 %v5601_v0, %s6225_s1  ;;  %v5602_v59 = vsub.f32 %v5576_v45, %v5601_v0 }
0x18fd   :  { %5604 = vst.msk [vmem:[#allocation12] sm:$0xff] %vm5603_vm1, %v5602_v59 }
0x196d   :  { %v5607_v55 = vpop.permute.xlu1 %5606 }
0x196e   :  { %v5609_v48 = vsub.f32 %v5576_v45, %v5607_v55 }
0x1970   :  { %5611 = vst.msk [vmem:[#allocation12] sm:$0xff] %vm5610_vm2, %v5609_v48 }
0x1971   :  { %6202 = shalt.err (!%p6199_p5)
}
0x1972   :  { %5621 = dma.vmem_to_hbm [thread:$0]  %s5619_s3, 128, %s9345_s7, [#allocation8]  }
0x1973   :  { %6215 = dma.done.wait [#allocation8], 128  }
0x1974   :  { %6216 = vsyncadd [#allocation8], 4294967168 }
0x1975   :  { %5625 = vsyncpa [#allocation7], 1 }
0x1976   :  { %5626 = vsyncpa [#allocation10], 1 }
0x1977   :  { %5627 = vsyncpa [#allocation8], 1 }

</bundles_post_ra>
